<compile_context>
chip_gen: v7x
topology: tpu7x:2x2x1
jax: 0.10.0
libtpu: 0.0.40
codegen_flags: <defaults>
</compile_context>

<pallas_src>
import jax
import jax.numpy as jnp
from jax import lax
from jax.experimental import pallas as pl
from jax.experimental.pallas import tpu as pltpu


def _rup(x, m):
    return ((x + m - 1) // m) * m


def _tpu_vmem_bytes():
    try:
        return int(pltpu.get_tpu_info().vmem_capacity_bytes)
    except Exception:
        return 64 * 1024 * 1024          # assume the smallest (v7x-like) if unknown


_BIG_VMEM = _tpu_vmem_bytes() >= 100 * 1024 * 1024   # v5e/v6e: 128 MiB, v7x: 64 MiB
_FC_WEIGHT_BUDGET = (40 if _BIG_VMEM else 16) * 1024 * 1024
_FC_VMEM_LIMIT = (96 if _BIG_VMEM else 32) * 1024 * 1024
_PREFER_EVEN_PARALLEL = not _BIG_VMEM    # v7x: 2 TCs share the "parallel" grid axis
_CONV_VMEM_LIMIT = 32 * 1024 * 1024


# ------------- fused conv3x3 (pad=1) + bias + ReLU + maxpool2x2 (im2col form) -------------
def _conv_relu_pool_kernel(xq_ref, w_ref, b_ref, o_ref):
    # xq_ref: (1, 4, TM, 9*Cin) bf16   quadrant-separated im2col rows
    # w_ref : (9*Cin, Cout)     bf16   conv weight, (dy, dx, cin)-major K
    # b_ref : (1, Cout)         f32
    # o_ref : (1, TM, Cout)     f32    pooled+ReLU'd output rows
    w = w_ref[...]

    def qdot(q):
        return jnp.dot(xq_ref[0, q], w, preferred_element_type=jnp.float32)

    m = jnp.maximum(jnp.maximum(qdot(0), qdot(1)),
                    jnp.maximum(qdot(2), qdot(3)))        # 2x2 max pool
    o_ref[0] = jnp.maximum(m + b_ref[...], 0.0)           # bias + ReLU (commutes w/ max)


def _conv_m_tile(m_total, cap=1024):
    """Largest tile dividing m_total that is a multiple of 16 and <= cap
    (falls back to the full extent, which is always a legal block)."""
    if m_total <= cap:
        return m_total
    best = None
    for t in range(16, cap + 1, 16):
        if m_total % t == 0:
            best = t
    return best if best is not None else m_total


def _im2col_quadrants(x):
    """x: (N, H, W, Cin) -> (N, 4, H2*W2, 9*Cin) bf16.
    Quadrant q = 2*ry + rx is the position inside each 2x2 pool window; channel
    index is (dy*3 + dx)*Cin + c, matching the (3,3,Cin,Cout) weight reshape."""
    N, H, W, Cin = x.shape
    H2, W2 = H // 2, W // 2
    xp = jnp.pad(x.astype(jnp.bfloat16), ((0, 0), (1, 1), (1, 1), (0, 0)))
    # TODO(synk): the zero-pad + patch extraction is done with XLA strided slices
    # here (extra ~9x conv-input HBM traffic, negligible vs the FC weights); it
    # could be folded into the kernel with halo BlockSpecs to save that traffic.
    quads = []
    for ry in (0, 1):
        for rx in (0, 1):
            taps = []
            for dy in range(3):
                for dx in range(3):
                    taps.append(
                        xp[:, ry + dy:ry + dy + 2 * H2 - 1:2,
                           rx + dx:rx + dx + 2 * W2 - 1:2, :])   # (N, H2, W2, Cin)
            quads.append(jnp.concatenate(taps, axis=-1))          # (N, H2, W2, 9*Cin)
    xq = jnp.stack(quads, axis=1)                                 # (N, 4, H2, W2, 9*Cin)
    return xq.reshape(N, 4, H2 * W2, 9 * Cin)


def conv3x3_relu_pool(x, w9, b):
    # x: (N, H, W, Cin) -> (N, H//2, W//2, Cout)
    N, H, W, Cin = x.shape
    K9, Cout = w9.shape
    H2, W2 = H // 2, W // 2
    M = H2 * W2
    xq = _im2col_quadrants(x)                 # (N, 4, M, 9*Cin) bf16
    TM = _conv_m_tile(M)

    flops = 2 * N * 4 * M * K9 * Cout
    bytes_accessed = xq.size * 2 + w9.size * 2 + N * M * Cout * 4

    out = pl.pallas_call(
        _conv_relu_pool_kernel,
        out_shape=jax.ShapeDtypeStruct((N, M, Cout), jnp.float32),
        grid_spec=pltpu.PrefetchScalarGridSpec(
            num_scalar_prefetch=0,
            grid=(N, M // TM),
            in_specs=[
                pl.BlockSpec((1, 4, TM, K9), lambda n, m: (n, 0, m, 0)),
                pl.BlockSpec((K9, Cout), lambda n, m: (0, 0)),
                pl.BlockSpec((1, Cout), lambda n, m: (0, 0)),
            ],
            out_specs=pl.BlockSpec((1, TM, Cout), lambda n, m: (n, m, 0))),
        compiler_params=pltpu.CompilerParams(
            dimension_semantics=("parallel", "parallel"),
            vmem_limit_bytes=_CONV_VMEM_LIMIT),
        cost_estimate=pl.CostEstimate(flops=flops, transcendentals=0,
                                      bytes_accessed=bytes_accessed),
    )(xq, w9, b)
    return out.reshape(N, H2, W2, Cout)


# ------------------- fully connected (int8 weights) + activation, tiled -------------------
def _make_fc_kernel(act):
    def fc_kernel(x_ref, w_ref, s_ref, b_ref, o_ref, acc_ref):
        k = pl.program_id(1)

        @pl.when(k == 0)
        def _():
            acc_ref[...] = jnp.zeros_like(acc_ref)

        # int8 weight tile -> bf16 for the MXU; per-column scale applied in the epilogue.
        acc_ref[...] += jnp.dot(x_ref[...], w_ref[...].astype(jnp.bfloat16),
                                preferred_element_type=jnp.float32)

        @pl.when(k == pl.num_programs(1) - 1)
        def _():
            z = acc_ref[...] * s_ref[...] + b_ref[...]
            if act == "relu":
                z = jnp.maximum(z, 0.0)
            else:  # numerically stable sigmoid
                e = jnp.exp(-jnp.abs(z))
                z = jnp.where(z >= 0, 1.0 / (1.0 + e), e / (1.0 + e))
            o_ref[...] = z.astype(o_ref.dtype)

    return fc_kernel


def _fc_tiles(K, Np, itemsize, weight_budget, prefer_even_j):
    """Largest (tk, tn) with tk|K, tn|Np (multiples of 128, <=8192) whose
    double-buffered weight block fits the budget; optionally prefer an even
    Np//tn so the 'parallel' grid axis balances across v7x's 2 TensorCores."""
    def cands(d):
        return [t for t in range(128, min(d, 8192) + 1, 128) if d % t == 0]

    best, best_key = (128, 128), None
    for tn in cands(Np):
        for tk in cands(K):
            if 2 * tk * tn * itemsize > weight_budget:
                continue
            area = tk * tn
            j_even = (Np // tn) % 2 == 0
            eff = area if (j_even or not prefer_even_j) else area // 2
            key = (eff, j_even, area, tn, tk)
            if best_key is None or key > best_key:
                best_key, best = key, (tk, tn)
    return best


def linear_act(x, w, s, b, act):
    # x: (M, K) bf16, w: (K, Np) int8, s/b: (1, Np) f32 -> (M, Np) f32
    M, K = x.shape
    _, Np = w.shape
    tk, tn = _fc_tiles(K, Np, w.dtype.itemsize, _FC_WEIGHT_BUDGET, _PREFER_EVEN_PARALLEL)
    flops = 2 * M * K * Np
    bytes_accessed = M * K * 2 + K * Np * w.dtype.itemsize + (2 + M) * Np * 4
    return pl.pallas_call(
        _make_fc_kernel(act),
        out_shape=jax.ShapeDtypeStruct((M, Np), jnp.float32),
        grid_spec=pltpu.PrefetchScalarGridSpec(
            num_scalar_prefetch=0,
            grid=(Np // tn, K // tk),
            in_specs=[pl.BlockSpec((M, tk), lambda j, k: (0, k)),
                      pl.BlockSpec((tk, tn), lambda j, k: (k, j)),
                      pl.BlockSpec((1, tn), lambda j, k: (0, j)),
                      pl.BlockSpec((1, tn), lambda j, k: (0, j))],
            out_specs=pl.BlockSpec((M, tn), lambda j, k: (0, j)),
            scratch_shapes=[pltpu.VMEM((M, tn), jnp.float32)]),
        compiler_params=pltpu.CompilerParams(
            dimension_semantics=("parallel", "arbitrary"),
            vmem_limit_bytes=_FC_VMEM_LIMIT),
        cost_estimate=pl.CostEstimate(
            flops=flops,
            transcendentals=M * Np if act == "sigmoid" else 0,
            bytes_accessed=bytes_accessed),
    )(x, w, s, b)


# ---------------------------------------- parameters ----------------------------------------
def model_dims(img_size):
    """AdamsCNN dimensions; img_size=224 gives the exact original FC stack
    25088 -> 12544 -> 3136 -> 392 -> 49 -> 1."""
    assert img_size % 16 == 0
    feat = 128 * (img_size // 16) ** 2
    assert feat // 512 >= 1
    conv_dims = [(3, 16), (16, 32), (32, 64), (64, 128)]
    fc_dims = [feat, feat // 2, feat // 8, feat // 64, feat // 512, 1]
    return conv_dims, fc_dims


def init_params(key, conv_dims, fc_dims):
    p = {}
    for i, (cin, cout) in enumerate(conv_dims, 1):
        key, k1, k2 = jax.random.split(key, 3)
        w = jax.random.normal(k1, (cout, cin, 3, 3), jnp.float32) / jnp.sqrt(9.0 * cin)
        bvec = jax.random.normal(k2, (cout,), jnp.float32) * 0.01
        w_hwio = jnp.transpose(w, (2, 3, 1, 0))                     # OIHW -> HWIO
        p[f"conv{i}_w"] = w_hwio.reshape(9 * cin, cout).astype(jnp.bfloat16)
        p[f"conv{i}_b"] = bvec.reshape(1, cout)
    # FC weights: (in, out) == torch weight.T, zero-padded to multiples of 128,
    # then int8-quantised per output channel (dequant happens in-kernel).
    for i, (din, dout) in enumerate(zip(fc_dims[:-1], fc_dims[1:]), 1):
        key, k1, k2 = jax.random.split(key, 3)
        w = jax.random.normal(k1, (din, dout), jnp.float32) / jnp.sqrt(float(din))
        bvec = jax.random.normal(k2, (dout,), jnp.float32) * 0.01
        din_p, dout_p = _rup(din, 128), _rup(dout, 128)
        wp = jnp.pad(w, ((0, din_p - din), (0, dout_p - dout)))
        scale = jnp.maximum(jnp.max(jnp.abs(wp), axis=0), 1e-8) / 127.0
        p[f"fc{i}_w"] = jnp.clip(jnp.round(wp / scale), -127, 127).astype(jnp.int8)
        p[f"fc{i}_s"] = scale.reshape(1, dout_p).astype(jnp.float32)
        p[f"fc{i}_b"] = jnp.pad(bvec, (0, dout_p - dout)).reshape(1, dout_p)
    return p


# ------------------------------------------ forward -----------------------------------------
def adams_cnn_forward(x_nchw, p):
    x = jnp.transpose(x_nchw, (0, 2, 3, 1)).astype(jnp.float32)     # NCHW -> NHWC
    for i in range(1, 5):
        x = conv3x3_relu_pool(x, p[f"conv{i}_w"], p[f"conv{i}_b"])
    n = x.shape[0]
    # flatten in torch NCHW order: equivalent to x.view(-1, C*H*W)
    xf = jnp.transpose(x, (0, 3, 1, 2)).reshape(n, -1)
    kdim = xf.shape[1]
    m_pad, k_pad = _rup(n, 8), _rup(kdim, 128)
    h = jnp.pad(xf, ((0, m_pad - n), (0, k_pad - kdim))).astype(jnp.bfloat16)
    # TODO(synk): nn.Dropout(0.2) is identity in eval/inference mode; training-mode
    #             RNG dropout is not reproduced here.
    out = None
    for i, act in enumerate(["relu", "relu", "relu", "relu", "sigmoid"], 1):
        out = linear_act(h, p[f"fc{i}_w"], p[f"fc{i}_s"], p[f"fc{i}_b"], act)   # f32
        h = out.astype(jnp.bfloat16)
    return out[:n, :1]                                               # (N, 1)


if __name__ == "__main__":
    # Small demo config so the script finishes quickly: 64x64 input -> flatten
    # 2048, FC dims 2048/1024/256/32/4/1 with the same architecture.  Setting
    # IMG_SIZE = 224 reproduces the exact AdamsCNN sizes
    # (25088 -> 12544 -> 3136 -> 392 -> 49 -> 1) with the same kernels.
    IMG_SIZE = 64
    conv_dims, fc_dims = model_dims(IMG_SIZE)
    key = jax.random.PRNGKey(0)
    pkey, xkey = jax.random.split(key)
    params = init_params(pkey, conv_dims, fc_dims)
    x = jax.random.normal(xkey, (2, 3, IMG_SIZE, IMG_SIZE), jnp.float32)
    fwd = jax.jit(adams_cnn_forward)
    out = jax.block_until_ready(fwd(x, params))
    assert out.shape == (2, 1), out.shape
    assert bool(jnp.all(jnp.isfinite(out)))
    assert bool(jnp.all((out >= 0.0) & (out <= 1.0)))
    print("KERNEL_OK")
</pallas_src>

<mosaic_0001>
module attributes {stable_mosaic.version = 11 : i64} {
  func.func @_conv_relu_pool_kernel(%arg0: i32, %arg1: i32, %arg2: memref<1x4x1024x27xbf16, #tpu.memory_space<vmem>>, %arg3: memref<27x16xbf16, #tpu.memory_space<vmem>>, %arg4: memref<1x16xf32, #tpu.memory_space<vmem>>, %arg5: memref<1x1024x16xf32, #tpu.memory_space<vmem>>) attributes {dimension_semantics = [#tpu.dimension_semantics<parallel>, #tpu.dimension_semantics<parallel>], iteration_bounds = array<i64: 2, 1>, scalar_prefetch = 0 : i64, scratch_operands = 0 : i64, tpu.core_type = #tpu.core_type<tc>, window_params = [{transform_indices = @transform_0, window_bounds = array<i64: 1, 4, 1024, 27>}, {pipeline_mode = #tpu.pipeline_mode<synchronous>, transform_indices = @transform_1, window_bounds = array<i64: 27, 16>}, {pipeline_mode = #tpu.pipeline_mode<synchronous>, transform_indices = @transform_2, window_bounds = array<i64: 1, 16>}, {transform_indices = @transform_3, window_bounds = array<i64: 1, 1024, 16>}]} {
    %c0 = arith.constant 0 : index
    %c0_0 = arith.constant 0 : index
    %0 = vector.load %arg3[%c0, %c0_0] : memref<27x16xbf16, #tpu.memory_space<vmem>>, vector<27x16xbf16>
    %c0_1 = arith.constant 0 : index
    %c0_2 = arith.constant 0 : index
    %c0_3 = arith.constant 0 : index
    %c0_4 = arith.constant 0 : index
    %1 = vector.load %arg2[%c0_1, %c0_2, %c0_3, %c0_4] : memref<1x4x1024x27xbf16, #tpu.memory_space<vmem>>, vector<1x1x1024x27xbf16>
    %2 = vector.shape_cast %1 : vector<1x1x1024x27xbf16> to vector<1024x27xbf16>
    %cst = arith.constant dense<0.000000e+00> : vector<1024x16xf32>
    %3 = tpu.matmul %2, %0, %cst {dimension_numbers = #tpu.dot_dimension_numbers<[1], [0], [0], [1], [0, 0, 1, 1], [], []>} : vector<1024x27xbf16>, vector<27x16xbf16>, vector<1024x16xf32> -> vector<1024x16xf32>
    %c0_5 = arith.constant 0 : index
    %c1 = arith.constant 1 : index
    %c0_6 = arith.constant 0 : index
    %c0_7 = arith.constant 0 : index
    %4 = vector.load %arg2[%c0_5, %c1, %c0_6, %c0_7] : memref<1x4x1024x27xbf16, #tpu.memory_space<vmem>>, vector<1x1x1024x27xbf16>
    %5 = vector.shape_cast %4 : vector<1x1x1024x27xbf16> to vector<1024x27xbf16>
    %cst_8 = arith.constant dense<0.000000e+00> : vector<1024x16xf32>
    %6 = tpu.matmul %5, %0, %cst_8 {dimension_numbers = #tpu.dot_dimension_numbers<[1], [0], [0], [1], [0, 0, 1, 1], [], []>} : vector<1024x27xbf16>, vector<27x16xbf16>, vector<1024x16xf32> -> vector<1024x16xf32>
    %7 = arith.maximumf %3, %6 : vector<1024x16xf32>
    %c0_9 = arith.constant 0 : index
    %c2 = arith.constant 2 : index
    %c0_10 = arith.constant 0 : index
    %c0_11 = arith.constant 0 : index
    %8 = vector.load %arg2[%c0_9, %c2, %c0_10, %c0_11] : memref<1x4x1024x27xbf16, #tpu.memory_space<vmem>>, vector<1x1x1024x27xbf16>
    %9 = vector.shape_cast %8 : vector<1x1x1024x27xbf16> to vector<1024x27xbf16>
    %cst_12 = arith.constant dense<0.000000e+00> : vector<1024x16xf32>
    %10 = tpu.matmul %9, %0, %cst_12 {dimension_numbers = #tpu.dot_dimension_numbers<[1], [0], [0], [1], [0, 0, 1, 1], [], []>} : vector<1024x27xbf16>, vector<27x16xbf16>, vector<1024x16xf32> -> vector<1024x16xf32>
    %c0_13 = arith.constant 0 : index
    %c3 = arith.constant 3 : index
    %c0_14 = arith.constant 0 : index
    %c0_15 = arith.constant 0 : index
    %11 = vector.load %arg2[%c0_13, %c3, %c0_14, %c0_15] : memref<1x4x1024x27xbf16, #tpu.memory_space<vmem>>, vector<1x1x1024x27xbf16>
    %12 = vector.shape_cast %11 : vector<1x1x1024x27xbf16> to vector<1024x27xbf16>
    %cst_16 = arith.constant dense<0.000000e+00> : vector<1024x16xf32>
    %13 = tpu.matmul %12, %0, %cst_16 {dimension_numbers = #tpu.dot_dimension_numbers<[1], [0], [0], [1], [0, 0, 1, 1], [], []>} : vector<1024x27xbf16>, vector<27x16xbf16>, vector<1024x16xf32> -> vector<1024x16xf32>
    %14 = arith.maximumf %10, %13 : vector<1024x16xf32>
    %15 = arith.maximumf %7, %14 : vector<1024x16xf32>
    %c0_17 = arith.constant 0 : index
    %c0_18 = arith.constant 0 : index
    %16 = vector.load %arg4[%c0_17, %c0_18] : memref<1x16xf32, #tpu.memory_space<vmem>>, vector<1x16xf32>
    %17 = vector.broadcast %16 : vector<1x16xf32> to vector<1024x16xf32>
    %18 = arith.addf %15, %17 : vector<1024x16xf32>
    %cst_19 = arith.constant 0.000000e+00 : f32
    %19 = vector.broadcast %cst_19 : f32 to vector<1024x16xf32>
    %20 = arith.maximumf %18, %19 : vector<1024x16xf32>
    %c0_20 = arith.constant 0 : index
    %c0_21 = arith.constant 0 : index
    %c0_22 = arith.constant 0 : index
    %21 = vector.load %arg5[%c0_20, %c0_21, %c0_22] : memref<1x1024x16xf32, #tpu.memory_space<vmem>>, vector<1x1024x16xf32>
    %22 = vector.shape_cast %21 : vector<1x1024x16xf32> to vector<1024x16xf32>
    %23 = vector.shape_cast %20 : vector<1024x16xf32> to vector<1x1024x16xf32>
    tpu.vector_store %arg5[%c0_20, %c0_21, %c0_22], %23 {strides = array<i32>} : memref<1x1024x16xf32, #tpu.memory_space<vmem>>, vector<1x1024x16xf32>,
    return
  }
  func.func @transform_0(%arg0: i32, %arg1: i32) -> (i32, i32, i32, i32) {
    %c0_i32 = arith.constant 0 : i32
    %c0_i32_0 = arith.constant 0 : i32
    %c0_i32_1 = arith.constant 0 : i32
    return %arg0, %c0_i32, %arg1, %c0_i32_0 : i32, i32, i32, i32
  }
  func.func @transform_1(%arg0: i32, %arg1: i32) -> (i32, i32) {
    %c0_i32 = arith.constant 0 : i32
    %c0_i32_0 = arith.constant 0 : i32
    %c0_i32_1 = arith.constant 0 : i32
    return %c0_i32, %c0_i32_0 : i32, i32
  }
  func.func @transform_2(%arg0: i32, %arg1: i32) -> (i32, i32) {
    %c0_i32 = arith.constant 0 : i32
    %c0_i32_0 = arith.constant 0 : i32
    %c0_i32_1 = arith.constant 0 : i32
    return %c0_i32, %c0_i32_0 : i32, i32
  }
  func.func @transform_3(%arg0: i32, %arg1: i32) -> (i32, i32, i32) {
    %c0_i32 = arith.constant 0 : i32
    %c0_i32_0 = arith.constant 0 : i32
    return %arg0, %arg1, %c0_i32 : i32, i32, i32
  }
}

module attributes {stable_mosaic.version = 11 : i64} {
  func.func @_conv_relu_pool_kernel(%arg0: i32, %arg1: i32, %arg2: memref<1x4x256x144xbf16, #tpu.memory_space<vmem>>, %arg3: memref<144x32xbf16, #tpu.memory_space<vmem>>, %arg4: memref<1x32xf32, #tpu.memory_space<vmem>>, %arg5: memref<1x256x32xf32, #tpu.memory_space<vmem>>) attributes {dimension_semantics = [#tpu.dimension_semantics<parallel>, #tpu.dimension_semantics<parallel>], iteration_bounds = array<i64: 2, 1>, scalar_prefetch = 0 : i64, scratch_operands = 0 : i64, tpu.core_type = #tpu.core_type<tc>, window_params = [{transform_indices = @transform_0, window_bounds = array<i64: 1, 4, 256, 144>}, {pipeline_mode = #tpu.pipeline_mode<synchronous>, transform_indices = @transform_1, window_bounds = array<i64: 144, 32>}, {pipeline_mode = #tpu.pipeline_mode<synchronous>, transform_indices = @transform_2, window_bounds = array<i64: 1, 32>}, {transform_indices = @transform_3, window_bounds = array<i64: 1, 256, 32>}]} {
    %c0 = arith.constant 0 : index
    %c0_0 = arith.constant 0 : index
    %0 = vector.load %arg3[%c0, %c0_0] : memref<144x32xbf16, #tpu.memory_space<vmem>>, vector<144x32xbf16>
    %c0_1 = arith.constant 0 : index
    %c0_2 = arith.constant 0 : index
    %c0_3 = arith.constant 0 : index
    %c0_4 = arith.constant 0 : index
    %1 = vector.load %arg2[%c0_1, %c0_2, %c0_3, %c0_4] : memref<1x4x256x144xbf16, #tpu.memory_space<vmem>>, vector<1x1x256x144xbf16>
    %2 = vector.shape_cast %1 : vector<1x1x256x144xbf16> to vector<256x144xbf16>
    %cst = arith.constant dense<0.000000e+00> : vector<256x32xf32>
    %3 = tpu.matmul %2, %0, %cst {dimension_numbers = #tpu.dot_dimension_numbers<[1], [0], [0], [1], [0, 0, 1, 1], [], []>} : vector<256x144xbf16>, vector<144x32xbf16>, vector<256x32xf32> -> vector<256x32xf32>
    %c0_5 = arith.constant 0 : index
    %c1 = arith.constant 1 : index
    %c0_6 = arith.constant 0 : index
    %c0_7 = arith.constant 0 : index
    %4 = vector.load %arg2[%c0_5, %c1, %c0_6, %c0_7] : memref<1x4x256x144xbf16, #tpu.memory_space<vmem>>, vector<1x1x256x144xbf16>
    %5 = vector.shape_cast %4 : vector<1x1x256x144xbf16> to vector<256x144xbf16>
    %cst_8 = arith.constant dense<0.000000e+00> : vector<256x32xf32>
    %6 = tpu.matmul %5, %0, %cst_8 {dimension_numbers = #tpu.dot_dimension_numbers<[1], [0], [0], [1], [0, 0, 1, 1], [], []>} : vector<256x144xbf16>, vector<144x32xbf16>, vector<256x32xf32> -> vector<256x32xf32>
    %7 = arith.maximumf %3, %6 : vector<256x32xf32>
    %c0_9 = arith.constant 0 : index
    %c2 = arith.constant 2 : index
    %c0_10 = arith.constant 0 : index
    %c0_11 = arith.constant 0 : index
    %8 = vector.load %arg2[%c0_9, %c2, %c0_10, %c0_11] : memref<1x4x256x144xbf16, #tpu.memory_space<vmem>>, vector<1x1x256x144xbf16>
    %9 = vector.shape_cast %8 : vector<1x1x256x144xbf16> to vector<256x144xbf16>
    %cst_12 = arith.constant dense<0.000000e+00> : vector<256x32xf32>
    %10 = tpu.matmul %9, %0, %cst_12 {dimension_numbers = #tpu.dot_dimension_numbers<[1], [0], [0], [1], [0, 0, 1, 1], [], []>} : vector<256x144xbf16>, vector<144x32xbf16>, vector<256x32xf32> -> vector<256x32xf32>
    %c0_13 = arith.constant 0 : index
    %c3 = arith.constant 3 : index
    %c0_14 = arith.constant 0 : index
    %c0_15 = arith.constant 0 : index
    %11 = vector.load %arg2[%c0_13, %c3, %c0_14, %c0_15] : memref<1x4x256x144xbf16, #tpu.memory_space<vmem>>, vector<1x1x256x144xbf16>
    %12 = vector.shape_cast %11 : vector<1x1x256x144xbf16> to vector<256x144xbf16>
    %cst_16 = arith.constant dense<0.000000e+00> : vector<256x32xf32>
    %13 = tpu.matmul %12, %0, %cst_16 {dimension_numbers = #tpu.dot_dimension_numbers<[1], [0], [0], [1], [0, 0, 1, 1], [], []>} : vector<256x144xbf16>, vector<144x32xbf16>, vector<256x32xf32> -> vector<256x32xf32>
    %14 = arith.maximumf %10, %13 : vector<256x32xf32>
    %15 = arith.maximumf %7, %14 : vector<256x32xf32>
    %c0_17 = arith.constant 0 : index
    %c0_18 = arith.constant 0 : index
    %16 = vector.load %arg4[%c0_17, %c0_18] : memref<1x32xf32, #tpu.memory_space<vmem>>, vector<1x32xf32>
    %17 = vector.broadcast %16 : vector<1x32xf32> to vector<256x32xf32>
    %18 = arith.addf %15, %17 : vector<256x32xf32>
    %cst_19 = arith.constant 0.000000e+00 : f32
    %19 = vector.broadcast %cst_19 : f32 to vector<256x32xf32>
    %20 = arith.maximumf %18, %19 : vector<256x32xf32>
    %c0_20 = arith.constant 0 : index
    %c0_21 = arith.constant 0 : index
    %c0_22 = arith.constant 0 : index
    %21 = vector.load %arg5[%c0_20, %c0_21, %c0_22] : memref<1x256x32xf32, #tpu.memory_space<vmem>>, vector<1x256x32xf32>
    %22 = vector.shape_cast %21 : vector<1x256x32xf32> to vector<256x32xf32>
    %23 = vector.shape_cast %20 : vector<256x32xf32> to vector<1x256x32xf32>
    tpu.vector_store %arg5[%c0_20, %c0_21, %c0_22], %23 {strides = array<i32>} : memref<1x256x32xf32, #tpu.memory_space<vmem>>, vector<1x256x32xf32>,
    return
  }
  func.func @transform_0(%arg0: i32, %arg1: i32) -> (i32, i32, i32, i32) {
    %c0_i32 = arith.constant 0 : i32
    %c0_i32_0 = arith.constant 0 : i32
    %c0_i32_1 = arith.constant 0 : i32
    return %arg0, %c0_i32, %arg1, %c0_i32_0 : i32, i32, i32, i32
  }
  func.func @transform_1(%arg0: i32, %arg1: i32) -> (i32, i32) {
    %c0_i32 = arith.constant 0 : i32
    %c0_i32_0 = arith.constant 0 : i32
    %c0_i32_1 = arith.constant 0 : i32
    return %c0_i32, %c0_i32_0 : i32, i32
  }
  func.func @transform_2(%arg0: i32, %arg1: i32) -> (i32, i32) {
    %c0_i32 = arith.constant 0 : i32
    %c0_i32_0 = arith.constant 0 : i32
    %c0_i32_1 = arith.constant 0 : i32
    return %c0_i32, %c0_i32_0 : i32, i32
  }
  func.func @transform_3(%arg0: i32, %arg1: i32) -> (i32, i32, i32) {
    %c0_i32 = arith.constant 0 : i32
    %c0_i32_0 = arith.constant 0 : i32
    return %arg0, %arg1, %c0_i32 : i32, i32, i32
  }
}

module attributes {stable_mosaic.version = 11 : i64} {
  func.func @_conv_relu_pool_kernel(%arg0: i32, %arg1: i32, %arg2: memref<1x4x64x288xbf16, #tpu.memory_space<vmem>>, %arg3: memref<288x64xbf16, #tpu.memory_space<vmem>>, %arg4: memref<1x64xf32, #tpu.memory_space<vmem>>, %arg5: memref<1x64x64xf32, #tpu.memory_space<vmem>>) attributes {dimension_semantics = [#tpu.dimension_semantics<parallel>, #tpu.dimension_semantics<parallel>], iteration_bounds = array<i64: 2, 1>, scalar_prefetch = 0 : i64, scratch_operands = 0 : i64, tpu.core_type = #tpu.core_type<tc>, window_params = [{transform_indices = @transform_0, window_bounds = array<i64: 1, 4, 64, 288>}, {pipeline_mode = #tpu.pipeline_mode<synchronous>, transform_indices = @transform_1, window_bounds = array<i64: 288, 64>}, {pipeline_mode = #tpu.pipeline_mode<synchronous>, transform_indices = @transform_2, window_bounds = array<i64: 1, 64>}, {transform_indices = @transform_3, window_bounds = array<i64: 1, 64, 64>}]} {
    %c0 = arith.constant 0 : index
    %c0_0 = arith.constant 0 : index
    %0 = vector.load %arg3[%c0, %c0_0] : memref<288x64xbf16, #tpu.memory_space<vmem>>, vector<288x64xbf16>
    %c0_1 = arith.constant 0 : index
    %c0_2 = arith.constant 0 : index
    %c0_3 = arith.constant 0 : index
    %c0_4 = arith.constant 0 : index
    %1 = vector.load %arg2[%c0_1, %c0_2, %c0_3, %c0_4] : memref<1x4x64x288xbf16, #tpu.memory_space<vmem>>, vector<1x1x64x288xbf16>
    %2 = vector.shape_cast %1 : vector<1x1x64x288xbf16> to vector<64x288xbf16>
    %cst = arith.constant dense<0.000000e+00> : vector<64x64xf32>
    %3 = tpu.matmul %2, %0, %cst {dimension_numbers = #tpu.dot_dimension_numbers<[1], [0], [0], [1], [0, 0, 1, 1], [], []>} : vector<64x288xbf16>, vector<288x64xbf16>, vector<64x64xf32> -> vector<64x64xf32>
    %c0_5 = arith.constant 0 : index
    %c1 = arith.constant 1 : index
    %c0_6 = arith.constant 0 : index
    %c0_7 = arith.constant 0 : index
    %4 = vector.load %arg2[%c0_5, %c1, %c0_6, %c0_7] : memref<1x4x64x288xbf16, #tpu.memory_space<vmem>>, vector<1x1x64x288xbf16>
    %5 = vector.shape_cast %4 : vector<1x1x64x288xbf16> to vector<64x288xbf16>
    %cst_8 = arith.constant dense<0.000000e+00> : vector<64x64xf32>
    %6 = tpu.matmul %5, %0, %cst_8 {dimension_numbers = #tpu.dot_dimension_numbers<[1], [0], [0], [1], [0, 0, 1, 1], [], []>} : vector<64x288xbf16>, vector<288x64xbf16>, vector<64x64xf32> -> vector<64x64xf32>
    %7 = arith.maximumf %3, %6 : vector<64x64xf32>
    %c0_9 = arith.constant 0 : index
    %c2 = arith.constant 2 : index
    %c0_10 = arith.constant 0 : index
    %c0_11 = arith.constant 0 : index
    %8 = vector.load %arg2[%c0_9, %c2, %c0_10, %c0_11] : memref<1x4x64x288xbf16, #tpu.memory_space<vmem>>, vector<1x1x64x288xbf16>
    %9 = vector.shape_cast %8 : vector<1x1x64x288xbf16> to vector<64x288xbf16>
    %cst_12 = arith.constant dense<0.000000e+00> : vector<64x64xf32>
    %10 = tpu.matmul %9, %0, %cst_12 {dimension_numbers = #tpu.dot_dimension_numbers<[1], [0], [0], [1], [0, 0, 1, 1], [], []>} : vector<64x288xbf16>, vector<288x64xbf16>, vector<64x64xf32> -> vector<64x64xf32>
    %c0_13 = arith.constant 0 : index
    %c3 = arith.constant 3 : index
    %c0_14 = arith.constant 0 : index
    %c0_15 = arith.constant 0 : index
    %11 = vector.load %arg2[%c0_13, %c3, %c0_14, %c0_15] : memref<1x4x64x288xbf16, #tpu.memory_space<vmem>>, vector<1x1x64x288xbf16>
    %12 = vector.shape_cast %11 : vector<1x1x64x288xbf16> to vector<64x288xbf16>
    %cst_16 = arith.constant dense<0.000000e+00> : vector<64x64xf32>
    %13 = tpu.matmul %12, %0, %cst_16 {dimension_numbers = #tpu.dot_dimension_numbers<[1], [0], [0], [1], [0, 0, 1, 1], [], []>} : vector<64x288xbf16>, vector<288x64xbf16>, vector<64x64xf32> -> vector<64x64xf32>
    %14 = arith.maximumf %10, %13 : vector<64x64xf32>
    %15 = arith.maximumf %7, %14 : vector<64x64xf32>
    %c0_17 = arith.constant 0 : index
    %c0_18 = arith.constant 0 : index
    %16 = vector.load %arg4[%c0_17, %c0_18] : memref<1x64xf32, #tpu.memory_space<vmem>>, vector<1x64xf32>
    %17 = vector.broadcast %16 : vector<1x64xf32> to vector<64x64xf32>
    %18 = arith.addf %15, %17 : vector<64x64xf32>
    %cst_19 = arith.constant 0.000000e+00 : f32
    %19 = vector.broadcast %cst_19 : f32 to vector<64x64xf32>
    %20 = arith.maximumf %18, %19 : vector<64x64xf32>
    %c0_20 = arith.constant 0 : index
    %c0_21 = arith.constant 0 : index
    %c0_22 = arith.constant 0 : index
    %21 = vector.load %arg5[%c0_20, %c0_21, %c0_22] : memref<1x64x64xf32, #tpu.memory_space<vmem>>, vector<1x64x64xf32>
    %22 = vector.shape_cast %21 : vector<1x64x64xf32> to vector<64x64xf32>
    %23 = vector.shape_cast %20 : vector<64x64xf32> to vector<1x64x64xf32>
    tpu.vector_store %arg5[%c0_20, %c0_21, %c0_22], %23 {strides = array<i32>} : memref<1x64x64xf32, #tpu.memory_space<vmem>>, vector<1x64x64xf32>,
    return
  }
  func.func @transform_0(%arg0: i32, %arg1: i32) -> (i32, i32, i32, i32) {
    %c0_i32 = arith.constant 0 : i32
    %c0_i32_0 = arith.constant 0 : i32
    %c0_i32_1 = arith.constant 0 : i32
    return %arg0, %c0_i32, %arg1, %c0_i32_0 : i32, i32, i32, i32
  }
  func.func @transform_1(%arg0: i32, %arg1: i32) -> (i32, i32) {
    %c0_i32 = arith.constant 0 : i32
    %c0_i32_0 = arith.constant 0 : i32
    %c0_i32_1 = arith.constant 0 : i32
    return %c0_i32, %c0_i32_0 : i32, i32
  }
  func.func @transform_2(%arg0: i32, %arg1: i32) -> (i32, i32) {
    %c0_i32 = arith.constant 0 : i32
    %c0_i32_0 = arith.constant 0 : i32
    %c0_i32_1 = arith.constant 0 : i32
    return %c0_i32, %c0_i32_0 : i32, i32
  }
  func.func @transform_3(%arg0: i32, %arg1: i32) -> (i32, i32, i32) {
    %c0_i32 = arith.constant 0 : i32
    %c0_i32_0 = arith.constant 0 : i32
    return %arg0, %arg1, %c0_i32 : i32, i32, i32
  }
}

module attributes {stable_mosaic.version = 11 : i64} {
  func.func @fc_kernel(%arg0: i32, %arg1: i32, %arg2: memref<8x2048xbf16, #tpu.memory_space<vmem>>, %arg3: memref<2048x512xi8, #tpu.memory_space<vmem>>, %arg4: memref<1x512xf32, #tpu.memory_space<vmem>>, %arg5: memref<1x512xf32, #tpu.memory_space<vmem>>, %arg6: memref<8x512xf32, #tpu.memory_space<vmem>>, %arg7: memref<8x512xf32, #tpu.memory_space<vmem>>) attributes {dimension_semantics = [#tpu.dimension_semantics<parallel>, #tpu.dimension_semantics<arbitrary>], iteration_bounds = array<i64: 2, 1>, scalar_prefetch = 0 : i64, scratch_operands = 1 : i64, tpu.core_type = #tpu.core_type<tc>, window_params = [{transform_indices = @transform_0, window_bounds = array<i64: 8, 2048>}, {transform_indices = @transform_1, window_bounds = array<i64: 2048, 512>}, {transform_indices = @transform_2, window_bounds = array<i64: 1, 512>}, {transform_indices = @transform_3, window_bounds = array<i64: 1, 512>}, {transform_indices = @transform_4, window_bounds = array<i64: 8, 512>}]} {
    %c0_i32 = arith.constant 0 : i32
    %0 = arith.cmpi eq, %arg1, %c0_i32 : i32
    %1 = arith.extui %0 : i1 to i32
    %c0_i32_0 = arith.constant 0 : i32
    %2 = arith.cmpi ne, %1, %c0_i32_0 : i32
    scf.if %2 {
      %cst_10 = arith.constant 0.000000e+00 : f32
      %13 = vector.broadcast %cst_10 : f32 to vector<8x512xf32>
      %c0_11 = arith.constant 0 : index
      %c0_12 = arith.constant 0 : index
      %14 = vector.load %arg7[%c0_11, %c0_12] : memref<8x512xf32, #tpu.memory_space<vmem>>, vector<8x512xf32>
      tpu.vector_store %arg7[%c0_11, %c0_12], %13 {strides = array<i32>} : memref<8x512xf32, #tpu.memory_space<vmem>>, vector<8x512xf32>,
    } else {
    }
    %c0 = arith.constant 0 : index
    %c0_1 = arith.constant 0 : index
    %3 = vector.load %arg7[%c0, %c0_1] : memref<8x512xf32, #tpu.memory_space<vmem>>, vector<8x512xf32>
    %c0_2 = arith.constant 0 : index
    %c0_3 = arith.constant 0 : index
    %4 = vector.load %arg2[%c0_2, %c0_3] : memref<8x2048xbf16, #tpu.memory_space<vmem>>, vector<8x2048xbf16>
    %c0_4 = arith.constant 0 : index
    %c0_5 = arith.constant 0 : index
    %5 = vector.load %arg3[%c0_4, %c0_5] : memref<2048x512xi8, #tpu.memory_space<vmem>>, vector<2048x512xi8>
    %6 = arith.sitofp %5 : vector<2048x512xi8> to vector<2048x512xbf16>
    %cst = arith.constant dense<0.000000e+00> : vector<8x512xf32>
    %7 = tpu.matmul %4, %6, %cst {dimension_numbers = #tpu.dot_dimension_numbers<[1], [0], [0], [1], [0, 0, 1, 1], [], []>} : vector<8x2048xbf16>, vector<2048x512xbf16>, vector<8x512xf32> -> vector<8x512xf32>
    %8 = arith.addf %3, %7 : vector<8x512xf32>
    %c0_6 = arith.constant 0 : index
    %c0_7 = arith.constant 0 : index
    %9 = vector.load %arg7[%c0_6, %c0_7] : memref<8x512xf32, #tpu.memory_space<vmem>>, vector<8x512xf32>
    tpu.vector_store %arg7[%c0_6, %c0_7], %8 {strides = array<i32>} : memref<8x512xf32, #tpu.memory_space<vmem>>, vector<8x512xf32>,
    %c0_i32_8 = arith.constant 0 : i32
    %10 = arith.cmpi eq, %arg1, %c0_i32_8 : i32
    %11 = arith.extui %10 : i1 to i32
    %c0_i32_9 = arith.constant 0 : i32
    %12 = arith.cmpi ne, %11, %c0_i32_9 : i32
    scf.if %12 {
      %c0_10 = arith.constant 0 : index
      %c0_11 = arith.constant 0 : index
      %13 = vector.load %arg7[%c0_10, %c0_11] : memref<8x512xf32, #tpu.memory_space<vmem>>, vector<8x512xf32>
      %c0_12 = arith.constant 0 : index
      %c0_13 = arith.constant 0 : index
      %14 = vector.load %arg4[%c0_12, %c0_13] : memref<1x512xf32, #tpu.memory_space<vmem>>, vector<1x512xf32>
      %15 = vector.broadcast %14 : vector<1x512xf32> to vector<8x512xf32>
      %16 = arith.mulf %13, %15 : vector<8x512xf32>
      %c0_14 = arith.constant 0 : index
      %c0_15 = arith.constant 0 : index
      %17 = vector.load %arg5[%c0_14, %c0_15] : memref<1x512xf32, #tpu.memory_space<vmem>>, vector<1x512xf32>
      %18 = vector.broadcast %17 : vector<1x512xf32> to vector<8x512xf32>
      %19 = arith.addf %16, %18 : vector<8x512xf32>
      %cst_16 = arith.constant 0.000000e+00 : f32
      %20 = vector.broadcast %cst_16 : f32 to vector<8x512xf32>
      %21 = arith.maximumf %19, %20 : vector<8x512xf32>
      %c0_17 = arith.constant 0 : index
      %c0_18 = arith.constant 0 : index
      %22 = vector.load %arg6[%c0_17, %c0_18] : memref<8x512xf32, #tpu.memory_space<vmem>>, vector<8x512xf32>
      tpu.vector_store %arg6[%c0_17, %c0_18], %21 {strides = array<i32>} : memref<8x512xf32, #tpu.memory_space<vmem>>, vector<8x512xf32>,
    } else {
    }
    return
  }
  func.func @transform_0(%arg0: i32, %arg1: i32) -> (i32, i32) {
    %c0_i32 = arith.constant 0 : i32
    %c0_i32_0 = arith.constant 0 : i32
    return %c0_i32, %arg1 : i32, i32
  }
  func.func @transform_1(%arg0: i32, %arg1: i32) -> (i32, i32) {
    %c0_i32 = arith.constant 0 : i32
    return %arg1, %arg0 : i32, i32
  }
  func.func @transform_2(%arg0: i32, %arg1: i32) -> (i32, i32) {
    %c0_i32 = arith.constant 0 : i32
    %c0_i32_0 = arith.constant 0 : i32
    return %c0_i32, %arg0 : i32, i32
  }
  func.func @transform_3(%arg0: i32, %arg1: i32) -> (i32, i32) {
    %c0_i32 = arith.constant 0 : i32
    %c0_i32_0 = arith.constant 0 : i32
    return %c0_i32, %arg0 : i32, i32
  }
  func.func @transform_4(%arg0: i32, %arg1: i32) -> (i32, i32) {
    %c0_i32 = arith.constant 0 : i32
    %c0_i32_0 = arith.constant 0 : i32
    return %c0_i32, %arg0 : i32, i32
  }
}

module attributes {stable_mosaic.version = 11 : i64} {
  func.func @_conv_relu_pool_kernel(%arg0: i32, %arg1: i32, %arg2: memref<1x4x16x576xbf16, #tpu.memory_space<vmem>>, %arg3: memref<576x128xbf16, #tpu.memory_space<vmem>>, %arg4: memref<1x128xf32, #tpu.memory_space<vmem>>, %arg5: memref<1x16x128xf32, #tpu.memory_space<vmem>>) attributes {dimension_semantics = [#tpu.dimension_semantics<parallel>, #tpu.dimension_semantics<parallel>], iteration_bounds = array<i64: 2, 1>, scalar_prefetch = 0 : i64, scratch_operands = 0 : i64, tpu.core_type = #tpu.core_type<tc>, window_params = [{transform_indices = @transform_0, window_bounds = array<i64: 1, 4, 16, 576>}, {pipeline_mode = #tpu.pipeline_mode<synchronous>, transform_indices = @transform_1, window_bounds = array<i64: 576, 128>}, {pipeline_mode = #tpu.pipeline_mode<synchronous>, transform_indices = @transform_2, window_bounds = array<i64: 1, 128>}, {transform_indices = @transform_3, window_bounds = array<i64: 1, 16, 128>}]} {
    %c0 = arith.constant 0 : index
    %c0_0 = arith.constant 0 : index
    %0 = vector.load %arg3[%c0, %c0_0] : memref<576x128xbf16, #tpu.memory_space<vmem>>, vector<576x128xbf16>
    %c0_1 = arith.constant 0 : index
    %c0_2 = arith.constant 0 : index
    %c0_3 = arith.constant 0 : index
    %c0_4 = arith.constant 0 : index
    %1 = vector.load %arg2[%c0_1, %c0_2, %c0_3, %c0_4] : memref<1x4x16x576xbf16, #tpu.memory_space<vmem>>, vector<1x1x16x576xbf16>
    %2 = vector.shape_cast %1 : vector<1x1x16x576xbf16> to vector<16x576xbf16>
    %cst = arith.constant dense<0.000000e+00> : vector<16x128xf32>
    %3 = tpu.matmul %2, %0, %cst {dimension_numbers = #tpu.dot_dimension_numbers<[1], [0], [0], [1], [0, 0, 1, 1], [], []>} : vector<16x576xbf16>, vector<576x128xbf16>, vector<16x128xf32> -> vector<16x128xf32>
    %c0_5 = arith.constant 0 : index
    %c1 = arith.constant 1 : index
    %c0_6 = arith.constant 0 : index
    %c0_7 = arith.constant 0 : index
    %4 = vector.load %arg2[%c0_5, %c1, %c0_6, %c0_7] : memref<1x4x16x576xbf16, #tpu.memory_space<vmem>>, vector<1x1x16x576xbf16>
    %5 = vector.shape_cast %4 : vector<1x1x16x576xbf16> to vector<16x576xbf16>
    %cst_8 = arith.constant dense<0.000000e+00> : vector<16x128xf32>
    %6 = tpu.matmul %5, %0, %cst_8 {dimension_numbers = #tpu.dot_dimension_numbers<[1], [0], [0], [1], [0, 0, 1, 1], [], []>} : vector<16x576xbf16>, vector<576x128xbf16>, vector<16x128xf32> -> vector<16x128xf32>
    %7 = arith.maximumf %3, %6 : vector<16x128xf32>
    %c0_9 = arith.constant 0 : index
    %c2 = arith.constant 2 : index
    %c0_10 = arith.constant 0 : index
    %c0_11 = arith.constant 0 : index
    %8 = vector.load %arg2[%c0_9, %c2, %c0_10, %c0_11] : memref<1x4x16x576xbf16, #tpu.memory_space<vmem>>, vector<1x1x16x576xbf16>
    %9 = vector.shape_cast %8 : vector<1x1x16x576xbf16> to vector<16x576xbf16>
    %cst_12 = arith.constant dense<0.000000e+00> : vector<16x128xf32>
    %10 = tpu.matmul %9, %0, %cst_12 {dimension_numbers = #tpu.dot_dimension_numbers<[1], [0], [0], [1], [0, 0, 1, 1], [], []>} : vector<16x576xbf16>, vector<576x128xbf16>, vector<16x128xf32> -> vector<16x128xf32>
    %c0_13 = arith.constant 0 : index
    %c3 = arith.constant 3 : index
    %c0_14 = arith.constant 0 : index
    %c0_15 = arith.constant 0 : index
    %11 = vector.load %arg2[%c0_13, %c3, %c0_14, %c0_15] : memref<1x4x16x576xbf16, #tpu.memory_space<vmem>>, vector<1x1x16x576xbf16>
    %12 = vector.shape_cast %11 : vector<1x1x16x576xbf16> to vector<16x576xbf16>
    %cst_16 = arith.constant dense<0.000000e+00> : vector<16x128xf32>
    %13 = tpu.matmul %12, %0, %cst_16 {dimension_numbers = #tpu.dot_dimension_numbers<[1], [0], [0], [1], [0, 0, 1, 1], [], []>} : vector<16x576xbf16>, vector<576x128xbf16>, vector<16x128xf32> -> vector<16x128xf32>
    %14 = arith.maximumf %10, %13 : vector<16x128xf32>
    %15 = arith.maximumf %7, %14 : vector<16x128xf32>
    %c0_17 = arith.constant 0 : index
    %c0_18 = arith.constant 0 : index
    %16 = vector.load %arg4[%c0_17, %c0_18] : memref<1x128xf32, #tpu.memory_space<vmem>>, vector<1x128xf32>
    %17 = vector.broadcast %16 : vector<1x128xf32> to vector<16x128xf32>
    %18 = arith.addf %15, %17 : vector<16x128xf32>
    %cst_19 = arith.constant 0.000000e+00 : f32
    %19 = vector.broadcast %cst_19 : f32 to vector<16x128xf32>
    %20 = arith.maximumf %18, %19 : vector<16x128xf32>
    %c0_20 = arith.constant 0 : index
    %c0_21 = arith.constant 0 : index
    %c0_22 = arith.constant 0 : index
    %21 = vector.load %arg5[%c0_20, %c0_21, %c0_22] : memref<1x16x128xf32, #tpu.memory_space<vmem>>, vector<1x16x128xf32>
    %22 = vector.shape_cast %21 : vector<1x16x128xf32> to vector<16x128xf32>
    %23 = vector.shape_cast %20 : vector<16x128xf32> to vector<1x16x128xf32>
    tpu.vector_store %arg5[%c0_20, %c0_21, %c0_22], %23 {strides = array<i32>} : memref<1x16x128xf32, #tpu.memory_space<vmem>>, vector<1x16x128xf32>,
    return
  }
  func.func @transform_0(%arg0: i32, %arg1: i32) -> (i32, i32, i32, i32) {
    %c0_i32 = arith.constant 0 : i32
    %c0_i32_0 = arith.constant 0 : i32
    %c0_i32_1 = arith.constant 0 : i32
    return %arg0, %c0_i32, %arg1, %c0_i32_0 : i32, i32, i32, i32
  }
  func.func @transform_1(%arg0: i32, %arg1: i32) -> (i32, i32) {
    %c0_i32 = arith.constant 0 : i32
    %c0_i32_0 = arith.constant 0 : i32
    %c0_i32_1 = arith.constant 0 : i32
    return %c0_i32, %c0_i32_0 : i32, i32
  }
  func.func @transform_2(%arg0: i32, %arg1: i32) -> (i32, i32) {
    %c0_i32 = arith.constant 0 : i32
    %c0_i32_0 = arith.constant 0 : i32
    %c0_i32_1 = arith.constant 0 : i32
    return %c0_i32, %c0_i32_0 : i32, i32
  }
  func.func @transform_3(%arg0: i32, %arg1: i32) -> (i32, i32, i32) {
    %c0_i32 = arith.constant 0 : i32
    %c0_i32_0 = arith.constant 0 : i32
    return %arg0, %arg1, %c0_i32 : i32, i32, i32
  }
}

module attributes {stable_mosaic.version = 11 : i64} {
  func.func @fc_kernel(%arg0: i32, %arg1: i32, %arg2: memref<8x1024xbf16, #tpu.memory_space<vmem>>, %arg3: memref<1024x128xi8, #tpu.memory_space<vmem>>, %arg4: memref<1x128xf32, #tpu.memory_space<vmem>>, %arg5: memref<1x128xf32, #tpu.memory_space<vmem>>, %arg6: memref<8x128xf32, #tpu.memory_space<vmem>>, %arg7: memref<8x128xf32, #tpu.memory_space<vmem>>) attributes {dimension_semantics = [#tpu.dimension_semantics<parallel>, #tpu.dimension_semantics<arbitrary>], iteration_bounds = array<i64: 2, 1>, scalar_prefetch = 0 : i64, scratch_operands = 1 : i64, tpu.core_type = #tpu.core_type<tc>, window_params = [{transform_indices = @transform_0, window_bounds = array<i64: 8, 1024>}, {transform_indices = @transform_1, window_bounds = array<i64: 1024, 128>}, {transform_indices = @transform_2, window_bounds = array<i64: 1, 128>}, {transform_indices = @transform_3, window_bounds = array<i64: 1, 128>}, {transform_indices = @transform_4, window_bounds = array<i64: 8, 128>}]} {
    %c0_i32 = arith.constant 0 : i32
    %0 = arith.cmpi eq, %arg1, %c0_i32 : i32
    %1 = arith.extui %0 : i1 to i32
    %c0_i32_0 = arith.constant 0 : i32
    %2 = arith.cmpi ne, %1, %c0_i32_0 : i32
    scf.if %2 {
      %cst_10 = arith.constant 0.000000e+00 : f32
      %13 = vector.broadcast %cst_10 : f32 to vector<8x128xf32>
      %c0_11 = arith.constant 0 : index
      %c0_12 = arith.constant 0 : index
      %14 = vector.load %arg7[%c0_11, %c0_12] : memref<8x128xf32, #tpu.memory_space<vmem>>, vector<8x128xf32>
      tpu.vector_store %arg7[%c0_11, %c0_12], %13 {strides = array<i32>} : memref<8x128xf32, #tpu.memory_space<vmem>>, vector<8x128xf32>,
    } else {
    }
    %c0 = arith.constant 0 : index
    %c0_1 = arith.constant 0 : index
    %3 = vector.load %arg7[%c0, %c0_1] : memref<8x128xf32, #tpu.memory_space<vmem>>, vector<8x128xf32>
    %c0_2 = arith.constant 0 : index
    %c0_3 = arith.constant 0 : index
    %4 = vector.load %arg2[%c0_2, %c0_3] : memref<8x1024xbf16, #tpu.memory_space<vmem>>, vector<8x1024xbf16>
    %c0_4 = arith.constant 0 : index
    %c0_5 = arith.constant 0 : index
    %5 = vector.load %arg3[%c0_4, %c0_5] : memref<1024x128xi8, #tpu.memory_space<vmem>>, vector<1024x128xi8>
    %6 = arith.sitofp %5 : vector<1024x128xi8> to vector<1024x128xbf16>
    %cst = arith.constant dense<0.000000e+00> : vector<8x128xf32>
    %7 = tpu.matmul %4, %6, %cst {dimension_numbers = #tpu.dot_dimension_numbers<[1], [0], [0], [1], [0, 0, 1, 1], [], []>} : vector<8x1024xbf16>, vector<1024x128xbf16>, vector<8x128xf32> -> vector<8x128xf32>
    %8 = arith.addf %3, %7 : vector<8x128xf32>
    %c0_6 = arith.constant 0 : index
    %c0_7 = arith.constant 0 : index
    %9 = vector.load %arg7[%c0_6, %c0_7] : memref<8x128xf32, #tpu.memory_space<vmem>>, vector<8x128xf32>
    tpu.vector_store %arg7[%c0_6, %c0_7], %8 {strides = array<i32>} : memref<8x128xf32, #tpu.memory_space<vmem>>, vector<8x128xf32>,
    %c0_i32_8 = arith.constant 0 : i32
    %10 = arith.cmpi eq, %arg1, %c0_i32_8 : i32
    %11 = arith.extui %10 : i1 to i32
    %c0_i32_9 = arith.constant 0 : i32
    %12 = arith.cmpi ne, %11, %c0_i32_9 : i32
    scf.if %12 {
      %c0_10 = arith.constant 0 : index
      %c0_11 = arith.constant 0 : index
      %13 = vector.load %arg7[%c0_10, %c0_11] : memref<8x128xf32, #tpu.memory_space<vmem>>, vector<8x128xf32>
      %c0_12 = arith.constant 0 : index
      %c0_13 = arith.constant 0 : index
      %14 = vector.load %arg4[%c0_12, %c0_13] : memref<1x128xf32, #tpu.memory_space<vmem>>, vector<1x128xf32>
      %15 = vector.broadcast %14 : vector<1x128xf32> to vector<8x128xf32>
      %16 = arith.mulf %13, %15 : vector<8x128xf32>
      %c0_14 = arith.constant 0 : index
      %c0_15 = arith.constant 0 : index
      %17 = vector.load %arg5[%c0_14, %c0_15] : memref<1x128xf32, #tpu.memory_space<vmem>>, vector<1x128xf32>
      %18 = vector.broadcast %17 : vector<1x128xf32> to vector<8x128xf32>
      %19 = arith.addf %16, %18 : vector<8x128xf32>
      %cst_16 = arith.constant 0.000000e+00 : f32
      %20 = vector.broadcast %cst_16 : f32 to vector<8x128xf32>
      %21 = arith.maximumf %19, %20 : vector<8x128xf32>
      %c0_17 = arith.constant 0 : index
      %c0_18 = arith.constant 0 : index
      %22 = vector.load %arg6[%c0_17, %c0_18] : memref<8x128xf32, #tpu.memory_space<vmem>>, vector<8x128xf32>
      tpu.vector_store %arg6[%c0_17, %c0_18], %21 {strides = array<i32>} : memref<8x128xf32, #tpu.memory_space<vmem>>, vector<8x128xf32>,
    } else {
    }
    return
  }
  func.func @transform_0(%arg0: i32, %arg1: i32) -> (i32, i32) {
    %c0_i32 = arith.constant 0 : i32
    %c0_i32_0 = arith.constant 0 : i32
    return %c0_i32, %arg1 : i32, i32
  }
  func.func @transform_1(%arg0: i32, %arg1: i32) -> (i32, i32) {
    %c0_i32 = arith.constant 0 : i32
    return %arg1, %arg0 : i32, i32
  }
  func.func @transform_2(%arg0: i32, %arg1: i32) -> (i32, i32) {
    %c0_i32 = arith.constant 0 : i32
    %c0_i32_0 = arith.constant 0 : i32
    return %c0_i32, %arg0 : i32, i32
  }
  func.func @transform_3(%arg0: i32, %arg1: i32) -> (i32, i32) {
    %c0_i32 = arith.constant 0 : i32
    %c0_i32_0 = arith.constant 0 : i32
    return %c0_i32, %arg0 : i32, i32
  }
  func.func @transform_4(%arg0: i32, %arg1: i32) -> (i32, i32) {
    %c0_i32 = arith.constant 0 : i32
    %c0_i32_0 = arith.constant 0 : i32
    return %c0_i32, %arg0 : i32, i32
  }
}

module attributes {stable_mosaic.version = 11 : i64} {
  func.func @fc_kernel(%arg0: i32, %arg1: i32, %arg2: memref<8x256xbf16, #tpu.memory_space<vmem>>, %arg3: memref<256x128xi8, #tpu.memory_space<vmem>>, %arg4: memref<1x128xf32, #tpu.memory_space<vmem>>, %arg5: memref<1x128xf32, #tpu.memory_space<vmem>>, %arg6: memref<8x128xf32, #tpu.memory_space<vmem>>, %arg7: memref<8x128xf32, #tpu.memory_space<vmem>>) attributes {dimension_semantics = [#tpu.dimension_semantics<parallel>, #tpu.dimension_semantics<arbitrary>], iteration_bounds = array<i64: 1, 1>, scalar_prefetch = 0 : i64, scratch_operands = 1 : i64, tpu.core_type = #tpu.core_type<tc>, window_params = [{transform_indices = @transform_0, window_bounds = array<i64: 8, 256>}, {transform_indices = @transform_1, window_bounds = array<i64: 256, 128>}, {transform_indices = @transform_2, window_bounds = array<i64: 1, 128>}, {transform_indices = @transform_3, window_bounds = array<i64: 1, 128>}, {transform_indices = @transform_4, window_bounds = array<i64: 8, 128>}]} {
    %c0_i32 = arith.constant 0 : i32
    %0 = arith.cmpi eq, %arg1, %c0_i32 : i32
    %1 = arith.extui %0 : i1 to i32
    %c0_i32_0 = arith.constant 0 : i32
    %2 = arith.cmpi ne, %1, %c0_i32_0 : i32
    scf.if %2 {
      %cst_10 = arith.constant 0.000000e+00 : f32
      %13 = vector.broadcast %cst_10 : f32 to vector<8x128xf32>
      %c0_11 = arith.constant 0 : index
      %c0_12 = arith.constant 0 : index
      %14 = vector.load %arg7[%c0_11, %c0_12] : memref<8x128xf32, #tpu.memory_space<vmem>>, vector<8x128xf32>
      tpu.vector_store %arg7[%c0_11, %c0_12], %13 {strides = array<i32>} : memref<8x128xf32, #tpu.memory_space<vmem>>, vector<8x128xf32>,
    } else {
    }
    %c0 = arith.constant 0 : index
    %c0_1 = arith.constant 0 : index
    %3 = vector.load %arg7[%c0, %c0_1] : memref<8x128xf32, #tpu.memory_space<vmem>>, vector<8x128xf32>
    %c0_2 = arith.constant 0 : index
    %c0_3 = arith.constant 0 : index
    %4 = vector.load %arg2[%c0_2, %c0_3] : memref<8x256xbf16, #tpu.memory_space<vmem>>, vector<8x256xbf16>
    %c0_4 = arith.constant 0 : index
    %c0_5 = arith.constant 0 : index
    %5 = vector.load %arg3[%c0_4, %c0_5] : memref<256x128xi8, #tpu.memory_space<vmem>>, vector<256x128xi8>
    %6 = arith.sitofp %5 : vector<256x128xi8> to vector<256x128xbf16>
    %cst = arith.constant dense<0.000000e+00> : vector<8x128xf32>
    %7 = tpu.matmul %4, %6, %cst {dimension_numbers = #tpu.dot_dimension_numbers<[1], [0], [0], [1], [0, 0, 1, 1], [], []>} : vector<8x256xbf16>, vector<256x128xbf16>, vector<8x128xf32> -> vector<8x128xf32>
    %8 = arith.addf %3, %7 : vector<8x128xf32>
    %c0_6 = arith.constant 0 : index
    %c0_7 = arith.constant 0 : index
    %9 = vector.load %arg7[%c0_6, %c0_7] : memref<8x128xf32, #tpu.memory_space<vmem>>, vector<8x128xf32>
    tpu.vector_store %arg7[%c0_6, %c0_7], %8 {strides = array<i32>} : memref<8x128xf32, #tpu.memory_space<vmem>>, vector<8x128xf32>,
    %c0_i32_8 = arith.constant 0 : i32
    %10 = arith.cmpi eq, %arg1, %c0_i32_8 : i32
    %11 = arith.extui %10 : i1 to i32
    %c0_i32_9 = arith.constant 0 : i32
    %12 = arith.cmpi ne, %11, %c0_i32_9 : i32
    scf.if %12 {
      %c0_10 = arith.constant 0 : index
      %c0_11 = arith.constant 0 : index
      %13 = vector.load %arg7[%c0_10, %c0_11] : memref<8x128xf32, #tpu.memory_space<vmem>>, vector<8x128xf32>
      %c0_12 = arith.constant 0 : index
      %c0_13 = arith.constant 0 : index
      %14 = vector.load %arg4[%c0_12, %c0_13] : memref<1x128xf32, #tpu.memory_space<vmem>>, vector<1x128xf32>
      %15 = vector.broadcast %14 : vector<1x128xf32> to vector<8x128xf32>
      %16 = arith.mulf %13, %15 : vector<8x128xf32>
      %c0_14 = arith.constant 0 : index
      %c0_15 = arith.constant 0 : index
      %17 = vector.load %arg5[%c0_14, %c0_15] : memref<1x128xf32, #tpu.memory_space<vmem>>, vector<1x128xf32>
      %18 = vector.broadcast %17 : vector<1x128xf32> to vector<8x128xf32>
      %19 = arith.addf %16, %18 : vector<8x128xf32>
      %cst_16 = arith.constant 0.000000e+00 : f32
      %20 = vector.broadcast %cst_16 : f32 to vector<8x128xf32>
      %21 = arith.maximumf %19, %20 : vector<8x128xf32>
      %c0_17 = arith.constant 0 : index
      %c0_18 = arith.constant 0 : index
      %22 = vector.load %arg6[%c0_17, %c0_18] : memref<8x128xf32, #tpu.memory_space<vmem>>, vector<8x128xf32>
      tpu.vector_store %arg6[%c0_17, %c0_18], %21 {strides = array<i32>} : memref<8x128xf32, #tpu.memory_space<vmem>>, vector<8x128xf32>,
    } else {
    }
    return
  }
  func.func @transform_0(%arg0: i32, %arg1: i32) -> (i32, i32) {
    %c0_i32 = arith.constant 0 : i32
    %c0_i32_0 = arith.constant 0 : i32
    return %c0_i32, %arg1 : i32, i32
  }
  func.func @transform_1(%arg0: i32, %arg1: i32) -> (i32, i32) {
    %c0_i32 = arith.constant 0 : i32
    return %arg1, %arg0 : i32, i32
  }
  func.func @transform_2(%arg0: i32, %arg1: i32) -> (i32, i32) {
    %c0_i32 = arith.constant 0 : i32
    %c0_i32_0 = arith.constant 0 : i32
    return %c0_i32, %arg0 : i32, i32
  }
  func.func @transform_3(%arg0: i32, %arg1: i32) -> (i32, i32) {
    %c0_i32 = arith.constant 0 : i32
    %c0_i32_0 = arith.constant 0 : i32
    return %c0_i32, %arg0 : i32, i32
  }
  func.func @transform_4(%arg0: i32, %arg1: i32) -> (i32, i32) {
    %c0_i32 = arith.constant 0 : i32
    %c0_i32_0 = arith.constant 0 : i32
    return %c0_i32, %arg0 : i32, i32
  }
}

module attributes {stable_mosaic.version = 11 : i64} {
  func.func @fc_kernel(%arg0: i32, %arg1: i32, %arg2: memref<8x128xbf16, #tpu.memory_space<vmem>>, %arg3: memref<128x128xi8, #tpu.memory_space<vmem>>, %arg4: memref<1x128xf32, #tpu.memory_space<vmem>>, %arg5: memref<1x128xf32, #tpu.memory_space<vmem>>, %arg6: memref<8x128xf32, #tpu.memory_space<vmem>>, %arg7: memref<8x128xf32, #tpu.memory_space<vmem>>) attributes {dimension_semantics = [#tpu.dimension_semantics<parallel>, #tpu.dimension_semantics<arbitrary>], iteration_bounds = array<i64: 1, 1>, scalar_prefetch = 0 : i64, scratch_operands = 1 : i64, tpu.core_type = #tpu.core_type<tc>, window_params = [{transform_indices = @transform_0, window_bounds = array<i64: 8, 128>}, {transform_indices = @transform_1, window_bounds = array<i64: 128, 128>}, {transform_indices = @transform_2, window_bounds = array<i64: 1, 128>}, {transform_indices = @transform_3, window_bounds = array<i64: 1, 128>}, {transform_indices = @transform_4, window_bounds = array<i64: 8, 128>}]} {
    %c0_i32 = arith.constant 0 : i32
    %0 = arith.cmpi eq, %arg1, %c0_i32 : i32
    %1 = arith.extui %0 : i1 to i32
    %c0_i32_0 = arith.constant 0 : i32
    %2 = arith.cmpi ne, %1, %c0_i32_0 : i32
    scf.if %2 {
      %cst_10 = arith.constant 0.000000e+00 : f32
      %13 = vector.broadcast %cst_10 : f32 to vector<8x128xf32>
      %c0_11 = arith.constant 0 : index
      %c0_12 = arith.constant 0 : index
      %14 = vector.load %arg7[%c0_11, %c0_12] : memref<8x128xf32, #tpu.memory_space<vmem>>, vector<8x128xf32>
      tpu.vector_store %arg7[%c0_11, %c0_12], %13 {strides = array<i32>} : memref<8x128xf32, #tpu.memory_space<vmem>>, vector<8x128xf32>,
    } else {
    }
    %c0 = arith.constant 0 : index
    %c0_1 = arith.constant 0 : index
    %3 = vector.load %arg7[%c0, %c0_1] : memref<8x128xf32, #tpu.memory_space<vmem>>, vector<8x128xf32>
    %c0_2 = arith.constant 0 : index
    %c0_3 = arith.constant 0 : index
    %4 = vector.load %arg2[%c0_2, %c0_3] : memref<8x128xbf16, #tpu.memory_space<vmem>>, vector<8x128xbf16>
    %c0_4 = arith.constant 0 : index
    %c0_5 = arith.constant 0 : index
    %5 = vector.load %arg3[%c0_4, %c0_5] : memref<128x128xi8, #tpu.memory_space<vmem>>, vector<128x128xi8>
    %6 = arith.sitofp %5 : vector<128x128xi8> to vector<128x128xbf16>
    %cst = arith.constant dense<0.000000e+00> : vector<8x128xf32>
    %7 = tpu.matmul %4, %6, %cst {dimension_numbers = #tpu.dot_dimension_numbers<[1], [0], [0], [1], [0, 0, 1, 1], [], []>} : vector<8x128xbf16>, vector<128x128xbf16>, vector<8x128xf32> -> vector<8x128xf32>
    %8 = arith.addf %3, %7 : vector<8x128xf32>
    %c0_6 = arith.constant 0 : index
    %c0_7 = arith.constant 0 : index
    %9 = vector.load %arg7[%c0_6, %c0_7] : memref<8x128xf32, #tpu.memory_space<vmem>>, vector<8x128xf32>
    tpu.vector_store %arg7[%c0_6, %c0_7], %8 {strides = array<i32>} : memref<8x128xf32, #tpu.memory_space<vmem>>, vector<8x128xf32>,
    %c0_i32_8 = arith.constant 0 : i32
    %10 = arith.cmpi eq, %arg1, %c0_i32_8 : i32
    %11 = arith.extui %10 : i1 to i32
    %c0_i32_9 = arith.constant 0 : i32
    %12 = arith.cmpi ne, %11, %c0_i32_9 : i32
    scf.if %12 {
      %c0_10 = arith.constant 0 : index
      %c0_11 = arith.constant 0 : index
      %13 = vector.load %arg7[%c0_10, %c0_11] : memref<8x128xf32, #tpu.memory_space<vmem>>, vector<8x128xf32>
      %c0_12 = arith.constant 0 : index
      %c0_13 = arith.constant 0 : index
      %14 = vector.load %arg4[%c0_12, %c0_13] : memref<1x128xf32, #tpu.memory_space<vmem>>, vector<1x128xf32>
      %15 = vector.broadcast %14 : vector<1x128xf32> to vector<8x128xf32>
      %16 = arith.mulf %13, %15 : vector<8x128xf32>
      %c0_14 = arith.constant 0 : index
      %c0_15 = arith.constant 0 : index
      %17 = vector.load %arg5[%c0_14, %c0_15] : memref<1x128xf32, #tpu.memory_space<vmem>>, vector<1x128xf32>
      %18 = vector.broadcast %17 : vector<1x128xf32> to vector<8x128xf32>
      %19 = arith.addf %16, %18 : vector<8x128xf32>
      %cst_16 = arith.constant 0.000000e+00 : f32
      %20 = vector.broadcast %cst_16 : f32 to vector<8x128xf32>
      %21 = arith.maximumf %19, %20 : vector<8x128xf32>
      %c0_17 = arith.constant 0 : index
      %c0_18 = arith.constant 0 : index
      %22 = vector.load %arg6[%c0_17, %c0_18] : memref<8x128xf32, #tpu.memory_space<vmem>>, vector<8x128xf32>
      tpu.vector_store %arg6[%c0_17, %c0_18], %21 {strides = array<i32>} : memref<8x128xf32, #tpu.memory_space<vmem>>, vector<8x128xf32>,
    } else {
    }
    return
  }
  func.func @transform_0(%arg0: i32, %arg1: i32) -> (i32, i32) {
    %c0_i32 = arith.constant 0 : i32
    %c0_i32_0 = arith.constant 0 : i32
    return %c0_i32, %arg1 : i32, i32
  }
  func.func @transform_1(%arg0: i32, %arg1: i32) -> (i32, i32) {
    %c0_i32 = arith.constant 0 : i32
    return %arg1, %arg0 : i32, i32
  }
  func.func @transform_2(%arg0: i32, %arg1: i32) -> (i32, i32) {
    %c0_i32 = arith.constant 0 : i32
    %c0_i32_0 = arith.constant 0 : i32
    return %c0_i32, %arg0 : i32, i32
  }
  func.func @transform_3(%arg0: i32, %arg1: i32) -> (i32, i32) {
    %c0_i32 = arith.constant 0 : i32
    %c0_i32_0 = arith.constant 0 : i32
    return %c0_i32, %arg0 : i32, i32
  }
  func.func @transform_4(%arg0: i32, %arg1: i32) -> (i32, i32) {
    %c0_i32 = arith.constant 0 : i32
    %c0_i32_0 = arith.constant 0 : i32
    return %c0_i32, %arg0 : i32, i32
  }
}

module attributes {stable_mosaic.version = 11 : i64} {
  func.func @fc_kernel(%arg0: i32, %arg1: i32, %arg2: memref<8x128xbf16, #tpu.memory_space<vmem>>, %arg3: memref<128x128xi8, #tpu.memory_space<vmem>>, %arg4: memref<1x128xf32, #tpu.memory_space<vmem>>, %arg5: memref<1x128xf32, #tpu.memory_space<vmem>>, %arg6: memref<8x128xf32, #tpu.memory_space<vmem>>, %arg7: memref<8x128xf32, #tpu.memory_space<vmem>>) attributes {dimension_semantics = [#tpu.dimension_semantics<parallel>, #tpu.dimension_semantics<arbitrary>], iteration_bounds = array<i64: 1, 1>, scalar_prefetch = 0 : i64, scratch_operands = 1 : i64, tpu.core_type = #tpu.core_type<tc>, window_params = [{transform_indices = @transform_0, window_bounds = array<i64: 8, 128>}, {transform_indices = @transform_1, window_bounds = array<i64: 128, 128>}, {transform_indices = @transform_2, window_bounds = array<i64: 1, 128>}, {transform_indices = @transform_3, window_bounds = array<i64: 1, 128>}, {transform_indices = @transform_4, window_bounds = array<i64: 8, 128>}]} {
    %c0_i32 = arith.constant 0 : i32
    %0 = arith.cmpi eq, %arg1, %c0_i32 : i32
    %1 = arith.extui %0 : i1 to i32
    %c0_i32_0 = arith.constant 0 : i32
    %2 = arith.cmpi ne, %1, %c0_i32_0 : i32
    scf.if %2 {
      %cst_10 = arith.constant 0.000000e+00 : f32
      %13 = vector.broadcast %cst_10 : f32 to vector<8x128xf32>
      %c0_11 = arith.constant 0 : index
      %c0_12 = arith.constant 0 : index
      %14 = vector.load %arg7[%c0_11, %c0_12] : memref<8x128xf32, #tpu.memory_space<vmem>>, vector<8x128xf32>
      tpu.vector_store %arg7[%c0_11, %c0_12], %13 {strides = array<i32>} : memref<8x128xf32, #tpu.memory_space<vmem>>, vector<8x128xf32>,
    } else {
    }
    %c0 = arith.constant 0 : index
    %c0_1 = arith.constant 0 : index
    %3 = vector.load %arg7[%c0, %c0_1] : memref<8x128xf32, #tpu.memory_space<vmem>>, vector<8x128xf32>
    %c0_2 = arith.constant 0 : index
    %c0_3 = arith.constant 0 : index
    %4 = vector.load %arg2[%c0_2, %c0_3] : memref<8x128xbf16, #tpu.memory_space<vmem>>, vector<8x128xbf16>
    %c0_4 = arith.constant 0 : index
    %c0_5 = arith.constant 0 : index
    %5 = vector.load %arg3[%c0_4, %c0_5] : memref<128x128xi8, #tpu.memory_space<vmem>>, vector<128x128xi8>
    %6 = arith.sitofp %5 : vector<128x128xi8> to vector<128x128xbf16>
    %cst = arith.constant dense<0.000000e+00> : vector<8x128xf32>
    %7 = tpu.matmul %4, %6, %cst {dimension_numbers = #tpu.dot_dimension_numbers<[1], [0], [0], [1], [0, 0, 1, 1], [], []>} : vector<8x128xbf16>, vector<128x128xbf16>, vector<8x128xf32> -> vector<8x128xf32>
    %8 = arith.addf %3, %7 : vector<8x128xf32>
    %c0_6 = arith.constant 0 : index
    %c0_7 = arith.constant 0 : index
    %9 = vector.load %arg7[%c0_6, %c0_7] : memref<8x128xf32, #tpu.memory_space<vmem>>, vector<8x128xf32>
    tpu.vector_store %arg7[%c0_6, %c0_7], %8 {strides = array<i32>} : memref<8x128xf32, #tpu.memory_space<vmem>>, vector<8x128xf32>,
    %c0_i32_8 = arith.constant 0 : i32
    %10 = arith.cmpi eq, %arg1, %c0_i32_8 : i32
    %11 = arith.extui %10 : i1 to i32
    %c0_i32_9 = arith.constant 0 : i32
    %12 = arith.cmpi ne, %11, %c0_i32_9 : i32
    scf.if %12 {
      %c0_10 = arith.constant 0 : index
      %c0_11 = arith.constant 0 : index
      %13 = vector.load %arg7[%c0_10, %c0_11] : memref<8x128xf32, #tpu.memory_space<vmem>>, vector<8x128xf32>
      %c0_12 = arith.constant 0 : index
      %c0_13 = arith.constant 0 : index
      %14 = vector.load %arg4[%c0_12, %c0_13] : memref<1x128xf32, #tpu.memory_space<vmem>>, vector<1x128xf32>
      %15 = vector.broadcast %14 : vector<1x128xf32> to vector<8x128xf32>
      %16 = arith.mulf %13, %15 : vector<8x128xf32>
      %c0_14 = arith.constant 0 : index
      %c0_15 = arith.constant 0 : index
      %17 = vector.load %arg5[%c0_14, %c0_15] : memref<1x128xf32, #tpu.memory_space<vmem>>, vector<1x128xf32>
      %18 = vector.broadcast %17 : vector<1x128xf32> to vector<8x128xf32>
      %19 = arith.addf %16, %18 : vector<8x128xf32>
      %20 = math.absf %19 : vector<8x128xf32>
      %cst_16 = arith.constant 0.000000e+00 : f32
      %21 = vector.broadcast %cst_16 : f32 to vector<8x128xf32>
      %22 = arith.subf %21, %20 : vector<8x128xf32>
      %23 = math.exp %22 : vector<8x128xf32>
      %cst_17 = arith.constant 0.000000e+00 : f32
      %24 = vector.broadcast %cst_17 : f32 to vector<8x128xf32>
      %25 = arith.cmpf oge, %19, %24 : vector<8x128xf32>
      %cst_18 = arith.constant 1.000000e+00 : f32
      %26 = vector.broadcast %cst_18 : f32 to vector<8x128xf32>
      %27 = arith.addf %26, %23 : vector<8x128xf32>
      %cst_19 = arith.constant 1.000000e+00 : f32
      %28 = vector.broadcast %cst_19 : f32 to vector<8x128xf32>
      %29 = arith.divf %28, %27 : vector<8x128xf32>
      %cst_20 = arith.constant 1.000000e+00 : f32
      %30 = vector.broadcast %cst_20 : f32 to vector<8x128xf32>
      %31 = arith.addf %30, %23 : vector<8x128xf32>
      %32 = arith.divf %23, %31 : vector<8x128xf32>
      %33 = arith.select %25, %29, %32 : vector<8x128xi1>, vector<8x128xf32>
      %c0_21 = arith.constant 0 : index
      %c0_22 = arith.constant 0 : index
      %34 = vector.load %arg6[%c0_21, %c0_22] : memref<8x128xf32, #tpu.memory_space<vmem>>, vector<8x128xf32>
      tpu.vector_store %arg6[%c0_21, %c0_22], %33 {strides = array<i32>} : memref<8x128xf32, #tpu.memory_space<vmem>>, vector<8x128xf32>,
    } else {
    }
    return
  }
  func.func @transform_0(%arg0: i32, %arg1: i32) -> (i32, i32) {
    %c0_i32 = arith.constant 0 : i32
    %c0_i32_0 = arith.constant 0 : i32
    return %c0_i32, %arg1 : i32, i32
  }
  func.func @transform_1(%arg0: i32, %arg1: i32) -> (i32, i32) {
    %c0_i32 = arith.constant 0 : i32
    return %arg1, %arg0 : i32, i32
  }
  func.func @transform_2(%arg0: i32, %arg1: i32) -> (i32, i32) {
    %c0_i32 = arith.constant 0 : i32
    %c0_i32_0 = arith.constant 0 : i32
    return %c0_i32, %arg0 : i32, i32
  }
  func.func @transform_3(%arg0: i32, %arg1: i32) -> (i32, i32) {
    %c0_i32 = arith.constant 0 : i32
    %c0_i32_0 = arith.constant 0 : i32
    return %c0_i32, %arg0 : i32, i32
  }
  func.func @transform_4(%arg0: i32, %arg1: i32) -> (i32, i32) {
    %c0_i32 = arith.constant 0 : i32
    %c0_i32_0 = arith.constant 0 : i32
    return %c0_i32, %arg0 : i32, i32
  }
}

</mosaic_0001>

<bundles_post_ra>
// kernel: adams_cnn_forward.9
= control target key start
LH: loop header
LB: loop body
LE: loop exit
PB: predicated region body
PF: predicated region fallthrough
CT: control target
= control target key end

     0   :  { %s7873_s12 = smov 0   ;;  %s7875_s13 = smov 0   ;;  %s9978_s0 = inlined_call_operand.vmem [shape: bf16[2,4,1024,27], index: 0, kind: input, shape index: {}]   ;;  %s9979_s1 = inlined_call_operand.vmem [shape: bf16[27,16], index: 1, kind: input, shape index: {}]   ;;  %s9980_s2 = inlined_call_operand.vmem [shape: f32[1,16], index: 2, kind: input, shape index: {}]   ;;  %s9981_s3 = inlined_call_operand.vmem [shape: f32[2,1024,16], index: 3, kind: output, shape index: {}]  }
   0x1   :  { %s7877_s14 = smov 0  }
   0x2 LB: > { %s25_s15 = sadd.s32 1, %s7846_s13  ;;  %p5844_p0 = scmp.ge.s32.totalorder %s7850_s14, 1  ;;  %s7850_s14 = sphi %s7877_s14, %s13_s14   ;;  %s7846_s13 = sphi %s7875_s13, %s10747_s13   ;;  %s7842_s12 = sphi %s7873_s12, %s10746_s12  }
   0x3   : > { %p27_p1 = scmp.ge.s32.totalorder %s25_s15, 2  ;;  %p158_p2 = scmp.lt.s32.totalorder %s7850_s14, 3 }
   0x5   : > { %s10749_s15 = smov (%p27_p1, %s25_s15), 0  ;;  %p159_p3 = pnand %p5844_p0, %p158_p2 }
   0x7   : > { %162 = sbr.rel (%p159_p3) target bundleno = 752 (0x2f0), region = 32 }
   0xe   : > { %v7569_v0 = vld [vmem:[%s9979_s1] sm:$0xff]   ;;  %vm867_vm0 = vcmask 1044480   ;;  %v7570_v1 = vld [vmem:[%s9979_s1 + $0x8] sm:$0x3f]   ;;  %vm868_vm1 = vcmask 1045504   ;;  %p191_p4 = scmp.lt.s32.totalorder %s7842_s12, 1 }
   0xf   : > { %7016 = vmatprep.subr.bf16.mxu0 %v7569_v0  ;;  %7148 = vmatprep.subr.bf16.mxu1 %v7569_v0  ;;  %v7852_v2 = vmov 65535   ;;  %vm674_vm2 = vcmask 220160   ;;  %vm5624_vm3 = vcmask 130048  }
  0x10   : > { %7017 = vmatpush3.bf16.msra.mxu0 %v7569_v0  ;;  %7149 = vmatpush3.bf16.msra.mxu1 %v7569_v0  ;;  %v869_v3 = vsel %vm867_vm0, 4294967295, %v7852_v2  ;;  %s10751_s12 = smov (!%p191_p4, %s7842_s12), 1 }
  0x11   : > { %v870_v4 = vsel %vm868_vm1, %v869_v3, 0  ;;  %s6750_s20 = sshll.u32 %s10751_s12, 11  ;;  %s6751_s26 = sshll.u32 %s10751_s12, 10 }
  0x12   : > { %v872_v5 = vand.u32 %v7570_v1, %v870_v4  ;;  %s7903_s23 = scalar_lea.vmem %s9978_s0, %s6750_s20  ;;  %s9175_s29 = scalar_lea.vmem %s9981_s3, %s6751_s26 }
  0x13   : > { %v7571_v6 = vld [vmem:[%s7903_s23] sm:$0xff]   ;;  %v7573_v8 = vld [vmem:[%s7903_s23 + $0x8] sm:$0xff]   ;;  %v7575_v10 = vld [vmem:[%s7903_s23 + $0x10] sm:$0xff]  }
  0x14   : > { %7018 = vmatprep.subr.bf16.mxu0 %v872_v5  ;;  %7150 = vmatprep.subr.bf16.mxu1 %v872_v5  ;;  %v7572_v7 = vld [vmem:[%s7903_s23 + $0x200] sm:$0xff]   ;;  %v7574_v9 = vld [vmem:[%s7903_s23 + $0x208] sm:$0xff]   ;;  %v7576_v11 = vld [vmem:[%s7903_s23 + $0x210] sm:$0xff]  }
  0x15   : > { %7019 = vmatpush3.bf16.msra.mxu0 %v872_v5  ;;  %7151 = vmatpush3.bf16.msra.mxu1 %v872_v5  ;;  %v7577_v12 = vld [vmem:[%s7903_s23 + $0x18] sm:$0xff]   ;;  %v7579_v14 = vld [vmem:[%s7903_s23 + $0x20] sm:$0xff]   ;;  %v7581_v16 = vld [vmem:[%s7903_s23 + $0x28] sm:$0xff]  }
  0x16   : > { %7280 = vmatprep.subr.bf16.mxu0 %v7569_v0  ;;  %7412 = vmatprep.subr.bf16.mxu1 %v7569_v0  ;;  %v7578_v13 = vld [vmem:[%s7903_s23 + $0x218] sm:$0xff]   ;;  %v7580_v15 = vld [vmem:[%s7903_s23 + $0x220] sm:$0xff]   ;;  %v7582_v17 = vld [vmem:[%s7903_s23 + $0x228] sm:$0xff]  }
  0x17   : > { %7020 = vmatprep.mubr.msk.bf16.mxu0 %vm674_vm2, %v7571_v6  ;;  %7152 = vmatprep.mubr.msk.bf16.mxu1 %vm674_vm2, %v7572_v7  ;;  %v7583_v18 = vld [vmem:[%s7903_s23 + $0x30] sm:$0xff]   ;;  %v7585_v20 = vld [vmem:[%s7903_s23 + $0x38] sm:$0xff]   ;;  %v7587_v22 = vld [vmem:[%s7903_s23 + $0x40] sm:$0xff]  }
  0x18   : > { %7021 = vmatmul.mubr.msk.bf16.vlgmr.msra.gmra.mrb[0].mxu0 %vm674_vm2, %v7573_v8  ;;  %7153 = vmatmul.mubr.msk.bf16.vlgmr.msra.gmra.mrb[0].mxu1 %vm674_vm2, %v7574_v9  ;;  %v7584_v19 = vld [vmem:[%s7903_s23 + $0x230] sm:$0xff]   ;;  %v7586_v21 = vld [vmem:[%s7903_s23 + $0x238] sm:$0xff]   ;;  %v7588_v23 = vld [vmem:[%s7903_s23 + $0x240] sm:$0xff]  }
  0x19   : > { %7281 = vmatpush3.bf16.msra.mxu0 %v7569_v0  ;;  %7413 = vmatpush3.bf16.msra.mxu1 %v7569_v0  ;;  %v7589_v24 = vld [vmem:[%s7903_s23 + $0x48] sm:$0xff]   ;;  %v7591_v26 = vld [vmem:[%s7903_s23 + $0x50] sm:$0xff]   ;;  %v7593_v28 = vld [vmem:[%s7903_s23 + $0x58] sm:$0xff]  }
  0x1a   : > { %7024 = vmatprep.mubr.msk.bf16.mxu0 %vm674_vm2, %v7575_v10  ;;  %7156 = vmatprep.mubr.msk.bf16.mxu1 %vm674_vm2, %v7576_v11  ;;  %v7590_v25 = vld [vmem:[%s7903_s23 + $0x248] sm:$0xff]   ;;  %v7592_v27 = vld [vmem:[%s7903_s23 + $0x250] sm:$0xff]   ;;  %v7594_v29 = vld [vmem:[%s7903_s23 + $0x258] sm:$0xff]  }
  0x1b   : > { %7282 = vmatprep.subr.bf16.mxu0 %v872_v5  ;;  %7414 = vmatprep.subr.bf16.mxu1 %v872_v5  ;;  %v7595_v30 = vld [vmem:[%s7903_s23 + $0x60] sm:$0xff]   ;;  %v7597_v32 = vld [vmem:[%s7903_s23 + $0x68] sm:$0xff]   ;;  %v7599_v34 = vld [vmem:[%s7903_s23 + $0x70] sm:$0xff]  }
  0x1c   : > { %v7596_v31 = vld [vmem:[%s7903_s23 + $0x260] sm:$0xff]   ;;  %v7598_v33 = vld [vmem:[%s7903_s23 + $0x268] sm:$0xff]   ;;  %v7600_v35 = vld [vmem:[%s7903_s23 + $0x270] sm:$0xff]  }
  0x1d   : > { %7283 = vmatpush3.bf16.msra.mxu0 %v872_v5  ;;  %7415 = vmatpush3.bf16.msra.mxu1 %v872_v5  ;;  %v7601_v36 = vld [vmem:[%s7903_s23 + $0x78] sm:$0xff]   ;;  %v7603_v38 = vld [vmem:[%s7903_s23 + $0x80] sm:$0xff]   ;;  %v7605_v40 = vld [vmem:[%s7903_s23 + $0x88] sm:$0xff]  }
  0x1e   : > { %v7602_v37 = vld [vmem:[%s7903_s23 + $0x278] sm:$0xff]   ;;  %v7604_v39 = vld [vmem:[%s7903_s23 + $0x280] sm:$0xff]   ;;  %v7606_v41 = vld [vmem:[%s7903_s23 + $0x288] sm:$0xff]  }
  0x1f   : > { %v7607_v42 = vld [vmem:[%s7903_s23 + $0x90] sm:$0xff]   ;;  %v7609_v44 = vld [vmem:[%s7903_s23 + $0x98] sm:$0xff]   ;;  %v7611_v46 = vld [vmem:[%s7903_s23 + $0xa0] sm:$0xff]  }
  0x20   : > { %7025 = vmatmul.mubr.msk.bf16.gmra.mrb[4].mxu0 %vm674_vm2, %v7577_v12  ;;  %7157 = vmatmul.mubr.msk.bf16.gmra.mrb[4].mxu1 %vm674_vm2, %v7578_v13  ;;  %v7608_v43 = vld [vmem:[%s7903_s23 + $0x290] sm:$0xff]   ;;  %v7610_v45 = vld [vmem:[%s7903_s23 + $0x298] sm:$0xff]   ;;  %v7612_v47 = vld [vmem:[%s7903_s23 + $0x2a0] sm:$0xff]  }
  0x21   : > { %7028 = vmatprep.mubr.msk.bf16.mxu0 %vm674_vm2, %v7579_v14  ;;  %7160 = vmatprep.mubr.msk.bf16.mxu1 %vm674_vm2, %v7580_v15  ;;  %v7613_v48 = vld [vmem:[%s7903_s23 + $0xa8] sm:$0xff]   ;;  %v7615_v50 = vld [vmem:[%s7903_s23 + $0xb0] sm:$0xff]   ;;  %v7617_v52 = vld [vmem:[%s7903_s23 + $0xb8] sm:$0xff]  }
  0x22   : > { %v7614_v49 = vld [vmem:[%s7903_s23 + $0x2a8] sm:$0xff]   ;;  %v7616_v51 = vld [vmem:[%s7903_s23 + $0x2b0] sm:$0xff]   ;;  %v7618_v53 = vld [vmem:[%s7903_s23 + $0x2b8] sm:$0xff]  }
  0x23   : > { %v7619_v54 = vld [vmem:[%s7903_s23 + $0xc0] sm:$0xff]   ;;  %v7621_v56 = vld [vmem:[%s7903_s23 + $0xc8] sm:$0xff]   ;;  %v7623_v58 = vld [vmem:[%s7903_s23 + $0xd0] sm:$0xff]  }
  0x24   : > { %v7620_v55 = vld [vmem:[%s7903_s23 + $0x2c0] sm:$0xff]   ;;  %v7622_v57 = vld [vmem:[%s7903_s23 + $0x2c8] sm:$0xff]   ;;  %v7624_v59 = vld [vmem:[%s7903_s23 + $0x2d0] sm:$0xff]  }
  0x25   : > { %v7625_v60 = vld [vmem:[%s7903_s23 + $0xd8] sm:$0xff]   ;;  %v7627_v62 = vld [vmem:[%s7903_s23 + $0xe0] sm:$0xff]   ;;  %v7629_v0 = vld [vmem:[%s7903_s23 + $0xe8] sm:$0xff]  }
  0x26   : > { %v7626_v61 = vld [vmem:[%s7903_s23 + $0x2d8] sm:$0xff]   ;;  %v7628_v63 = vld [vmem:[%s7903_s23 + $0x2e0] sm:$0xff]   ;;  %v7630_v1 = vld [vmem:[%s7903_s23 + $0x2e8] sm:$0xff]  }
  0x27   : > { %v7631_v2 = vld [vmem:[%s7903_s23 + $0xf0] sm:$0xff]   ;;  %v7633_v4 = vld [vmem:[%s7903_s23 + $0xf8] sm:$0xff]   ;;  %v7635_v6 = vld [vmem:[%s7903_s23 + $0x100] sm:$0xff]  }
  0x28   : > { %7029 = vmatmul.mubr.msk.bf16.gmra.mrb[8].mxu0 %vm674_vm2, %v7581_v16  ;;  %7161 = vmatmul.mubr.msk.bf16.gmra.mrb[8].mxu1 %vm674_vm2, %v7582_v17  ;;  %v7632_v3 = vld [vmem:[%s7903_s23 + $0x2f0] sm:$0xff]   ;;  %v7634_v5 = vld [vmem:[%s7903_s23 + $0x2f8] sm:$0xff]   ;;  %v7636_v7 = vld [vmem:[%s7903_s23 + $0x300] sm:$0xff]  }
  0x29   : > { %7032 = vmatprep.mubr.msk.bf16.mxu0 %vm674_vm2, %v7583_v18  ;;  %7164 = vmatprep.mubr.msk.bf16.mxu1 %vm674_vm2, %v7584_v19  ;;  %v7637_v8 = vld [vmem:[%s7903_s23 + $0x108] sm:$0xff]   ;;  %v7639_v10 = vld [vmem:[%s7903_s23 + $0x110] sm:$0xff]   ;;  %v7641_v12 = vld [vmem:[%s7903_s23 + $0x118] sm:$0xff]  }
  0x2a   : > { %v7638_v9 = vld [vmem:[%s7903_s23 + $0x308] sm:$0xff]   ;;  %v7640_v11 = vld [vmem:[%s7903_s23 + $0x310] sm:$0xff]   ;;  %v7642_v13 = vld [vmem:[%s7903_s23 + $0x318] sm:$0xff]  }
  0x2b   : > { %v7643_v14 = vld [vmem:[%s7903_s23 + $0x120] sm:$0xff]   ;;  %v7645_v16 = vld [vmem:[%s7903_s23 + $0x128] sm:$0xff]   ;;  %v7647_v18 = vld [vmem:[%s7903_s23 + $0x130] sm:$0xff]  }
  0x2c   : > { %v7644_v15 = vld [vmem:[%s7903_s23 + $0x320] sm:$0xff]   ;;  %v7646_v17 = vld [vmem:[%s7903_s23 + $0x328] sm:$0xff]   ;;  %v7648_v19 = vld [vmem:[%s7903_s23 + $0x330] sm:$0xff]  }
  0x30   : > { %7033 = vmatmul.mubr.msk.bf16.gmra.mrb[12].mxu0 %vm674_vm2, %v7585_v20  ;;  %7165 = vmatmul.mubr.msk.bf16.gmra.mrb[12].mxu1 %vm674_vm2, %v7586_v21  ;;  %v7649_v20 = vld [vmem:[%s7903_s23 + $0x138] sm:$0xff]  }
  0x31   : > { %7036 = vmatprep.mubr.msk.bf16.mxu0 %vm674_vm2, %v7587_v22  ;;  %7168 = vmatprep.mubr.msk.bf16.mxu1 %vm674_vm2, %v7588_v23  ;;  %v7650_v21 = vld [vmem:[%s7903_s23 + $0x338] sm:$0xff]   ;;  %v7651_v22 = vld [vmem:[%s7903_s23 + $0x140] sm:$0xff]  }
  0x32   : > { %v7652_v23 = vld [vmem:[%s7903_s23 + $0x340] sm:$0xff]  }
  0x38   : > { %7037 = vmatmul.mubr.msk.bf16.gmra.mrb[16].mxu0 %vm674_vm2, %v7589_v24  ;;  %7169 = vmatmul.mubr.msk.bf16.gmra.mrb[16].mxu1 %vm674_vm2, %v7590_v25  ;;  %v7653_v24 = vld [vmem:[%s7903_s23 + $0x148] sm:$0xff]  }
  0x39   : > { %7040 = vmatprep.mubr.msk.bf16.mxu0 %vm674_vm2, %v7591_v26  ;;  %7172 = vmatprep.mubr.msk.bf16.mxu1 %vm674_vm2, %v7592_v27  ;;  %v7654_v25 = vld [vmem:[%s7903_s23 + $0x348] sm:$0xff]   ;;  %v7655_v26 = vld [vmem:[%s7903_s23 + $0x150] sm:$0xff]  }
  0x3a   : > { %v7656_v27 = vld [vmem:[%s7903_s23 + $0x350] sm:$0xff]  }
  0x40   : > { %7041 = vmatmul.mubr.msk.bf16.gmra.mrb[20].mxu0 %vm674_vm2, %v7593_v28  ;;  %7173 = vmatmul.mubr.msk.bf16.gmra.mrb[20].mxu1 %vm674_vm2, %v7594_v29  ;;  %v7657_v28 = vld [vmem:[%s7903_s23 + $0x158] sm:$0xff]  }
  0x41   : > { %7044 = vmatprep.mubr.msk.bf16.mxu0 %vm674_vm2, %v7595_v30  ;;  %7176 = vmatprep.mubr.msk.bf16.mxu1 %vm674_vm2, %v7596_v31  ;;  %v7658_v29 = vld [vmem:[%s7903_s23 + $0x358] sm:$0xff]   ;;  %v7659_v30 = vld [vmem:[%s7903_s23 + $0x160] sm:$0xff]  }
  0x42   : > { %v7660_v31 = vld [vmem:[%s7903_s23 + $0x360] sm:$0xff]  }
  0x48   : > { %7045 = vmatmul.mubr.msk.bf16.gmra.mrb[24].mxu0 %vm674_vm2, %v7597_v32  ;;  %7177 = vmatmul.mubr.msk.bf16.gmra.mrb[24].mxu1 %vm674_vm2, %v7598_v33  ;;  %v7661_v32 = vld [vmem:[%s7903_s23 + $0x168] sm:$0xff]  }
  0x49   : > { %7048 = vmatprep.mubr.msk.bf16.mxu0 %vm674_vm2, %v7599_v34  ;;  %7180 = vmatprep.mubr.msk.bf16.mxu1 %vm674_vm2, %v7600_v35  ;;  %v7662_v33 = vld [vmem:[%s7903_s23 + $0x368] sm:$0xff]   ;;  %v7663_v34 = vld [vmem:[%s7903_s23 + $0x170] sm:$0xff]  }
  0x4a   : > { %v7664_v35 = vld [vmem:[%s7903_s23 + $0x370] sm:$0xff]  }
  0x50   : > { %7049 = vmatmul.mubr.msk.bf16.gmra.mrb[28].mxu0 %vm674_vm2, %v7601_v36  ;;  %7181 = vmatmul.mubr.msk.bf16.gmra.mrb[28].mxu1 %vm674_vm2, %v7602_v37  ;;  %v7665_v36 = vld [vmem:[%s7903_s23 + $0x178] sm:$0xff]  }
  0x51   : > { %7052 = vmatprep.mubr.msk.bf16.mxu0 %vm674_vm2, %v7603_v38  ;;  %7184 = vmatprep.mubr.msk.bf16.mxu1 %vm674_vm2, %v7604_v39  ;;  %v7666_v37 = vld [vmem:[%s7903_s23 + $0x378] sm:$0xff]   ;;  %v7667_v38 = vld [vmem:[%s7903_s23 + $0x180] sm:$0xff]  }
  0x52   : > { %v7668_v39 = vld [vmem:[%s7903_s23 + $0x380] sm:$0xff]  }
  0x58   : > { %7053 = vmatmul.mubr.msk.bf16.gmra.mrb[32].mxu0 %vm674_vm2, %v7605_v40  ;;  %7185 = vmatmul.mubr.msk.bf16.gmra.mrb[32].mxu1 %vm674_vm2, %v7606_v41  ;;  %v7669_v40 = vld [vmem:[%s7903_s23 + $0x188] sm:$0xff]  }
  0x59   : > { %7056 = vmatprep.mubr.msk.bf16.mxu0 %vm674_vm2, %v7607_v42  ;;  %7188 = vmatprep.mubr.msk.bf16.mxu1 %vm674_vm2, %v7608_v43  ;;  %v7670_v41 = vld [vmem:[%s7903_s23 + $0x388] sm:$0xff]   ;;  %v7671_v42 = vld [vmem:[%s7903_s23 + $0x190] sm:$0xff]  }
  0x5a   : > { %v7672_v43 = vld [vmem:[%s7903_s23 + $0x390] sm:$0xff]  }
  0x60   : > { %7057 = vmatmul.mubr.msk.bf16.gmra.mrb[36].mxu0 %vm674_vm2, %v7609_v44  ;;  %7189 = vmatmul.mubr.msk.bf16.gmra.mrb[36].mxu1 %vm674_vm2, %v7610_v45  ;;  %v7673_v44 = vld [vmem:[%s7903_s23 + $0x198] sm:$0xff]  }
  0x61   : > { %7060 = vmatprep.mubr.msk.bf16.mxu0 %vm674_vm2, %v7611_v46  ;;  %7192 = vmatprep.mubr.msk.bf16.mxu1 %vm674_vm2, %v7612_v47  ;;  %v7674_v45 = vld [vmem:[%s7903_s23 + $0x398] sm:$0xff]   ;;  %v7675_v46 = vld [vmem:[%s7903_s23 + $0x1a0] sm:$0xff]  }
  0x62   : > { %v7676_v47 = vld [vmem:[%s7903_s23 + $0x3a0] sm:$0xff]  }
  0x68   : > { %7061 = vmatmul.mubr.msk.bf16.gmra.mrb[40].mxu0 %vm674_vm2, %v7613_v48  ;;  %7193 = vmatmul.mubr.msk.bf16.gmra.mrb[40].mxu1 %vm674_vm2, %v7614_v49  ;;  %v7677_v48 = vld [vmem:[%s7903_s23 + $0x1a8] sm:$0xff]  }
  0x69   : > { %7064 = vmatprep.mubr.msk.bf16.mxu0 %vm674_vm2, %v7615_v50  ;;  %7196 = vmatprep.mubr.msk.bf16.mxu1 %vm674_vm2, %v7616_v51  ;;  %v7678_v49 = vld [vmem:[%s7903_s23 + $0x3a8] sm:$0xff]   ;;  %v7679_v50 = vld [vmem:[%s7903_s23 + $0x1b0] sm:$0xff]  }
  0x6a   : > { %v7680_v51 = vld [vmem:[%s7903_s23 + $0x3b0] sm:$0xff]  }
  0x70   : > { %7065 = vmatmul.mubr.msk.bf16.gmra.mrb[44].mxu0 %vm674_vm2, %v7617_v52  ;;  %7197 = vmatmul.mubr.msk.bf16.gmra.mrb[44].mxu1 %vm674_vm2, %v7618_v53  ;;  %v7681_v52 = vld [vmem:[%s7903_s23 + $0x1b8] sm:$0xff]  }
  0x71   : > { %7068 = vmatprep.mubr.msk.bf16.mxu0 %vm674_vm2, %v7619_v54  ;;  %7200 = vmatprep.mubr.msk.bf16.mxu1 %vm674_vm2, %v7620_v55  ;;  %v7682_v54 = vld [vmem:[%s7903_s23 + $0x3b8] sm:$0xff]   ;;  %v7683_v55 = vld [vmem:[%s7903_s23 + $0x1c0] sm:$0xff]  }
  0x78   : > { %7069 = vmatmul.mubr.msk.bf16.gmra.mrb[48].mxu0 %vm674_vm2, %v7621_v56  ;;  %7201 = vmatmul.mubr.msk.bf16.gmra.mrb[48].mxu1 %vm674_vm2, %v7622_v57 }
  0x79   : > { %7072 = vmatprep.mubr.msk.bf16.mxu0 %vm674_vm2, %v7623_v58  ;;  %7204 = vmatprep.mubr.msk.bf16.mxu1 %vm674_vm2, %v7624_v59 }
  0x80   : > { %7073 = vmatmul.mubr.msk.bf16.gmra.mrb[52].mxu0 %vm674_vm2, %v7625_v60  ;;  %7205 = vmatmul.mubr.msk.bf16.gmra.mrb[52].mxu1 %vm674_vm2, %v7626_v61 }
  0x81   : > { %7076 = vmatprep.mubr.msk.bf16.mxu0 %vm674_vm2, %v7627_v62  ;;  %7208 = vmatprep.mubr.msk.bf16.mxu1 %vm674_vm2, %v7628_v63 }
  0x88   : > { %7077 = vmatmul.mubr.msk.bf16.gmra.mrb[56].mxu0 %vm674_vm2, %v7629_v0  ;;  %7209 = vmatmul.mubr.msk.bf16.gmra.mrb[56].mxu1 %vm674_vm2, %v7630_v1  ;;  %v7684_v0 = vld [vmem:[%s7903_s23 + $0x3c0] sm:$0xff]  }
  0x89   : > { %7080 = vmatprep.mubr.msk.bf16.mxu0 %vm674_vm2, %v7631_v2  ;;  %7212 = vmatprep.mubr.msk.bf16.mxu1 %vm674_vm2, %v7632_v3  ;;  %v7708_v3 = vld [vmem:[%s7903_s23 + $0x620] sm:$0xff]  }
  0x90   : > { %7081 = vmatmul.mubr.msk.bf16.gmra.mrb[60].mxu0 %vm674_vm2, %v7633_v4  ;;  %7213 = vmatmul.mubr.msk.bf16.gmra.mrb[60].mxu1 %vm674_vm2, %v7634_v5  ;;  %v7685_v4 = vld [vmem:[%s7903_s23 + $0x1c8] sm:$0xff]  }
  0x91   : > { %7084 = vmatprep.mubr.msk.bf16.mxu0 %vm674_vm2, %v7635_v6  ;;  %7216 = vmatprep.mubr.msk.bf16.mxu1 %vm674_vm2, %v7636_v7  ;;  %v7686_v6 = vld [vmem:[%s7903_s23 + $0x3c8] sm:$0xff]   ;;  %v7687_v7 = vld [vmem:[%s7903_s23 + $0x1d0] sm:$0xff]  }
  0x98   : > { %7085 = vmatmul.mubr.msk.bf16.gmra.mrb[64].mxu0 %vm674_vm2, %v7637_v8  ;;  %7217 = vmatmul.mubr.msk.bf16.gmra.mrb[64].mxu1 %vm674_vm2, %v7638_v9 }
  0x99   : > { %7088 = vmatprep.mubr.msk.bf16.mxu0 %vm674_vm2, %v7639_v10  ;;  %7220 = vmatprep.mubr.msk.bf16.mxu1 %vm674_vm2, %v7640_v11 }
  0xa0   : > { %7089 = vmatmul.mubr.msk.bf16.gmra.mrb[68].mxu0 %vm674_vm2, %v7641_v12  ;;  %7221 = vmatmul.mubr.msk.bf16.gmra.mrb[68].mxu1 %vm674_vm2, %v7642_v13  ;;  %v7706_v13 = vld [vmem:[%s7903_s23 + $0x618] sm:$0xff]  }
  0xa1   : > { %7092 = vmatprep.mubr.msk.bf16.mxu0 %vm674_vm2, %v7643_v14  ;;  %7224 = vmatprep.mubr.msk.bf16.mxu1 %vm674_vm2, %v7644_v15 }
  0xa8   : > { %7093 = vmatmul.mubr.msk.bf16.gmra.mrb[72].mxu0 %vm674_vm2, %v7645_v16  ;;  %7225 = vmatmul.mubr.msk.bf16.gmra.mrb[72].mxu1 %vm674_vm2, %v7646_v17  ;;  %v7688_v16 = vld [vmem:[%s7903_s23 + $0x3d0] sm:$0xff]   ;;  %v7709_v17 = vld [vmem:[%s7903_s23 + $0x428] sm:$0xff]  }
  0xa9   : > { %7096 = vmatprep.mubr.msk.bf16.mxu0 %vm674_vm2, %v7647_v18  ;;  %7228 = vmatprep.mubr.msk.bf16.mxu1 %vm674_vm2, %v7648_v19 }
  0xb0   : > { %7097 = vmatmul.mubr.msk.bf16.gmra.mrb[76].mxu0 %vm674_vm2, %v7649_v20  ;;  %7229 = vmatmul.mubr.msk.bf16.gmra.mrb[76].mxu1 %vm674_vm2, %v7650_v21  ;;  %v7689_v21 = vld [vmem:[%s7903_s23 + $0x1d8] sm:$0xff]  }
  0xb1   : > { %7100 = vmatprep.mubr.msk.bf16.mxu0 %vm674_vm2, %v7651_v22  ;;  %7232 = vmatprep.mubr.msk.bf16.mxu1 %vm674_vm2, %v7652_v23 }
  0xb8   : > { %7101 = vmatmul.mubr.msk.bf16.gmra.mrb[80].mxu0 %vm674_vm2, %v7653_v24  ;;  %7233 = vmatmul.mubr.msk.bf16.gmra.mrb[80].mxu1 %vm674_vm2, %v7654_v25 }
  0xb9   : > { %7104 = vmatprep.mubr.msk.bf16.mxu0 %vm674_vm2, %v7655_v26  ;;  %7236 = vmatprep.mubr.msk.bf16.mxu1 %vm674_vm2, %v7656_v27  ;;  %v7690_v27 = vld [vmem:[%s7903_s23 + $0x3d8] sm:$0xff]  }
  0xc0   : > { %7105 = vmatmul.mubr.msk.bf16.gmra.mrb[84].mxu0 %vm674_vm2, %v7657_v28  ;;  %7237 = vmatmul.mubr.msk.bf16.gmra.mrb[84].mxu1 %vm674_vm2, %v7658_v29  ;;  %v7691_v28 = vld [vmem:[%s7903_s23 + $0x1e0] sm:$0xff]  }
  0xc1   : > { %7108 = vmatprep.mubr.msk.bf16.mxu0 %vm674_vm2, %v7659_v30  ;;  %7240 = vmatprep.mubr.msk.bf16.mxu1 %vm674_vm2, %v7660_v31 }
  0xc8   : > { %7109 = vmatmul.mubr.msk.bf16.gmra.mrb[88].mxu0 %vm674_vm2, %v7661_v32  ;;  %7241 = vmatmul.mubr.msk.bf16.gmra.mrb[88].mxu1 %vm674_vm2, %v7662_v33  ;;  %v7692_v32 = vld [vmem:[%s7903_s23 + $0x3e0] sm:$0xff]  }
  0xc9   : > { %7112 = vmatprep.mubr.msk.bf16.mxu0 %vm674_vm2, %v7663_v34  ;;  %7244 = vmatprep.mubr.msk.bf16.mxu1 %vm674_vm2, %v7664_v35  ;;  %v7704_v35 = vld [vmem:[%s7903_s23 + $0x610] sm:$0xff]  }
  0xd0   : > { %7113 = vmatmul.mubr.msk.bf16.gmra.mrb[92].mxu0 %vm674_vm2, %v7665_v36  ;;  %7245 = vmatmul.mubr.msk.bf16.gmra.mrb[92].mxu1 %vm674_vm2, %v7666_v37 }
  0xd1   : > { %7116 = vmatprep.mubr.msk.bf16.mxu0 %vm674_vm2, %v7667_v38  ;;  %7248 = vmatprep.mubr.msk.bf16.mxu1 %vm674_vm2, %v7668_v39  ;;  %v7693_v39 = vld [vmem:[%s7903_s23 + $0x1e8] sm:$0xff]  }
  0xd8   : > { %7117 = vmatmul.mubr.msk.bf16.gmra.mrb[96].mxu0 %vm674_vm2, %v7669_v40  ;;  %7249 = vmatmul.mubr.msk.bf16.gmra.mrb[96].mxu1 %vm674_vm2, %v7670_v41 }
  0xd9   : > { %7120 = vmatprep.mubr.msk.bf16.mxu0 %vm674_vm2, %v7671_v42  ;;  %7252 = vmatprep.mubr.msk.bf16.mxu1 %vm674_vm2, %v7672_v43  ;;  %v7694_v43 = vld [vmem:[%s7903_s23 + $0x3e8] sm:$0xff]  }
  0xe0   : > { %7121 = vmatmul.mubr.msk.bf16.gmra.mrb[100].mxu0 %vm674_vm2, %v7673_v44  ;;  %7253 = vmatmul.mubr.msk.bf16.gmra.mrb[100].mxu1 %vm674_vm2, %v7674_v45  ;;  %v7695_v44 = vld [vmem:[%s7903_s23 + $0x1f0] sm:$0xff]   ;;  %v7702_v45 = vld [vmem:[%s7903_s23 + $0x608] sm:$0xff]  }
  0xe1   : > { %7124 = vmatprep.mubr.msk.bf16.mxu0 %vm674_vm2, %v7675_v46  ;;  %7256 = vmatprep.mubr.msk.bf16.mxu1 %vm674_vm2, %v7676_v47 }
  0xe8   : > { %7125 = vmatmul.mubr.msk.bf16.gmra.mrb[104].mxu0 %vm674_vm2, %v7677_v48  ;;  %7257 = vmatmul.mubr.msk.bf16.gmra.mrb[104].mxu1 %vm674_vm2, %v7678_v49  ;;  %v7696_v48 = vld [vmem:[%s7903_s23 + $0x3f0] sm:$0xff]   ;;  %v7705_v49 = vld [vmem:[%s7903_s23 + $0x418] sm:$0xff]  }
  0xe9   : > { %7128 = vmatprep.mubr.msk.bf16.mxu0 %vm674_vm2, %v7679_v50  ;;  %7260 = vmatprep.mubr.msk.bf16.mxu1 %vm674_vm2, %v7680_v51 }
  0xeb   : > { %v8126_v53 = vpop.f32.mrb[0].mxu0  ;;  %v8130_v56 = vpop.f32.mrb[0].mxu1 }
  0xec   : > { %v8132_v57 = vpop.f32.mrb[1].mxu0  ;;  %v8136_v59 = vpop.f32.mrb[1].mxu1 }
  0xed   : > { %v8138_v60 = vpop.f32.mrb[2].mxu0  ;;  %v8142_v62 = vpop.f32.mrb[2].mxu1 }
  0xee   : > { %v8144_v63 = vpop.f32.mrb[3].mxu0  ;;  %v8149_v2 = vpop.f32.mrb[3].mxu1 }
  0xf0   : > { %7129 = vmatmul.mubr.msk.bf16.gmra.mrb[108].mxu0 %vm674_vm2, %v7681_v52  ;;  %7261 = vmatmul.mubr.msk.bf16.gmra.mrb[108].mxu1 %vm674_vm2, %v7682_v54 }
  0xf1   : > { %7132 = vmatprep.mubr.msk.bf16.mxu0 %vm674_vm2, %v7683_v55  ;;  %7264 = vmatprep.mubr.msk.bf16.mxu1 %vm674_vm2, %v7684_v0  ;;  %v7697_v0 = vld [vmem:[%s7903_s23 + $0x1f8] sm:$0xff]  }
  0xf3   : > { %v8158_v5 = vpop.f32.mrb[4].mxu0  ;;  %v8162_v8 = vpop.f32.mrb[4].mxu1 }
  0xf4   : > { %v8164_v9 = vpop.f32.mrb[5].mxu0  ;;  %v8168_v11 = vpop.f32.mrb[5].mxu1 }
  0xf5   : > { %v8170_v12 = vpop.f32.mrb[6].mxu0  ;;  %v8174_v14 = vpop.f32.mrb[6].mxu1 }
  0xf6   : > { %v8176_v15 = vpop.f32.mrb[7].mxu0  ;;  %v8181_v18 = vpop.f32.mrb[7].mxu1 }
  0xf8   : > { %7133 = vmatmul.mubr.msk.bf16.gmra.mrb[112].mxu0 %vm674_vm2, %v7685_v4  ;;  %7265 = vmatmul.mubr.msk.bf16.gmra.mrb[112].mxu1 %vm674_vm2, %v7686_v6 }
  0xf9   : > { %7136 = vmatprep.mubr.msk.bf16.mxu0 %vm674_vm2, %v7687_v7  ;;  %7268 = vmatprep.mubr.msk.bf16.mxu1 %vm674_vm2, %v7688_v16  ;;  %v7698_v16 = vld [vmem:[%s7903_s23 + $0x3f8] sm:$0xff]  }
  0xfb   : > { %v8189_v20 = vpop.f32.mrb[8].mxu0  ;;  %v8192_v22 = vpop.f32.mrb[8].mxu1 }
  0xfc   : > { %v8194_v23 = vpop.f32.mrb[9].mxu0  ;;  %v8198_v25 = vpop.f32.mrb[9].mxu1 }
  0xfd   : > { %v8200_v26 = vpop.f32.mrb[10].mxu0  ;;  %v8206_v30 = vpop.f32.mrb[10].mxu1 }
  0xfe   : > { %v8208_v31 = vpop.f32.mrb[11].mxu0  ;;  %v8213_v34 = vpop.f32.mrb[11].mxu1 }
 0x100   : > { %7137 = vmatmul.mubr.msk.bf16.gmra.mrb[116].mxu0 %vm674_vm2, %v7689_v21  ;;  %7269 = vmatmul.mubr.msk.bf16.gmra.mrb[116].mxu1 %vm674_vm2, %v7690_v27  ;;  %v7699_v21 = vld [vmem:[%s7903_s23 + $0x400] sm:$0xff]  }
 0x101   : > { %7140 = vmatprep.mubr.msk.bf16.mxu0 %vm674_vm2, %v7691_v28  ;;  %7272 = vmatprep.mubr.msk.bf16.mxu1 %vm674_vm2, %v7692_v32 }
 0x103   : > { %v8221_v36 = vpop.f32.mrb[12].mxu0  ;;  %v8223_v37 = vpop.f32.mrb[12].mxu1 }
 0x104   : > { %v8225_v38 = vpop.f32.mrb[13].mxu0  ;;  %v8230_v41 = vpop.f32.mrb[13].mxu1 }
 0x105   : > { %v8232_v42 = vpop.f32.mrb[14].mxu0  ;;  %v8238_v46 = vpop.f32.mrb[14].mxu1 }
 0x106   : > { %v8240_v47 = vpop.f32.mrb[15].mxu0  ;;  %v8245_v50 = vpop.f32.mrb[15].mxu1 }
 0x108   : > { %7141 = vmatmul.mubr.msk.bf16.gmra.mrb[120].mxu0 %vm674_vm2, %v7693_v39  ;;  %7273 = vmatmul.mubr.msk.bf16.gmra.mrb[120].mxu1 %vm674_vm2, %v7694_v43  ;;  %v7700_v39 = vld [vmem:[%s7903_s23 + $0x600] sm:$0xff]   ;;  %v7701_v43 = vld [vmem:[%s7903_s23 + $0x408] sm:$0xff]  }
 0x109   : > { %7144 = vmatprep.mubr.msk.bf16.mxu0 %vm674_vm2, %v7695_v44  ;;  %7276 = vmatprep.mubr.msk.bf16.mxu1 %vm674_vm2, %v7696_v48 }
 0x10b   : > { %v8253_v52 = vpop.f32.mrb[16].mxu0  ;;  %v8255_v54 = vpop.f32.mrb[16].mxu1 }
 0x10c   : > { %v8257_v55 = vpop.f32.mrb[17].mxu0  ;;  %v8262_v6 = vpop.f32.mrb[17].mxu1 }
 0x10d   : > { %v8264_v7 = vpop.f32.mrb[18].mxu0  ;;  %v8270_v28 = vpop.f32.mrb[18].mxu1 }
 0x10e   : > { %v8272_v32 = vpop.f32.mrb[19].mxu0  ;;  %v8277_v44 = vpop.f32.mrb[19].mxu1 }
 0x110   : > { %7145 = vmatmul.mubr.msk.bf16.gmra.mrb[124].mxu0 %vm674_vm2, %v7697_v0  ;;  %7277 = vmatmul.mubr.msk.bf16.gmra.mrb[124].mxu1 %vm674_vm2, %v7698_v16  ;;  %v7703_v16 = vld [vmem:[%s7903_s23 + $0x410] sm:$0xff]  }
 0x111   : > { %7284 = vmatprep.mubr.msk.bf16.mxu0 %vm674_vm2, %v7699_v21  ;;  %7416 = vmatprep.mubr.msk.bf16.mxu1 %vm674_vm2, %v7700_v39 }
 0x113   : > { %v8285_v27 = vpop.f32.mrb[20].mxu0  ;;  %v8287_v4 = vpop.f32.mrb[20].mxu1 }
 0x114   : > { %v8289_v51 = vpop.f32.mrb[21].mxu0  ;;  %v8294_v48 = vpop.f32.mrb[21].mxu1 }
 0x115   : > { %v8296_v0 = vpop.f32.mrb[22].mxu0  ;;  %v8302_v39 = vpop.f32.mrb[22].mxu1 }
 0x116   : > { %10194 = vst [vmem:[#allocation2_spill] sm:$0xff] %v8296_v0  ;;  %10195 = vst [vmem:[#allocation3_spill] sm:$0xff] %v8302_v39  ;;  %v8304_v40 = vpop.f32.mrb[23].mxu0  ;;  %v8309_v33 = vpop.f32.mrb[23].mxu1 }
 0x117   : > { %10196 = vst [vmem:[#allocation4_spill] sm:$0xff] %v8304_v40  ;;  %10197 = vst [vmem:[#allocation5_spill] sm:$0xff] %v8309_v33 }
 0x118   : > { %7285 = vmatmul.mubr.msk.bf16.vlgmr.msra.gmra.mrb[128].mxu0 %vm674_vm2, %v7701_v43  ;;  %7417 = vmatmul.mubr.msk.bf16.vlgmr.msra.gmra.mrb[128].mxu1 %vm674_vm2, %v7702_v45  ;;  %v7707_v45 = vld [vmem:[%s7903_s23 + $0x420] sm:$0xff]  }
 0x119   : > { %7288 = vmatprep.mubr.msk.bf16.mxu0 %vm674_vm2, %v7703_v16  ;;  %7420 = vmatprep.mubr.msk.bf16.mxu1 %vm674_vm2, %v7704_v35 }
 0x11b   : > { %v8317_v21 = vpop.f32.mrb[24].mxu0  ;;  %v8319_v24 = vpop.f32.mrb[24].mxu1 }
 0x11c   : > { %10198 = vst [vmem:[#allocation6_spill] sm:$0xff] %v8317_v21  ;;  %10199 = vst [vmem:[#allocation7_spill] sm:$0xff] %v8319_v24  ;;  %v8321_v19 = vpop.f32.mrb[25].mxu0  ;;  %v8326_v29 = vpop.f32.mrb[25].mxu1  ;;  %v7810_v24 = vld [vmem:[%s7903_s23 + $0x7b8] sm:$0xff]   ;;  %v7811_v21 = vld [vmem:[%s7903_s23 + $0x5c0] sm:$0xff]  }
 0x11d   : > { %10200 = vst [vmem:[#allocation8_spill] sm:$0xff] %v8321_v19  ;;  %10201 = vst [vmem:[#allocation9_spill] sm:$0xff] %v8326_v29  ;;  %v8328_v43 = vpop.f32.mrb[26].mxu0  ;;  %v8334_v16 = vpop.f32.mrb[26].mxu1  ;;  %v7809_v19 = vld [vmem:[%s7903_s23 + $0x5b8] sm:$0xff]  }
 0x11e   : > { %10202 = vst [vmem:[#allocation10_spill] sm:$0xff] %v8328_v43  ;;  %10203 = vst [vmem:[#allocation11_spill] sm:$0xff] %v8334_v16  ;;  %v8336_v10 = vpop.f32.mrb[27].mxu0  ;;  %v8341_v1 = vpop.f32.mrb[27].mxu1  ;;  %v7712_v43 = vld [vmem:[%s7903_s23 + $0x630] sm:$0xff]   ;;  %v7713_v16 = vld [vmem:[%s7903_s23 + $0x438] sm:$0xff]  }
 0x11f   : > { %10204 = vst [vmem:[#allocation12_spill] sm:$0xff] %v8336_v10  ;;  %10205 = vst [vmem:[#allocation13_spill] sm:$0xff] %v8341_v1  ;;  %v7710_v1 = vld [vmem:[%s7903_s23 + $0x628] sm:$0xff]  }
 0x120   : > { %7289 = vmatmul.mubr.msk.bf16.gmra.mrb[132].mxu0 %vm674_vm2, %v7705_v49  ;;  %7421 = vmatmul.mubr.msk.bf16.gmra.mrb[132].mxu1 %vm674_vm2, %v7706_v13  ;;  %v7711_v13 = vld [vmem:[%s7903_s23 + $0x430] sm:$0xff]  }
 0x121   : > { %7292 = vmatprep.mubr.msk.bf16.mxu0 %vm674_vm2, %v7707_v45  ;;  %7424 = vmatprep.mubr.msk.bf16.mxu1 %vm674_vm2, %v7708_v3 }
 0x123   : > { %v8349_v35 = vpop.f32.mrb[28].mxu0  ;;  %v8351_v58 = vpop.f32.mrb[28].mxu1 }
 0x124   : > { %10206 = vst [vmem:[#allocation14_spill] sm:$0xff] %v8349_v35  ;;  %10207 = vst [vmem:[#allocation15_spill] sm:$0xff] %v8351_v58  ;;  %v8353_v29 = vpop.f32.mrb[29].mxu0  ;;  %v8358_v61 = vpop.f32.mrb[29].mxu1 }
 0x125   : > { %10208 = vst [vmem:[#allocation16_spill] sm:$0xff] %v8353_v29  ;;  %10209 = vst [vmem:[#allocation17_spill] sm:$0xff] %v8358_v61  ;;  %v8360_v49 = vpop.f32.mrb[30].mxu0  ;;  %v8366_v45 = vpop.f32.mrb[30].mxu1 }
 0x126   : > { %10210 = vst [vmem:[#allocation18_spill] sm:$0xff] %v8360_v49  ;;  %10211 = vst [vmem:[#allocation19_spill] sm:$0xff] %v8366_v45  ;;  %v8368_v10 = vpop.f32.mrb[31].mxu0  ;;  %v8373_v58 = vpop.f32.mrb[31].mxu1  ;;  %v7716_v49 = vld [vmem:[%s7903_s23 + $0x640] sm:$0xff]   ;;  %v7717_v45 = vld [vmem:[%s7903_s23 + $0x448] sm:$0xff]  }
 0x127   : > { %10212 = vst [vmem:[#allocation20_spill] sm:$0xff] %v8368_v10  ;;  %10213 = vst [vmem:[#allocation21_spill] sm:$0xff] %v8373_v58  ;;  %v7714_v58 = vld [vmem:[%s7903_s23 + $0x638] sm:$0xff]  }
 0x128   : > { %7293 = vmatmul.mubr.msk.bf16.gmra.mrb[136].mxu0 %vm674_vm2, %v7709_v17  ;;  %7425 = vmatmul.mubr.msk.bf16.gmra.mrb[136].mxu1 %vm674_vm2, %v7710_v1  ;;  %v7715_v1 = vld [vmem:[%s7903_s23 + $0x440] sm:$0xff]  }
 0x129   : > { %7296 = vmatprep.mubr.msk.bf16.mxu0 %vm674_vm2, %v7711_v13  ;;  %7428 = vmatprep.mubr.msk.bf16.mxu1 %vm674_vm2, %v7712_v43 }
 0x12b   : > { %v8381_v3 = vpop.f32.mrb[32].mxu0  ;;  %v8383_v61 = vpop.f32.mrb[32].mxu1 }
 0x12c   : > { %10214 = vst [vmem:[#allocation22_spill] sm:$0xff] %v8381_v3  ;;  %10215 = vst [vmem:[#allocation23_spill] sm:$0xff] %v8383_v61  ;;  %v8385_v29 = vpop.f32.mrb[33].mxu0  ;;  %v8390_v35 = vpop.f32.mrb[33].mxu1 }
 0x12d   : > { %10216 = vst [vmem:[#allocation24_spill] sm:$0xff] %v8385_v29  ;;  %10217 = vst [vmem:[#allocation25_spill] sm:$0xff] %v8390_v35  ;;  %v8392_v17 = vpop.f32.mrb[34].mxu0  ;;  %v8398_v13 = vpop.f32.mrb[34].mxu1 }
 0x12e   : > { %10218 = vst [vmem:[#allocation26_spill] sm:$0xff] %v8392_v17  ;;  %10219 = vst [vmem:[#allocation27_spill] sm:$0xff] %v8398_v13  ;;  %v8400_v10 = vpop.f32.mrb[35].mxu0  ;;  %v8405_v61 = vpop.f32.mrb[35].mxu1  ;;  %v7720_v17 = vld [vmem:[%s7903_s23 + $0x650] sm:$0xff]   ;;  %v7721_v13 = vld [vmem:[%s7903_s23 + $0x458] sm:$0xff]  }
 0x12f   : > { %10220 = vst [vmem:[#allocation28_spill] sm:$0xff] %v8400_v10  ;;  %10221 = vst [vmem:[#allocation29_spill] sm:$0xff] %v8405_v61  ;;  %v7718_v61 = vld [vmem:[%s7903_s23 + $0x648] sm:$0xff]  }
 0x130   : > { %7297 = vmatmul.mubr.msk.bf16.gmra.mrb[140].mxu0 %vm674_vm2, %v7713_v16  ;;  %7429 = vmatmul.mubr.msk.bf16.gmra.mrb[140].mxu1 %vm674_vm2, %v7714_v58  ;;  %v7719_v58 = vld [vmem:[%s7903_s23 + $0x450] sm:$0xff]  }
 0x131   : > { %7300 = vmatprep.mubr.msk.bf16.mxu0 %vm674_vm2, %v7715_v1  ;;  %7432 = vmatprep.mubr.msk.bf16.mxu1 %vm674_vm2, %v7716_v49 }
 0x133   : > { %v8413_v43 = vpop.f32.mrb[36].mxu0  ;;  %v8415_v35 = vpop.f32.mrb[36].mxu1 }
 0x134   : > { %10222 = vst [vmem:[#allocation30_spill] sm:$0xff] %v8413_v43  ;;  %10223 = vst [vmem:[#allocation31_spill] sm:$0xff] %v8415_v35  ;;  %v8417_v29 = vpop.f32.mrb[37].mxu0  ;;  %v8422_v3 = vpop.f32.mrb[37].mxu1 }
 0x135   : > { %10224 = vst [vmem:[#allocation32_spill] sm:$0xff] %v8417_v29  ;;  %10225 = vst [vmem:[#allocation33_spill] sm:$0xff] %v8422_v3  ;;  %v8424_v16 = vpop.f32.mrb[38].mxu0  ;;  %v8430_v1 = vpop.f32.mrb[38].mxu1 }
 0x136   : > { %10226 = vst [vmem:[#allocation34_spill] sm:$0xff] %v8424_v16  ;;  %10227 = vst [vmem:[#allocation35_spill] sm:$0xff] %v8430_v1  ;;  %v8432_v10 = vpop.f32.mrb[39].mxu0  ;;  %v8437_v35 = vpop.f32.mrb[39].mxu1  ;;  %v7724_v16 = vld [vmem:[%s7903_s23 + $0x660] sm:$0xff]   ;;  %v7725_v1 = vld [vmem:[%s7903_s23 + $0x468] sm:$0xff]  }
 0x137   : > { %10228 = vst [vmem:[#allocation36_spill] sm:$0xff] %v8432_v10  ;;  %10229 = vst [vmem:[#allocation37_spill] sm:$0xff] %v8437_v35  ;;  %v7722_v35 = vld [vmem:[%s7903_s23 + $0x658] sm:$0xff]  }
 0x138   : > { %7301 = vmatmul.mubr.msk.bf16.gmra.mrb[144].mxu0 %vm674_vm2, %v7717_v45  ;;  %7433 = vmatmul.mubr.msk.bf16.gmra.mrb[144].mxu1 %vm674_vm2, %v7718_v61  ;;  %v7723_v61 = vld [vmem:[%s7903_s23 + $0x460] sm:$0xff]  }
 0x139   : > { %7304 = vmatprep.mubr.msk.bf16.mxu0 %vm674_vm2, %v7719_v58  ;;  %7436 = vmatprep.mubr.msk.bf16.mxu1 %vm674_vm2, %v7720_v17 }
 0x13b   : > { %v8445_v49 = vpop.f32.mrb[40].mxu0  ;;  %v8447_v3 = vpop.f32.mrb[40].mxu1 }
 0x13c   : > { %10230 = vst [vmem:[#allocation38_spill] sm:$0xff] %v8445_v49  ;;  %10231 = vst [vmem:[#allocation39_spill] sm:$0xff] %v8447_v3  ;;  %v8449_v29 = vpop.f32.mrb[41].mxu0  ;;  %v8454_v43 = vpop.f32.mrb[41].mxu1 }
 0x13d   : > { %10232 = vst [vmem:[#allocation40_spill] sm:$0xff] %v8449_v29  ;;  %10233 = vst [vmem:[#allocation41_spill] sm:$0xff] %v8454_v43  ;;  %v8456_v45 = vpop.f32.mrb[42].mxu0  ;;  %v8462_v58 = vpop.f32.mrb[42].mxu1 }
 0x13e   : > { %10234 = vst [vmem:[#allocation42_spill] sm:$0xff] %v8456_v45  ;;  %10235 = vst [vmem:[#allocation43_spill] sm:$0xff] %v8462_v58  ;;  %v8464_v10 = vpop.f32.mrb[43].mxu0  ;;  %v8469_v3 = vpop.f32.mrb[43].mxu1  ;;  %v7728_v45 = vld [vmem:[%s7903_s23 + $0x670] sm:$0xff]   ;;  %v7729_v58 = vld [vmem:[%s7903_s23 + $0x478] sm:$0xff]  }
 0x13f   : > { %10236 = vst [vmem:[#allocation44_spill] sm:$0xff] %v8464_v10  ;;  %10237 = vst [vmem:[#allocation45_spill] sm:$0xff] %v8469_v3  ;;  %v7726_v3 = vld [vmem:[%s7903_s23 + $0x668] sm:$0xff]  }
 0x140   : > { %7305 = vmatmul.mubr.msk.bf16.gmra.mrb[148].mxu0 %vm674_vm2, %v7721_v13  ;;  %7437 = vmatmul.mubr.msk.bf16.gmra.mrb[148].mxu1 %vm674_vm2, %v7722_v35  ;;  %v7727_v35 = vld [vmem:[%s7903_s23 + $0x470] sm:$0xff]  }
 0x141   : > { %7308 = vmatprep.mubr.msk.bf16.mxu0 %vm674_vm2, %v7723_v61  ;;  %7440 = vmatprep.mubr.msk.bf16.mxu1 %vm674_vm2, %v7724_v16 }
 0x143   : > { %v8477_v17 = vpop.f32.mrb[44].mxu0  ;;  %v8479_v43 = vpop.f32.mrb[44].mxu1 }
 0x144   : > { %10238 = vst [vmem:[#allocation46_spill] sm:$0xff] %v8477_v17  ;;  %10239 = vst [vmem:[#allocation47_spill] sm:$0xff] %v8479_v43  ;;  %v8481_v29 = vpop.f32.mrb[45].mxu0  ;;  %v8486_v49 = vpop.f32.mrb[45].mxu1 }
 0x145   : > { %10240 = vst [vmem:[#allocation48_spill] sm:$0xff] %v8481_v29  ;;  %10241 = vst [vmem:[#allocation49_spill] sm:$0xff] %v8486_v49  ;;  %v8488_v13 = vpop.f32.mrb[46].mxu0  ;;  %v8494_v61 = vpop.f32.mrb[46].mxu1 }
 0x146   : > { %10242 = vst [vmem:[#allocation50_spill] sm:$0xff] %v8488_v13  ;;  %10243 = vst [vmem:[#allocation51_spill] sm:$0xff] %v8494_v61  ;;  %v8496_v10 = vpop.f32.mrb[47].mxu0  ;;  %v8501_v43 = vpop.f32.mrb[47].mxu1  ;;  %v7732_v13 = vld [vmem:[%s7903_s23 + $0x680] sm:$0xff]   ;;  %v7733_v61 = vld [vmem:[%s7903_s23 + $0x488] sm:$0xff]  }
 0x147   : > { %10244 = vst [vmem:[#allocation52_spill] sm:$0xff] %v8496_v10  ;;  %10245 = vst [vmem:[#allocation53_spill] sm:$0xff] %v8501_v43  ;;  %v7730_v43 = vld [vmem:[%s7903_s23 + $0x678] sm:$0xff]  }
 0x148   : > { %7309 = vmatmul.mubr.msk.bf16.gmra.mrb[152].mxu0 %vm674_vm2, %v7725_v1  ;;  %7441 = vmatmul.mubr.msk.bf16.gmra.mrb[152].mxu1 %vm674_vm2, %v7726_v3  ;;  %v7731_v3 = vld [vmem:[%s7903_s23 + $0x480] sm:$0xff]  }
 0x149   : > { %7312 = vmatprep.mubr.msk.bf16.mxu0 %vm674_vm2, %v7727_v35  ;;  %7444 = vmatprep.mubr.msk.bf16.mxu1 %vm674_vm2, %v7728_v45 }
 0x14b   : > { %v8509_v16 = vpop.f32.mrb[48].mxu0  ;;  %v8511_v49 = vpop.f32.mrb[48].mxu1 }
 0x14c   : > { %10246 = vst [vmem:[#allocation54_spill] sm:$0xff] %v8509_v16  ;;  %10247 = vst [vmem:[#allocation55_spill] sm:$0xff] %v8511_v49  ;;  %v8513_v29 = vpop.f32.mrb[49].mxu0  ;;  %v8518_v17 = vpop.f32.mrb[49].mxu1 }
 0x14d   : > { %10248 = vst [vmem:[#allocation56_spill] sm:$0xff] %v8513_v29  ;;  %10249 = vst [vmem:[#allocation57_spill] sm:$0xff] %v8518_v17  ;;  %v8520_v1 = vpop.f32.mrb[50].mxu0  ;;  %v8526_v35 = vpop.f32.mrb[50].mxu1 }
 0x14e   : > { %10250 = vst [vmem:[#allocation58_spill] sm:$0xff] %v8520_v1  ;;  %10251 = vst [vmem:[#allocation59_spill] sm:$0xff] %v8526_v35  ;;  %v8528_v10 = vpop.f32.mrb[51].mxu0  ;;  %v8533_v49 = vpop.f32.mrb[51].mxu1  ;;  %v7736_v1 = vld [vmem:[%s7903_s23 + $0x690] sm:$0xff]   ;;  %v7737_v35 = vld [vmem:[%s7903_s23 + $0x498] sm:$0xff]  }
 0x14f   : > { %10252 = vst [vmem:[#allocation60_spill] sm:$0xff] %v8528_v10  ;;  %10253 = vst [vmem:[#allocation61_spill] sm:$0xff] %v8533_v49  ;;  %v7734_v49 = vld [vmem:[%s7903_s23 + $0x688] sm:$0xff]  }
 0x150   : > { %7313 = vmatmul.mubr.msk.bf16.gmra.mrb[156].mxu0 %vm674_vm2, %v7729_v58  ;;  %7445 = vmatmul.mubr.msk.bf16.gmra.mrb[156].mxu1 %vm674_vm2, %v7730_v43  ;;  %v7735_v43 = vld [vmem:[%s7903_s23 + $0x490] sm:$0xff]  }
 0x151   : > { %7316 = vmatprep.mubr.msk.bf16.mxu0 %vm674_vm2, %v7731_v3  ;;  %7448 = vmatprep.mubr.msk.bf16.mxu1 %vm674_vm2, %v7732_v13 }
 0x153   : > { %v8541_v45 = vpop.f32.mrb[52].mxu0  ;;  %v8543_v17 = vpop.f32.mrb[52].mxu1 }
 0x154   : > { %10254 = vst [vmem:[#allocation62_spill] sm:$0xff] %v8541_v45  ;;  %10255 = vst [vmem:[#allocation63_spill] sm:$0xff] %v8543_v17  ;;  %v8545_v29 = vpop.f32.mrb[53].mxu0  ;;  %v8550_v16 = vpop.f32.mrb[53].mxu1 }
 0x155   : > { %10256 = vst [vmem:[#allocation64_spill] sm:$0xff] %v8545_v29  ;;  %10257 = vst [vmem:[#allocation65_spill] sm:$0xff] %v8550_v16  ;;  %v8552_v58 = vpop.f32.mrb[54].mxu0  ;;  %v8558_v3 = vpop.f32.mrb[54].mxu1 }
 0x156   : > { %10258 = vst [vmem:[#allocation66_spill] sm:$0xff] %v8552_v58  ;;  %10259 = vst [vmem:[#allocation67_spill] sm:$0xff] %v8558_v3  ;;  %v8560_v10 = vpop.f32.mrb[55].mxu0  ;;  %v8565_v17 = vpop.f32.mrb[55].mxu1  ;;  %v7740_v58 = vld [vmem:[%s7903_s23 + $0x6a0] sm:$0xff]   ;;  %v7741_v3 = vld [vmem:[%s7903_s23 + $0x4a8] sm:$0xff]  }
 0x157   : > { %10260 = vst [vmem:[#allocation68_spill] sm:$0xff] %v8560_v10  ;;  %10261 = vst [vmem:[#allocation69_spill] sm:$0xff] %v8565_v17  ;;  %v7738_v17 = vld [vmem:[%s7903_s23 + $0x698] sm:$0xff]  }
 0x158   : > { %7317 = vmatmul.mubr.msk.bf16.gmra.mrb[160].mxu0 %vm674_vm2, %v7733_v61  ;;  %7449 = vmatmul.mubr.msk.bf16.gmra.mrb[160].mxu1 %vm674_vm2, %v7734_v49  ;;  %v7739_v49 = vld [vmem:[%s7903_s23 + $0x4a0] sm:$0xff]  }
 0x159   : > { %7320 = vmatprep.mubr.msk.bf16.mxu0 %vm674_vm2, %v7735_v43  ;;  %7452 = vmatprep.mubr.msk.bf16.mxu1 %vm674_vm2, %v7736_v1 }
 0x15b   : > { %v8573_v13 = vpop.f32.mrb[56].mxu0  ;;  %v8575_v16 = vpop.f32.mrb[56].mxu1 }
 0x15c   : > { %10262 = vst [vmem:[#allocation70_spill] sm:$0xff] %v8573_v13  ;;  %10263 = vst [vmem:[#allocation71_spill] sm:$0xff] %v8575_v16  ;;  %v8577_v29 = vpop.f32.mrb[57].mxu0  ;;  %v8582_v45 = vpop.f32.mrb[57].mxu1 }
 0x15d   : > { %10264 = vst [vmem:[#allocation72_spill] sm:$0xff] %v8577_v29  ;;  %10265 = vst [vmem:[#allocation73_spill] sm:$0xff] %v8582_v45  ;;  %v8584_v61 = vpop.f32.mrb[58].mxu0  ;;  %v8590_v43 = vpop.f32.mrb[58].mxu1 }
 0x15e   : > { %10266 = vst [vmem:[#allocation74_spill] sm:$0xff] %v8584_v61  ;;  %10267 = vst [vmem:[#allocation75_spill] sm:$0xff] %v8590_v43  ;;  %v8592_v10 = vpop.f32.mrb[59].mxu0  ;;  %v8597_v16 = vpop.f32.mrb[59].mxu1  ;;  %v7744_v61 = vld [vmem:[%s7903_s23 + $0x6b0] sm:$0xff]   ;;  %v7745_v43 = vld [vmem:[%s7903_s23 + $0x4b8] sm:$0xff]  }
 0x15f   : > { %10268 = vst [vmem:[#allocation76_spill] sm:$0xff] %v8592_v10  ;;  %10269 = vst [vmem:[#allocation77_spill] sm:$0xff] %v8597_v16  ;;  %v7742_v16 = vld [vmem:[%s7903_s23 + $0x6a8] sm:$0xff]  }
 0x160   : > { %7321 = vmatmul.mubr.msk.bf16.gmra.mrb[164].mxu0 %vm674_vm2, %v7737_v35  ;;  %7453 = vmatmul.mubr.msk.bf16.gmra.mrb[164].mxu1 %vm674_vm2, %v7738_v17  ;;  %v7743_v17 = vld [vmem:[%s7903_s23 + $0x4b0] sm:$0xff]  }
 0x161   : > { %7324 = vmatprep.mubr.msk.bf16.mxu0 %vm674_vm2, %v7739_v49  ;;  %7456 = vmatprep.mubr.msk.bf16.mxu1 %vm674_vm2, %v7740_v58 }
 0x163   : > { %v8605_v1 = vpop.f32.mrb[60].mxu0  ;;  %v8607_v45 = vpop.f32.mrb[60].mxu1 }
 0x164   : > { %10270 = vst [vmem:[#allocation78_spill] sm:$0xff] %v8605_v1  ;;  %10271 = vst [vmem:[#allocation79_spill] sm:$0xff] %v8607_v45  ;;  %v8609_v29 = vpop.f32.mrb[61].mxu0  ;;  %v8614_v13 = vpop.f32.mrb[61].mxu1 }
 0x165   : > { %10272 = vst [vmem:[#allocation80_spill] sm:$0xff] %v8609_v29  ;;  %10273 = vst [vmem:[#allocation81_spill] sm:$0xff] %v8614_v13  ;;  %v8616_v35 = vpop.f32.mrb[62].mxu0  ;;  %v8622_v49 = vpop.f32.mrb[62].mxu1 }
 0x166   : > { %10274 = vst [vmem:[#allocation82_spill] sm:$0xff] %v8616_v35  ;;  %10275 = vst [vmem:[#allocation83_spill] sm:$0xff] %v8622_v49  ;;  %v8624_v10 = vpop.f32.mrb[63].mxu0  ;;  %v8629_v45 = vpop.f32.mrb[63].mxu1  ;;  %v7748_v35 = vld [vmem:[%s7903_s23 + $0x6c0] sm:$0xff]   ;;  %v7749_v49 = vld [vmem:[%s7903_s23 + $0x4c8] sm:$0xff]  }
 0x167   : > { %10276 = vst [vmem:[#allocation84_spill] sm:$0xff] %v8624_v10  ;;  %10277 = vst [vmem:[#allocation85_spill] sm:$0xff] %v8629_v45  ;;  %v7746_v45 = vld [vmem:[%s7903_s23 + $0x6b8] sm:$0xff]  }
 0x168   : > { %7325 = vmatmul.mubr.msk.bf16.gmra.mrb[168].mxu0 %vm674_vm2, %v7741_v3  ;;  %7457 = vmatmul.mubr.msk.bf16.gmra.mrb[168].mxu1 %vm674_vm2, %v7742_v16  ;;  %v7747_v16 = vld [vmem:[%s7903_s23 + $0x4c0] sm:$0xff]  }
 0x169   : > { %7328 = vmatprep.mubr.msk.bf16.mxu0 %vm674_vm2, %v7743_v17  ;;  %7460 = vmatprep.mubr.msk.bf16.mxu1 %vm674_vm2, %v7744_v61 }
 0x16b   : > { %v8637_v58 = vpop.f32.mrb[64].mxu0  ;;  %v8639_v13 = vpop.f32.mrb[64].mxu1 }
 0x16c   : > { %10278 = vst [vmem:[#allocation86_spill] sm:$0xff] %v8637_v58  ;;  %10279 = vst [vmem:[#allocation87_spill] sm:$0xff] %v8639_v13  ;;  %v8641_v29 = vpop.f32.mrb[65].mxu0  ;;  %v8646_v1 = vpop.f32.mrb[65].mxu1 }
 0x16d   : > { %10280 = vst [vmem:[#allocation88_spill] sm:$0xff] %v8641_v29  ;;  %10281 = vst [vmem:[#allocation89_spill] sm:$0xff] %v8646_v1  ;;  %v8648_v3 = vpop.f32.mrb[66].mxu0  ;;  %v8654_v17 = vpop.f32.mrb[66].mxu1 }
 0x16e   : > { %10282 = vst [vmem:[#allocation90_spill] sm:$0xff] %v8648_v3  ;;  %10283 = vst [vmem:[#allocation91_spill] sm:$0xff] %v8654_v17  ;;  %v8656_v10 = vpop.f32.mrb[67].mxu0  ;;  %v8661_v13 = vpop.f32.mrb[67].mxu1  ;;  %v7752_v3 = vld [vmem:[%s7903_s23 + $0x6d0] sm:$0xff]   ;;  %v7753_v17 = vld [vmem:[%s7903_s23 + $0x4d8] sm:$0xff]  }
 0x16f   : > { %10284 = vst [vmem:[#allocation92_spill] sm:$0xff] %v8656_v10  ;;  %10285 = vst [vmem:[#allocation93_spill] sm:$0xff] %v8661_v13  ;;  %v7750_v13 = vld [vmem:[%s7903_s23 + $0x6c8] sm:$0xff]  }
 0x170   : > { %7329 = vmatmul.mubr.msk.bf16.gmra.mrb[172].mxu0 %vm674_vm2, %v7745_v43  ;;  %7461 = vmatmul.mubr.msk.bf16.gmra.mrb[172].mxu1 %vm674_vm2, %v7746_v45  ;;  %v7751_v45 = vld [vmem:[%s7903_s23 + $0x4d0] sm:$0xff]  }
 0x171   : > { %7332 = vmatprep.mubr.msk.bf16.mxu0 %vm674_vm2, %v7747_v16  ;;  %7464 = vmatprep.mubr.msk.bf16.mxu1 %vm674_vm2, %v7748_v35 }
 0x173   : > { %v8669_v61 = vpop.f32.mrb[68].mxu0  ;;  %v8671_v1 = vpop.f32.mrb[68].mxu1 }
 0x174   : > { %10286 = vst [vmem:[#allocation94_spill] sm:$0xff] %v8669_v61  ;;  %10287 = vst [vmem:[#allocation95_spill] sm:$0xff] %v8671_v1  ;;  %v8673_v29 = vpop.f32.mrb[69].mxu0  ;;  %v8678_v58 = vpop.f32.mrb[69].mxu1 }
 0x175   : > { %10288 = vst [vmem:[#allocation96_spill] sm:$0xff] %v8673_v29  ;;  %10289 = vst [vmem:[#allocation97_spill] sm:$0xff] %v8678_v58  ;;  %v8680_v43 = vpop.f32.mrb[70].mxu0  ;;  %v8686_v16 = vpop.f32.mrb[70].mxu1 }
 0x176   : > { %10290 = vst [vmem:[#allocation98_spill] sm:$0xff] %v8680_v43  ;;  %10291 = vst [vmem:[#allocation99_spill] sm:$0xff] %v8686_v16  ;;  %v8688_v10 = vpop.f32.mrb[71].mxu0  ;;  %v8693_v1 = vpop.f32.mrb[71].mxu1  ;;  %v7756_v43 = vld [vmem:[%s7903_s23 + $0x6e0] sm:$0xff]   ;;  %v7757_v16 = vld [vmem:[%s7903_s23 + $0x4e8] sm:$0xff]  }
 0x177   : > { %10292 = vst [vmem:[#allocation100_spill] sm:$0xff] %v8688_v10  ;;  %10293 = vst [vmem:[#allocation101_spill] sm:$0xff] %v8693_v1  ;;  %v7754_v1 = vld [vmem:[%s7903_s23 + $0x6d8] sm:$0xff]  }
 0x178   : > { %7333 = vmatmul.mubr.msk.bf16.gmra.mrb[176].mxu0 %vm674_vm2, %v7749_v49  ;;  %7465 = vmatmul.mubr.msk.bf16.gmra.mrb[176].mxu1 %vm674_vm2, %v7750_v13  ;;  %v7755_v13 = vld [vmem:[%s7903_s23 + $0x4e0] sm:$0xff]  }
 0x179   : > { %7336 = vmatprep.mubr.msk.bf16.mxu0 %vm674_vm2, %v7751_v45  ;;  %7468 = vmatprep.mubr.msk.bf16.mxu1 %vm674_vm2, %v7752_v3 }
 0x17b   : > { %v8701_v35 = vpop.f32.mrb[72].mxu0  ;;  %v8703_v58 = vpop.f32.mrb[72].mxu1 }
 0x17c   : > { %10294 = vst [vmem:[#allocation102_spill] sm:$0xff] %v8701_v35  ;;  %10295 = vst [vmem:[#allocation103_spill] sm:$0xff] %v8703_v58  ;;  %v8705_v29 = vpop.f32.mrb[73].mxu0  ;;  %v8710_v61 = vpop.f32.mrb[73].mxu1 }
 0x17d   : > { %10296 = vst [vmem:[#allocation104_spill] sm:$0xff] %v8705_v29  ;;  %10297 = vst [vmem:[#allocation105_spill] sm:$0xff] %v8710_v61  ;;  %v8712_v49 = vpop.f32.mrb[74].mxu0  ;;  %v8718_v45 = vpop.f32.mrb[74].mxu1 }
 0x17e   : > { %10298 = vst [vmem:[#allocation106_spill] sm:$0xff] %v8712_v49  ;;  %10299 = vst [vmem:[#allocation107_spill] sm:$0xff] %v8718_v45  ;;  %v8720_v10 = vpop.f32.mrb[75].mxu0  ;;  %v8725_v58 = vpop.f32.mrb[75].mxu1  ;;  %v7760_v49 = vld [vmem:[%s7903_s23 + $0x6f0] sm:$0xff]   ;;  %v7761_v45 = vld [vmem:[%s7903_s23 + $0x4f8] sm:$0xff]  }
 0x17f   : > { %10300 = vst [vmem:[#allocation108_spill] sm:$0xff] %v8720_v10  ;;  %10301 = vst [vmem:[#allocation109_spill] sm:$0xff] %v8725_v58  ;;  %v7758_v58 = vld [vmem:[%s7903_s23 + $0x6e8] sm:$0xff]  }
 0x180   : > { %7337 = vmatmul.mubr.msk.bf16.gmra.mrb[180].mxu0 %vm674_vm2, %v7753_v17  ;;  %7469 = vmatmul.mubr.msk.bf16.gmra.mrb[180].mxu1 %vm674_vm2, %v7754_v1  ;;  %v7759_v1 = vld [vmem:[%s7903_s23 + $0x4f0] sm:$0xff]  }
 0x181   : > { %7340 = vmatprep.mubr.msk.bf16.mxu0 %vm674_vm2, %v7755_v13  ;;  %7472 = vmatprep.mubr.msk.bf16.mxu1 %vm674_vm2, %v7756_v43 }
 0x183   : > { %v8733_v3 = vpop.f32.mrb[76].mxu0  ;;  %v8735_v61 = vpop.f32.mrb[76].mxu1 }
 0x184   : > { %10302 = vst [vmem:[#allocation110_spill] sm:$0xff] %v8733_v3  ;;  %10303 = vst [vmem:[#allocation111_spill] sm:$0xff] %v8735_v61  ;;  %v8737_v29 = vpop.f32.mrb[77].mxu0  ;;  %v8742_v35 = vpop.f32.mrb[77].mxu1 }
 0x185   : > { %10304 = vst [vmem:[#allocation112_spill] sm:$0xff] %v8737_v29  ;;  %10305 = vst [vmem:[#allocation113_spill] sm:$0xff] %v8742_v35  ;;  %v8744_v17 = vpop.f32.mrb[78].mxu0  ;;  %v8750_v13 = vpop.f32.mrb[78].mxu1 }
 0x186   : > { %10306 = vst [vmem:[#allocation114_spill] sm:$0xff] %v8744_v17  ;;  %10307 = vst [vmem:[#allocation115_spill] sm:$0xff] %v8750_v13  ;;  %v8752_v10 = vpop.f32.mrb[79].mxu0  ;;  %v8757_v61 = vpop.f32.mrb[79].mxu1  ;;  %v7764_v17 = vld [vmem:[%s7903_s23 + $0x700] sm:$0xff]   ;;  %v7765_v13 = vld [vmem:[%s7903_s23 + $0x508] sm:$0xff]  }
 0x187   : > { %10308 = vst [vmem:[#allocation116_spill] sm:$0xff] %v8752_v10  ;;  %10309 = vst [vmem:[#allocation117_spill] sm:$0xff] %v8757_v61  ;;  %v7762_v61 = vld [vmem:[%s7903_s23 + $0x6f8] sm:$0xff]  }
 0x188   : > { %7341 = vmatmul.mubr.msk.bf16.gmra.mrb[184].mxu0 %vm674_vm2, %v7757_v16  ;;  %7473 = vmatmul.mubr.msk.bf16.gmra.mrb[184].mxu1 %vm674_vm2, %v7758_v58  ;;  %v7763_v58 = vld [vmem:[%s7903_s23 + $0x500] sm:$0xff]  }
 0x189   : > { %7344 = vmatprep.mubr.msk.bf16.mxu0 %vm674_vm2, %v7759_v1  ;;  %7476 = vmatprep.mubr.msk.bf16.mxu1 %vm674_vm2, %v7760_v49 }
 0x18b   : > { %v8765_v43 = vpop.f32.mrb[80].mxu0  ;;  %v8767_v35 = vpop.f32.mrb[80].mxu1 }
 0x18c   : > { %10310 = vst [vmem:[#allocation118_spill] sm:$0xff] %v8765_v43  ;;  %10311 = vst [vmem:[#allocation119_spill] sm:$0xff] %v8767_v35  ;;  %v8769_v29 = vpop.f32.mrb[81].mxu0  ;;  %v8774_v3 = vpop.f32.mrb[81].mxu1 }
 0x18d   : > { %10312 = vst [vmem:[#allocation120_spill] sm:$0xff] %v8769_v29  ;;  %10313 = vst [vmem:[#allocation121_spill] sm:$0xff] %v8774_v3  ;;  %v8776_v16 = vpop.f32.mrb[82].mxu0  ;;  %v8782_v1 = vpop.f32.mrb[82].mxu1 }
 0x18e   : > { %10314 = vst [vmem:[#allocation122_spill] sm:$0xff] %v8776_v16  ;;  %10315 = vst [vmem:[#allocation123_spill] sm:$0xff] %v8782_v1  ;;  %v8784_v10 = vpop.f32.mrb[83].mxu0  ;;  %v8789_v35 = vpop.f32.mrb[83].mxu1  ;;  %v7768_v16 = vld [vmem:[%s7903_s23 + $0x710] sm:$0xff]   ;;  %v7769_v1 = vld [vmem:[%s7903_s23 + $0x518] sm:$0xff]  }
 0x18f   : > { %10316 = vst [vmem:[#allocation124_spill] sm:$0xff] %v8784_v10  ;;  %10317 = vst [vmem:[#allocation125_spill] sm:$0xff] %v8789_v35  ;;  %v7766_v35 = vld [vmem:[%s7903_s23 + $0x708] sm:$0xff]  }
 0x190   : > { %7345 = vmatmul.mubr.msk.bf16.gmra.mrb[188].mxu0 %vm674_vm2, %v7761_v45  ;;  %7477 = vmatmul.mubr.msk.bf16.gmra.mrb[188].mxu1 %vm674_vm2, %v7762_v61  ;;  %v7767_v61 = vld [vmem:[%s7903_s23 + $0x510] sm:$0xff]  }
 0x191   : > { %7348 = vmatprep.mubr.msk.bf16.mxu0 %vm674_vm2, %v7763_v58  ;;  %7480 = vmatprep.mubr.msk.bf16.mxu1 %vm674_vm2, %v7764_v17 }
 0x193   : > { %v8797_v49 = vpop.f32.mrb[84].mxu0  ;;  %v8799_v3 = vpop.f32.mrb[84].mxu1 }
 0x194   : > { %10318 = vst [vmem:[#allocation126_spill] sm:$0xff] %v8797_v49  ;;  %10319 = vst [vmem:[#allocation127_spill] sm:$0xff] %v8799_v3  ;;  %v8801_v29 = vpop.f32.mrb[85].mxu0  ;;  %v8806_v43 = vpop.f32.mrb[85].mxu1 }
 0x195   : > { %10320 = vst [vmem:[#allocation128_spill] sm:$0xff] %v8801_v29  ;;  %10321 = vst [vmem:[#allocation129_spill] sm:$0xff] %v8806_v43  ;;  %v8808_v45 = vpop.f32.mrb[86].mxu0  ;;  %v8814_v58 = vpop.f32.mrb[86].mxu1 }
 0x196   : > { %10322 = vst [vmem:[#allocation130_spill] sm:$0xff] %v8808_v45  ;;  %10323 = vst [vmem:[#allocation131_spill] sm:$0xff] %v8814_v58  ;;  %v8816_v10 = vpop.f32.mrb[87].mxu0  ;;  %v8821_v3 = vpop.f32.mrb[87].mxu1  ;;  %v7772_v45 = vld [vmem:[%s7903_s23 + $0x720] sm:$0xff]   ;;  %v7773_v58 = vld [vmem:[%s7903_s23 + $0x528] sm:$0xff]  }
 0x197   : > { %10324 = vst [vmem:[#allocation132_spill] sm:$0xff] %v8816_v10  ;;  %10325 = vst [vmem:[#allocation133_spill] sm:$0xff] %v8821_v3  ;;  %v7770_v3 = vld [vmem:[%s7903_s23 + $0x718] sm:$0xff]  }
 0x198   : > { %7349 = vmatmul.mubr.msk.bf16.gmra.mrb[192].mxu0 %vm674_vm2, %v7765_v13  ;;  %7481 = vmatmul.mubr.msk.bf16.gmra.mrb[192].mxu1 %vm674_vm2, %v7766_v35  ;;  %v7771_v35 = vld [vmem:[%s7903_s23 + $0x520] sm:$0xff]  }
 0x199   : > { %7352 = vmatprep.mubr.msk.bf16.mxu0 %vm674_vm2, %v7767_v61  ;;  %7484 = vmatprep.mubr.msk.bf16.mxu1 %vm674_vm2, %v7768_v16 }
 0x19b   : > { %v8829_v17 = vpop.f32.mrb[88].mxu0  ;;  %v8831_v43 = vpop.f32.mrb[88].mxu1 }
 0x19c   : > { %10326 = vst [vmem:[#allocation134_spill] sm:$0xff] %v8829_v17  ;;  %10327 = vst [vmem:[#allocation135_spill] sm:$0xff] %v8831_v43  ;;  %v8833_v29 = vpop.f32.mrb[89].mxu0  ;;  %v8838_v49 = vpop.f32.mrb[89].mxu1 }
 0x19d   : > { %10328 = vst [vmem:[#allocation136_spill] sm:$0xff] %v8833_v29  ;;  %10329 = vst [vmem:[#allocation137_spill] sm:$0xff] %v8838_v49  ;;  %v8840_v13 = vpop.f32.mrb[90].mxu0  ;;  %v8846_v61 = vpop.f32.mrb[90].mxu1 }
 0x19e   : > { %10330 = vst [vmem:[#allocation138_spill] sm:$0xff] %v8840_v13  ;;  %10331 = vst [vmem:[#allocation139_spill] sm:$0xff] %v8846_v61  ;;  %v8848_v10 = vpop.f32.mrb[91].mxu0  ;;  %v8853_v43 = vpop.f32.mrb[91].mxu1  ;;  %v7776_v13 = vld [vmem:[%s7903_s23 + $0x730] sm:$0xff]   ;;  %v7777_v61 = vld [vmem:[%s7903_s23 + $0x538] sm:$0xff]  }
 0x19f   : > { %10332 = vst [vmem:[#allocation140_spill] sm:$0xff] %v8848_v10  ;;  %10333 = vst [vmem:[#allocation141_spill] sm:$0xff] %v8853_v43  ;;  %v7774_v43 = vld [vmem:[%s7903_s23 + $0x728] sm:$0xff]  }
 0x1a0   : > { %7353 = vmatmul.mubr.msk.bf16.gmra.mrb[196].mxu0 %vm674_vm2, %v7769_v1  ;;  %7485 = vmatmul.mubr.msk.bf16.gmra.mrb[196].mxu1 %vm674_vm2, %v7770_v3  ;;  %v7775_v3 = vld [vmem:[%s7903_s23 + $0x530] sm:$0xff]  }
 0x1a1   : > { %7356 = vmatprep.mubr.msk.bf16.mxu0 %vm674_vm2, %v7771_v35  ;;  %7488 = vmatprep.mubr.msk.bf16.mxu1 %vm674_vm2, %v7772_v45 }
 0x1a3   : > { %v8861_v16 = vpop.f32.mrb[92].mxu0  ;;  %v8863_v49 = vpop.f32.mrb[92].mxu1 }
 0x1a4   : > { %10334 = vst [vmem:[#allocation142_spill] sm:$0xff] %v8861_v16  ;;  %10335 = vst [vmem:[#allocation143_spill] sm:$0xff] %v8863_v49  ;;  %v8865_v29 = vpop.f32.mrb[93].mxu0  ;;  %v8870_v17 = vpop.f32.mrb[93].mxu1 }
 0x1a5   : > { %10336 = vst [vmem:[#allocation144_spill] sm:$0xff] %v8865_v29  ;;  %10337 = vst [vmem:[#allocation145_spill] sm:$0xff] %v8870_v17  ;;  %v8872_v1 = vpop.f32.mrb[94].mxu0  ;;  %v8878_v35 = vpop.f32.mrb[94].mxu1 }
 0x1a6   : > { %10338 = vst [vmem:[#allocation146_spill] sm:$0xff] %v8872_v1  ;;  %10339 = vst [vmem:[#allocation147_spill] sm:$0xff] %v8878_v35  ;;  %v8880_v10 = vpop.f32.mrb[95].mxu0  ;;  %v8885_v49 = vpop.f32.mrb[95].mxu1  ;;  %v7780_v1 = vld [vmem:[%s7903_s23 + $0x740] sm:$0xff]   ;;  %v7781_v35 = vld [vmem:[%s7903_s23 + $0x548] sm:$0xff]  }
 0x1a7   : > { %10340 = vst [vmem:[#allocation148_spill] sm:$0xff] %v8880_v10  ;;  %10341 = vst [vmem:[#allocation149_spill] sm:$0xff] %v8885_v49  ;;  %v7778_v49 = vld [vmem:[%s7903_s23 + $0x738] sm:$0xff]  }
 0x1a8   : > { %7357 = vmatmul.mubr.msk.bf16.gmra.mrb[200].mxu0 %vm674_vm2, %v7773_v58  ;;  %7489 = vmatmul.mubr.msk.bf16.gmra.mrb[200].mxu1 %vm674_vm2, %v7774_v43  ;;  %v7779_v43 = vld [vmem:[%s7903_s23 + $0x540] sm:$0xff]  }
 0x1a9   : > { %7360 = vmatprep.mubr.msk.bf16.mxu0 %vm674_vm2, %v7775_v3  ;;  %7492 = vmatprep.mubr.msk.bf16.mxu1 %vm674_vm2, %v7776_v13 }
 0x1ab   : > { %v8893_v45 = vpop.f32.mrb[96].mxu0  ;;  %v8895_v17 = vpop.f32.mrb[96].mxu1 }
 0x1ac   : > { %10342 = vst [vmem:[#allocation150_spill] sm:$0xff] %v8893_v45  ;;  %10343 = vst [vmem:[#allocation151_spill] sm:$0xff] %v8895_v17  ;;  %v8897_v29 = vpop.f32.mrb[97].mxu0  ;;  %v8902_v16 = vpop.f32.mrb[97].mxu1 }
 0x1ad   : > { %10344 = vst [vmem:[#allocation152_spill] sm:$0xff] %v8897_v29  ;;  %10345 = vst [vmem:[#allocation153_spill] sm:$0xff] %v8902_v16  ;;  %v8904_v58 = vpop.f32.mrb[98].mxu0  ;;  %v8910_v3 = vpop.f32.mrb[98].mxu1 }
 0x1ae   : > { %10346 = vst [vmem:[#allocation154_spill] sm:$0xff] %v8904_v58  ;;  %10347 = vst [vmem:[#allocation155_spill] sm:$0xff] %v8910_v3  ;;  %v8912_v10 = vpop.f32.mrb[99].mxu0  ;;  %v8917_v17 = vpop.f32.mrb[99].mxu1  ;;  %v7784_v58 = vld [vmem:[%s7903_s23 + $0x750] sm:$0xff]   ;;  %v7785_v3 = vld [vmem:[%s7903_s23 + $0x558] sm:$0xff]  }
 0x1af   : > { %10348 = vst [vmem:[#allocation156_spill] sm:$0xff] %v8912_v10  ;;  %10349 = vst [vmem:[#allocation157_spill] sm:$0xff] %v8917_v17  ;;  %v7782_v17 = vld [vmem:[%s7903_s23 + $0x748] sm:$0xff]  }
 0x1b0   : > { %7361 = vmatmul.mubr.msk.bf16.gmra.mrb[204].mxu0 %vm674_vm2, %v7777_v61  ;;  %7493 = vmatmul.mubr.msk.bf16.gmra.mrb[204].mxu1 %vm674_vm2, %v7778_v49  ;;  %v7783_v49 = vld [vmem:[%s7903_s23 + $0x550] sm:$0xff]  }
 0x1b1   : > { %7364 = vmatprep.mubr.msk.bf16.mxu0 %vm674_vm2, %v7779_v43  ;;  %7496 = vmatprep.mubr.msk.bf16.mxu1 %vm674_vm2, %v7780_v1 }
 0x1b3   : > { %v8925_v13 = vpop.f32.mrb[100].mxu0  ;;  %v8927_v16 = vpop.f32.mrb[100].mxu1 }
 0x1b4   : > { %10350 = vst [vmem:[#allocation158_spill] sm:$0xff] %v8925_v13  ;;  %10351 = vst [vmem:[#allocation159_spill] sm:$0xff] %v8927_v16  ;;  %v8929_v29 = vpop.f32.mrb[101].mxu0  ;;  %v8934_v45 = vpop.f32.mrb[101].mxu1 }
 0x1b5   : > { %10352 = vst [vmem:[#allocation160_spill] sm:$0xff] %v8929_v29  ;;  %10353 = vst [vmem:[#allocation161_spill] sm:$0xff] %v8934_v45  ;;  %v8936_v61 = vpop.f32.mrb[102].mxu0  ;;  %v8942_v43 = vpop.f32.mrb[102].mxu1 }
 0x1b6   : > { %10354 = vst [vmem:[#allocation162_spill] sm:$0xff] %v8936_v61  ;;  %10355 = vst [vmem:[#allocation163_spill] sm:$0xff] %v8942_v43  ;;  %v8944_v10 = vpop.f32.mrb[103].mxu0  ;;  %v8949_v16 = vpop.f32.mrb[103].mxu1  ;;  %v7788_v61 = vld [vmem:[%s7903_s23 + $0x760] sm:$0xff]   ;;  %v7789_v43 = vld [vmem:[%s7903_s23 + $0x568] sm:$0xff]  }
 0x1b7   : > { %10356 = vst [vmem:[#allocation164_spill] sm:$0xff] %v8944_v10  ;;  %10357 = vst [vmem:[#allocation165_spill] sm:$0xff] %v8949_v16  ;;  %v7786_v16 = vld [vmem:[%s7903_s23 + $0x758] sm:$0xff]  }
 0x1b8   : > { %7365 = vmatmul.mubr.msk.bf16.gmra.mrb[208].mxu0 %vm674_vm2, %v7781_v35  ;;  %7497 = vmatmul.mubr.msk.bf16.gmra.mrb[208].mxu1 %vm674_vm2, %v7782_v17  ;;  %v7787_v17 = vld [vmem:[%s7903_s23 + $0x560] sm:$0xff]  }
 0x1b9   : > { %7368 = vmatprep.mubr.msk.bf16.mxu0 %vm674_vm2, %v7783_v49  ;;  %7500 = vmatprep.mubr.msk.bf16.mxu1 %vm674_vm2, %v7784_v58 }
 0x1bb   : > { %v8957_v1 = vpop.f32.mrb[104].mxu0  ;;  %v8959_v45 = vpop.f32.mrb[104].mxu1 }
 0x1bc   : > { %10358 = vst [vmem:[#allocation166_spill] sm:$0xff] %v8957_v1  ;;  %10359 = vst [vmem:[#allocation167_spill] sm:$0xff] %v8959_v45  ;;  %v8961_v29 = vpop.f32.mrb[105].mxu0  ;;  %v8966_v13 = vpop.f32.mrb[105].mxu1 }
 0x1bd   : > { %10360 = vst [vmem:[#allocation168_spill] sm:$0xff] %v8961_v29  ;;  %10361 = vst [vmem:[#allocation169_spill] sm:$0xff] %v8966_v13  ;;  %v8968_v35 = vpop.f32.mrb[106].mxu0  ;;  %v8974_v49 = vpop.f32.mrb[106].mxu1 }
 0x1be   : > { %10362 = vst [vmem:[#allocation170_spill] sm:$0xff] %v8968_v35  ;;  %10363 = vst [vmem:[#allocation171_spill] sm:$0xff] %v8974_v49  ;;  %v8976_v10 = vpop.f32.mrb[107].mxu0  ;;  %v8981_v45 = vpop.f32.mrb[107].mxu1  ;;  %v7792_v35 = vld [vmem:[%s7903_s23 + $0x770] sm:$0xff]   ;;  %v7793_v49 = vld [vmem:[%s7903_s23 + $0x578] sm:$0xff]  }
 0x1bf   : > { %10364 = vst [vmem:[#allocation172_spill] sm:$0xff] %v8976_v10  ;;  %10365 = vst [vmem:[#allocation173_spill] sm:$0xff] %v8981_v45  ;;  %v7790_v45 = vld [vmem:[%s7903_s23 + $0x768] sm:$0xff]  }
 0x1c0   : > { %7369 = vmatmul.mubr.msk.bf16.gmra.mrb[212].mxu0 %vm674_vm2, %v7785_v3  ;;  %7501 = vmatmul.mubr.msk.bf16.gmra.mrb[212].mxu1 %vm674_vm2, %v7786_v16  ;;  %v7791_v16 = vld [vmem:[%s7903_s23 + $0x570] sm:$0xff]  }
 0x1c1   : > { %7372 = vmatprep.mubr.msk.bf16.mxu0 %vm674_vm2, %v7787_v17  ;;  %7504 = vmatprep.mubr.msk.bf16.mxu1 %vm674_vm2, %v7788_v61 }
 0x1c3   : > { %v8989_v58 = vpop.f32.mrb[108].mxu0  ;;  %v8991_v13 = vpop.f32.mrb[108].mxu1 }
 0x1c4   : > { %10366 = vst [vmem:[#allocation174_spill] sm:$0xff] %v8989_v58  ;;  %10367 = vst [vmem:[#allocation175_spill] sm:$0xff] %v8991_v13  ;;  %v8993_v29 = vpop.f32.mrb[109].mxu0  ;;  %v8998_v1 = vpop.f32.mrb[109].mxu1 }
 0x1c5   : > { %10368 = vst [vmem:[#allocation176_spill] sm:$0xff] %v8993_v29  ;;  %10369 = vst [vmem:[#allocation177_spill] sm:$0xff] %v8998_v1  ;;  %v9000_v3 = vpop.f32.mrb[110].mxu0  ;;  %v9006_v17 = vpop.f32.mrb[110].mxu1 }
 0x1c6   : > { %10370 = vst [vmem:[#allocation178_spill] sm:$0xff] %v9000_v3  ;;  %10371 = vst [vmem:[#allocation179_spill] sm:$0xff] %v9006_v17  ;;  %v9008_v10 = vpop.f32.mrb[111].mxu0  ;;  %v9013_v13 = vpop.f32.mrb[111].mxu1  ;;  %v7796_v3 = vld [vmem:[%s7903_s23 + $0x780] sm:$0xff]   ;;  %v7797_v17 = vld [vmem:[%s7903_s23 + $0x588] sm:$0xff]  }
 0x1c7   : > { %10372 = vst [vmem:[#allocation180_spill] sm:$0xff] %v9008_v10  ;;  %10373 = vst [vmem:[#allocation181_spill] sm:$0xff] %v9013_v13  ;;  %v7794_v13 = vld [vmem:[%s7903_s23 + $0x778] sm:$0xff]  }
 0x1c8   : > { %7373 = vmatmul.mubr.msk.bf16.gmra.mrb[216].mxu0 %vm674_vm2, %v7789_v43  ;;  %7505 = vmatmul.mubr.msk.bf16.gmra.mrb[216].mxu1 %vm674_vm2, %v7790_v45  ;;  %v7795_v45 = vld [vmem:[%s7903_s23 + $0x580] sm:$0xff]  }
 0x1c9   : > { %7376 = vmatprep.mubr.msk.bf16.mxu0 %vm674_vm2, %v7791_v16  ;;  %7508 = vmatprep.mubr.msk.bf16.mxu1 %vm674_vm2, %v7792_v35 }
 0x1cb   : > { %v9021_v61 = vpop.f32.mrb[112].mxu0  ;;  %v9023_v1 = vpop.f32.mrb[112].mxu1 }
 0x1cc   : > { %10374 = vst [vmem:[#allocation182_spill] sm:$0xff] %v9021_v61  ;;  %10375 = vst [vmem:[#allocation183_spill] sm:$0xff] %v9023_v1  ;;  %v9025_v29 = vpop.f32.mrb[113].mxu0  ;;  %v9030_v58 = vpop.f32.mrb[113].mxu1 }
 0x1cd   : > { %10376 = vst [vmem:[#allocation184_spill] sm:$0xff] %v9025_v29  ;;  %10377 = vst [vmem:[#allocation185_spill] sm:$0xff] %v9030_v58  ;;  %v9032_v43 = vpop.f32.mrb[114].mxu0  ;;  %v9038_v16 = vpop.f32.mrb[114].mxu1 }
 0x1ce   : > { %10378 = vst [vmem:[#allocation186_spill] sm:$0xff] %v9032_v43  ;;  %10379 = vst [vmem:[#allocation187_spill] sm:$0xff] %v9038_v16  ;;  %v9040_v10 = vpop.f32.mrb[115].mxu0  ;;  %v9045_v1 = vpop.f32.mrb[115].mxu1  ;;  %v7800_v43 = vld [vmem:[%s7903_s23 + $0x790] sm:$0xff]   ;;  %v7801_v16 = vld [vmem:[%s7903_s23 + $0x598] sm:$0xff]  }
 0x1cf   : > { %10380 = vst [vmem:[#allocation188_spill] sm:$0xff] %v9040_v10  ;;  %10381 = vst [vmem:[#allocation189_spill] sm:$0xff] %v9045_v1  ;;  %v7798_v1 = vld [vmem:[%s7903_s23 + $0x788] sm:$0xff]  }
 0x1d0   : > { %7377 = vmatmul.mubr.msk.bf16.gmra.mrb[220].mxu0 %vm674_vm2, %v7793_v49  ;;  %7509 = vmatmul.mubr.msk.bf16.gmra.mrb[220].mxu1 %vm674_vm2, %v7794_v13  ;;  %v7799_v13 = vld [vmem:[%s7903_s23 + $0x590] sm:$0xff]  }
 0x1d1   : > { %7380 = vmatprep.mubr.msk.bf16.mxu0 %vm674_vm2, %v7795_v45  ;;  %7512 = vmatprep.mubr.msk.bf16.mxu1 %vm674_vm2, %v7796_v3 }
 0x1d3   : > { %v9053_v35 = vpop.f32.mrb[116].mxu0  ;;  %v9055_v58 = vpop.f32.mrb[116].mxu1 }
 0x1d4   : > { %10382 = vst [vmem:[#allocation190_spill] sm:$0xff] %v9053_v35  ;;  %10383 = vst [vmem:[#allocation191_spill] sm:$0xff] %v9055_v58  ;;  %v9057_v29 = vpop.f32.mrb[117].mxu0  ;;  %v9062_v61 = vpop.f32.mrb[117].mxu1 }
 0x1d5   : > { %10384 = vst [vmem:[#allocation192_spill] sm:$0xff] %v9057_v29  ;;  %10385 = vst [vmem:[#allocation193_spill] sm:$0xff] %v9062_v61  ;;  %v9064_v49 = vpop.f32.mrb[118].mxu0  ;;  %v9070_v45 = vpop.f32.mrb[118].mxu1 }
 0x1d6   : > { %10386 = vst [vmem:[#allocation194_spill] sm:$0xff] %v9064_v49  ;;  %10387 = vst [vmem:[#allocation195_spill] sm:$0xff] %v9070_v45  ;;  %v9072_v10 = vpop.f32.mrb[119].mxu0  ;;  %v9077_v58 = vpop.f32.mrb[119].mxu1  ;;  %v7804_v49 = vld [vmem:[%s7903_s23 + $0x7a0] sm:$0xff]   ;;  %v7805_v45 = vld [vmem:[%s7903_s23 + $0x5a8] sm:$0xff]  }
 0x1d7   : > { %10388 = vst [vmem:[#allocation196_spill] sm:$0xff] %v9072_v10  ;;  %10389 = vst [vmem:[#allocation197_spill] sm:$0xff] %v9077_v58  ;;  %v7802_v58 = vld [vmem:[%s7903_s23 + $0x798] sm:$0xff]  }
 0x1d8   : > { %7381 = vmatmul.mubr.msk.bf16.gmra.mrb[224].mxu0 %vm674_vm2, %v7797_v17  ;;  %7513 = vmatmul.mubr.msk.bf16.gmra.mrb[224].mxu1 %vm674_vm2, %v7798_v1  ;;  %v7803_v1 = vld [vmem:[%s7903_s23 + $0x5a0] sm:$0xff]  }
 0x1d9   : > { %7384 = vmatprep.mubr.msk.bf16.mxu0 %vm674_vm2, %v7799_v13  ;;  %7516 = vmatprep.mubr.msk.bf16.mxu1 %vm674_vm2, %v7800_v43 }
 0x1db   : > { %v9085_v3 = vpop.f32.mrb[120].mxu0  ;;  %v9087_v61 = vpop.f32.mrb[120].mxu1 }
 0x1dc   : > { %10390 = vst [vmem:[#allocation198_spill] sm:$0xff] %v9085_v3  ;;  %10391 = vst [vmem:[#allocation199_spill] sm:$0xff] %v9087_v61  ;;  %v9089_v29 = vpop.f32.mrb[121].mxu0  ;;  %v9094_v35 = vpop.f32.mrb[121].mxu1 }
 0x1dd   : > { %10392 = vst [vmem:[#allocation200_spill] sm:$0xff] %v9089_v29  ;;  %10393 = vst [vmem:[#allocation201_spill] sm:$0xff] %v9094_v35  ;;  %v9096_v17 = vpop.f32.mrb[122].mxu0  ;;  %v9102_v13 = vpop.f32.mrb[122].mxu1 }
 0x1de   : > { %10394 = vst [vmem:[#allocation202_spill] sm:$0xff] %v9096_v17  ;;  %10395 = vst [vmem:[#allocation203_spill] sm:$0xff] %v9102_v13  ;;  %v9104_v10 = vpop.f32.mrb[123].mxu0  ;;  %v9109_v61 = vpop.f32.mrb[123].mxu1  ;;  %v7808_v17 = vld [vmem:[%s7903_s23 + $0x7b0] sm:$0xff]  }
 0x1df   : > { %10396 = vst [vmem:[#allocation204_spill] sm:$0xff] %v9104_v10  ;;  %10397 = vst [vmem:[#allocation205_spill] sm:$0xff] %v9109_v61  ;;  %v7806_v61 = vld [vmem:[%s7903_s23 + $0x7a8] sm:$0xff]  }
 0x1e0   : > { %7385 = vmatmul.mubr.msk.bf16.gmra.mrb[228].mxu0 %vm674_vm2, %v7801_v16  ;;  %7517 = vmatmul.mubr.msk.bf16.gmra.mrb[228].mxu1 %vm674_vm2, %v7802_v58  ;;  %v7807_v58 = vld [vmem:[%s7903_s23 + $0x5b0] sm:$0xff]  }
 0x1e1   : > { %7388 = vmatprep.mubr.msk.bf16.mxu0 %vm674_vm2, %v7803_v1  ;;  %7520 = vmatprep.mubr.msk.bf16.mxu1 %vm674_vm2, %v7804_v49 }
 0x1e3   : > { %v9117_v43 = vpop.f32.mrb[124].mxu0  ;;  %v9119_v35 = vpop.f32.mrb[124].mxu1 }
 0x1e4   : > { %10398 = vst [vmem:[#allocation206_spill] sm:$0xff] %v9117_v43  ;;  %10399 = vst [vmem:[#allocation207_spill] sm:$0xff] %v9119_v35  ;;  %v9121_v29 = vpop.f32.mrb[125].mxu0  ;;  %v9126_v3 = vpop.f32.mrb[125].mxu1 }
 0x1e5   : > { %10400 = vst [vmem:[#allocation208_spill] sm:$0xff] %v9121_v29  ;;  %10401 = vst [vmem:[#allocation209_spill] sm:$0xff] %v9126_v3  ;;  %v9128_v16 = vpop.f32.mrb[126].mxu0  ;;  %v9134_v1 = vpop.f32.mrb[126].mxu1 }
 0x1e6   : > { %10402 = vst [vmem:[#allocation210_spill] sm:$0xff] %v9128_v16  ;;  %10403 = vst [vmem:[#allocation211_spill] sm:$0xff] %v9134_v1  ;;  %v9136_v10 = vpop.f32.mrb[127].mxu0  ;;  %v9141_v35 = vpop.f32.mrb[127].mxu1 }
 0x1e7   : > { %10404 = vst [vmem:[#allocation212_spill] sm:$0xff] %v9136_v10  ;;  %10405 = vst [vmem:[#allocation213_spill] sm:$0xff] %v9141_v35  ;;  %v7812_v35 = vld [vmem:[%s7903_s23 + $0x7c0] sm:$0xff]  }
 0x1e8   : > { %7389 = vmatmul.mubr.msk.bf16.gmra.mrb[232].mxu0 %vm674_vm2, %v7805_v45  ;;  %7521 = vmatmul.mubr.msk.bf16.gmra.mrb[232].mxu1 %vm674_vm2, %v7806_v61  ;;  %v9155_v45 = vld [vmem:[%s9980_s2] ss:$0 sm:$0xff] }
 0x1e9   : > { %7392 = vmatprep.mubr.msk.bf16.mxu0 %vm674_vm2, %v7807_v58  ;;  %7524 = vmatprep.mubr.msk.bf16.mxu1 %vm674_vm2, %v7808_v17  ;;  %v10406_v17 = vmax.f32 %v8126_v53, %v8130_v56  ;;  %v10409_v56 = vmax.f32 %v8144_v63, %v8149_v2 }
 0x1eb   : > { %v7286_v49 = vpop.f32.mrb[128].mxu0  ;;  %v7418_v3 = vpop.f32.mrb[128].mxu1 }
 0x1ec   : > { %v3408_v29 = vpop.f32.mrb[129].mxu0  ;;  %v5107_v13 = vmax.f32 %v7286_v49, %v7418_v3  ;;  %v4594_v1 = vpop.f32.mrb[129].mxu1  ;;  %v10407_v49 = vmax.f32 %v8132_v57, %v8136_v59 }
 0x1ed   : > { %v7287_v16 = vpop.f32.mrb[130].mxu0  ;;  %v5105_v61 = vmax.f32 %v3408_v29, %v4594_v1  ;;  %v7419_v43 = vpop.f32.mrb[130].mxu1  ;;  %v10408_v29 = vmax.f32 %v8138_v60, %v8142_v62 }
 0x1ee   : > { %v3411_v58 = vpop.f32.mrb[131].mxu0  ;;  %v5235_v10 = vmax.f32 %v10406_v17, %v5107_v13  ;;  %v5108_v33 = vmax.f32 %v7287_v16, %v7419_v43  ;;  %v4597_v3 = vpop.f32.mrb[131].mxu1  ;;  %v10410_v17 = vmax.f32 %v8158_v5, %v8162_v8 }
 0x1ef   : > { %v5233_v40 = vmax.f32 %v10407_v49, %v5105_v61  ;;  %v5106_v39 = vmax.f32 %v3411_v58, %v4597_v3  ;;  %v7816_v58 = vld [vmem:[%s7903_s23 + $0x7d0] sm:$0xff]  }
 0x1f0   : > { %7393 = vmatmul.mubr.msk.bf16.gmra.mrb[236].mxu0 %vm674_vm2, %v7809_v19  ;;  %v5370_v0 = vadd.f32 %v9155_v45, %v5235_v10  ;;  %v5236_v1 = vmax.f32 %v10408_v29, %v5108_v33  ;;  %7525 = vmatmul.mubr.msk.bf16.gmra.mrb[236].mxu1 %vm674_vm2, %v7810_v24 }
 0x1f1   : > { %7396 = vmatprep.mubr.msk.bf16.mxu0 %vm674_vm2, %v7811_v21  ;;  %v5368_v53 = vadd.f32 %v9155_v45, %v5233_v40  ;;  %v5234_v57 = vmax.f32 %v10409_v56, %v5106_v39  ;;  %7528 = vmatprep.mubr.msk.bf16.mxu1 %vm674_vm2, %v7812_v35  ;;  %v7813_v40 = vld [vmem:[%s7903_s23 + $0x5c8] sm:$0xff]  }
 0x1f2   : > { %v5498_v59 = vmax.f32 %v5370_v0, 0.0  ;;  %v5371_v60 = vadd.f32 %v9155_v45, %v5236_v1  ;;  %v7814_v35 = vld [vmem:[%s7903_s23 + $0x7c8] sm:$0xff]   ;;  %v7815_v0 = vld [vmem:[%s7903_s23 + $0x5d0] sm:$0xff]   ;;  %v10411_v1 = vmax.f32 %v8164_v9, %v8168_v11  ;;  %v10413_v9 = vmax.f32 %v8176_v15, %v8181_v18 }
 0x1f3   : > { %v7290_v62 = vpop.f32.mrb[132].mxu0  ;;  %v5496_v10 = vmax.f32 %v5368_v53, 0.0  ;;  %v5369_v19 = vadd.f32 %v9155_v45, %v5234_v57  ;;  %v7422_v24 = vpop.f32.mrb[132].mxu1 }
 0x1f4   : > { %v3424_v33 = vpop.f32.mrb[133].mxu0  ;;  %5627 = vst.msk [vmem:[%s9175_s29 + $0x10] sm:$0xff] %vm5624_vm3, %v5498_v59  ;;  %v5499_v63 = vmax.f32 %v5371_v60, 0.0  ;;  %v5111_v2 = vmax.f32 %v7290_v62, %v7422_v24  ;;  %v4610_v21 = vpop.f32.mrb[133].mxu1  ;;  %v10412_v59 = vmax.f32 %v8170_v12, %v8174_v14 }
 0x1f5   : > { %v7291_v39 = vpop.f32.mrb[134].mxu0  ;;  %5625 = vst.msk [vmem:[%s9175_s29] sm:$0xff] %vm5624_vm3, %v5496_v10  ;;  %v5497_v43 = vmax.f32 %v5369_v19, 0.0  ;;  %v5109_v13 = vmax.f32 %v3424_v33, %v4610_v21  ;;  %v7423_v16 = vpop.f32.mrb[134].mxu1  ;;  %v7817_v33 = vld [vmem:[%s7903_s23 + $0x5d8] sm:$0xff]   ;;  %v7819_v21 = vld [vmem:[%s7903_s23 + $0x5e0] sm:$0xff]  }
 0x1f6   : > { %v3427_v61 = vpop.f32.mrb[135].mxu0  ;;  %5628 = vst.msk [vmem:[%s9175_s29 + $0x18] sm:$0xff] %vm5624_vm3, %v5499_v63  ;;  %v5239_v3 = vmax.f32 %v10410_v17, %v5111_v2  ;;  %v5112_v49 = vmax.f32 %v7291_v39, %v7423_v16  ;;  %v4613_v29 = vpop.f32.mrb[135].mxu1  ;;  %v7818_v2 = vld [vmem:[%s7903_s23 + $0x7d8] sm:$0xff]   ;;  %v10414_v16 = vmax.f32 %v8189_v20, %v8192_v22 }
 0x1f7   : > { %5626 = vst.msk [vmem:[%s9175_s29 + $0x8] sm:$0xff] %vm5624_vm3, %v5497_v43  ;;  %v5237_v53 = vmax.f32 %v10411_v1, %v5109_v13  ;;  %v5110_v56 = vmax.f32 %v3427_v61, %v4613_v29  ;;  %v7820_v13 = vld [vmem:[%s7903_s23 + $0x7e0] sm:$0xff]  }
 0x1f8   : > { %7397 = vmatmul.mubr.msk.bf16.gmra.mrb[240].mxu0 %vm674_vm2, %v7813_v40  ;;  %v5374_v57 = vadd.f32 %v9155_v45, %v5239_v3  ;;  %v5240_v5 = vmax.f32 %v10412_v59, %v5112_v49  ;;  %7529 = vmatmul.mubr.msk.bf16.gmra.mrb[240].mxu1 %vm674_vm2, %v7814_v35  ;;  %v10415_v3 = vmax.f32 %v8194_v23, %v8198_v25 }
 0x1f9   : > { %7400 = vmatprep.mubr.msk.bf16.mxu0 %vm674_vm2, %v7815_v0  ;;  %v5372_v8 = vadd.f32 %v9155_v45, %v5237_v53  ;;  %v5238_v11 = vmax.f32 %v10413_v9, %v5110_v56  ;;  %7532 = vmatprep.mubr.msk.bf16.mxu1 %vm674_vm2, %v7816_v58  ;;  %v10416_v53 = vmax.f32 %v8200_v26, %v8206_v30  ;;  %v7821_v9 = vld [vmem:[%s7903_s23 + $0x5e8] sm:$0xff]  }
 0x1fa   : > { %v5502_v60 = vmax.f32 %v5374_v57, 0.0  ;;  %v5375_v62 = vadd.f32 %v9155_v45, %v5240_v5  ;;  %v10417_v23 = vmax.f32 %v8208_v31, %v8213_v34 }
 0x1fb   : > { %v7294_v12 = vpop.f32.mrb[136].mxu0  ;;  %v5500_v14 = vmax.f32 %v5372_v8, 0.0  ;;  %v5373_v10 = vadd.f32 %v9155_v45, %v5238_v11  ;;  %v7426_v19 = vpop.f32.mrb[136].mxu1 }
 0x1fc   : > { %v3440_v24 = vpop.f32.mrb[137].mxu0  ;;  %5631 = vst.msk [vmem:[%s9175_s29 + $0x30] sm:$0xff] %vm5624_vm3, %v5502_v60  ;;  %v5503_v15 = vmax.f32 %v5375_v62, 0.0  ;;  %v5115_v18 = vmax.f32 %v7294_v12, %v7426_v19  ;;  %v4626_v40 = vpop.f32.mrb[137].mxu1  ;;  %v7822_v62 = vld [vmem:[%s7903_s23 + $0x7e8] sm:$0xff]   ;;  %v7823_v12 = vld [vmem:[%s7903_s23 + $0x5f0] sm:$0xff]  }
 0x1fd   : > { %v7295_v63 = vpop.f32.mrb[138].mxu0  ;;  %5629 = vst.msk [vmem:[%s9175_s29 + $0x20] sm:$0xff] %vm5624_vm3, %v5500_v14  ;;  %v5501_v39 = vmax.f32 %v5373_v10, 0.0  ;;  %v5113_v35 = vmax.f32 %v3440_v24, %v4626_v40  ;;  %v7427_v0 = vpop.f32.mrb[138].mxu1 }
 0x1fe   : > { %v3443_v43 = vpop.f32.mrb[139].mxu0  ;;  %5632 = vst.msk [vmem:[%s9175_s29 + $0x38] sm:$0xff] %vm5624_vm3, %v5503_v15  ;;  %v5243_v61 = vmax.f32 %v10414_v16, %v5115_v18  ;;  %v5116_v58 = vmax.f32 %v7295_v63, %v7427_v0  ;;  %v4629_v17 = vpop.f32.mrb[139].mxu1  ;;  %v10418_v15 = vmax.f32 %v8221_v36, %v8223_v37  ;;  %v10420_v0 = vmax.f32 %v8232_v42, %v8238_v46 }
 0x1ff   : > { %5630 = vst.msk [vmem:[%s9175_s29 + $0x28] sm:$0xff] %vm5624_vm3, %v5501_v39  ;;  %v5241_v49 = vmax.f32 %v10415_v3, %v5113_v35  ;;  %v5114_v29 = vmax.f32 %v3443_v43, %v4629_v17  ;;  %v7825_v17 = vld [vmem:[%s7903_s23 + $0x5f8] sm:$0xff]  }
 0x200   : > { %7401 = vmatmul.mubr.msk.bf16.gmra.mrb[244].mxu0 %vm674_vm2, %v7817_v33  ;;  %v5378_v1 = vadd.f32 %v9155_v45, %v5243_v61  ;;  %v5244_v20 = vmax.f32 %v10416_v53, %v5116_v58  ;;  %7533 = vmatmul.mubr.msk.bf16.gmra.mrb[244].mxu1 %vm674_vm2, %v7818_v2  ;;  %v7824_v33 = vld [vmem:[%s7903_s23 + $0x7f0] sm:$0xff]   ;;  %v10419_v2 = vmax.f32 %v8225_v38, %v8230_v41 }
 0x201   : > { %7404 = vmatprep.mubr.msk.bf16.mxu0 %vm674_vm2, %v7819_v21  ;;  %v5376_v22 = vadd.f32 %v9155_v45, %v5241_v49  ;;  %v5242_v25 = vmax.f32 %v10417_v23, %v5114_v29  ;;  %7536 = vmatprep.mubr.msk.bf16.mxu1 %vm674_vm2, %v7820_v13  ;;  %v10421_v38 = vmax.f32 %v8240_v47, %v8245_v50  ;;  %v7826_v29 = vld [vmem:[%s7903_s23 + $0x7f8] sm:$0xff]  }
 0x202   : > { %v5506_v56 = vmax.f32 %v5378_v1, 0.0  ;;  %v5379_v57 = vadd.f32 %v9155_v45, %v5244_v20  ;;  %v10422_v23 = vmax.f32 %v8253_v52, %v8255_v54  ;;  %v10425_v54 = vmax.f32 %v8272_v32, %v8277_v44 }
 0x203   : > { %v7298_v26 = vpop.f32.mrb[140].mxu0  ;;  %v5504_v30 = vmax.f32 %v5376_v22, 0.0  ;;  %v5377_v59 = vadd.f32 %v9155_v45, %v5242_v25  ;;  %v7430_v5 = vpop.f32.mrb[140].mxu1 }
 0x204   : > { %v3456_v8 = vpop.f32.mrb[141].mxu0  ;;  %5635 = vst.msk [vmem:[%s9175_s29 + $0x50] sm:$0xff] %vm5624_vm3, %v5506_v56  ;;  %v5507_v31 = vmax.f32 %v5379_v57, 0.0  ;;  %v5119_v34 = vmax.f32 %v7298_v26, %v7430_v5  ;;  %v4642_v11 = vpop.f32.mrb[141].mxu1  ;;  %v10423_v26 = vmax.f32 %v8257_v55, %v8262_v6 }
 0x205   : > { %v7299_v60 = vpop.f32.mrb[142].mxu0  ;;  %5633 = vst.msk [vmem:[%s9175_s29 + $0x40] sm:$0xff] %vm5624_vm3, %v5504_v30  ;;  %v5505_v14 = vmax.f32 %v5377_v59, 0.0  ;;  %v5117_v10 = vmax.f32 %v3456_v8, %v4642_v11  ;;  %v7431_v19 = vpop.f32.mrb[142].mxu1  ;;  %v10424_v8 = vmax.f32 %v8264_v7, %v8270_v28 }
 0x206   : > { %v3459_v24 = vpop.f32.mrb[143].mxu0  ;;  %5636 = vst.msk [vmem:[%s9175_s29 + $0x58] sm:$0xff] %vm5624_vm3, %v5507_v31  ;;  %v5247_v18 = vmax.f32 %v10418_v15, %v5119_v34  ;;  %v5120_v40 = vmax.f32 %v7299_v60, %v7431_v19  ;;  %v4645_v63 = vpop.f32.mrb[143].mxu1 }
 0x207   : > { %5634 = vst.msk [vmem:[%s9175_s29 + $0x48] sm:$0xff] %vm5624_vm3, %v5505_v14  ;;  %v5245_v21 = vmax.f32 %v10419_v2, %v5117_v10  ;;  %v5118_v39 = vmax.f32 %v3459_v24, %v4645_v63  ;;  %v10427_v63 = vmax.f32 %v8289_v51, %v8294_v48 }
 0x208   : > { %7405 = vmatmul.mubr.msk.bf16.gmra.mrb[248].mxu0 %vm674_vm2, %v7821_v9  ;;  %v5382_v35 = vadd.f32 %v9155_v45, %v5247_v18  ;;  %v5248_v36 = vmax.f32 %v10420_v0, %v5120_v40  ;;  %7537 = vmatmul.mubr.msk.bf16.gmra.mrb[248].mxu1 %vm674_vm2, %v7822_v62  ;;  %v10429_v0 = vld [vmem:[#allocation3_spill] sm:$0xff] }
 0x209   : > { %7408 = vmatprep.mubr.msk.bf16.mxu0 %vm674_vm2, %v7823_v12  ;;  %v5380_v37 = vadd.f32 %v9155_v45, %v5245_v21  ;;  %v5246_v41 = vmax.f32 %v10421_v38, %v5118_v39  ;;  %7540 = vmatprep.mubr.msk.bf16.mxu1 %vm674_vm2, %v7824_v33  ;;  %v10426_v33 = vmax.f32 %v8285_v27, %v8287_v4  ;;  %v10431_v27 = vld [vmem:[#allocation4_spill] sm:$0xff]  ;;  %v10432_v38 = vld [vmem:[#allocation5_spill] sm:$0xff] }
 0x20a   : > { %v5510_v43 = vmax.f32 %v5382_v35, 0.0  ;;  %v5383_v13 = vadd.f32 %v9155_v45, %v5248_v36  ;;  %v10428_v35 = vld [vmem:[#allocation2_spill] sm:$0xff] }
 0x20b   : > { %v7302_v16 = vpop.f32.mrb[144].mxu0  ;;  %v5508_v42 = vmax.f32 %v5380_v37, 0.0  ;;  %v5381_v46 = vadd.f32 %v9155_v45, %v5246_v41  ;;  %v7434_v61 = vpop.f32.mrb[144].mxu1  ;;  %v10430_v36 = vmax.f32 %v10428_v35, %v10429_v0  ;;  %v10433_v41 = vmax.f32 %v10431_v27, %v10432_v38 }
 0x20c   : > { %v3472_v58 = vpop.f32.mrb[145].mxu0  ;;  %5639 = vst.msk [vmem:[%s9175_s29 + $0x70] sm:$0xff] %vm5624_vm3, %v5510_v43  ;;  %v5511_v47 = vmax.f32 %v5383_v13, 0.0  ;;  %v5123_v50 = vmax.f32 %v7302_v16, %v7434_v61  ;;  %v4658_v3 = vpop.f32.mrb[145].mxu1 }
 0x20d   : > { %v7303_v49 = vpop.f32.mrb[146].mxu0  ;;  %5637 = vst.msk [vmem:[%s9175_s29 + $0x60] sm:$0xff] %vm5624_vm3, %v5508_v42  ;;  %v5509_v1 = vmax.f32 %v5381_v46, 0.0  ;;  %v5121_v53 = vmax.f32 %v3472_v58, %v4658_v3  ;;  %v7435_v20 = vpop.f32.mrb[146].mxu1 }
 0x20e   : > { %v3475_v22 = vpop.f32.mrb[147].mxu0  ;;  %5640 = vst.msk [vmem:[%s9175_s29 + $0x78] sm:$0xff] %vm5624_vm3, %v5511_v47  ;;  %v5251_v25 = vmax.f32 %v10422_v23, %v5123_v50  ;;  %v5124_v56 = vmax.f32 %v7303_v49, %v7435_v20  ;;  %v4661_v57 = vpop.f32.mrb[147].mxu1  ;;  %v10435_v20 = vld [vmem:[#allocation7_spill] sm:$0xff] }
 0x20f   : > { %5638 = vst.msk [vmem:[%s9175_s29 + $0x68] sm:$0xff] %vm5624_vm3, %v5509_v1  ;;  %v5249_v30 = vmax.f32 %v10423_v26, %v5121_v53  ;;  %v5122_v59 = vmax.f32 %v3475_v22, %v4661_v57  ;;  %v10434_v53 = vld [vmem:[#allocation6_spill] sm:$0xff]  ;;  %v10437_v57 = vld [vmem:[#allocation8_spill] sm:$0xff]  ;;  %v10438_v26 = vld [vmem:[#allocation9_spill] sm:$0xff] }
 0x210   : > { %7409 = vmatmul.mubr.msk.bf16.gmra.mrb[252].mxu0 %vm674_vm2, %v7825_v17  ;;  %v5386_v5 = vadd.f32 %v9155_v45, %v5251_v25  ;;  %v5252_v9 = vmax.f32 %v10424_v8, %v5124_v56  ;;  %7541 = vmatmul.mubr.msk.bf16.gmra.mrb[252].mxu1 %vm674_vm2, %v7826_v29  ;;  %v10436_v22 = vmax.f32 %v10434_v53, %v10435_v20 }
 0x211   : > { %v5384_v52 = vadd.f32 %v9155_v45, %v5249_v30  ;;  %v5250_v55 = vmax.f32 %v10425_v54, %v5122_v59  ;;  %v10439_v30 = vmax.f32 %v10437_v57, %v10438_v26 }
 0x212   : > { %v5514_v6 = vmax.f32 %v5386_v5, 0.0  ;;  %v5387_v31 = vadd.f32 %v9155_v45, %v5252_v9  ;;  %v10440_v9 = vld [vmem:[#allocation10_spill] sm:$0xff] }
 0x213   : > { %v7306_v34 = vpop.f32.mrb[148].mxu0  ;;  %v5512_v11 = vmax.f32 %v5384_v52, 0.0  ;;  %v5385_v60 = vadd.f32 %v9155_v45, %v5250_v55  ;;  %v7438_v62 = vpop.f32.mrb[148].mxu1  ;;  %v10441_v52 = vld [vmem:[#allocation11_spill] sm:$0xff] }
 0x214   : > { %v3488_v7 = vpop.f32.mrb[149].mxu0  ;;  %5643 = vst.msk [vmem:[%s9175_s29 + $0x90] sm:$0xff] %vm5624_vm3, %v5514_v6  ;;  %v5515_v28 = vmax.f32 %v5387_v31, 0.0  ;;  %v5127_v12 = vmax.f32 %v7306_v34, %v7438_v62  ;;  %v4674_v14 = vpop.f32.mrb[149].mxu1  ;;  %v10442_v54 = vmax.f32 %v10440_v9, %v10441_v52  ;;  %v10443_v31 = vld [vmem:[#allocation12_spill] sm:$0xff]  ;;  %v10444_v34 = vld [vmem:[#allocation13_spill] sm:$0xff] }
 0x215   : > { %v7307_v10 = vpop.f32.mrb[150].mxu0  ;;  %5641 = vst.msk [vmem:[%s9175_s29 + $0x80] sm:$0xff] %vm5624_vm3, %v5512_v11  ;;  %v5513_v32 = vmax.f32 %v5385_v60, 0.0  ;;  %v5125_v44 = vmax.f32 %v3488_v7, %v4674_v14  ;;  %v7439_v19 = vpop.f32.mrb[150].mxu1  ;;  %v10445_v11 = vmax.f32 %v10443_v31, %v10444_v34 }
 0x216   : > { %v3491_v24 = vpop.f32.mrb[151].mxu0  ;;  %5644 = vst.msk [vmem:[%s9175_s29 + $0x98] sm:$0xff] %vm5624_vm3, %v5515_v28  ;;  %v5255_v15 = vmax.f32 %v10426_v33, %v5127_v12  ;;  %v5128_v18 = vmax.f32 %v7307_v10, %v7439_v19  ;;  %v4677_v40 = vpop.f32.mrb[151].mxu1 }
 0x217   : > { %5642 = vst.msk [vmem:[%s9175_s29 + $0x88] sm:$0xff] %vm5624_vm3, %v5513_v32  ;;  %v5253_v2 = vmax.f32 %v10427_v63, %v5125_v44  ;;  %v5126_v21 = vmax.f32 %v3491_v24, %v4677_v40 }
 0x218   : > { %v5390_v39 = vadd.f32 %v9155_v45, %v5255_v15  ;;  %v5256_v37 = vmax.f32 %v10430_v36, %v5128_v18 }
 0x219   : > { %v5388_v4 = vadd.f32 %v9155_v45, %v5253_v2  ;;  %v5254_v43 = vmax.f32 %v10433_v41, %v5126_v21  ;;  %v10446_v2 = vld [vmem:[#allocation14_spill] sm:$0xff]  ;;  %v10447_v21 = vld [vmem:[#allocation15_spill] sm:$0xff] }
 0x21a   : > { %v5518_v13 = vmax.f32 %v5390_v39, 0.0  ;;  %v5391_v16 = vadd.f32 %v9155_v45, %v5256_v37  ;;  %v10448_v39 = vmax.f32 %v10446_v2, %v10447_v21  ;;  %v10449_v37 = vld [vmem:[#allocation16_spill] sm:$0xff] }
 0x21b   : > { %v7310_v51 = vpop.f32.mrb[152].mxu0  ;;  %v5516_v48 = vmax.f32 %v5388_v4, 0.0  ;;  %v5389_v42 = vadd.f32 %v9155_v45, %v5254_v43  ;;  %v7442_v46 = vpop.f32.mrb[152].mxu1  ;;  %v10450_v4 = vld [vmem:[#allocation17_spill] sm:$0xff] }
 0x21c   : > { %v3504_v61 = vpop.f32.mrb[153].mxu0  ;;  %5647 = vst.msk [vmem:[%s9175_s29 + $0xb0] sm:$0xff] %vm5624_vm3, %v5518_v13  ;;  %v5519_v58 = vmax.f32 %v5391_v16, 0.0  ;;  %v5131_v17 = vmax.f32 %v7310_v51, %v7442_v46  ;;  %v4690_v47 = vpop.f32.mrb[153].mxu1  ;;  %v10451_v27 = vmax.f32 %v10449_v37, %v10450_v4  ;;  %v10452_v13 = vld [vmem:[#allocation18_spill] sm:$0xff]  ;;  %v10453_v16 = vld [vmem:[#allocation19_spill] sm:$0xff] }
 0x21d   : > { %v7311_v50 = vpop.f32.mrb[154].mxu0  ;;  %5645 = vst.msk [vmem:[%s9175_s29 + $0xa0] sm:$0xff] %vm5624_vm3, %v5516_v48  ;;  %v5517_v3 = vmax.f32 %v5389_v42, 0.0  ;;  %v5129_v49 = vmax.f32 %v3504_v61, %v4690_v47  ;;  %v7443_v29 = vpop.f32.mrb[154].mxu1  ;;  %v10454_v51 = vmax.f32 %v10452_v13, %v10453_v16  ;;  %v10455_v46 = vld [vmem:[#allocation20_spill] sm:$0xff]  ;;  %v10456_v61 = vld [vmem:[#allocation21_spill] sm:$0xff] }
 0x21e   : > { %v3507_v1 = vpop.f32.mrb[155].mxu0  ;;  %5648 = vst.msk [vmem:[%s9175_s29 + $0xb8] sm:$0xff] %vm5624_vm3, %v5519_v58  ;;  %v5259_v23 = vmax.f32 %v10436_v22, %v5131_v17  ;;  %v5132_v25 = vmax.f32 %v7311_v50, %v7443_v29  ;;  %v4693_v56 = vpop.f32.mrb[155].mxu1  ;;  %v10457_v58 = vmax.f32 %v10455_v46, %v10456_v61 }
 0x21f   : > { %5646 = vst.msk [vmem:[%s9175_s29 + $0xa8] sm:$0xff] %vm5624_vm3, %v5517_v3  ;;  %v5257_v59 = vmax.f32 %v10439_v30, %v5129_v49  ;;  %v5130_v5 = vmax.f32 %v3507_v1, %v4693_v56 }
 0x220   : > { %v5394_v8 = vadd.f32 %v9155_v45, %v5259_v23  ;;  %v5260_v55 = vmax.f32 %v10442_v54, %v5132_v25 }
 0x221   : > { %v5392_v6 = vadd.f32 %v9155_v45, %v5257_v59  ;;  %v5258_v60 = vmax.f32 %v10445_v11, %v5130_v5  ;;  %v10458_v59 = vld [vmem:[#allocation22_spill] sm:$0xff]  ;;  %v10459_v5 = vld [vmem:[#allocation23_spill] sm:$0xff] }
 0x222   : > { %v5522_v62 = vmax.f32 %v5394_v8, 0.0  ;;  %v5395_v7 = vadd.f32 %v9155_v45, %v5260_v55  ;;  %v10460_v8 = vmax.f32 %v10458_v59, %v10459_v5  ;;  %v10461_v55 = vld [vmem:[#allocation24_spill] sm:$0xff] }
 0x223   : > { %v7314_v28 = vpop.f32.mrb[156].mxu0  ;;  %v5520_v12 = vmax.f32 %v5392_v6, 0.0  ;;  %v5393_v14 = vadd.f32 %v9155_v45, %v5258_v60  ;;  %v7446_v10 = vpop.f32.mrb[156].mxu1  ;;  %v10462_v6 = vld [vmem:[#allocation25_spill] sm:$0xff] }
 0x224   : > { %v3520_v32 = vpop.f32.mrb[157].mxu0  ;;  %5651 = vst.msk [vmem:[%s9175_s29 + $0xd0] sm:$0xff] %vm5624_vm3, %v5522_v62  ;;  %v5523_v44 = vmax.f32 %v5395_v7, 0.0  ;;  %v5135_v19 = vmax.f32 %v7314_v28, %v7446_v10  ;;  %v4706_v24 = vpop.f32.mrb[157].mxu1  ;;  %v10463_v31 = vmax.f32 %v10461_v55, %v10462_v6  ;;  %v10464_v62 = vld [vmem:[#allocation26_spill] sm:$0xff]  ;;  %v10465_v7 = vld [vmem:[#allocation27_spill] sm:$0xff] }
 0x225   : > { %v7315_v33 = vpop.f32.mrb[158].mxu0  ;;  %5649 = vst.msk [vmem:[%s9175_s29 + $0xc0] sm:$0xff] %vm5624_vm3, %v5520_v12  ;;  %v5521_v15 = vmax.f32 %v5393_v14, 0.0  ;;  %v5133_v18 = vmax.f32 %v3520_v32, %v4706_v24  ;;  %v7447_v40 = vpop.f32.mrb[158].mxu1  ;;  %v10466_v28 = vmax.f32 %v10464_v62, %v10465_v7  ;;  %v10467_v10 = vld [vmem:[#allocation28_spill] sm:$0xff]  ;;  %v10468_v32 = vld [vmem:[#allocation29_spill] sm:$0xff] }
 0x226   : > { %v3523_v63 = vpop.f32.mrb[159].mxu0  ;;  %5652 = vst.msk [vmem:[%s9175_s29 + $0xd8] sm:$0xff] %vm5624_vm3, %v5523_v44  ;;  %v5263_v35 = vmax.f32 %v10448_v39, %v5135_v19  ;;  %v5136_v0 = vmax.f32 %v7315_v33, %v7447_v40  ;;  %v4709_v36 = vpop.f32.mrb[159].mxu1  ;;  %v10469_v44 = vmax.f32 %v10467_v10, %v10468_v32 }
 0x227   : > { %5650 = vst.msk [vmem:[%s9175_s29 + $0xc8] sm:$0xff] %vm5624_vm3, %v5521_v15  ;;  %v5261_v38 = vmax.f32 %v10451_v27, %v5133_v18  ;;  %v5134_v41 = vmax.f32 %v3523_v63, %v4709_v36 }
 0x228   : > { %v5398_v43 = vadd.f32 %v9155_v45, %v5263_v35  ;;  %v5264_v48 = vmax.f32 %v10454_v51, %v5136_v0 }
 0x229   : > { %v5396_v42 = vadd.f32 %v9155_v45, %v5261_v38  ;;  %v5262_v17 = vmax.f32 %v10457_v58, %v5134_v41  ;;  %v10470_v38 = vld [vmem:[#allocation30_spill] sm:$0xff]  ;;  %v10471_v41 = vld [vmem:[#allocation31_spill] sm:$0xff] }
 0x22a   : > { %v5526_v47 = vmax.f32 %v5398_v43, 0.0  ;;  %v5399_v50 = vadd.f32 %v9155_v45, %v5264_v48  ;;  %v10472_v43 = vmax.f32 %v10470_v38, %v10471_v41  ;;  %v10473_v48 = vld [vmem:[#allocation32_spill] sm:$0xff] }
 0x22b   : > { %v7318_v3 = vpop.f32.mrb[160].mxu0  ;;  %v5524_v49 = vmax.f32 %v5396_v42, 0.0  ;;  %v5397_v29 = vadd.f32 %v9155_v45, %v5262_v17  ;;  %v7450_v1 = vpop.f32.mrb[160].mxu1  ;;  %v10474_v42 = vld [vmem:[#allocation33_spill] sm:$0xff] }
 0x22c   : > { %v3536_v53 = vpop.f32.mrb[161].mxu0  ;;  %5655 = vst.msk [vmem:[%s9175_s29 + $0xf0] sm:$0xff] %vm5624_vm3, %v5526_v47  ;;  %v5527_v20 = vmax.f32 %v5399_v50, 0.0  ;;  %v5139_v22 = vmax.f32 %v7318_v3, %v7450_v1  ;;  %v4722_v23 = vpop.f32.mrb[161].mxu1  ;;  %v10475_v46 = vmax.f32 %v10473_v48, %v10474_v42  ;;  %v10476_v47 = vld [vmem:[#allocation34_spill] sm:$0xff]  ;;  %v10477_v50 = vld [vmem:[#allocation35_spill] sm:$0xff] }
 0x22d   : > { %v7319_v25 = vpop.f32.mrb[162].mxu0  ;;  %5653 = vst.msk [vmem:[%s9175_s29 + $0xe0] sm:$0xff] %vm5624_vm3, %v5524_v49  ;;  %v5525_v56 = vmax.f32 %v5397_v29, 0.0  ;;  %v5137_v57 = vmax.f32 %v3536_v53, %v4722_v23  ;;  %v7451_v26 = vpop.f32.mrb[162].mxu1  ;;  %v10478_v3 = vmax.f32 %v10476_v47, %v10477_v50  ;;  %v10479_v1 = vld [vmem:[#allocation36_spill] sm:$0xff]  ;;  %v10480_v53 = vld [vmem:[#allocation37_spill] sm:$0xff] }
 0x22e   : > { %v3539_v30 = vpop.f32.mrb[163].mxu0  ;;  %5656 = vst.msk [vmem:[%s9175_s29 + $0xf8] sm:$0xff] %vm5624_vm3, %v5527_v20  ;;  %v5267_v9 = vmax.f32 %v10460_v8, %v5139_v22  ;;  %v5140_v52 = vmax.f32 %v7319_v25, %v7451_v26  ;;  %v4725_v54 = vpop.f32.mrb[163].mxu1  ;;  %v10481_v20 = vmax.f32 %v10479_v1, %v10480_v53 }
 0x22f   : > { %5654 = vst.msk [vmem:[%s9175_s29 + $0xe8] sm:$0xff] %vm5624_vm3, %v5525_v56  ;;  %v5265_v34 = vmax.f32 %v10463_v31, %v5137_v57  ;;  %v5138_v11 = vmax.f32 %v3539_v30, %v4725_v54 }
 0x230   : > { %v5402_v60 = vadd.f32 %v9155_v45, %v5267_v9  ;;  %v5268_v12 = vmax.f32 %v10466_v28, %v5140_v52 }
 0x231   : > { %v5400_v14 = vadd.f32 %v9155_v45, %v5265_v34  ;;  %v5266_v19 = vmax.f32 %v10469_v44, %v5138_v11  ;;  %v10482_v34 = vld [vmem:[#allocation38_spill] sm:$0xff]  ;;  %v10483_v11 = vld [vmem:[#allocation39_spill] sm:$0xff] }
 0x232   : > { %v5530_v24 = vmax.f32 %v5402_v60, 0.0  ;;  %v5403_v33 = vadd.f32 %v9155_v45, %v5268_v12  ;;  %v10484_v60 = vmax.f32 %v10482_v34, %v10483_v11  ;;  %v10485_v12 = vld [vmem:[#allocation40_spill] sm:$0xff] }
 0x233   : > { %v7322_v15 = vpop.f32.mrb[164].mxu0  ;;  %v5528_v18 = vmax.f32 %v5400_v14, 0.0  ;;  %v5401_v40 = vadd.f32 %v9155_v45, %v5266_v19  ;;  %v7454_v63 = vpop.f32.mrb[164].mxu1  ;;  %v10486_v14 = vld [vmem:[#allocation41_spill] sm:$0xff] }
 0x234   : > { %v3552_v2 = vpop.f32.mrb[165].mxu0  ;;  %5659 = vst.msk [vmem:[%s9175_s29 + $0x110] sm:$0xff] %vm5624_vm3, %v5530_v24  ;;  %v5531_v21 = vmax.f32 %v5403_v33, 0.0  ;;  %v5143_v39 = vmax.f32 %v7322_v15, %v7454_v63  ;;  %v4738_v35 = vpop.f32.mrb[165].mxu1  ;;  %v10487_v10 = vmax.f32 %v10485_v12, %v10486_v14  ;;  %v10488_v24 = vld [vmem:[#allocation42_spill] sm:$0xff]  ;;  %v10489_v33 = vld [vmem:[#allocation43_spill] sm:$0xff] }
 0x235   : > { %v7323_v0 = vpop.f32.mrb[166].mxu0  ;;  %5657 = vst.msk [vmem:[%s9175_s29 + $0x100] sm:$0xff] %vm5624_vm3, %v5528_v18  ;;  %v5529_v36 = vmax.f32 %v5401_v40, 0.0  ;;  %v5141_v37 = vmax.f32 %v3552_v2, %v4738_v35  ;;  %v7455_v4 = vpop.f32.mrb[166].mxu1  ;;  %v10490_v15 = vmax.f32 %v10488_v24, %v10489_v33  ;;  %v10491_v63 = vld [vmem:[#allocation44_spill] sm:$0xff]  ;;  %v10492_v2 = vld [vmem:[#allocation45_spill] sm:$0xff] }
 0x236   : > { %v3555_v27 = vpop.f32.mrb[167].mxu0  ;;  %5660 = vst.msk [vmem:[%s9175_s29 + $0x118] sm:$0xff] %vm5624_vm3, %v5531_v21  ;;  %v5271_v13 = vmax.f32 %v10472_v43, %v5143_v39  ;;  %v5144_v16 = vmax.f32 %v7323_v0, %v7455_v4  ;;  %v4741_v51 = vpop.f32.mrb[167].mxu1  ;;  %v10493_v21 = vmax.f32 %v10491_v63, %v10492_v2 }
 0x237   : > { %5658 = vst.msk [vmem:[%s9175_s29 + $0x108] sm:$0xff] %vm5624_vm3, %v5529_v36  ;;  %v5269_v61 = vmax.f32 %v10475_v46, %v5141_v37  ;;  %v5142_v58 = vmax.f32 %v3555_v27, %v4741_v51 }
 0x238   : > { %v5406_v17 = vadd.f32 %v9155_v45, %v5271_v13  ;;  %v5272_v49 = vmax.f32 %v10478_v3, %v5144_v16 }
 0x239   : > { %v5404_v29 = vadd.f32 %v9155_v45, %v5269_v61  ;;  %v5270_v22 = vmax.f32 %v10481_v20, %v5142_v58  ;;  %v10494_v61 = vld [vmem:[#allocation46_spill] sm:$0xff]  ;;  %v10495_v58 = vld [vmem:[#allocation47_spill] sm:$0xff] }
 0x23a   : > { %v5534_v23 = vmax.f32 %v5406_v17, 0.0  ;;  %v5407_v25 = vadd.f32 %v9155_v45, %v5272_v49  ;;  %v10496_v17 = vmax.f32 %v10494_v61, %v10495_v58  ;;  %v10497_v49 = vld [vmem:[#allocation48_spill] sm:$0xff] }
 0x23b   : > { %v7326_v56 = vpop.f32.mrb[168].mxu0  ;;  %v5532_v57 = vmax.f32 %v5404_v29, 0.0  ;;  %v5405_v26 = vadd.f32 %v9155_v45, %v5270_v22  ;;  %v7458_v30 = vpop.f32.mrb[168].mxu1  ;;  %v10498_v29 = vld [vmem:[#allocation49_spill] sm:$0xff] }
 0x23c   : > { %v3568_v59 = vpop.f32.mrb[169].mxu0  ;;  %5663 = vst.msk [vmem:[%s9175_s29 + $0x130] sm:$0xff] %vm5624_vm3, %v5534_v23  ;;  %v5535_v5 = vmax.f32 %v5407_v25, 0.0  ;;  %v5147_v8 = vmax.f32 %v7326_v56, %v7458_v30  ;;  %v4754_v9 = vpop.f32.mrb[169].mxu1  ;;  %v10499_v1 = vmax.f32 %v10497_v49, %v10498_v29  ;;  %v10500_v23 = vld [vmem:[#allocation50_spill] sm:$0xff]  ;;  %v10501_v25 = vld [vmem:[#allocation51_spill] sm:$0xff] }
 0x23d   : > { %v7327_v52 = vpop.f32.mrb[170].mxu0  ;;  %5661 = vst.msk [vmem:[%s9175_s29 + $0x120] sm:$0xff] %vm5624_vm3, %v5532_v57  ;;  %v5533_v54 = vmax.f32 %v5405_v26, 0.0  ;;  %v5145_v55 = vmax.f32 %v3568_v59, %v4754_v9  ;;  %v7459_v6 = vpop.f32.mrb[170].mxu1  ;;  %v10502_v56 = vmax.f32 %v10500_v23, %v10501_v25  ;;  %v10503_v30 = vld [vmem:[#allocation52_spill] sm:$0xff]  ;;  %v10504_v59 = vld [vmem:[#allocation53_spill] sm:$0xff] }
 0x23e   : > { %v3571_v31 = vpop.f32.mrb[171].mxu0  ;;  %5664 = vst.msk [vmem:[%s9175_s29 + $0x138] sm:$0xff] %vm5624_vm3, %v5535_v5  ;;  %v5275_v62 = vmax.f32 %v10484_v60, %v5147_v8  ;;  %v5148_v7 = vmax.f32 %v7327_v52, %v7459_v6  ;;  %v4757_v28 = vpop.f32.mrb[171].mxu1  ;;  %v10505_v5 = vmax.f32 %v10503_v30, %v10504_v59 }
 0x23f   : > { %5662 = vst.msk [vmem:[%s9175_s29 + $0x128] sm:$0xff] %vm5624_vm3, %v5533_v54  ;;  %v5273_v32 = vmax.f32 %v10487_v10, %v5145_v55  ;;  %v5146_v44 = vmax.f32 %v3571_v31, %v4757_v28 }
 0x240   : > { %v5410_v19 = vadd.f32 %v9155_v45, %v5275_v62  ;;  %v5276_v18 = vmax.f32 %v10490_v15, %v5148_v7 }
 0x241   : > { %v5408_v40 = vadd.f32 %v9155_v45, %v5273_v32  ;;  %v5274_v39 = vmax.f32 %v10493_v21, %v5146_v44  ;;  %v10506_v32 = vld [vmem:[#allocation54_spill] sm:$0xff]  ;;  %v10507_v44 = vld [vmem:[#allocation55_spill] sm:$0xff] }
 0x242   : > { %v5538_v35 = vmax.f32 %v5410_v19, 0.0  ;;  %v5411_v0 = vadd.f32 %v9155_v45, %v5276_v18  ;;  %v10508_v19 = vmax.f32 %v10506_v32, %v10507_v44  ;;  %v10509_v18 = vld [vmem:[#allocation56_spill] sm:$0xff] }
 0x243   : > { %v7330_v36 = vpop.f32.mrb[172].mxu0  ;;  %v5536_v37 = vmax.f32 %v5408_v40, 0.0  ;;  %v5409_v4 = vadd.f32 %v9155_v45, %v5274_v39  ;;  %v7462_v27 = vpop.f32.mrb[172].mxu1  ;;  %v10510_v40 = vld [vmem:[#allocation57_spill] sm:$0xff] }
 0x244   : > { %v3584_v38 = vpop.f32.mrb[173].mxu0  ;;  %5667 = vst.msk [vmem:[%s9175_s29 + $0x150] sm:$0xff] %vm5624_vm3, %v5538_v35  ;;  %v5539_v41 = vmax.f32 %v5411_v0, 0.0  ;;  %v5151_v43 = vmax.f32 %v7330_v36, %v7462_v27  ;;  %v4770_v13 = vpop.f32.mrb[173].mxu1  ;;  %v10511_v63 = vmax.f32 %v10509_v18, %v10510_v40  ;;  %v10512_v35 = vld [vmem:[#allocation58_spill] sm:$0xff]  ;;  %v10513_v0 = vld [vmem:[#allocation59_spill] sm:$0xff] }
 0x245   : > { %v7331_v16 = vpop.f32.mrb[174].mxu0  ;;  %5665 = vst.msk [vmem:[%s9175_s29 + $0x140] sm:$0xff] %vm5624_vm3, %v5536_v37  ;;  %v5537_v51 = vmax.f32 %v5409_v4, 0.0  ;;  %v5149_v48 = vmax.f32 %v3584_v38, %v4770_v13  ;;  %v7463_v42 = vpop.f32.mrb[174].mxu1  ;;  %v10514_v36 = vmax.f32 %v10512_v35, %v10513_v0  ;;  %v10515_v27 = vld [vmem:[#allocation60_spill] sm:$0xff]  ;;  %v10516_v38 = vld [vmem:[#allocation61_spill] sm:$0xff] }
 0x246   : > { %v3587_v46 = vpop.f32.mrb[175].mxu0  ;;  %5668 = vst.msk [vmem:[%s9175_s29 + $0x158] sm:$0xff] %vm5624_vm3, %v5539_v41  ;;  %v5279_v47 = vmax.f32 %v10496_v17, %v5151_v43  ;;  %v5152_v50 = vmax.f32 %v7331_v16, %v7463_v42  ;;  %v4773_v3 = vpop.f32.mrb[175].mxu1  ;;  %v10517_v41 = vmax.f32 %v10515_v27, %v10516_v38 }
 0x247   : > { %5666 = vst.msk [vmem:[%s9175_s29 + $0x148] sm:$0xff] %vm5624_vm3, %v5537_v51  ;;  %v5277_v53 = vmax.f32 %v10499_v1, %v5149_v48  ;;  %v5150_v20 = vmax.f32 %v3587_v46, %v4773_v3 }
 0x248   : > { %v5414_v22 = vadd.f32 %v9155_v45, %v5279_v47  ;;  %v5280_v57 = vmax.f32 %v10502_v56, %v5152_v50 }
 0x249   : > { %v5412_v26 = vadd.f32 %v9155_v45, %v5277_v53  ;;  %v5278_v8 = vmax.f32 %v10505_v5, %v5150_v20  ;;  %v10518_v53 = vld [vmem:[#allocation62_spill] sm:$0xff]  ;;  %v10519_v20 = vld [vmem:[#allocation63_spill] sm:$0xff] }
 0x24a   : > { %v5542_v9 = vmax.f32 %v5414_v22, 0.0  ;;  %v5415_v52 = vadd.f32 %v9155_v45, %v5280_v57  ;;  %v10520_v22 = vmax.f32 %v10518_v53, %v10519_v20  ;;  %v10521_v57 = vld [vmem:[#allocation64_spill] sm:$0xff] }
 0x24b   : > { %v7334_v54 = vpop.f32.mrb[176].mxu0  ;;  %v5540_v55 = vmax.f32 %v5412_v26, 0.0  ;;  %v5413_v6 = vadd.f32 %v9155_v45, %v5278_v8  ;;  %v7466_v31 = vpop.f32.mrb[176].mxu1  ;;  %v10522_v26 = vld [vmem:[#allocation65_spill] sm:$0xff] }
 0x24c   : > { %v3600_v34 = vpop.f32.mrb[177].mxu0  ;;  %5671 = vst.msk [vmem:[%s9175_s29 + $0x170] sm:$0xff] %vm5624_vm3, %v5542_v9  ;;  %v5543_v11 = vmax.f32 %v5415_v52, 0.0  ;;  %v5155_v60 = vmax.f32 %v7334_v54, %v7466_v31  ;;  %v4786_v62 = vpop.f32.mrb[177].mxu1  ;;  %v10523_v30 = vmax.f32 %v10521_v57, %v10522_v26  ;;  %v10524_v9 = vld [vmem:[#allocation66_spill] sm:$0xff]  ;;  %v10525_v52 = vld [vmem:[#allocation67_spill] sm:$0xff] }
 0x24d   : > { %v7335_v7 = vpop.f32.mrb[178].mxu0  ;;  %5669 = vst.msk [vmem:[%s9175_s29 + $0x160] sm:$0xff] %vm5624_vm3, %v5540_v55  ;;  %v5541_v28 = vmax.f32 %v5413_v6, 0.0  ;;  %v5153_v12 = vmax.f32 %v3600_v34, %v4786_v62  ;;  %v7467_v14 = vpop.f32.mrb[178].mxu1  ;;  %v10526_v54 = vmax.f32 %v10524_v9, %v10525_v52  ;;  %v10527_v31 = vld [vmem:[#allocation68_spill] sm:$0xff]  ;;  %v10528_v34 = vld [vmem:[#allocation69_spill] sm:$0xff] }
 0x24e   : > { %v3603_v10 = vpop.f32.mrb[179].mxu0  ;;  %5672 = vst.msk [vmem:[%s9175_s29 + $0x178] sm:$0xff] %vm5624_vm3, %v5543_v11  ;;  %v5283_v24 = vmax.f32 %v10508_v19, %v5155_v60  ;;  %v5156_v33 = vmax.f32 %v7335_v7, %v7467_v14  ;;  %v4789_v15 = vpop.f32.mrb[179].mxu1  ;;  %v10529_v11 = vmax.f32 %v10527_v31, %v10528_v34 }
 0x24f   : > { %5670 = vst.msk [vmem:[%s9175_s29 + $0x168] sm:$0xff] %vm5624_vm3, %v5541_v28  ;;  %v5281_v2 = vmax.f32 %v10511_v63, %v5153_v12  ;;  %v5154_v21 = vmax.f32 %v3603_v10, %v4789_v15 }
 0x250   : > { %v5418_v39 = vadd.f32 %v9155_v45, %v5283_v24  ;;  %v5284_v37 = vmax.f32 %v10514_v36, %v5156_v33 }
 0x251   : > { %v5416_v4 = vadd.f32 %v9155_v45, %v5281_v2  ;;  %v5282_v43 = vmax.f32 %v10517_v41, %v5154_v21  ;;  %v10530_v2 = vld [vmem:[#allocation70_spill] sm:$0xff]  ;;  %v10531_v21 = vld [vmem:[#allocation71_spill] sm:$0xff] }
 0x252   : > { %v5546_v13 = vmax.f32 %v5418_v39, 0.0  ;;  %v5419_v16 = vadd.f32 %v9155_v45, %v5284_v37  ;;  %v10532_v39 = vmax.f32 %v10530_v2, %v10531_v21  ;;  %v10533_v37 = vld [vmem:[#allocation72_spill] sm:$0xff] }
 0x253   : > { %v7338_v51 = vpop.f32.mrb[180].mxu0  ;;  %v5544_v48 = vmax.f32 %v5416_v4, 0.0  ;;  %v5417_v42 = vadd.f32 %v9155_v45, %v5282_v43  ;;  %v7470_v46 = vpop.f32.mrb[180].mxu1  ;;  %v10534_v4 = vld [vmem:[#allocation73_spill] sm:$0xff] }
 0x254   : > { %v3616_v61 = vpop.f32.mrb[181].mxu0  ;;  %5675 = vst.msk [vmem:[%s9175_s29 + $0x190] sm:$0xff] %vm5624_vm3, %v5546_v13  ;;  %v5547_v58 = vmax.f32 %v5419_v16, 0.0  ;;  %v5159_v17 = vmax.f32 %v7338_v51, %v7470_v46  ;;  %v4802_v47 = vpop.f32.mrb[181].mxu1  ;;  %v10535_v27 = vmax.f32 %v10533_v37, %v10534_v4  ;;  %v10536_v13 = vld [vmem:[#allocation74_spill] sm:$0xff]  ;;  %v10537_v16 = vld [vmem:[#allocation75_spill] sm:$0xff] }
 0x255   : > { %v7339_v50 = vpop.f32.mrb[182].mxu0  ;;  %5673 = vst.msk [vmem:[%s9175_s29 + $0x180] sm:$0xff] %vm5624_vm3, %v5544_v48  ;;  %v5545_v3 = vmax.f32 %v5417_v42, 0.0  ;;  %v5157_v49 = vmax.f32 %v3616_v61, %v4802_v47  ;;  %v7471_v29 = vpop.f32.mrb[182].mxu1  ;;  %v10538_v51 = vmax.f32 %v10536_v13, %v10537_v16  ;;  %v10539_v46 = vld [vmem:[#allocation76_spill] sm:$0xff]  ;;  %v10540_v61 = vld [vmem:[#allocation77_spill] sm:$0xff] }
 0x256   : > { %v3619_v1 = vpop.f32.mrb[183].mxu0  ;;  %5676 = vst.msk [vmem:[%s9175_s29 + $0x198] sm:$0xff] %vm5624_vm3, %v5547_v58  ;;  %v5287_v23 = vmax.f32 %v10520_v22, %v5159_v17  ;;  %v5160_v25 = vmax.f32 %v7339_v50, %v7471_v29  ;;  %v4805_v56 = vpop.f32.mrb[183].mxu1  ;;  %v10541_v58 = vmax.f32 %v10539_v46, %v10540_v61 }
 0x257   : > { %5674 = vst.msk [vmem:[%s9175_s29 + $0x188] sm:$0xff] %vm5624_vm3, %v5545_v3  ;;  %v5285_v59 = vmax.f32 %v10523_v30, %v5157_v49  ;;  %v5158_v5 = vmax.f32 %v3619_v1, %v4805_v56 }
 0x258   : > { %v5422_v8 = vadd.f32 %v9155_v45, %v5287_v23  ;;  %v5288_v55 = vmax.f32 %v10526_v54, %v5160_v25 }
 0x259   : > { %v5420_v6 = vadd.f32 %v9155_v45, %v5285_v59  ;;  %v5286_v60 = vmax.f32 %v10529_v11, %v5158_v5  ;;  %v10542_v59 = vld [vmem:[#allocation78_spill] sm:$0xff]  ;;  %v10543_v5 = vld [vmem:[#allocation79_spill] sm:$0xff] }
 0x25a   : > { %v5550_v62 = vmax.f32 %v5422_v8, 0.0  ;;  %v5423_v7 = vadd.f32 %v9155_v45, %v5288_v55  ;;  %v10544_v8 = vmax.f32 %v10542_v59, %v10543_v5  ;;  %v10545_v55 = vld [vmem:[#allocation80_spill] sm:$0xff] }
 0x25b   : > { %v7342_v28 = vpop.f32.mrb[184].mxu0  ;;  %v5548_v12 = vmax.f32 %v5420_v6, 0.0  ;;  %v5421_v14 = vadd.f32 %v9155_v45, %v5286_v60  ;;  %v7474_v10 = vpop.f32.mrb[184].mxu1  ;;  %v10546_v6 = vld [vmem:[#allocation81_spill] sm:$0xff] }
 0x25c   : > { %v3632_v32 = vpop.f32.mrb[185].mxu0  ;;  %5679 = vst.msk [vmem:[%s9175_s29 + $0x1b0] sm:$0xff] %vm5624_vm3, %v5550_v62  ;;  %v5551_v44 = vmax.f32 %v5423_v7, 0.0  ;;  %v5163_v19 = vmax.f32 %v7342_v28, %v7474_v10  ;;  %v4818_v24 = vpop.f32.mrb[185].mxu1  ;;  %v10547_v31 = vmax.f32 %v10545_v55, %v10546_v6  ;;  %v10548_v62 = vld [vmem:[#allocation82_spill] sm:$0xff]  ;;  %v10549_v7 = vld [vmem:[#allocation83_spill] sm:$0xff] }
 0x25d   : > { %v7343_v33 = vpop.f32.mrb[186].mxu0  ;;  %5677 = vst.msk [vmem:[%s9175_s29 + $0x1a0] sm:$0xff] %vm5624_vm3, %v5548_v12  ;;  %v5549_v15 = vmax.f32 %v5421_v14, 0.0  ;;  %v5161_v18 = vmax.f32 %v3632_v32, %v4818_v24  ;;  %v7475_v40 = vpop.f32.mrb[186].mxu1  ;;  %v10550_v28 = vmax.f32 %v10548_v62, %v10549_v7  ;;  %v10551_v10 = vld [vmem:[#allocation84_spill] sm:$0xff]  ;;  %v10552_v32 = vld [vmem:[#allocation85_spill] sm:$0xff] }
 0x25e   : > { %v3635_v63 = vpop.f32.mrb[187].mxu0  ;;  %5680 = vst.msk [vmem:[%s9175_s29 + $0x1b8] sm:$0xff] %vm5624_vm3, %v5551_v44  ;;  %v5291_v35 = vmax.f32 %v10532_v39, %v5163_v19  ;;  %v5164_v0 = vmax.f32 %v7343_v33, %v7475_v40  ;;  %v4821_v36 = vpop.f32.mrb[187].mxu1  ;;  %v10553_v44 = vmax.f32 %v10551_v10, %v10552_v32 }
 0x25f   : > { %5678 = vst.msk [vmem:[%s9175_s29 + $0x1a8] sm:$0xff] %vm5624_vm3, %v5549_v15  ;;  %v5289_v38 = vmax.f32 %v10535_v27, %v5161_v18  ;;  %v5162_v41 = vmax.f32 %v3635_v63, %v4821_v36 }
 0x260   : > { %v5426_v43 = vadd.f32 %v9155_v45, %v5291_v35  ;;  %v5292_v48 = vmax.f32 %v10538_v51, %v5164_v0 }
 0x261   : > { %v5424_v42 = vadd.f32 %v9155_v45, %v5289_v38  ;;  %v5290_v17 = vmax.f32 %v10541_v58, %v5162_v41  ;;  %v10554_v38 = vld [vmem:[#allocation86_spill] sm:$0xff]  ;;  %v10555_v41 = vld [vmem:[#allocation87_spill] sm:$0xff] }
 0x262   : > { %v5554_v47 = vmax.f32 %v5426_v43, 0.0  ;;  %v5427_v50 = vadd.f32 %v9155_v45, %v5292_v48  ;;  %v10556_v43 = vmax.f32 %v10554_v38, %v10555_v41  ;;  %v10557_v48 = vld [vmem:[#allocation88_spill] sm:$0xff] }
 0x263   : > { %v7346_v3 = vpop.f32.mrb[188].mxu0  ;;  %v5552_v49 = vmax.f32 %v5424_v42, 0.0  ;;  %v5425_v29 = vadd.f32 %v9155_v45, %v5290_v17  ;;  %v7478_v1 = vpop.f32.mrb[188].mxu1  ;;  %v10558_v42 = vld [vmem:[#allocation89_spill] sm:$0xff] }
 0x264   : > { %v3648_v53 = vpop.f32.mrb[189].mxu0  ;;  %5683 = vst.msk [vmem:[%s9175_s29 + $0x1d0] sm:$0xff] %vm5624_vm3, %v5554_v47  ;;  %v5555_v20 = vmax.f32 %v5427_v50, 0.0  ;;  %v5167_v22 = vmax.f32 %v7346_v3, %v7478_v1  ;;  %v4834_v23 = vpop.f32.mrb[189].mxu1  ;;  %v10559_v46 = vmax.f32 %v10557_v48, %v10558_v42  ;;  %v10560_v47 = vld [vmem:[#allocation90_spill] sm:$0xff]  ;;  %v10561_v50 = vld [vmem:[#allocation91_spill] sm:$0xff] }
 0x265   : > { %v7347_v25 = vpop.f32.mrb[190].mxu0  ;;  %5681 = vst.msk [vmem:[%s9175_s29 + $0x1c0] sm:$0xff] %vm5624_vm3, %v5552_v49  ;;  %v5553_v56 = vmax.f32 %v5425_v29, 0.0  ;;  %v5165_v57 = vmax.f32 %v3648_v53, %v4834_v23  ;;  %v7479_v26 = vpop.f32.mrb[190].mxu1  ;;  %v10562_v3 = vmax.f32 %v10560_v47, %v10561_v50  ;;  %v10563_v1 = vld [vmem:[#allocation92_spill] sm:$0xff]  ;;  %v10564_v53 = vld [vmem:[#allocation93_spill] sm:$0xff] }
 0x266   : > { %v3651_v30 = vpop.f32.mrb[191].mxu0  ;;  %5684 = vst.msk [vmem:[%s9175_s29 + $0x1d8] sm:$0xff] %vm5624_vm3, %v5555_v20  ;;  %v5295_v9 = vmax.f32 %v10544_v8, %v5167_v22  ;;  %v5168_v52 = vmax.f32 %v7347_v25, %v7479_v26  ;;  %v4837_v54 = vpop.f32.mrb[191].mxu1  ;;  %v10565_v20 = vmax.f32 %v10563_v1, %v10564_v53 }
 0x267   : > { %5682 = vst.msk [vmem:[%s9175_s29 + $0x1c8] sm:$0xff] %vm5624_vm3, %v5553_v56  ;;  %v5293_v34 = vmax.f32 %v10547_v31, %v5165_v57  ;;  %v5166_v11 = vmax.f32 %v3651_v30, %v4837_v54 }
 0x268   : > { %v5430_v60 = vadd.f32 %v9155_v45, %v5295_v9  ;;  %v5296_v12 = vmax.f32 %v10550_v28, %v5168_v52  ;;  %v10569_v28 = vld [vmem:[#allocation96_spill] sm:$0xff] }
 0x269   : > { %v5428_v14 = vadd.f32 %v9155_v45, %v5293_v34  ;;  %v5294_v19 = vmax.f32 %v10553_v44, %v5166_v11  ;;  %v10566_v34 = vld [vmem:[#allocation94_spill] sm:$0xff]  ;;  %v10567_v11 = vld [vmem:[#allocation95_spill] sm:$0xff] }
 0x26a   : > { %v5558_v24 = vmax.f32 %v5430_v60, 0.0  ;;  %v5431_v33 = vadd.f32 %v9155_v45, %v5296_v12  ;;  %v10570_v12 = vld [vmem:[#allocation97_spill] sm:$0xff]  ;;  %v9613_v44 = vld [vmem:[%s9980_s2] ss:$0 sm:$0xff] }
 0x26b   : > { %v7350_v15 = vpop.f32.mrb[192].mxu0  ;;  %v5556_v18 = vmax.f32 %v5428_v14, 0.0  ;;  %v5429_v40 = vadd.f32 %v9155_v45, %v5294_v19  ;;  %v7482_v63 = vpop.f32.mrb[192].mxu1  ;;  %v10571_v14 = vmax.f32 %v10569_v28, %v10570_v12 }
 0x26c   : > { %v3664_v2 = vpop.f32.mrb[193].mxu0  ;;  %5687 = vst.msk [vmem:[%s9175_s29 + $0x1f0] sm:$0xff] %vm5624_vm3, %v5558_v24  ;;  %v5559_v21 = vmax.f32 %v5431_v33, 0.0  ;;  %v5171_v39 = vmax.f32 %v7350_v15, %v7482_v63  ;;  %v4850_v35 = vpop.f32.mrb[193].mxu1  ;;  %v10572_v24 = vld [vmem:[#allocation98_spill] sm:$0xff]  ;;  %v10573_v33 = vld [vmem:[#allocation99_spill] sm:$0xff] }
 0x26d   : > { %v7351_v0 = vpop.f32.mrb[194].mxu0  ;;  %5685 = vst.msk [vmem:[%s9175_s29 + $0x1e0] sm:$0xff] %vm5624_vm3, %v5556_v18  ;;  %v5557_v36 = vmax.f32 %v5429_v40, 0.0  ;;  %v5169_v37 = vmax.f32 %v3664_v2, %v4850_v35  ;;  %v7483_v4 = vpop.f32.mrb[194].mxu1  ;;  %v10574_v15 = vmax.f32 %v10572_v24, %v10573_v33  ;;  %v10575_v63 = vld [vmem:[#allocation100_spill] sm:$0xff]  ;;  %v10576_v2 = vld [vmem:[#allocation101_spill] sm:$0xff] }
 0x26e   : > { %v3667_v27 = vpop.f32.mrb[195].mxu0  ;;  %5688 = vst.msk [vmem:[%s9175_s29 + $0x1f8] sm:$0xff] %vm5624_vm3, %v5559_v21  ;;  %v5299_v13 = vmax.f32 %v10556_v43, %v5171_v39  ;;  %v5172_v16 = vmax.f32 %v7351_v0, %v7483_v4  ;;  %v4853_v51 = vpop.f32.mrb[195].mxu1  ;;  %v10577_v21 = vmax.f32 %v10575_v63, %v10576_v2 }
 0x26f   : > { %5686 = vst.msk [vmem:[%s9175_s29 + $0x1e8] sm:$0xff] %vm5624_vm3, %v5557_v36  ;;  %v5297_v61 = vmax.f32 %v10559_v46, %v5169_v37  ;;  %v5170_v58 = vmax.f32 %v3667_v27, %v4853_v51 }
 0x270   : > { %v5434_v17 = vadd.f32 %v9155_v45, %v5299_v13  ;;  %v5300_v49 = vmax.f32 %v10562_v3, %v5172_v16 }
 0x271   : > { %v5432_v29 = vadd.f32 %v9155_v45, %v5297_v61  ;;  %v5298_v22 = vmax.f32 %v10565_v20, %v5170_v58  ;;  %v10578_v61 = vld [vmem:[#allocation102_spill] sm:$0xff]  ;;  %v10579_v58 = vld [vmem:[#allocation103_spill] sm:$0xff] }
 0x272   : > { %v5562_v23 = vmax.f32 %v5434_v17, 0.0  ;;  %v5435_v25 = vadd.f32 %v9155_v45, %v5300_v49  ;;  %v10580_v17 = vmax.f32 %v10578_v61, %v10579_v58  ;;  %v10581_v49 = vld [vmem:[#allocation104_spill] sm:$0xff] }
 0x273   : > { %v7354_v56 = vpop.f32.mrb[196].mxu0  ;;  %v5560_v57 = vmax.f32 %v5432_v29, 0.0  ;;  %v5433_v26 = vadd.f32 %v9155_v45, %v5298_v22  ;;  %v7486_v30 = vpop.f32.mrb[196].mxu1  ;;  %v10568_v45 = vmax.f32 %v10566_v34, %v10567_v11  ;;  %v10582_v29 = vld [vmem:[#allocation105_spill] sm:$0xff] }
 0x274   : > { %v3680_v59 = vpop.f32.mrb[197].mxu0  ;;  %5691 = vst.msk [vmem:[%s9175_s29 + $0x210] sm:$0xff] %vm5624_vm3, %v5562_v23  ;;  %v5563_v5 = vmax.f32 %v5435_v25, 0.0  ;;  %v5175_v8 = vmax.f32 %v7354_v56, %v7486_v30  ;;  %v4866_v9 = vpop.f32.mrb[197].mxu1  ;;  %v10583_v1 = vmax.f32 %v10581_v49, %v10582_v29  ;;  %v10584_v23 = vld [vmem:[#allocation106_spill] sm:$0xff]  ;;  %v10585_v25 = vld [vmem:[#allocation107_spill] sm:$0xff] }
 0x275   : > { %v7355_v52 = vpop.f32.mrb[198].mxu0  ;;  %5689 = vst.msk [vmem:[%s9175_s29 + $0x200] sm:$0xff] %vm5624_vm3, %v5560_v57  ;;  %v5561_v54 = vmax.f32 %v5433_v26, 0.0  ;;  %v5173_v55 = vmax.f32 %v3680_v59, %v4866_v9  ;;  %v7487_v6 = vpop.f32.mrb[198].mxu1  ;;  %v10586_v56 = vmax.f32 %v10584_v23, %v10585_v25  ;;  %v10587_v30 = vld [vmem:[#allocation108_spill] sm:$0xff]  ;;  %v10588_v59 = vld [vmem:[#allocation109_spill] sm:$0xff] }
 0x276   : > { %v3683_v31 = vpop.f32.mrb[199].mxu0  ;;  %5692 = vst.msk [vmem:[%s9175_s29 + $0x218] sm:$0xff] %vm5624_vm3, %v5563_v5  ;;  %v5303_v60 = vmax.f32 %v10568_v45, %v5175_v8  ;;  %v5176_v62 = vmax.f32 %v7355_v52, %v7487_v6  ;;  %v4869_v7 = vpop.f32.mrb[199].mxu1  ;;  %v10589_v5 = vmax.f32 %v10587_v30, %v10588_v59 }
 0x277   : > { %5690 = vst.msk [vmem:[%s9175_s29 + $0x208] sm:$0xff] %vm5624_vm3, %v5561_v54  ;;  %v5301_v10 = vmax.f32 %v10571_v14, %v5173_v55  ;;  %v5174_v32 = vmax.f32 %v3683_v31, %v4869_v7 }
 0x278   : > { %v5438_v19 = vadd.f32 %v9613_v44, %v5303_v60  ;;  %v5304_v18 = vmax.f32 %v10574_v15, %v5176_v62 }
 0x279   : > { %v5436_v40 = vadd.f32 %v9613_v44, %v5301_v10  ;;  %v5302_v39 = vmax.f32 %v10577_v21, %v5174_v32  ;;  %v10590_v10 = vld [vmem:[#allocation110_spill] sm:$0xff]  ;;  %v10591_v32 = vld [vmem:[#allocation111_spill] sm:$0xff] }
 0x27a   : > { %v5566_v35 = vmax.f32 %v5438_v19, 0.0  ;;  %v5439_v0 = vadd.f32 %v9613_v44, %v5304_v18  ;;  %v10592_v19 = vmax.f32 %v10590_v10, %v10591_v32  ;;  %v10593_v18 = vld [vmem:[#allocation112_spill] sm:$0xff] }
 0x27b   : > { %v7358_v36 = vpop.f32.mrb[200].mxu0  ;;  %v5564_v37 = vmax.f32 %v5436_v40, 0.0  ;;  %v5437_v4 = vadd.f32 %v9613_v44, %v5302_v39  ;;  %v7490_v27 = vpop.f32.mrb[200].mxu1  ;;  %v10594_v40 = vld [vmem:[#allocation113_spill] sm:$0xff] }
 0x27c   : > { %v3696_v38 = vpop.f32.mrb[201].mxu0  ;;  %5695 = vst.msk [vmem:[%s9175_s29 + $0x230] sm:$0xff] %vm5624_vm3, %v5566_v35  ;;  %v5567_v41 = vmax.f32 %v5439_v0, 0.0  ;;  %v5179_v43 = vmax.f32 %v7358_v36, %v7490_v27  ;;  %v4882_v13 = vpop.f32.mrb[201].mxu1  ;;  %v10595_v63 = vmax.f32 %v10593_v18, %v10594_v40  ;;  %v10596_v35 = vld [vmem:[#allocation114_spill] sm:$0xff]  ;;  %v10597_v0 = vld [vmem:[#allocation115_spill] sm:$0xff] }
 0x27d   : > { %v7359_v16 = vpop.f32.mrb[202].mxu0  ;;  %5693 = vst.msk [vmem:[%s9175_s29 + $0x220] sm:$0xff] %vm5624_vm3, %v5564_v37  ;;  %v5565_v51 = vmax.f32 %v5437_v4, 0.0  ;;  %v5177_v48 = vmax.f32 %v3696_v38, %v4882_v13  ;;  %v7491_v42 = vpop.f32.mrb[202].mxu1  ;;  %v10598_v36 = vmax.f32 %v10596_v35, %v10597_v0  ;;  %v10599_v27 = vld [vmem:[#allocation116_spill] sm:$0xff]  ;;  %v10600_v38 = vld [vmem:[#allocation117_spill] sm:$0xff] }
 0x27e   : > { %v3699_v46 = vpop.f32.mrb[203].mxu0  ;;  %5696 = vst.msk [vmem:[%s9175_s29 + $0x238] sm:$0xff] %vm5624_vm3, %v5567_v41  ;;  %v5307_v47 = vmax.f32 %v10580_v17, %v5179_v43  ;;  %v5180_v50 = vmax.f32 %v7359_v16, %v7491_v42  ;;  %v4885_v3 = vpop.f32.mrb[203].mxu1  ;;  %v10601_v41 = vmax.f32 %v10599_v27, %v10600_v38 }
 0x27f   : > { %5694 = vst.msk [vmem:[%s9175_s29 + $0x228] sm:$0xff] %vm5624_vm3, %v5565_v51  ;;  %v5305_v53 = vmax.f32 %v10583_v1, %v5177_v48  ;;  %v5178_v20 = vmax.f32 %v3699_v46, %v4885_v3 }
 0x280   : > { %v5442_v22 = vadd.f32 %v9613_v44, %v5307_v47  ;;  %v5308_v57 = vmax.f32 %v10586_v56, %v5180_v50 }
 0x281   : > { %v5440_v26 = vadd.f32 %v9613_v44, %v5305_v53  ;;  %v5306_v8 = vmax.f32 %v10589_v5, %v5178_v20  ;;  %v10602_v53 = vld [vmem:[#allocation118_spill] sm:$0xff]  ;;  %v10603_v20 = vld [vmem:[#allocation119_spill] sm:$0xff] }
 0x282   : > { %v5570_v9 = vmax.f32 %v5442_v22, 0.0  ;;  %v5443_v52 = vadd.f32 %v9613_v44, %v5308_v57  ;;  %v10604_v22 = vmax.f32 %v10602_v53, %v10603_v20  ;;  %v10605_v57 = vld [vmem:[#allocation120_spill] sm:$0xff] }
 0x283   : > { %v7362_v54 = vpop.f32.mrb[204].mxu0  ;;  %v5568_v55 = vmax.f32 %v5440_v26, 0.0  ;;  %v5441_v6 = vadd.f32 %v9613_v44, %v5306_v8  ;;  %v7494_v31 = vpop.f32.mrb[204].mxu1  ;;  %v10606_v26 = vld [vmem:[#allocation121_spill] sm:$0xff] }
 0x284   : > { %v3712_v34 = vpop.f32.mrb[205].mxu0  ;;  %5699 = vst.msk [vmem:[%s9175_s29 + $0x250] sm:$0xff] %vm5624_vm3, %v5570_v9  ;;  %v5571_v11 = vmax.f32 %v5443_v52, 0.0  ;;  %v5183_v45 = vmax.f32 %v7362_v54, %v7494_v31  ;;  %v4898_v60 = vpop.f32.mrb[205].mxu1  ;;  %v10607_v30 = vmax.f32 %v10605_v57, %v10606_v26  ;;  %v10608_v9 = vld [vmem:[#allocation122_spill] sm:$0xff]  ;;  %v10609_v52 = vld [vmem:[#allocation123_spill] sm:$0xff] }
 0x285   : > { %v7363_v62 = vpop.f32.mrb[206].mxu0  ;;  %5697 = vst.msk [vmem:[%s9175_s29 + $0x240] sm:$0xff] %vm5624_vm3, %v5568_v55  ;;  %v5569_v7 = vmax.f32 %v5441_v6, 0.0  ;;  %v5181_v28 = vmax.f32 %v3712_v34, %v4898_v60  ;;  %v7495_v12 = vpop.f32.mrb[206].mxu1  ;;  %v10610_v54 = vmax.f32 %v10608_v9, %v10609_v52  ;;  %v10611_v31 = vld [vmem:[#allocation124_spill] sm:$0xff]  ;;  %v10612_v34 = vld [vmem:[#allocation125_spill] sm:$0xff] }
 0x286   : > { %v3715_v14 = vpop.f32.mrb[207].mxu0  ;;  %5700 = vst.msk [vmem:[%s9175_s29 + $0x258] sm:$0xff] %vm5624_vm3, %v5571_v11  ;;  %v5311_v24 = vmax.f32 %v10592_v19, %v5183_v45  ;;  %v5184_v33 = vmax.f32 %v7363_v62, %v7495_v12  ;;  %v4901_v15 = vpop.f32.mrb[207].mxu1  ;;  %v10613_v11 = vmax.f32 %v10611_v31, %v10612_v34 }
 0x287   : > { %5698 = vst.msk [vmem:[%s9175_s29 + $0x248] sm:$0xff] %vm5624_vm3, %v5569_v7  ;;  %v5309_v2 = vmax.f32 %v10595_v63, %v5181_v28  ;;  %v5182_v21 = vmax.f32 %v3715_v14, %v4901_v15 }
 0x288   : > { %v5446_v39 = vadd.f32 %v9613_v44, %v5311_v24  ;;  %v5312_v37 = vmax.f32 %v10598_v36, %v5184_v33 }
 0x289   : > { %v5444_v4 = vadd.f32 %v9613_v44, %v5309_v2  ;;  %v5310_v43 = vmax.f32 %v10601_v41, %v5182_v21  ;;  %v10614_v2 = vld [vmem:[#allocation126_spill] sm:$0xff]  ;;  %v10615_v21 = vld [vmem:[#allocation127_spill] sm:$0xff] }
 0x28a   : > { %v5574_v13 = vmax.f32 %v5446_v39, 0.0  ;;  %v5447_v16 = vadd.f32 %v9613_v44, %v5312_v37  ;;  %v10616_v39 = vmax.f32 %v10614_v2, %v10615_v21  ;;  %v10617_v37 = vld [vmem:[#allocation128_spill] sm:$0xff] }
 0x28b   : > { %v7366_v51 = vpop.f32.mrb[208].mxu0  ;;  %v5572_v48 = vmax.f32 %v5444_v4, 0.0  ;;  %v5445_v42 = vadd.f32 %v9613_v44, %v5310_v43  ;;  %v7498_v46 = vpop.f32.mrb[208].mxu1  ;;  %v10618_v4 = vld [vmem:[#allocation129_spill] sm:$0xff] }
 0x28c   : > { %v3728_v61 = vpop.f32.mrb[209].mxu0  ;;  %5703 = vst.msk [vmem:[%s9175_s29 + $0x270] sm:$0xff] %vm5624_vm3, %v5574_v13  ;;  %v5575_v58 = vmax.f32 %v5447_v16, 0.0  ;;  %v5187_v17 = vmax.f32 %v7366_v51, %v7498_v46  ;;  %v4914_v47 = vpop.f32.mrb[209].mxu1  ;;  %v10619_v27 = vmax.f32 %v10617_v37, %v10618_v4  ;;  %v10620_v13 = vld [vmem:[#allocation130_spill] sm:$0xff]  ;;  %v10621_v16 = vld [vmem:[#allocation131_spill] sm:$0xff] }
 0x28d   : > { %v7367_v50 = vpop.f32.mrb[210].mxu0  ;;  %5701 = vst.msk [vmem:[%s9175_s29 + $0x260] sm:$0xff] %vm5624_vm3, %v5572_v48  ;;  %v5573_v3 = vmax.f32 %v5445_v42, 0.0  ;;  %v5185_v49 = vmax.f32 %v3728_v61, %v4914_v47  ;;  %v7499_v29 = vpop.f32.mrb[210].mxu1  ;;  %v10622_v51 = vmax.f32 %v10620_v13, %v10621_v16  ;;  %v10623_v46 = vld [vmem:[#allocation132_spill] sm:$0xff]  ;;  %v10624_v61 = vld [vmem:[#allocation133_spill] sm:$0xff] }
 0x28e   : > { %v3731_v1 = vpop.f32.mrb[211].mxu0  ;;  %5704 = vst.msk [vmem:[%s9175_s29 + $0x278] sm:$0xff] %vm5624_vm3, %v5575_v58  ;;  %v5315_v23 = vmax.f32 %v10604_v22, %v5187_v17  ;;  %v5188_v25 = vmax.f32 %v7367_v50, %v7499_v29  ;;  %v4917_v56 = vpop.f32.mrb[211].mxu1  ;;  %v10625_v58 = vmax.f32 %v10623_v46, %v10624_v61 }
 0x28f   : > { %5702 = vst.msk [vmem:[%s9175_s29 + $0x268] sm:$0xff] %vm5624_vm3, %v5573_v3  ;;  %v5313_v59 = vmax.f32 %v10607_v30, %v5185_v49  ;;  %v5186_v5 = vmax.f32 %v3731_v1, %v4917_v56 }
 0x290   : > { %v5450_v8 = vadd.f32 %v9613_v44, %v5315_v23  ;;  %v5316_v55 = vmax.f32 %v10610_v54, %v5188_v25 }
 0x291   : > { %v5448_v6 = vadd.f32 %v9613_v44, %v5313_v59  ;;  %v5314_v45 = vmax.f32 %v10613_v11, %v5186_v5  ;;  %v10626_v59 = vld [vmem:[#allocation134_spill] sm:$0xff]  ;;  %v10627_v5 = vld [vmem:[#allocation135_spill] sm:$0xff] }
 0x292   : > { %v5578_v60 = vmax.f32 %v5450_v8, 0.0  ;;  %v5451_v62 = vadd.f32 %v9613_v44, %v5316_v55  ;;  %v10628_v8 = vmax.f32 %v10626_v59, %v10627_v5  ;;  %v10629_v55 = vld [vmem:[#allocation136_spill] sm:$0xff] }
 0x293   : > { %v7370_v7 = vpop.f32.mrb[212].mxu0  ;;  %v5576_v28 = vmax.f32 %v5448_v6, 0.0  ;;  %v5449_v12 = vadd.f32 %v9613_v44, %v5314_v45  ;;  %v7502_v14 = vpop.f32.mrb[212].mxu1  ;;  %v10630_v6 = vld [vmem:[#allocation137_spill] sm:$0xff] }
 0x294   : > { %v3744_v10 = vpop.f32.mrb[213].mxu0  ;;  %5707 = vst.msk [vmem:[%s9175_s29 + $0x290] sm:$0xff] %vm5624_vm3, %v5578_v60  ;;  %v5579_v32 = vmax.f32 %v5451_v62, 0.0  ;;  %v5191_v19 = vmax.f32 %v7370_v7, %v7502_v14  ;;  %v4930_v24 = vpop.f32.mrb[213].mxu1  ;;  %v10631_v31 = vmax.f32 %v10629_v55, %v10630_v6  ;;  %v10632_v60 = vld [vmem:[#allocation138_spill] sm:$0xff]  ;;  %v10633_v62 = vld [vmem:[#allocation139_spill] sm:$0xff] }
 0x295   : > { %v7371_v33 = vpop.f32.mrb[214].mxu0  ;;  %5705 = vst.msk [vmem:[%s9175_s29 + $0x280] sm:$0xff] %vm5624_vm3, %v5576_v28  ;;  %v5577_v15 = vmax.f32 %v5449_v12, 0.0  ;;  %v5189_v18 = vmax.f32 %v3744_v10, %v4930_v24  ;;  %v7503_v40 = vpop.f32.mrb[214].mxu1  ;;  %v10634_v7 = vmax.f32 %v10632_v60, %v10633_v62  ;;  %v10635_v14 = vld [vmem:[#allocation140_spill] sm:$0xff]  ;;  %v10636_v10 = vld [vmem:[#allocation141_spill] sm:$0xff] }
 0x296   : > { %v3747_v63 = vpop.f32.mrb[215].mxu0  ;;  %5708 = vst.msk [vmem:[%s9175_s29 + $0x298] sm:$0xff] %vm5624_vm3, %v5579_v32  ;;  %v5319_v35 = vmax.f32 %v10616_v39, %v5191_v19  ;;  %v5192_v0 = vmax.f32 %v7371_v33, %v7503_v40  ;;  %v4933_v36 = vpop.f32.mrb[215].mxu1  ;;  %v10637_v32 = vmax.f32 %v10635_v14, %v10636_v10 }
 0x297   : > { %5706 = vst.msk [vmem:[%s9175_s29 + $0x288] sm:$0xff] %vm5624_vm3, %v5577_v15  ;;  %v5317_v38 = vmax.f32 %v10619_v27, %v5189_v18  ;;  %v5190_v41 = vmax.f32 %v3747_v63, %v4933_v36 }
 0x298   : > { %v5454_v43 = vadd.f32 %v9613_v44, %v5319_v35  ;;  %v5320_v48 = vmax.f32 %v10622_v51, %v5192_v0 }
 0x299   : > { %v5452_v42 = vadd.f32 %v9613_v44, %v5317_v38  ;;  %v5318_v17 = vmax.f32 %v10625_v58, %v5190_v41  ;;  %v10638_v38 = vld [vmem:[#allocation142_spill] sm:$0xff]  ;;  %v10639_v41 = vld [vmem:[#allocation143_spill] sm:$0xff] }
 0x29a   : > { %v5582_v47 = vmax.f32 %v5454_v43, 0.0  ;;  %v5455_v50 = vadd.f32 %v9613_v44, %v5320_v48  ;;  %v10640_v43 = vmax.f32 %v10638_v38, %v10639_v41  ;;  %v10641_v48 = vld [vmem:[#allocation144_spill] sm:$0xff] }
 0x29b   : > { %v7374_v3 = vpop.f32.mrb[216].mxu0  ;;  %v5580_v49 = vmax.f32 %v5452_v42, 0.0  ;;  %v5453_v29 = vadd.f32 %v9613_v44, %v5318_v17  ;;  %v7506_v1 = vpop.f32.mrb[216].mxu1  ;;  %v10642_v42 = vld [vmem:[#allocation145_spill] sm:$0xff] }
 0x29c   : > { %v3760_v53 = vpop.f32.mrb[217].mxu0  ;;  %5711 = vst.msk [vmem:[%s9175_s29 + $0x2b0] sm:$0xff] %vm5624_vm3, %v5582_v47  ;;  %v5583_v20 = vmax.f32 %v5455_v50, 0.0  ;;  %v5195_v22 = vmax.f32 %v7374_v3, %v7506_v1  ;;  %v4946_v23 = vpop.f32.mrb[217].mxu1  ;;  %v10643_v46 = vmax.f32 %v10641_v48, %v10642_v42  ;;  %v10644_v47 = vld [vmem:[#allocation146_spill] sm:$0xff]  ;;  %v10645_v50 = vld [vmem:[#allocation147_spill] sm:$0xff] }
 0x29d   : > { %v7375_v25 = vpop.f32.mrb[218].mxu0  ;;  %5709 = vst.msk [vmem:[%s9175_s29 + $0x2a0] sm:$0xff] %vm5624_vm3, %v5580_v49  ;;  %v5581_v56 = vmax.f32 %v5453_v29, 0.0  ;;  %v5193_v57 = vmax.f32 %v3760_v53, %v4946_v23  ;;  %v7507_v26 = vpop.f32.mrb[218].mxu1  ;;  %v10646_v3 = vmax.f32 %v10644_v47, %v10645_v50  ;;  %v10647_v1 = vld [vmem:[#allocation148_spill] sm:$0xff]  ;;  %v10648_v53 = vld [vmem:[#allocation149_spill] sm:$0xff] }
 0x29e   : > { %v3763_v30 = vpop.f32.mrb[219].mxu0  ;;  %5712 = vst.msk [vmem:[%s9175_s29 + $0x2b8] sm:$0xff] %vm5624_vm3, %v5583_v20  ;;  %v5323_v9 = vmax.f32 %v10628_v8, %v5195_v22  ;;  %v5196_v52 = vmax.f32 %v7375_v25, %v7507_v26  ;;  %v4949_v54 = vpop.f32.mrb[219].mxu1  ;;  %v10649_v20 = vmax.f32 %v10647_v1, %v10648_v53 }
 0x29f   : > { %5710 = vst.msk [vmem:[%s9175_s29 + $0x2a8] sm:$0xff] %vm5624_vm3, %v5581_v56  ;;  %v5321_v34 = vmax.f32 %v10631_v31, %v5193_v57  ;;  %v5194_v11 = vmax.f32 %v3763_v30, %v4949_v54 }
 0x2a0   : > { %v5458_v45 = vadd.f32 %v9613_v44, %v5323_v9  ;;  %v5324_v28 = vmax.f32 %v10634_v7, %v5196_v52 }
 0x2a1   : > { %v5456_v12 = vadd.f32 %v9613_v44, %v5321_v34  ;;  %v5322_v19 = vmax.f32 %v10637_v32, %v5194_v11  ;;  %v10650_v34 = vld [vmem:[#allocation150_spill] sm:$0xff]  ;;  %v10651_v11 = vld [vmem:[#allocation151_spill] sm:$0xff] }
 0x2a2   : > { %v5586_v24 = vmax.f32 %v5458_v45, 0.0  ;;  %v5459_v33 = vadd.f32 %v9613_v44, %v5324_v28  ;;  %v10652_v45 = vmax.f32 %v10650_v34, %v10651_v11  ;;  %v10653_v28 = vld [vmem:[#allocation152_spill] sm:$0xff] }
 0x2a3   : > { %v7378_v15 = vpop.f32.mrb[220].mxu0  ;;  %v5584_v18 = vmax.f32 %v5456_v12, 0.0  ;;  %v5457_v40 = vadd.f32 %v9613_v44, %v5322_v19  ;;  %v7510_v63 = vpop.f32.mrb[220].mxu1  ;;  %v10654_v12 = vld [vmem:[#allocation153_spill] sm:$0xff] }
 0x2a4   : > { %v3776_v2 = vpop.f32.mrb[221].mxu0  ;;  %5715 = vst.msk [vmem:[%s9175_s29 + $0x2d0] sm:$0xff] %vm5624_vm3, %v5586_v24  ;;  %v5587_v21 = vmax.f32 %v5459_v33, 0.0  ;;  %v5199_v39 = vmax.f32 %v7378_v15, %v7510_v63  ;;  %v4962_v35 = vpop.f32.mrb[221].mxu1  ;;  %v10655_v14 = vmax.f32 %v10653_v28, %v10654_v12  ;;  %v10656_v24 = vld [vmem:[#allocation154_spill] sm:$0xff]  ;;  %v10657_v33 = vld [vmem:[#allocation155_spill] sm:$0xff] }
 0x2a5   : > { %v7379_v0 = vpop.f32.mrb[222].mxu0  ;;  %5713 = vst.msk [vmem:[%s9175_s29 + $0x2c0] sm:$0xff] %vm5624_vm3, %v5584_v18  ;;  %v5585_v36 = vmax.f32 %v5457_v40, 0.0  ;;  %v5197_v37 = vmax.f32 %v3776_v2, %v4962_v35  ;;  %v7511_v4 = vpop.f32.mrb[222].mxu1  ;;  %v10658_v15 = vmax.f32 %v10656_v24, %v10657_v33  ;;  %v10659_v63 = vld [vmem:[#allocation156_spill] sm:$0xff]  ;;  %v10660_v2 = vld [vmem:[#allocation157_spill] sm:$0xff] }
 0x2a6   : > { %v3779_v27 = vpop.f32.mrb[223].mxu0  ;;  %5716 = vst.msk [vmem:[%s9175_s29 + $0x2d8] sm:$0xff] %vm5624_vm3, %v5587_v21  ;;  %v5327_v13 = vmax.f32 %v10640_v43, %v5199_v39  ;;  %v5200_v16 = vmax.f32 %v7379_v0, %v7511_v4  ;;  %v4965_v51 = vpop.f32.mrb[223].mxu1  ;;  %v10661_v21 = vmax.f32 %v10659_v63, %v10660_v2 }
 0x2a7   : > { %5714 = vst.msk [vmem:[%s9175_s29 + $0x2c8] sm:$0xff] %vm5624_vm3, %v5585_v36  ;;  %v5325_v61 = vmax.f32 %v10643_v46, %v5197_v37  ;;  %v5198_v58 = vmax.f32 %v3779_v27, %v4965_v51 }
 0x2a8   : > { %v5462_v17 = vadd.f32 %v9613_v44, %v5327_v13  ;;  %v5328_v49 = vmax.f32 %v10646_v3, %v5200_v16 }
 0x2a9   : > { %v5460_v29 = vadd.f32 %v9613_v44, %v5325_v61  ;;  %v5326_v22 = vmax.f32 %v10649_v20, %v5198_v58  ;;  %v10662_v61 = vld [vmem:[#allocation158_spill] sm:$0xff]  ;;  %v10663_v58 = vld [vmem:[#allocation159_spill] sm:$0xff] }
 0x2aa   : > { %v5590_v23 = vmax.f32 %v5462_v17, 0.0  ;;  %v5463_v25 = vadd.f32 %v9613_v44, %v5328_v49  ;;  %v10664_v17 = vmax.f32 %v10662_v61, %v10663_v58  ;;  %v10665_v49 = vld [vmem:[#allocation160_spill] sm:$0xff] }
 0x2ab   : > { %v7382_v56 = vpop.f32.mrb[224].mxu0  ;;  %v5588_v57 = vmax.f32 %v5460_v29, 0.0  ;;  %v5461_v26 = vadd.f32 %v9613_v44, %v5326_v22  ;;  %v7514_v30 = vpop.f32.mrb[224].mxu1  ;;  %v10666_v29 = vld [vmem:[#allocation161_spill] sm:$0xff] }
 0x2ac   : > { %v3792_v59 = vpop.f32.mrb[225].mxu0  ;;  %5719 = vst.msk [vmem:[%s9175_s29 + $0x2f0] sm:$0xff] %vm5624_vm3, %v5590_v23  ;;  %v5591_v5 = vmax.f32 %v5463_v25, 0.0  ;;  %v5203_v8 = vmax.f32 %v7382_v56, %v7514_v30  ;;  %v4978_v9 = vpop.f32.mrb[225].mxu1  ;;  %v10667_v1 = vmax.f32 %v10665_v49, %v10666_v29  ;;  %v10668_v23 = vld [vmem:[#allocation162_spill] sm:$0xff]  ;;  %v10669_v25 = vld [vmem:[#allocation163_spill] sm:$0xff] }
 0x2ad   : > { %v7383_v52 = vpop.f32.mrb[226].mxu0  ;;  %5717 = vst.msk [vmem:[%s9175_s29 + $0x2e0] sm:$0xff] %vm5624_vm3, %v5588_v57  ;;  %v5589_v54 = vmax.f32 %v5461_v26, 0.0  ;;  %v5201_v55 = vmax.f32 %v3792_v59, %v4978_v9  ;;  %v7515_v6 = vpop.f32.mrb[226].mxu1  ;;  %v10670_v56 = vmax.f32 %v10668_v23, %v10669_v25  ;;  %v10671_v30 = vld [vmem:[#allocation164_spill] sm:$0xff]  ;;  %v10672_v59 = vld [vmem:[#allocation165_spill] sm:$0xff] }
 0x2ae   : > { %v3795_v31 = vpop.f32.mrb[227].mxu0  ;;  %5720 = vst.msk [vmem:[%s9175_s29 + $0x2f8] sm:$0xff] %vm5624_vm3, %v5591_v5  ;;  %v5331_v60 = vmax.f32 %v10652_v45, %v5203_v8  ;;  %v5204_v62 = vmax.f32 %v7383_v52, %v7515_v6  ;;  %v4981_v7 = vpop.f32.mrb[227].mxu1  ;;  %v10673_v5 = vmax.f32 %v10671_v30, %v10672_v59 }
 0x2af   : > { %5718 = vst.msk [vmem:[%s9175_s29 + $0x2e8] sm:$0xff] %vm5624_vm3, %v5589_v54  ;;  %v5329_v10 = vmax.f32 %v10655_v14, %v5201_v55  ;;  %v5202_v32 = vmax.f32 %v3795_v31, %v4981_v7 }
 0x2b0   : > { %v5466_v19 = vadd.f32 %v9613_v44, %v5331_v60  ;;  %v5332_v18 = vmax.f32 %v10658_v15, %v5204_v62 }
 0x2b1   : > { %v5464_v40 = vadd.f32 %v9613_v44, %v5329_v10  ;;  %v5330_v39 = vmax.f32 %v10661_v21, %v5202_v32  ;;  %v10674_v10 = vld [vmem:[#allocation166_spill] sm:$0xff]  ;;  %v10675_v32 = vld [vmem:[#allocation167_spill] sm:$0xff] }
 0x2b2   : > { %v5594_v35 = vmax.f32 %v5466_v19, 0.0  ;;  %v5467_v0 = vadd.f32 %v9613_v44, %v5332_v18  ;;  %v10676_v19 = vmax.f32 %v10674_v10, %v10675_v32  ;;  %v10677_v18 = vld [vmem:[#allocation168_spill] sm:$0xff] }
 0x2b3   : > { %v7386_v36 = vpop.f32.mrb[228].mxu0  ;;  %v5592_v37 = vmax.f32 %v5464_v40, 0.0  ;;  %v5465_v4 = vadd.f32 %v9613_v44, %v5330_v39  ;;  %v7518_v27 = vpop.f32.mrb[228].mxu1  ;;  %v10678_v40 = vld [vmem:[#allocation169_spill] sm:$0xff] }
 0x2b4   : > { %v3808_v38 = vpop.f32.mrb[229].mxu0  ;;  %5723 = vst.msk [vmem:[%s9175_s29 + $0x310] sm:$0xff] %vm5624_vm3, %v5594_v35  ;;  %v5595_v41 = vmax.f32 %v5467_v0, 0.0  ;;  %v5207_v43 = vmax.f32 %v7386_v36, %v7518_v27  ;;  %v4994_v13 = vpop.f32.mrb[229].mxu1  ;;  %v10679_v63 = vmax.f32 %v10677_v18, %v10678_v40  ;;  %v10680_v35 = vld [vmem:[#allocation170_spill] sm:$0xff]  ;;  %v10681_v0 = vld [vmem:[#allocation171_spill] sm:$0xff] }
 0x2b5   : > { %v7387_v16 = vpop.f32.mrb[230].mxu0  ;;  %5721 = vst.msk [vmem:[%s9175_s29 + $0x300] sm:$0xff] %vm5624_vm3, %v5592_v37  ;;  %v5593_v51 = vmax.f32 %v5465_v4, 0.0  ;;  %v5205_v48 = vmax.f32 %v3808_v38, %v4994_v13  ;;  %v7519_v42 = vpop.f32.mrb[230].mxu1  ;;  %v10682_v36 = vmax.f32 %v10680_v35, %v10681_v0  ;;  %v10683_v27 = vld [vmem:[#allocation172_spill] sm:$0xff]  ;;  %v10684_v38 = vld [vmem:[#allocation173_spill] sm:$0xff] }
 0x2b6   : > { %v3811_v46 = vpop.f32.mrb[231].mxu0  ;;  %5724 = vst.msk [vmem:[%s9175_s29 + $0x318] sm:$0xff] %vm5624_vm3, %v5595_v41  ;;  %v5335_v47 = vmax.f32 %v10664_v17, %v5207_v43  ;;  %v5208_v50 = vmax.f32 %v7387_v16, %v7519_v42  ;;  %v4997_v3 = vpop.f32.mrb[231].mxu1  ;;  %v10685_v41 = vmax.f32 %v10683_v27, %v10684_v38 }
 0x2b7   : > { %5722 = vst.msk [vmem:[%s9175_s29 + $0x308] sm:$0xff] %vm5624_vm3, %v5593_v51  ;;  %v5333_v53 = vmax.f32 %v10667_v1, %v5205_v48  ;;  %v5206_v20 = vmax.f32 %v3811_v46, %v4997_v3 }
 0x2b8   : > { %v5470_v22 = vadd.f32 %v9613_v44, %v5335_v47  ;;  %v5336_v57 = vmax.f32 %v10670_v56, %v5208_v50 }
 0x2b9   : > { %v5468_v26 = vadd.f32 %v9613_v44, %v5333_v53  ;;  %v5334_v8 = vmax.f32 %v10673_v5, %v5206_v20  ;;  %v10686_v53 = vld [vmem:[#allocation174_spill] sm:$0xff]  ;;  %v10687_v20 = vld [vmem:[#allocation175_spill] sm:$0xff] }
 0x2ba   : > { %v5598_v9 = vmax.f32 %v5470_v22, 0.0  ;;  %v5471_v52 = vadd.f32 %v9613_v44, %v5336_v57  ;;  %v10688_v22 = vmax.f32 %v10686_v53, %v10687_v20  ;;  %v10689_v57 = vld [vmem:[#allocation176_spill] sm:$0xff] }
 0x2bb   : > { %v7390_v54 = vpop.f32.mrb[232].mxu0  ;;  %v5596_v55 = vmax.f32 %v5468_v26, 0.0  ;;  %v5469_v6 = vadd.f32 %v9613_v44, %v5334_v8  ;;  %v7522_v31 = vpop.f32.mrb[232].mxu1  ;;  %v10690_v26 = vld [vmem:[#allocation177_spill] sm:$0xff] }
 0x2bc   : > { %v3824_v34 = vpop.f32.mrb[233].mxu0  ;;  %5727 = vst.msk [vmem:[%s9175_s29 + $0x330] sm:$0xff] %vm5624_vm3, %v5598_v9  ;;  %v5599_v11 = vmax.f32 %v5471_v52, 0.0  ;;  %v5211_v45 = vmax.f32 %v7390_v54, %v7522_v31  ;;  %v5010_v60 = vpop.f32.mrb[233].mxu1  ;;  %v10691_v30 = vmax.f32 %v10689_v57, %v10690_v26  ;;  %v10692_v9 = vld [vmem:[#allocation178_spill] sm:$0xff]  ;;  %v10693_v52 = vld [vmem:[#allocation179_spill] sm:$0xff] }
 0x2bd   : > { %v7391_v62 = vpop.f32.mrb[234].mxu0  ;;  %5725 = vst.msk [vmem:[%s9175_s29 + $0x320] sm:$0xff] %vm5624_vm3, %v5596_v55  ;;  %v5597_v7 = vmax.f32 %v5469_v6, 0.0  ;;  %v5209_v28 = vmax.f32 %v3824_v34, %v5010_v60  ;;  %v7523_v12 = vpop.f32.mrb[234].mxu1  ;;  %v10694_v54 = vmax.f32 %v10692_v9, %v10693_v52  ;;  %v10695_v31 = vld [vmem:[#allocation180_spill] sm:$0xff]  ;;  %v10696_v34 = vld [vmem:[#allocation181_spill] sm:$0xff] }
 0x2be   : > { %v3827_v14 = vpop.f32.mrb[235].mxu0  ;;  %5728 = vst.msk [vmem:[%s9175_s29 + $0x338] sm:$0xff] %vm5624_vm3, %v5599_v11  ;;  %v5339_v24 = vmax.f32 %v10676_v19, %v5211_v45  ;;  %v5212_v33 = vmax.f32 %v7391_v62, %v7523_v12  ;;  %v5013_v15 = vpop.f32.mrb[235].mxu1  ;;  %v10697_v11 = vmax.f32 %v10695_v31, %v10696_v34 }
 0x2bf   : > { %5726 = vst.msk [vmem:[%s9175_s29 + $0x328] sm:$0xff] %vm5624_vm3, %v5597_v7  ;;  %v5337_v2 = vmax.f32 %v10679_v63, %v5209_v28  ;;  %v5210_v21 = vmax.f32 %v3827_v14, %v5013_v15 }
 0x2c0   : > { %v5474_v39 = vadd.f32 %v9613_v44, %v5339_v24  ;;  %v5340_v37 = vmax.f32 %v10682_v36, %v5212_v33 }
 0x2c1   : > { %v5472_v4 = vadd.f32 %v9613_v44, %v5337_v2  ;;  %v5338_v43 = vmax.f32 %v10685_v41, %v5210_v21  ;;  %v10698_v2 = vld [vmem:[#allocation182_spill] sm:$0xff]  ;;  %v10699_v21 = vld [vmem:[#allocation183_spill] sm:$0xff] }
 0x2c2   : > { %v5602_v13 = vmax.f32 %v5474_v39, 0.0  ;;  %v5475_v16 = vadd.f32 %v9613_v44, %v5340_v37  ;;  %v10700_v39 = vmax.f32 %v10698_v2, %v10699_v21  ;;  %v10701_v37 = vld [vmem:[#allocation184_spill] sm:$0xff] }
 0x2c3   : > { %v7394_v51 = vpop.f32.mrb[236].mxu0  ;;  %v5600_v48 = vmax.f32 %v5472_v4, 0.0  ;;  %v5473_v42 = vadd.f32 %v9613_v44, %v5338_v43  ;;  %v7526_v46 = vpop.f32.mrb[236].mxu1  ;;  %v10702_v4 = vld [vmem:[#allocation185_spill] sm:$0xff] }
 0x2c4   : > { %v3840_v61 = vpop.f32.mrb[237].mxu0  ;;  %5731 = vst.msk [vmem:[%s9175_s29 + $0x350] sm:$0xff] %vm5624_vm3, %v5602_v13  ;;  %v5603_v58 = vmax.f32 %v5475_v16, 0.0  ;;  %v5215_v17 = vmax.f32 %v7394_v51, %v7526_v46  ;;  %v5026_v47 = vpop.f32.mrb[237].mxu1  ;;  %v10703_v27 = vmax.f32 %v10701_v37, %v10702_v4  ;;  %v10704_v13 = vld [vmem:[#allocation186_spill] sm:$0xff]  ;;  %v10705_v16 = vld [vmem:[#allocation187_spill] sm:$0xff] }
 0x2c5   : > { %v7395_v50 = vpop.f32.mrb[238].mxu0  ;;  %5729 = vst.msk [vmem:[%s9175_s29 + $0x340] sm:$0xff] %vm5624_vm3, %v5600_v48  ;;  %v5601_v3 = vmax.f32 %v5473_v42, 0.0  ;;  %v5213_v49 = vmax.f32 %v3840_v61, %v5026_v47  ;;  %v7527_v29 = vpop.f32.mrb[238].mxu1  ;;  %v10706_v51 = vmax.f32 %v10704_v13, %v10705_v16  ;;  %v10707_v46 = vld [vmem:[#allocation188_spill] sm:$0xff]  ;;  %v10708_v61 = vld [vmem:[#allocation189_spill] sm:$0xff] }
 0x2c6   : > { %v3843_v1 = vpop.f32.mrb[239].mxu0  ;;  %5732 = vst.msk [vmem:[%s9175_s29 + $0x358] sm:$0xff] %vm5624_vm3, %v5603_v58  ;;  %v5343_v23 = vmax.f32 %v10688_v22, %v5215_v17  ;;  %v5216_v25 = vmax.f32 %v7395_v50, %v7527_v29  ;;  %v5029_v56 = vpop.f32.mrb[239].mxu1  ;;  %v10709_v58 = vmax.f32 %v10707_v46, %v10708_v61 }
 0x2c7   : > { %5730 = vst.msk [vmem:[%s9175_s29 + $0x348] sm:$0xff] %vm5624_vm3, %v5601_v3  ;;  %v5341_v59 = vmax.f32 %v10691_v30, %v5213_v49  ;;  %v5214_v5 = vmax.f32 %v3843_v1, %v5029_v56 }
 0x2c8   : > { %v5478_v8 = vadd.f32 %v9613_v44, %v5343_v23  ;;  %v5344_v55 = vmax.f32 %v10694_v54, %v5216_v25 }
 0x2c9   : > { %v5476_v6 = vadd.f32 %v9613_v44, %v5341_v59  ;;  %v5342_v45 = vmax.f32 %v10697_v11, %v5214_v5  ;;  %v10710_v59 = vld [vmem:[#allocation190_spill] sm:$0xff]  ;;  %v10711_v5 = vld [vmem:[#allocation191_spill] sm:$0xff] }
 0x2ca   : > { %v5606_v60 = vmax.f32 %v5478_v8, 0.0  ;;  %v5479_v62 = vadd.f32 %v9613_v44, %v5344_v55  ;;  %v10712_v8 = vmax.f32 %v10710_v59, %v10711_v5  ;;  %v10713_v55 = vld [vmem:[#allocation192_spill] sm:$0xff] }
 0x2cb   : > { %v7398_v7 = vpop.f32.mrb[240].mxu0  ;;  %v5604_v28 = vmax.f32 %v5476_v6, 0.0  ;;  %v5477_v12 = vadd.f32 %v9613_v44, %v5342_v45  ;;  %v7530_v14 = vpop.f32.mrb[240].mxu1  ;;  %v10714_v6 = vld [vmem:[#allocation193_spill] sm:$0xff] }
 0x2cc   : > { %v3856_v10 = vpop.f32.mrb[241].mxu0  ;;  %5735 = vst.msk [vmem:[%s9175_s29 + $0x370] sm:$0xff] %vm5624_vm3, %v5606_v60  ;;  %v5607_v32 = vmax.f32 %v5479_v62, 0.0  ;;  %v5219_v19 = vmax.f32 %v7398_v7, %v7530_v14  ;;  %v5042_v24 = vpop.f32.mrb[241].mxu1  ;;  %v10715_v31 = vmax.f32 %v10713_v55, %v10714_v6  ;;  %v10716_v60 = vld [vmem:[#allocation194_spill] sm:$0xff]  ;;  %v10717_v62 = vld [vmem:[#allocation195_spill] sm:$0xff] }
 0x2cd   : > { %v7399_v33 = vpop.f32.mrb[242].mxu0  ;;  %5733 = vst.msk [vmem:[%s9175_s29 + $0x360] sm:$0xff] %vm5624_vm3, %v5604_v28  ;;  %v5605_v15 = vmax.f32 %v5477_v12, 0.0  ;;  %v5217_v18 = vmax.f32 %v3856_v10, %v5042_v24  ;;  %v7531_v40 = vpop.f32.mrb[242].mxu1  ;;  %v10718_v7 = vmax.f32 %v10716_v60, %v10717_v62  ;;  %v10719_v14 = vld [vmem:[#allocation196_spill] sm:$0xff]  ;;  %v10720_v10 = vld [vmem:[#allocation197_spill] sm:$0xff] }
 0x2ce   : > { %v3859_v63 = vpop.f32.mrb[243].mxu0  ;;  %5736 = vst.msk [vmem:[%s9175_s29 + $0x378] sm:$0xff] %vm5624_vm3, %v5607_v32  ;;  %v5347_v35 = vmax.f32 %v10700_v39, %v5219_v19  ;;  %v5220_v0 = vmax.f32 %v7399_v33, %v7531_v40  ;;  %v5045_v36 = vpop.f32.mrb[243].mxu1  ;;  %v10721_v32 = vmax.f32 %v10719_v14, %v10720_v10 }
 0x2cf   : > { %5734 = vst.msk [vmem:[%s9175_s29 + $0x368] sm:$0xff] %vm5624_vm3, %v5605_v15  ;;  %v5345_v38 = vmax.f32 %v10703_v27, %v5217_v18  ;;  %v5218_v41 = vmax.f32 %v3859_v63, %v5045_v36 }
 0x2d0   : > { %v5482_v43 = vadd.f32 %v9613_v44, %v5347_v35  ;;  %v5348_v48 = vmax.f32 %v10706_v51, %v5220_v0 }
 0x2d1   : > { %v5480_v42 = vadd.f32 %v9613_v44, %v5345_v38  ;;  %v5346_v17 = vmax.f32 %v10709_v58, %v5218_v41  ;;  %v10722_v38 = vld [vmem:[#allocation198_spill] sm:$0xff]  ;;  %v10723_v41 = vld [vmem:[#allocation199_spill] sm:$0xff] }
 0x2d2   : > { %v5610_v47 = vmax.f32 %v5482_v43, 0.0  ;;  %v5483_v50 = vadd.f32 %v9613_v44, %v5348_v48  ;;  %v10724_v43 = vmax.f32 %v10722_v38, %v10723_v41  ;;  %v10725_v48 = vld [vmem:[#allocation200_spill] sm:$0xff] }
 0x2d3   : > { %v7402_v3 = vpop.f32.mrb[244].mxu0  ;;  %v5608_v49 = vmax.f32 %v5480_v42, 0.0  ;;  %v5481_v29 = vadd.f32 %v9613_v44, %v5346_v17  ;;  %v7534_v1 = vpop.f32.mrb[244].mxu1  ;;  %v10726_v42 = vld [vmem:[#allocation201_spill] sm:$0xff] }
 0x2d4   : > { %v3872_v53 = vpop.f32.mrb[245].mxu0  ;;  %5739 = vst.msk [vmem:[%s9175_s29 + $0x390] sm:$0xff] %vm5624_vm3, %v5610_v47  ;;  %v5611_v20 = vmax.f32 %v5483_v50, 0.0  ;;  %v5223_v22 = vmax.f32 %v7402_v3, %v7534_v1  ;;  %v5058_v23 = vpop.f32.mrb[245].mxu1  ;;  %v10727_v46 = vmax.f32 %v10725_v48, %v10726_v42  ;;  %v10728_v47 = vld [vmem:[#allocation202_spill] sm:$0xff]  ;;  %v10729_v50 = vld [vmem:[#allocation203_spill] sm:$0xff] }
 0x2d5   : > { %v7403_v25 = vpop.f32.mrb[246].mxu0  ;;  %5737 = vst.msk [vmem:[%s9175_s29 + $0x380] sm:$0xff] %vm5624_vm3, %v5608_v49  ;;  %v5609_v56 = vmax.f32 %v5481_v29, 0.0  ;;  %v5221_v57 = vmax.f32 %v3872_v53, %v5058_v23  ;;  %v7535_v26 = vpop.f32.mrb[246].mxu1  ;;  %v10730_v3 = vmax.f32 %v10728_v47, %v10729_v50  ;;  %v10731_v1 = vld [vmem:[#allocation204_spill] sm:$0xff]  ;;  %v10732_v53 = vld [vmem:[#allocation205_spill] sm:$0xff] }
 0x2d6   : > { %v3875_v30 = vpop.f32.mrb[247].mxu0  ;;  %5740 = vst.msk [vmem:[%s9175_s29 + $0x398] sm:$0xff] %vm5624_vm3, %v5611_v20  ;;  %v5351_v9 = vmax.f32 %v10712_v8, %v5223_v22  ;;  %v5224_v52 = vmax.f32 %v7403_v25, %v7535_v26  ;;  %v5061_v54 = vpop.f32.mrb[247].mxu1  ;;  %v10733_v20 = vmax.f32 %v10731_v1, %v10732_v53 }
 0x2d7   : > { %5738 = vst.msk [vmem:[%s9175_s29 + $0x388] sm:$0xff] %vm5624_vm3, %v5609_v56  ;;  %v5349_v34 = vmax.f32 %v10715_v31, %v5221_v57  ;;  %v5222_v11 = vmax.f32 %v3875_v30, %v5061_v54 }
 0x2d8   : > { %v5486_v45 = vadd.f32 %v9613_v44, %v5351_v9  ;;  %v5352_v28 = vmax.f32 %v10718_v7, %v5224_v52 }
 0x2d9   : > { %v5484_v12 = vadd.f32 %v9613_v44, %v5349_v34  ;;  %v5350_v19 = vmax.f32 %v10721_v32, %v5222_v11  ;;  %v10734_v34 = vld [vmem:[#allocation206_spill] sm:$0xff]  ;;  %v10735_v11 = vld [vmem:[#allocation207_spill] sm:$0xff] }
 0x2da   : > { %v5614_v24 = vmax.f32 %v5486_v45, 0.0  ;;  %v5487_v33 = vadd.f32 %v9613_v44, %v5352_v28  ;;  %v10736_v45 = vmax.f32 %v10734_v34, %v10735_v11  ;;  %v10737_v28 = vld [vmem:[#allocation208_spill] sm:$0xff] }
 0x2db   : > { %v7406_v15 = vpop.f32.mrb[248].mxu0  ;;  %v5612_v18 = vmax.f32 %v5484_v12, 0.0  ;;  %v5485_v40 = vadd.f32 %v9613_v44, %v5350_v19  ;;  %v7538_v63 = vpop.f32.mrb[248].mxu1  ;;  %v10738_v12 = vld [vmem:[#allocation209_spill] sm:$0xff] }
 0x2dc   : > { %v3888_v2 = vpop.f32.mrb[249].mxu0  ;;  %5743 = vst.msk [vmem:[%s9175_s29 + $0x3b0] sm:$0xff] %vm5624_vm3, %v5614_v24  ;;  %v5615_v21 = vmax.f32 %v5487_v33, 0.0  ;;  %v5227_v39 = vmax.f32 %v7406_v15, %v7538_v63  ;;  %v5074_v35 = vpop.f32.mrb[249].mxu1  ;;  %v10739_v14 = vmax.f32 %v10737_v28, %v10738_v12  ;;  %v10740_v24 = vld [vmem:[#allocation210_spill] sm:$0xff]  ;;  %v10741_v33 = vld [vmem:[#allocation211_spill] sm:$0xff] }
 0x2dd   : > { %v7407_v0 = vpop.f32.mrb[250].mxu0  ;;  %5741 = vst.msk [vmem:[%s9175_s29 + $0x3a0] sm:$0xff] %vm5624_vm3, %v5612_v18  ;;  %v5613_v36 = vmax.f32 %v5485_v40, 0.0  ;;  %v5225_v37 = vmax.f32 %v3888_v2, %v5074_v35  ;;  %v7539_v4 = vpop.f32.mrb[250].mxu1  ;;  %v10742_v15 = vmax.f32 %v10740_v24, %v10741_v33  ;;  %v10743_v63 = vld [vmem:[#allocation212_spill] sm:$0xff]  ;;  %v10744_v2 = vld [vmem:[#allocation213_spill] sm:$0xff] }
 0x2de   : > { %v3891_v27 = vpop.f32.mrb[251].mxu0  ;;  %5744 = vst.msk [vmem:[%s9175_s29 + $0x3b8] sm:$0xff] %vm5624_vm3, %v5615_v21  ;;  %v5355_v13 = vmax.f32 %v10724_v43, %v5227_v39  ;;  %v5228_v16 = vmax.f32 %v7407_v0, %v7539_v4  ;;  %v5077_v51 = vpop.f32.mrb[251].mxu1  ;;  %v10745_v21 = vmax.f32 %v10743_v63, %v10744_v2 }
 0x2df   : > { %5742 = vst.msk [vmem:[%s9175_s29 + $0x3a8] sm:$0xff] %vm5624_vm3, %v5613_v36  ;;  %v5353_v61 = vmax.f32 %v10727_v46, %v5225_v37  ;;  %v5226_v58 = vmax.f32 %v3891_v27, %v5077_v51 }
 0x2e0   : > { %v5490_v17 = vadd.f32 %v9613_v44, %v5355_v13  ;;  %v5356_v49 = vmax.f32 %v10730_v3, %v5228_v16 }
 0x2e1   : > { %v5488_v29 = vadd.f32 %v9613_v44, %v5353_v61  ;;  %v5354_v22 = vmax.f32 %v10733_v20, %v5226_v58 }
 0x2e2   : > { %v5618_v23 = vmax.f32 %v5490_v17, 0.0  ;;  %v5491_v25 = vadd.f32 %v9613_v44, %v5356_v49 }
 0x2e3   : > { %v7410_v56 = vpop.f32.mrb[252].mxu0  ;;  %v5616_v57 = vmax.f32 %v5488_v29, 0.0  ;;  %v5489_v26 = vadd.f32 %v9613_v44, %v5354_v22  ;;  %v7542_v30 = vpop.f32.mrb[252].mxu1 }
 0x2e4   : > { %v3904_v59 = vpop.f32.mrb[253].mxu0  ;;  %5747 = vst.msk [vmem:[%s9175_s29 + $0x3d0] sm:$0xff] %vm5624_vm3, %v5618_v23  ;;  %v5619_v5 = vmax.f32 %v5491_v25, 0.0  ;;  %v5231_v8 = vmax.f32 %v7410_v56, %v7542_v30  ;;  %v5090_v9 = vpop.f32.mrb[253].mxu1 }
 0x2e5   : > { %v7411_v52 = vpop.f32.mrb[254].mxu0  ;;  %5745 = vst.msk [vmem:[%s9175_s29 + $0x3c0] sm:$0xff] %vm5624_vm3, %v5616_v57  ;;  %v5617_v54 = vmax.f32 %v5489_v26, 0.0  ;;  %v5229_v55 = vmax.f32 %v3904_v59, %v5090_v9  ;;  %v7543_v6 = vpop.f32.mrb[254].mxu1 }
 0x2e6   : > { %v3907_v31 = vpop.f32.mrb[255].mxu0  ;;  %5748 = vst.msk [vmem:[%s9175_s29 + $0x3d8] sm:$0xff] %vm5624_vm3, %v5619_v5  ;;  %v5359_v60 = vmax.f32 %v10736_v45, %v5231_v8  ;;  %v5232_v62 = vmax.f32 %v7411_v52, %v7543_v6  ;;  %v5093_v7 = vpop.f32.mrb[255].mxu1 }
 0x2e7   : > { %5746 = vst.msk [vmem:[%s9175_s29 + $0x3c8] sm:$0xff] %vm5624_vm3, %v5617_v54  ;;  %v5357_v10 = vmax.f32 %v10739_v14, %v5229_v55  ;;  %v5230_v32 = vmax.f32 %v3907_v31, %v5093_v7 }
 0x2e8   : > { %v5494_v19 = vadd.f32 %v9613_v44, %v5359_v60  ;;  %v5360_v18 = vmax.f32 %v10742_v15, %v5232_v62 }
 0x2e9   : > { %v5492_v40 = vadd.f32 %v9613_v44, %v5357_v10  ;;  %v5358_v39 = vmax.f32 %v10745_v21, %v5230_v32 }
 0x2ea   : > { %v5622_v35 = vmax.f32 %v5494_v19, 0.0  ;;  %v5495_v0 = vadd.f32 %v9613_v44, %v5360_v18 }
 0x2eb   : > { %v5620_v36 = vmax.f32 %v5492_v40, 0.0  ;;  %v5493_v37 = vadd.f32 %v9613_v44, %v5358_v39 }
 0x2ec   : > { %5751 = vst.msk [vmem:[%s9175_s29 + $0x3f0] sm:$0xff] %vm5624_vm3, %v5622_v35  ;;  %v5623_v4 = vmax.f32 %v5495_v0, 0.0 }
 0x2ed   : > { %5749 = vst.msk [vmem:[%s9175_s29 + $0x3e0] sm:$0xff] %vm5624_vm3, %v5620_v36  ;;  %v5621_v27 = vmax.f32 %v5493_v37, 0.0 }
 0x2ee   : > { %5752 = vst.msk [vmem:[%s9175_s29 + $0x3f8] sm:$0xff] %vm5624_vm3, %v5623_v4 }
 0x2ef   : > { %5750 = vst.msk [vmem:[%s9175_s29 + $0x3e8] sm:$0xff] %vm5624_vm3, %v5621_v27 }
 0x2f0 PF: > { %s13_s14 = sadd.s32 1, %s7850_s14   ;;  %s10746_s12 = smov %s7846_s13 }
 0x2f1   : > { %p10_p5 = scmp.ge.s32.totalorder %s13_s14, 4   ;;  %s10747_s13 = smov %s10749_s15 }
 0x2f3   :  { %12 = sbr.rel (!%p10_p5) target bundleno = 2 (0x2), region = 65 }

// kernel: adams_cnn_forward.10
= control target key start
LH: loop header
LB: loop body
LE: loop exit
PB: predicated region body
PF: predicated region fallthrough
CT: control target
= control target key end

     0   :  { %s2702_s12 = smov 0   ;;  %s2704_s13 = smov 0   ;;  %s3441_s0 = inlined_call_operand.vmem [shape: bf16[2,4,256,144], index: 0, kind: input, shape index: {}]   ;;  %s3442_s1 = inlined_call_operand.vmem [shape: bf16[144,32], index: 1, kind: input, shape index: {}]   ;;  %s3443_s2 = inlined_call_operand.vmem [shape: f32[1,32], index: 2, kind: input, shape index: {}]   ;;  %s3444_s3 = inlined_call_operand.vmem [shape: f32[2,256,32], index: 3, kind: output, shape index: {}]  }
   0x1   :  { %s2706_s14 = smov 0  }
   0x2 LB: > { %s25_s15 = sadd.s32 1, %s2675_s13  ;;  %p2124_p0 = scmp.ge.s32.totalorder %s2679_s14, 1  ;;  %s2679_s14 = sphi %s2706_s14, %s13_s14   ;;  %s2675_s13 = sphi %s2704_s13, %s3520_s13   ;;  %s2671_s12 = sphi %s2702_s12, %s3519_s12  }
   0x3   : > { %p27_p1 = scmp.ge.s32.totalorder %s25_s15, 2  ;;  %p159_p2 = scmp.lt.s32.totalorder %s2679_s14, 3 }
   0x5   : > { %s3522_s15 = smov (%p27_p1, %s25_s15), 0  ;;  %p160_p3 = pnand %p2124_p0, %p159_p2 }
   0x7   : > { %163 = sbr.rel (%p160_p3) target bundleno = 522 (0x20a), region = 32 }
   0xe   : > { %v2723_v0 = vld [vmem:[%s3442_s1] sm:$0xff]   ;;  %v2681_v1 = vmov 0   ;;  %p193_p4 = scmp.lt.s32.totalorder %s2671_s12, 1  ;;  %v2732_v2 = vld [vmem:[%s3442_s1 + $0x8] sm:$0xff]   ;;  %v2744_v3 = vld [vmem:[%s3442_s1 + $0x10] sm:$0xff]   ;;  %vm462_vm0 = vcmask 130048  }
   0xf   : > { %511 = vmatprep.subr.bf16.mxu0 %v2681_v1  ;;  %897 = vmatprep.subr.bf16.mxu1 %v2681_v1  ;;  %v2756_v4 = vld [vmem:[%s3442_s1 + $0x18] sm:$0xff]   ;;  %v2771_v7 = vld [vmem:[%s3442_s1 + $0x20] sm:$0xff]   ;;  %v2780_v8 = vld [vmem:[%s3442_s1 + $0x28] sm:$0xff]   ;;  %vm1997_vm1 = vcmask 261120  }
  0x10   : > { %512 = vmatpush1.bf16.msra.mxu0 %v2723_v0  ;;  %898 = vmatpush1.bf16.msra.mxu1 %v2723_v0  ;;  %s3524_s12 = smov (!%p193_p4, %s2671_s12), 1  ;;  %v2789_v9 = vld [vmem:[%s3442_s1 + $0x30] sm:$0xff]   ;;  %v2798_v10 = vld [vmem:[%s3442_s1 + $0x38] sm:$0xff]   ;;  %v2807_v11 = vld [vmem:[%s3442_s1 + $0x40] sm:$0xff]  }
  0x11   : > { %513 = vmatprep.subr.bf16.mxu0 %v2681_v1  ;;  %899 = vmatprep.subr.bf16.mxu1 %v2681_v1  ;;  %s2429_s20 = sshll.u32 %s3524_s12, 10  ;;  %s2430_s17 = sshll.u32 %s3524_s12, 8 }
  0x12   : > { %s2751_s25 = scalar_lea.vmem %s3441_s0, %s2429_s20  ;;  %s3245_s20 = scalar_lea.vmem %s3444_s3, %s2430_s17 }
  0x13   : > { %v2467_v5 = vld [vmem:[%s2751_s25 + $0x4] ss:$8 sps:$4 sm:$0xff]   ;;  %v2465_v12 = vld [vmem:[%s2751_s25] ss:$8 sps:$4 sm:$0xff]   ;;  %v2471_v14 = vld [vmem:[%s2751_s25 + $0x14] ss:$8 sps:$4 sm:$0xff]  }
  0x14   : > { %514 = vmatpush1.bf16.msra.mxu0 %v2732_v2  ;;  %900 = vmatpush1.bf16.msra.mxu1 %v2732_v2  ;;  %v2470_v6 = vld [vmem:[%s2751_s25 + $0x104] ss:$8 sps:$4 sm:$0xff]   ;;  %v2468_v13 = vld [vmem:[%s2751_s25 + $0x100] ss:$8 sps:$4 sm:$0xff]   ;;  %v2473_v15 = vld [vmem:[%s2751_s25 + $0x114] ss:$8 sps:$4 sm:$0xff]  }
  0x15   : > { %515 = vmatprep.subr.bf16.mxu0 %v2681_v1  ;;  %901 = vmatprep.subr.bf16.mxu1 %v2681_v1  ;;  %v2475_v16 = vld [vmem:[%s2751_s25 + $0x10] ss:$8 sps:$4 sm:$0xff]   ;;  %v2477_v18 = vld [vmem:[%s2751_s25 + $0x24] ss:$8 sps:$4 sm:$0xff]   ;;  %v2481_v20 = vld [vmem:[%s2751_s25 + $0x20] ss:$8 sps:$4 sm:$0xff]  }
  0x16   : > { %2170 = vmatprep.mubr.msk.bf16.mxu0 %vm462_vm0, %v2467_v5  ;;  %2250 = vmatprep.mubr.msk.bf16.mxu1 %vm462_vm0, %v2470_v6  ;;  %v2476_v17 = vld [vmem:[%s2751_s25 + $0x110] ss:$8 sps:$4 sm:$0xff]   ;;  %v2479_v19 = vld [vmem:[%s2751_s25 + $0x124] ss:$8 sps:$4 sm:$0xff]   ;;  %v2482_v21 = vld [vmem:[%s2751_s25 + $0x120] ss:$8 sps:$4 sm:$0xff]  }
  0x17   : > { %v2483_v22 = vld [vmem:[%s2751_s25 + $0x34] ss:$8 sps:$4 sm:$0xff]   ;;  %v2487_v24 = vld [vmem:[%s2751_s25 + $0x30] ss:$8 sps:$4 sm:$0xff]   ;;  %v2489_v26 = vld [vmem:[%s2751_s25 + $0x44] ss:$8 sps:$4 sm:$0xff]  }
  0x18   : > { %516 = vmatpush1.bf16.msra.mxu0 %v2744_v3  ;;  %902 = vmatpush1.bf16.msra.mxu1 %v2744_v3  ;;  %v2485_v23 = vld [vmem:[%s2751_s25 + $0x134] ss:$8 sps:$4 sm:$0xff]   ;;  %v2488_v25 = vld [vmem:[%s2751_s25 + $0x130] ss:$8 sps:$4 sm:$0xff]   ;;  %v2491_v27 = vld [vmem:[%s2751_s25 + $0x144] ss:$8 sps:$4 sm:$0xff]  }
  0x19   : > { %517 = vmatprep.subr.bf16.mxu0 %v2681_v1  ;;  %903 = vmatprep.subr.bf16.mxu1 %v2681_v1  ;;  %v2493_v28 = vld [vmem:[%s2751_s25 + $0x40] ss:$8 sps:$4 sm:$0xff]   ;;  %v2495_v30 = vld [vmem:[%s2751_s25 + $0x54] ss:$8 sps:$4 sm:$0xff]   ;;  %v2499_v32 = vld [vmem:[%s2751_s25 + $0x50] ss:$8 sps:$4 sm:$0xff]  }
  0x1a   : > { %v2494_v29 = vld [vmem:[%s2751_s25 + $0x140] ss:$8 sps:$4 sm:$0xff]   ;;  %v2497_v31 = vld [vmem:[%s2751_s25 + $0x154] ss:$8 sps:$4 sm:$0xff]   ;;  %v2500_v33 = vld [vmem:[%s2751_s25 + $0x150] ss:$8 sps:$4 sm:$0xff]  }
  0x1b   : > { %v2501_v34 = vld [vmem:[%s2751_s25 + $0x64] ss:$8 sps:$4 sm:$0xff]   ;;  %v2505_v36 = vld [vmem:[%s2751_s25 + $0x60] ss:$8 sps:$4 sm:$0xff]   ;;  %v2507_v38 = vld [vmem:[%s2751_s25 + $0x74] ss:$8 sps:$4 sm:$0xff]  }
  0x1c   : > { %518 = vmatpush1.bf16.msra.mxu0 %v2756_v4  ;;  %904 = vmatpush1.bf16.msra.mxu1 %v2756_v4  ;;  %v2503_v35 = vld [vmem:[%s2751_s25 + $0x164] ss:$8 sps:$4 sm:$0xff]   ;;  %v2506_v37 = vld [vmem:[%s2751_s25 + $0x160] ss:$8 sps:$4 sm:$0xff]   ;;  %v2509_v39 = vld [vmem:[%s2751_s25 + $0x174] ss:$8 sps:$4 sm:$0xff]  }
  0x1d   : > { %519 = vmatprep.subr.bf16.mxu0 %v2681_v1  ;;  %905 = vmatprep.subr.bf16.mxu1 %v2681_v1  ;;  %v2511_v40 = vld [vmem:[%s2751_s25 + $0x70] ss:$8 sps:$4 sm:$0xff]   ;;  %v2513_v42 = vld [vmem:[%s2751_s25 + $0x84] ss:$8 sps:$4 sm:$0xff]   ;;  %v2517_v44 = vld [vmem:[%s2751_s25 + $0x80] ss:$8 sps:$4 sm:$0xff]  }
  0x1e   : > { %v2512_v41 = vld [vmem:[%s2751_s25 + $0x170] ss:$8 sps:$4 sm:$0xff]   ;;  %v2515_v43 = vld [vmem:[%s2751_s25 + $0x184] ss:$8 sps:$4 sm:$0xff]   ;;  %v2518_v45 = vld [vmem:[%s2751_s25 + $0x180] ss:$8 sps:$4 sm:$0xff]  }
  0x1f   : > { %v2519_v46 = vld [vmem:[%s2751_s25 + $0x94] ss:$8 sps:$4 sm:$0xff]   ;;  %v2523_v48 = vld [vmem:[%s2751_s25 + $0x90] ss:$8 sps:$4 sm:$0xff]   ;;  %v2525_v50 = vld [vmem:[%s2751_s25 + $0xa4] ss:$8 sps:$4 sm:$0xff]  }
  0x20   : > { %520 = vmatpush1.bf16.msra.mxu0 %v2771_v7  ;;  %906 = vmatpush1.bf16.msra.mxu1 %v2771_v7  ;;  %v2521_v47 = vld [vmem:[%s2751_s25 + $0x194] ss:$8 sps:$4 sm:$0xff]   ;;  %v2524_v49 = vld [vmem:[%s2751_s25 + $0x190] ss:$8 sps:$4 sm:$0xff]   ;;  %v2527_v51 = vld [vmem:[%s2751_s25 + $0x1a4] ss:$8 sps:$4 sm:$0xff]  }
  0x21   : > { %521 = vmatprep.subr.bf16.mxu0 %v2681_v1  ;;  %907 = vmatprep.subr.bf16.mxu1 %v2681_v1  ;;  %v2529_v52 = vld [vmem:[%s2751_s25 + $0xa0] ss:$8 sps:$4 sm:$0xff]   ;;  %v2531_v54 = vld [vmem:[%s2751_s25 + $0xb4] ss:$8 sps:$4 sm:$0xff]   ;;  %v2535_v56 = vld [vmem:[%s2751_s25 + $0xb0] ss:$8 sps:$4 sm:$0xff]  }
  0x22   : > { %v2530_v53 = vld [vmem:[%s2751_s25 + $0x1a0] ss:$8 sps:$4 sm:$0xff]   ;;  %v2533_v55 = vld [vmem:[%s2751_s25 + $0x1b4] ss:$8 sps:$4 sm:$0xff]   ;;  %v2536_v57 = vld [vmem:[%s2751_s25 + $0x1b0] ss:$8 sps:$4 sm:$0xff]  }
  0x23   : > { %v2537_v58 = vld [vmem:[%s2751_s25 + $0xc4] ss:$8 sps:$4 sm:$0xff]   ;;  %v2541_v60 = vld [vmem:[%s2751_s25 + $0xc0] ss:$8 sps:$4 sm:$0xff]   ;;  %v2543_v62 = vld [vmem:[%s2751_s25 + $0xd4] ss:$8 sps:$4 sm:$0xff]  }
  0x24   : > { %522 = vmatpush1.bf16.msra.mxu0 %v2780_v8  ;;  %908 = vmatpush1.bf16.msra.mxu1 %v2780_v8  ;;  %v2539_v59 = vld [vmem:[%s2751_s25 + $0x1c4] ss:$8 sps:$4 sm:$0xff]   ;;  %v2542_v61 = vld [vmem:[%s2751_s25 + $0x1c0] ss:$8 sps:$4 sm:$0xff]   ;;  %v2545_v63 = vld [vmem:[%s2751_s25 + $0x1d4] ss:$8 sps:$4 sm:$0xff]  }
  0x25   : > { %523 = vmatprep.subr.bf16.mxu0 %v2681_v1  ;;  %909 = vmatprep.subr.bf16.mxu1 %v2681_v1  ;;  %v2554_v5 = vld [vmem:[%s2751_s25 + $0x1e0] ss:$8 sps:$4 sm:$0xff]   ;;  %v2555_v6 = vld [vmem:[%s2751_s25 + $0xf4] ss:$8 sps:$4 sm:$0xff]  }
  0x28   : > { %524 = vmatpush1.bf16.msra.mxu0 %v2789_v9  ;;  %910 = vmatpush1.bf16.msra.mxu1 %v2789_v9 }
  0x29   : > { %525 = vmatprep.subr.bf16.mxu0 %v2681_v1  ;;  %911 = vmatprep.subr.bf16.mxu1 %v2681_v1 }
  0x2c   : > { %526 = vmatpush1.bf16.msra.mxu0 %v2798_v10  ;;  %912 = vmatpush1.bf16.msra.mxu1 %v2798_v10 }
  0x2d   : > { %527 = vmatprep.subr.bf16.mxu0 %v2681_v1  ;;  %913 = vmatprep.subr.bf16.mxu1 %v2681_v1 }
  0x30   : > { %528 = vmatpush1.bf16.msra.mxu0 %v2807_v11  ;;  %914 = vmatpush1.bf16.msra.mxu1 %v2807_v11 }
  0x31   : > { %1315 = vmatprep.subr.bf16.mxu0 %v2681_v1  ;;  %1701 = vmatprep.subr.bf16.mxu1 %v2681_v1 }
  0x33   : > { %544 = vmatmul.mubr.bf16.vlgmr.msra.gmra.mrb[0].mxu0 %v2465_v12  ;;  %930 = vmatmul.mubr.bf16.vlgmr.msra.gmra.mrb[0].mxu1 %v2468_v13  ;;  %v2561_v12 = vld [vmem:[%s2751_s25 + $0x200] ss:$8 sps:$4 sm:$0xff]  }
  0x34   : > { %1316 = vmatpush1.bf16.msra.mxu0 %v2723_v0  ;;  %1702 = vmatpush1.bf16.msra.mxu1 %v2723_v0  ;;  %v2547_v0 = vld [vmem:[%s2751_s25 + $0xd0] ss:$8 sps:$4 sm:$0xff]   ;;  %v2564_v13 = vld [vmem:[%s2751_s25 + $0x300] ss:$8 sps:$4 sm:$0xff]  }
  0x35   : > { %2171 = vmatprep.mubr.msk.bf16.mxu0 %vm462_vm0, %v2471_v14  ;;  %2251 = vmatprep.mubr.msk.bf16.mxu1 %vm462_vm0, %v2473_v15  ;;  %v2567_v14 = vld [vmem:[%s2751_s25 + $0x214] ss:$8 sps:$4 sm:$0xff]  }
  0x36   : > { %1317 = vmatprep.subr.bf16.mxu0 %v2681_v1  ;;  %1703 = vmatprep.subr.bf16.mxu1 %v2681_v1  ;;  %v2569_v15 = vld [vmem:[%s2751_s25 + $0x314] ss:$8 sps:$4 sm:$0xff]  }
  0x38   : > { %1318 = vmatpush1.bf16.msra.mxu0 %v2732_v2  ;;  %1704 = vmatpush1.bf16.msra.mxu1 %v2732_v2  ;;  %v2549_v2 = vld [vmem:[%s2751_s25 + $0xe4] ss:$8 sps:$4 sm:$0xff]  }
  0x39   : > { %1319 = vmatprep.subr.bf16.mxu0 %v2681_v1  ;;  %1705 = vmatprep.subr.bf16.mxu1 %v2681_v1 }
  0x3b   : > { %552 = vmatmul.mubr.bf16.gmra.mrb[4].mxu0 %v2475_v16  ;;  %938 = vmatmul.mubr.bf16.gmra.mrb[4].mxu1 %v2476_v17  ;;  %v2571_v16 = vld [vmem:[%s2751_s25 + $0x210] ss:$8 sps:$4 sm:$0xff]  }
  0x3c   : > { %2172 = vmatprep.mubr.msk.bf16.mxu0 %vm462_vm0, %v2477_v18  ;;  %2252 = vmatprep.mubr.msk.bf16.mxu1 %vm462_vm0, %v2479_v19  ;;  %v2572_v17 = vld [vmem:[%s2751_s25 + $0x310] ss:$8 sps:$4 sm:$0xff]   ;;  %v2573_v18 = vld [vmem:[%s2751_s25 + $0x224] ss:$8 sps:$4 sm:$0xff]  }
  0x3d   : > { %1320 = vmatpush1.bf16.msra.mxu0 %v2744_v3  ;;  %1706 = vmatpush1.bf16.msra.mxu1 %v2744_v3  ;;  %v2551_v3 = vld [vmem:[%s2751_s25 + $0x1e4] ss:$8 sps:$4 sm:$0xff]  }
  0x3e   : > { %1321 = vmatprep.subr.bf16.mxu0 %v2681_v1  ;;  %1707 = vmatprep.subr.bf16.mxu1 %v2681_v1  ;;  %v2575_v19 = vld [vmem:[%s2751_s25 + $0x324] ss:$8 sps:$4 sm:$0xff]  }
  0x41   : > { %1322 = vmatpush1.bf16.msra.mxu0 %v2756_v4  ;;  %1708 = vmatpush1.bf16.msra.mxu1 %v2756_v4  ;;  %v2553_v4 = vld [vmem:[%s2751_s25 + $0xe0] ss:$8 sps:$4 sm:$0xff]  }
  0x42   : > { %1323 = vmatprep.subr.bf16.mxu0 %v2681_v1  ;;  %1709 = vmatprep.subr.bf16.mxu1 %v2681_v1 }
  0x43   : > { %560 = vmatmul.mubr.bf16.gmra.mrb[8].mxu0 %v2481_v20  ;;  %946 = vmatmul.mubr.bf16.gmra.mrb[8].mxu1 %v2482_v21  ;;  %v2577_v20 = vld [vmem:[%s2751_s25 + $0x220] ss:$8 sps:$4 sm:$0xff]  }
  0x44   : > { %2173 = vmatprep.mubr.msk.bf16.mxu0 %vm462_vm0, %v2483_v22  ;;  %2253 = vmatprep.mubr.msk.bf16.mxu1 %vm462_vm0, %v2485_v23  ;;  %v2578_v21 = vld [vmem:[%s2751_s25 + $0x320] ss:$8 sps:$4 sm:$0xff]   ;;  %v2579_v22 = vld [vmem:[%s2751_s25 + $0x234] ss:$8 sps:$4 sm:$0xff]  }
  0x45   : > { %1324 = vmatpush1.bf16.msra.mxu0 %v2771_v7  ;;  %1710 = vmatpush1.bf16.msra.mxu1 %v2771_v7  ;;  %v2557_v7 = vld [vmem:[%s2751_s25 + $0x1f4] ss:$8 sps:$4 sm:$0xff]  }
  0x46   : > { %1325 = vmatprep.subr.bf16.mxu0 %v2681_v1  ;;  %1711 = vmatprep.subr.bf16.mxu1 %v2681_v1  ;;  %v2581_v23 = vld [vmem:[%s2751_s25 + $0x334] ss:$8 sps:$4 sm:$0xff]  }
  0x49   : > { %1326 = vmatpush1.bf16.msra.mxu0 %v2780_v8  ;;  %1712 = vmatpush1.bf16.msra.mxu1 %v2780_v8  ;;  %v2559_v8 = vld [vmem:[%s2751_s25 + $0xf0] ss:$8 sps:$4 sm:$0xff]  }
  0x4a   : > { %1327 = vmatprep.subr.bf16.mxu0 %v2681_v1  ;;  %1713 = vmatprep.subr.bf16.mxu1 %v2681_v1 }
  0x4b   : > { %568 = vmatmul.mubr.bf16.gmra.mrb[12].mxu0 %v2487_v24  ;;  %954 = vmatmul.mubr.bf16.gmra.mrb[12].mxu1 %v2488_v25  ;;  %v2583_v24 = vld [vmem:[%s2751_s25 + $0x230] ss:$8 sps:$4 sm:$0xff]  }
  0x4c   : > { %2174 = vmatprep.mubr.msk.bf16.mxu0 %vm462_vm0, %v2489_v26  ;;  %2254 = vmatprep.mubr.msk.bf16.mxu1 %vm462_vm0, %v2491_v27  ;;  %v2584_v25 = vld [vmem:[%s2751_s25 + $0x330] ss:$8 sps:$4 sm:$0xff]   ;;  %v2585_v26 = vld [vmem:[%s2751_s25 + $0x244] ss:$8 sps:$4 sm:$0xff]  }
  0x4d   : > { %1328 = vmatpush1.bf16.msra.mxu0 %v2789_v9  ;;  %1714 = vmatpush1.bf16.msra.mxu1 %v2789_v9  ;;  %v2560_v9 = vld [vmem:[%s2751_s25 + $0x1f0] ss:$8 sps:$4 sm:$0xff]   ;;  %v2587_v27 = vld [vmem:[%s2751_s25 + $0x344] ss:$8 sps:$4 sm:$0xff]  }
  0x4e   : > { %1329 = vmatprep.subr.bf16.mxu0 %v2681_v1  ;;  %1715 = vmatprep.subr.bf16.mxu1 %v2681_v1 }
  0x51   : > { %1330 = vmatpush1.bf16.msra.mxu0 %v2798_v10  ;;  %1716 = vmatpush1.bf16.msra.mxu1 %v2798_v10  ;;  %v2563_v10 = vld [vmem:[%s2751_s25 + $0x204] ss:$8 sps:$4 sm:$0xff]  }
  0x52   : > { %1331 = vmatprep.subr.bf16.mxu0 %v2681_v1  ;;  %1717 = vmatprep.subr.bf16.mxu1 %v2681_v1  ;;  %v2548_v1 = vld [vmem:[%s2751_s25 + $0x1d0] ss:$8 sps:$4 sm:$0xff]  }
  0x53   : > { %576 = vmatmul.mubr.bf16.gmra.mrb[16].mxu0 %v2493_v28  ;;  %962 = vmatmul.mubr.bf16.gmra.mrb[16].mxu1 %v2494_v29  ;;  %v2589_v28 = vld [vmem:[%s2751_s25 + $0x240] ss:$8 sps:$4 sm:$0xff]  }
  0x54   : > { %2175 = vmatprep.mubr.msk.bf16.mxu0 %vm462_vm0, %v2495_v30  ;;  %2255 = vmatprep.mubr.msk.bf16.mxu1 %vm462_vm0, %v2497_v31  ;;  %v2590_v29 = vld [vmem:[%s2751_s25 + $0x340] ss:$8 sps:$4 sm:$0xff]   ;;  %v2591_v30 = vld [vmem:[%s2751_s25 + $0x254] ss:$8 sps:$4 sm:$0xff]  }
  0x55   : > { %1332 = vmatpush1.bf16.msra.mxu0 %v2807_v11  ;;  %1718 = vmatpush1.bf16.msra.mxu1 %v2807_v11  ;;  %v2566_v11 = vld [vmem:[%s2751_s25 + $0x304] ss:$8 sps:$4 sm:$0xff]   ;;  %v2593_v31 = vld [vmem:[%s2751_s25 + $0x354] ss:$8 sps:$4 sm:$0xff]  }
  0x5b   : > { %584 = vmatmul.mubr.bf16.gmra.mrb[20].mxu0 %v2499_v32  ;;  %970 = vmatmul.mubr.bf16.gmra.mrb[20].mxu1 %v2500_v33  ;;  %v2595_v32 = vld [vmem:[%s2751_s25 + $0x250] ss:$8 sps:$4 sm:$0xff]  }
  0x5c   : > { %2176 = vmatprep.mubr.msk.bf16.mxu0 %vm462_vm0, %v2501_v34  ;;  %2256 = vmatprep.mubr.msk.bf16.mxu1 %vm462_vm0, %v2503_v35  ;;  %v2596_v33 = vld [vmem:[%s2751_s25 + $0x350] ss:$8 sps:$4 sm:$0xff]   ;;  %v2597_v34 = vld [vmem:[%s2751_s25 + $0x264] ss:$8 sps:$4 sm:$0xff]  }
  0x5d   : > { %v2599_v35 = vld [vmem:[%s2751_s25 + $0x364] ss:$8 sps:$4 sm:$0xff]  }
  0x63   : > { %592 = vmatmul.mubr.bf16.gmra.mrb[24].mxu0 %v2505_v36  ;;  %978 = vmatmul.mubr.bf16.gmra.mrb[24].mxu1 %v2506_v37  ;;  %v2601_v36 = vld [vmem:[%s2751_s25 + $0x260] ss:$8 sps:$4 sm:$0xff]  }
  0x64   : > { %2177 = vmatprep.mubr.msk.bf16.mxu0 %vm462_vm0, %v2507_v38  ;;  %2257 = vmatprep.mubr.msk.bf16.mxu1 %vm462_vm0, %v2509_v39  ;;  %v2602_v37 = vld [vmem:[%s2751_s25 + $0x360] ss:$8 sps:$4 sm:$0xff]   ;;  %v2603_v38 = vld [vmem:[%s2751_s25 + $0x274] ss:$8 sps:$4 sm:$0xff]  }
  0x65   : > { %v2605_v39 = vld [vmem:[%s2751_s25 + $0x374] ss:$8 sps:$4 sm:$0xff]  }
  0x6b   : > { %600 = vmatmul.mubr.bf16.gmra.mrb[28].mxu0 %v2511_v40  ;;  %986 = vmatmul.mubr.bf16.gmra.mrb[28].mxu1 %v2512_v41  ;;  %v2607_v40 = vld [vmem:[%s2751_s25 + $0x270] ss:$8 sps:$4 sm:$0xff]  }
  0x6c   : > { %2178 = vmatprep.mubr.msk.bf16.mxu0 %vm462_vm0, %v2513_v42  ;;  %2258 = vmatprep.mubr.msk.bf16.mxu1 %vm462_vm0, %v2515_v43  ;;  %v2608_v41 = vld [vmem:[%s2751_s25 + $0x370] ss:$8 sps:$4 sm:$0xff]   ;;  %v2609_v42 = vld [vmem:[%s2751_s25 + $0x284] ss:$8 sps:$4 sm:$0xff]  }
  0x6d   : > { %v2611_v43 = vld [vmem:[%s2751_s25 + $0x384] ss:$8 sps:$4 sm:$0xff]  }
  0x73   : > { %608 = vmatmul.mubr.bf16.gmra.mrb[32].mxu0 %v2517_v44  ;;  %994 = vmatmul.mubr.bf16.gmra.mrb[32].mxu1 %v2518_v45  ;;  %v2613_v44 = vld [vmem:[%s2751_s25 + $0x280] ss:$8 sps:$4 sm:$0xff]  }
  0x74   : > { %2179 = vmatprep.mubr.msk.bf16.mxu0 %vm462_vm0, %v2519_v46  ;;  %2259 = vmatprep.mubr.msk.bf16.mxu1 %vm462_vm0, %v2521_v47  ;;  %v2614_v45 = vld [vmem:[%s2751_s25 + $0x380] ss:$8 sps:$4 sm:$0xff]   ;;  %v2615_v46 = vld [vmem:[%s2751_s25 + $0x294] ss:$8 sps:$4 sm:$0xff]  }
  0x75   : > { %v2617_v47 = vld [vmem:[%s2751_s25 + $0x394] ss:$8 sps:$4 sm:$0xff]  }
  0x7b   : > { %616 = vmatmul.mubr.bf16.gmra.mrb[36].mxu0 %v2523_v48  ;;  %1002 = vmatmul.mubr.bf16.gmra.mrb[36].mxu1 %v2524_v49  ;;  %v2619_v48 = vld [vmem:[%s2751_s25 + $0x290] ss:$8 sps:$4 sm:$0xff]  }
  0x7c   : > { %2180 = vmatprep.mubr.msk.bf16.mxu0 %vm462_vm0, %v2525_v50  ;;  %2260 = vmatprep.mubr.msk.bf16.mxu1 %vm462_vm0, %v2527_v51  ;;  %v2620_v49 = vld [vmem:[%s2751_s25 + $0x390] ss:$8 sps:$4 sm:$0xff]   ;;  %v2621_v50 = vld [vmem:[%s2751_s25 + $0x2a4] ss:$8 sps:$4 sm:$0xff]  }
  0x7d   : > { %v2623_v51 = vld [vmem:[%s2751_s25 + $0x3a4] ss:$8 sps:$4 sm:$0xff]  }
  0x83   : > { %624 = vmatmul.mubr.bf16.gmra.mrb[40].mxu0 %v2529_v52  ;;  %1010 = vmatmul.mubr.bf16.gmra.mrb[40].mxu1 %v2530_v53  ;;  %v2625_v52 = vld [vmem:[%s2751_s25 + $0x2a0] ss:$8 sps:$4 sm:$0xff]  }
  0x84   : > { %2181 = vmatprep.mubr.msk.bf16.mxu0 %vm462_vm0, %v2531_v54  ;;  %2261 = vmatprep.mubr.msk.bf16.mxu1 %vm462_vm0, %v2533_v55  ;;  %v2626_v53 = vld [vmem:[%s2751_s25 + $0x3a0] ss:$8 sps:$4 sm:$0xff]   ;;  %v2627_v54 = vld [vmem:[%s2751_s25 + $0x2b4] ss:$8 sps:$4 sm:$0xff]  }
  0x85   : > { %v2629_v55 = vld [vmem:[%s2751_s25 + $0x3b4] ss:$8 sps:$4 sm:$0xff]  }
  0x8b   : > { %632 = vmatmul.mubr.bf16.gmra.mrb[44].mxu0 %v2535_v56  ;;  %1018 = vmatmul.mubr.bf16.gmra.mrb[44].mxu1 %v2536_v57 }
  0x8c   : > { %2182 = vmatprep.mubr.msk.bf16.mxu0 %vm462_vm0, %v2537_v58  ;;  %2262 = vmatprep.mubr.msk.bf16.mxu1 %vm462_vm0, %v2539_v59 }
  0x93   : > { %640 = vmatmul.mubr.bf16.gmra.mrb[48].mxu0 %v2541_v60  ;;  %1026 = vmatmul.mubr.bf16.gmra.mrb[48].mxu1 %v2542_v61  ;;  %v2631_v61 = vld [vmem:[%s2751_s25 + $0x2b0] ss:$8 sps:$4 sm:$0xff]  }
  0x94   : > { %2183 = vmatprep.mubr.msk.bf16.mxu0 %vm462_vm0, %v2543_v62  ;;  %2263 = vmatprep.mubr.msk.bf16.mxu1 %vm462_vm0, %v2545_v63  ;;  %v2632_v62 = vld [vmem:[%s2751_s25 + $0x3b0] ss:$8 sps:$4 sm:$0xff]  }
  0x9b   : > { %648 = vmatmul.mubr.bf16.gmra.mrb[52].mxu0 %v2547_v0  ;;  %1034 = vmatmul.mubr.bf16.gmra.mrb[52].mxu1 %v2548_v1  ;;  %v2633_v1 = vld [vmem:[%s2751_s25 + $0x2c4] ss:$8 sps:$4 sm:$0xff]  }
  0x9c   : > { %2184 = vmatprep.mubr.msk.bf16.mxu0 %vm462_vm0, %v2549_v2  ;;  %2264 = vmatprep.mubr.msk.bf16.mxu1 %vm462_vm0, %v2551_v3  ;;  %v2635_v2 = vld [vmem:[%s2751_s25 + $0x3c4] ss:$8 sps:$4 sm:$0xff]  }
  0xa3   : > { %656 = vmatmul.mubr.bf16.gmra.mrb[56].mxu0 %v2553_v4  ;;  %1042 = vmatmul.mubr.bf16.gmra.mrb[56].mxu1 %v2554_v5 }
  0xa4   : > { %2185 = vmatprep.mubr.msk.bf16.mxu0 %vm462_vm0, %v2555_v6  ;;  %2265 = vmatprep.mubr.msk.bf16.mxu1 %vm462_vm0, %v2557_v7 }
  0xab   : > { %664 = vmatmul.mubr.bf16.gmra.mrb[60].mxu0 %v2559_v8  ;;  %1050 = vmatmul.mubr.bf16.gmra.mrb[60].mxu1 %v2560_v9 }
  0xac   : > { %2330 = vmatprep.mubr.msk.bf16.mxu0 %vm462_vm0, %v2563_v10  ;;  %2410 = vmatprep.mubr.msk.bf16.mxu1 %vm462_vm0, %v2566_v11  ;;  %v2637_v11 = vld [vmem:[%s2751_s25 + $0x2c0] ss:$8 sps:$4 sm:$0xff]  }
  0xb3   : > { %1348 = vmatmul.mubr.bf16.vlgmr.msra.gmra.mrb[64].mxu0 %v2561_v12  ;;  %1734 = vmatmul.mubr.bf16.vlgmr.msra.gmra.mrb[64].mxu1 %v2564_v13  ;;  %v2638_v12 = vld [vmem:[%s2751_s25 + $0x3c0] ss:$8 sps:$4 sm:$0xff]  }
  0xb4   : > { %2331 = vmatprep.mubr.msk.bf16.mxu0 %vm462_vm0, %v2567_v14  ;;  %2411 = vmatprep.mubr.msk.bf16.mxu1 %vm462_vm0, %v2569_v15  ;;  %v2639_v15 = vld [vmem:[%s2751_s25 + $0x2d4] ss:$8 sps:$4 sm:$0xff]  }
  0xbb   : > { %1356 = vmatmul.mubr.bf16.gmra.mrb[68].mxu0 %v2571_v16  ;;  %1742 = vmatmul.mubr.bf16.gmra.mrb[68].mxu1 %v2572_v17  ;;  %v2641_v16 = vld [vmem:[%s2751_s25 + $0x3d4] ss:$8 sps:$4 sm:$0xff]  }
  0xbc   : > { %2332 = vmatprep.mubr.msk.bf16.mxu0 %vm462_vm0, %v2573_v18  ;;  %2412 = vmatprep.mubr.msk.bf16.mxu1 %vm462_vm0, %v2575_v19 }
  0xc3   : > { %1364 = vmatmul.mubr.bf16.gmra.mrb[72].mxu0 %v2577_v20  ;;  %1750 = vmatmul.mubr.bf16.gmra.mrb[72].mxu1 %v2578_v21 }
  0xc4   : > { %2333 = vmatprep.mubr.msk.bf16.mxu0 %vm462_vm0, %v2579_v22  ;;  %2413 = vmatprep.mubr.msk.bf16.mxu1 %vm462_vm0, %v2581_v23 }
  0xcb   : > { %1372 = vmatmul.mubr.bf16.gmra.mrb[76].mxu0 %v2583_v24  ;;  %1758 = vmatmul.mubr.bf16.gmra.mrb[76].mxu1 %v2584_v25  ;;  %v2643_v25 = vld [vmem:[%s2751_s25 + $0x2d0] ss:$8 sps:$4 sm:$0xff]  }
  0xcc   : > { %2334 = vmatprep.mubr.msk.bf16.mxu0 %vm462_vm0, %v2585_v26  ;;  %2414 = vmatprep.mubr.msk.bf16.mxu1 %vm462_vm0, %v2587_v27  ;;  %v2644_v26 = vld [vmem:[%s2751_s25 + $0x3d0] ss:$8 sps:$4 sm:$0xff]  }
  0xd3   : > { %1380 = vmatmul.mubr.bf16.gmra.mrb[80].mxu0 %v2589_v28  ;;  %1766 = vmatmul.mubr.bf16.gmra.mrb[80].mxu1 %v2590_v29  ;;  %v2645_v29 = vld [vmem:[%s2751_s25 + $0x2e4] ss:$8 sps:$4 sm:$0xff]  }
  0xd4   : > { %2335 = vmatprep.mubr.msk.bf16.mxu0 %vm462_vm0, %v2591_v30  ;;  %2415 = vmatprep.mubr.msk.bf16.mxu1 %vm462_vm0, %v2593_v31  ;;  %v2647_v30 = vld [vmem:[%s2751_s25 + $0x3e4] ss:$8 sps:$4 sm:$0xff]  }
  0xdb   : > { %1388 = vmatmul.mubr.bf16.gmra.mrb[84].mxu0 %v2595_v32  ;;  %1774 = vmatmul.mubr.bf16.gmra.mrb[84].mxu1 %v2596_v33 }
  0xdc   : > { %2336 = vmatprep.mubr.msk.bf16.mxu0 %vm462_vm0, %v2597_v34  ;;  %2416 = vmatprep.mubr.msk.bf16.mxu1 %vm462_vm0, %v2599_v35 }
  0xe3   : > { %1396 = vmatmul.mubr.bf16.gmra.mrb[88].mxu0 %v2601_v36  ;;  %1782 = vmatmul.mubr.bf16.gmra.mrb[88].mxu1 %v2602_v37 }
  0xe4   : > { %2337 = vmatprep.mubr.msk.bf16.mxu0 %vm462_vm0, %v2603_v38  ;;  %2417 = vmatprep.mubr.msk.bf16.mxu1 %vm462_vm0, %v2605_v39  ;;  %v2649_v39 = vld [vmem:[%s2751_s25 + $0x2e0] ss:$8 sps:$4 sm:$0xff]  }
  0xeb   : > { %1404 = vmatmul.mubr.bf16.gmra.mrb[92].mxu0 %v2607_v40  ;;  %1790 = vmatmul.mubr.bf16.gmra.mrb[92].mxu1 %v2608_v41  ;;  %v2650_v40 = vld [vmem:[%s2751_s25 + $0x3e0] ss:$8 sps:$4 sm:$0xff]  }
  0xec   : > { %2338 = vmatprep.mubr.msk.bf16.mxu0 %vm462_vm0, %v2609_v42  ;;  %2418 = vmatprep.mubr.msk.bf16.mxu1 %vm462_vm0, %v2611_v43  ;;  %v2651_v43 = vld [vmem:[%s2751_s25 + $0x2f4] ss:$8 sps:$4 sm:$0xff]  }
  0xf3   : > { %1412 = vmatmul.mubr.bf16.gmra.mrb[96].mxu0 %v2613_v44  ;;  %1798 = vmatmul.mubr.bf16.gmra.mrb[96].mxu1 %v2614_v45  ;;  %v2653_v44 = vld [vmem:[%s2751_s25 + $0x3f4] ss:$8 sps:$4 sm:$0xff]  }
  0xf4   : > { %2339 = vmatprep.mubr.msk.bf16.mxu0 %vm462_vm0, %v2615_v46  ;;  %2419 = vmatprep.mubr.msk.bf16.mxu1 %vm462_vm0, %v2617_v47 }
  0xfb   : > { %1420 = vmatmul.mubr.bf16.gmra.mrb[100].mxu0 %v2619_v48  ;;  %1806 = vmatmul.mubr.bf16.gmra.mrb[100].mxu1 %v2620_v49 }
  0xfc   : > { %2340 = vmatprep.mubr.msk.bf16.mxu0 %vm462_vm0, %v2621_v50  ;;  %2420 = vmatprep.mubr.msk.bf16.mxu1 %vm462_vm0, %v2623_v51 }
 0x103   : > { %1428 = vmatmul.mubr.bf16.gmra.mrb[104].mxu0 %v2625_v52  ;;  %1814 = vmatmul.mubr.bf16.gmra.mrb[104].mxu1 %v2626_v53  ;;  %v2655_v53 = vld [vmem:[%s2751_s25 + $0x2f0] ss:$8 sps:$4 sm:$0xff]  }
 0x104   : > { %2341 = vmatprep.mubr.msk.bf16.mxu0 %vm462_vm0, %v2627_v54  ;;  %2421 = vmatprep.mubr.msk.bf16.mxu1 %vm462_vm0, %v2629_v55  ;;  %v2656_v54 = vld [vmem:[%s2751_s25 + $0x3f0] ss:$8 sps:$4 sm:$0xff]  }
 0x106   : > { %v3011_v56 = vpop.f32.mrb[0].mxu0  ;;  %v3013_v57 = vpop.f32.mrb[0].mxu1 }
 0x107   : > { %v547_v59 = vpop.f32.mrb[1].mxu0  ;;  %v933_v60 = vpop.f32.mrb[1].mxu1 }
 0x108   : > { %v3019_v63 = vpop.f32.mrb[2].mxu0  ;;  %v3021_v0 = vpop.f32.mrb[2].mxu1 }
 0x109   : > { %v550_v4 = vpop.f32.mrb[3].mxu0  ;;  %v936_v5 = vpop.f32.mrb[3].mxu1 }
 0x10b   : > { %1436 = vmatmul.mubr.bf16.gmra.mrb[108].mxu0 %v2631_v61  ;;  %1822 = vmatmul.mubr.bf16.gmra.mrb[108].mxu1 %v2632_v62 }
 0x10c   : > { %2342 = vmatprep.mubr.msk.bf16.mxu0 %vm462_vm0, %v2633_v1  ;;  %2422 = vmatprep.mubr.msk.bf16.mxu1 %vm462_vm0, %v2635_v2 }
 0x10e   : > { %v3029_v6 = vpop.f32.mrb[4].mxu0  ;;  %v3031_v7 = vpop.f32.mrb[4].mxu1 }
 0x10f   : > { %v555_v9 = vpop.f32.mrb[5].mxu0  ;;  %v941_v10 = vpop.f32.mrb[5].mxu1 }
 0x110   : > { %v3037_v13 = vpop.f32.mrb[6].mxu0  ;;  %v3039_v14 = vpop.f32.mrb[6].mxu1 }
 0x111   : > { %v558_v18 = vpop.f32.mrb[7].mxu0  ;;  %v944_v19 = vpop.f32.mrb[7].mxu1 }
 0x113   : > { %1444 = vmatmul.mubr.bf16.gmra.mrb[112].mxu0 %v2637_v11  ;;  %1830 = vmatmul.mubr.bf16.gmra.mrb[112].mxu1 %v2638_v12 }
 0x114   : > { %2343 = vmatprep.mubr.msk.bf16.mxu0 %vm462_vm0, %v2639_v15  ;;  %2423 = vmatprep.mubr.msk.bf16.mxu1 %vm462_vm0, %v2641_v16 }
 0x116   : > { %v3047_v20 = vpop.f32.mrb[8].mxu0  ;;  %v3049_v21 = vpop.f32.mrb[8].mxu1 }
 0x117   : > { %v563_v23 = vpop.f32.mrb[9].mxu0  ;;  %v949_v24 = vpop.f32.mrb[9].mxu1 }
 0x118   : > { %v3055_v27 = vpop.f32.mrb[10].mxu0  ;;  %v3057_v28 = vpop.f32.mrb[10].mxu1 }
 0x119   : > { %v566_v32 = vpop.f32.mrb[11].mxu0  ;;  %v952_v33 = vpop.f32.mrb[11].mxu1 }
 0x11b   : > { %1452 = vmatmul.mubr.bf16.gmra.mrb[116].mxu0 %v2643_v25  ;;  %1838 = vmatmul.mubr.bf16.gmra.mrb[116].mxu1 %v2644_v26 }
 0x11c   : > { %2344 = vmatprep.mubr.msk.bf16.mxu0 %vm462_vm0, %v2645_v29  ;;  %2424 = vmatprep.mubr.msk.bf16.mxu1 %vm462_vm0, %v2647_v30 }
 0x11e   : > { %v3065_v34 = vpop.f32.mrb[12].mxu0  ;;  %v3067_v35 = vpop.f32.mrb[12].mxu1 }
 0x11f   : > { %v571_v37 = vpop.f32.mrb[13].mxu0  ;;  %v957_v38 = vpop.f32.mrb[13].mxu1 }
 0x120   : > { %v3073_v41 = vpop.f32.mrb[14].mxu0  ;;  %v3075_v42 = vpop.f32.mrb[14].mxu1 }
 0x121   : > { %v574_v46 = vpop.f32.mrb[15].mxu0  ;;  %v960_v47 = vpop.f32.mrb[15].mxu1 }
 0x123   : > { %1460 = vmatmul.mubr.bf16.gmra.mrb[120].mxu0 %v2649_v39  ;;  %1846 = vmatmul.mubr.bf16.gmra.mrb[120].mxu1 %v2650_v40 }
 0x124   : > { %2345 = vmatprep.mubr.msk.bf16.mxu0 %vm462_vm0, %v2651_v43  ;;  %2425 = vmatprep.mubr.msk.bf16.mxu1 %vm462_vm0, %v2653_v44 }
 0x126   : > { %v3083_v48 = vpop.f32.mrb[16].mxu0  ;;  %v3085_v49 = vpop.f32.mrb[16].mxu1 }
 0x127   : > { %v579_v51 = vpop.f32.mrb[17].mxu0  ;;  %v965_v52 = vpop.f32.mrb[17].mxu1 }
 0x128   : > { %v3091_v55 = vpop.f32.mrb[18].mxu0  ;;  %v3093_v59 = vpop.f32.mrb[18].mxu1 }
 0x129   : > { %v582_v61 = vpop.f32.mrb[19].mxu0  ;;  %v968_v62 = vpop.f32.mrb[19].mxu1 }
 0x12b   : > { %1468 = vmatmul.mubr.bf16.gmra.mrb[124].mxu0 %v2655_v53  ;;  %1854 = vmatmul.mubr.bf16.gmra.mrb[124].mxu1 %v2656_v54 }
 0x12e   : > { %v3097_v1 = vpop.f32.mrb[20].mxu0  ;;  %v3099_v2 = vpop.f32.mrb[20].mxu1 }
 0x12f   : > { %v587_v5 = vpop.f32.mrb[21].mxu0  ;;  %v973_v9 = vpop.f32.mrb[21].mxu1 }
 0x130   : > { %v3103_v10 = vpop.f32.mrb[22].mxu0  ;;  %v3105_v11 = vpop.f32.mrb[22].mxu1 }
 0x131   : > { %v590_v15 = vpop.f32.mrb[23].mxu0  ;;  %v976_v16 = vpop.f32.mrb[23].mxu1 }
 0x136   : > { %v3109_v18 = vpop.f32.mrb[24].mxu0  ;;  %v3111_v19 = vpop.f32.mrb[24].mxu1 }
 0x137   : > { %v595_v24 = vpop.f32.mrb[25].mxu0  ;;  %v981_v25 = vpop.f32.mrb[25].mxu1 }
 0x138   : > { %v3115_v26 = vpop.f32.mrb[26].mxu0  ;;  %v3117_v29 = vpop.f32.mrb[26].mxu1 }
 0x139   : > { %v598_v32 = vpop.f32.mrb[27].mxu0  ;;  %v984_v33 = vpop.f32.mrb[27].mxu1 }
 0x13e   : > { %v3121_v37 = vpop.f32.mrb[28].mxu0  ;;  %v3123_v38 = vpop.f32.mrb[28].mxu1 }
 0x13f   : > { %v603_v40 = vpop.f32.mrb[29].mxu0  ;;  %v989_v43 = vpop.f32.mrb[29].mxu1 }
 0x140   : > { %v3127_v44 = vpop.f32.mrb[30].mxu0  ;;  %v3129_v46 = vpop.f32.mrb[30].mxu1 }
 0x141   : > { %v606_v51 = vpop.f32.mrb[31].mxu0  ;;  %v992_v52 = vpop.f32.mrb[31].mxu1 }
 0x146   : > { %v3133_v53 = vpop.f32.mrb[32].mxu0  ;;  %v3135_v54 = vpop.f32.mrb[32].mxu1 }
 0x147   : > { %v611_v62 = vpop.f32.mrb[33].mxu0  ;;  %v997_v5 = vpop.f32.mrb[33].mxu1 }
 0x148   : > { %v3139_v9 = vpop.f32.mrb[34].mxu0  ;;  %v3141_v15 = vpop.f32.mrb[34].mxu1 }
 0x149   : > { %v614_v24 = vpop.f32.mrb[35].mxu0  ;;  %v1000_v25 = vpop.f32.mrb[35].mxu1 }
 0x14e   : > { %v3145_v32 = vpop.f32.mrb[36].mxu0  ;;  %v3147_v33 = vpop.f32.mrb[36].mxu1 }
 0x14f   : > { %v619_v43 = vpop.f32.mrb[37].mxu0  ;;  %v1005_v51 = vpop.f32.mrb[37].mxu1 }
 0x150   : > { %v3151_v52 = vpop.f32.mrb[38].mxu0  ;;  %v3153_v62 = vpop.f32.mrb[38].mxu1 }
 0x151   : > { %v622_v61 = vpop.f32.mrb[39].mxu0  ;;  %v1008_v16 = vpop.f32.mrb[39].mxu1 }
 0x156   : > { %v3157_v24 = vpop.f32.mrb[40].mxu0  ;;  %v3159_v25 = vpop.f32.mrb[40].mxu1 }
 0x157   : > { %v627_v39 = vpop.f32.mrb[41].mxu0  ;;  %v1013_v40 = vpop.f32.mrb[41].mxu1 }
 0x158   : > { %v3163_v43 = vpop.f32.mrb[42].mxu0  ;;  %v3165_v51 = vpop.f32.mrb[42].mxu1 }
 0x159   : > { %v630_v23 = vpop.f32.mrb[43].mxu0  ;;  %v1016_v5 = vpop.f32.mrb[43].mxu1 }
 0x15e   : > { %v3169_v61 = vpop.f32.mrb[44].mxu0  ;;  %v3171_v16 = vpop.f32.mrb[44].mxu1 }
 0x15f   : > { %v635_v4 = vpop.f32.mrb[45].mxu0  ;;  %v1021_v47 = vpop.f32.mrb[45].mxu1 }
 0x160   : > { %v3175_v39 = vpop.f32.mrb[46].mxu0  ;;  %v3177_v40 = vpop.f32.mrb[46].mxu1 }
 0x161   : > { %v638_v50 = vpop.f32.mrb[47].mxu0  ;;  %v1024_v30 = vpop.f32.mrb[47].mxu1 }
 0x166   : > { %v3181_v23 = vpop.f32.mrb[48].mxu0  ;;  %v3183_v5 = vpop.f32.mrb[48].mxu1 }
 0x167   : > { %3459 = vst [vmem:[#allocation2_spill] sm:$0xff] %v3183_v5  ;;  %v643_v36 = vpop.f32.mrb[49].mxu0  ;;  %v1029_v12 = vpop.f32.mrb[49].mxu1 }
 0x168   : > { %v3187_v4 = vpop.f32.mrb[50].mxu0  ;;  %v3189_v47 = vpop.f32.mrb[50].mxu1 }
 0x169   : > { %3460 = vst [vmem:[#allocation3_spill] sm:$0xff] %v3187_v4  ;;  %3461 = vst [vmem:[#allocation4_spill] sm:$0xff] %v3189_v47  ;;  %v646_v22 = vpop.f32.mrb[51].mxu0  ;;  %v1032_v60 = vpop.f32.mrb[51].mxu1 }
 0x16e   : > { %v3193_v50 = vpop.f32.mrb[52].mxu0  ;;  %v3195_v30 = vpop.f32.mrb[52].mxu1 }
 0x16f   : > { %3462 = vst [vmem:[#allocation5_spill] sm:$0xff] %v3193_v50  ;;  %3463 = vst [vmem:[#allocation6_spill] sm:$0xff] %v3195_v30  ;;  %v651_v8 = vpop.f32.mrb[53].mxu0  ;;  %v1037_v45 = vpop.f32.mrb[53].mxu1 }
 0x170   : > { %v3199_v36 = vpop.f32.mrb[54].mxu0  ;;  %v3201_v12 = vpop.f32.mrb[54].mxu1 }
 0x171   : > { %3464 = vst [vmem:[#allocation7_spill] sm:$0xff] %v3199_v36  ;;  %3465 = vst [vmem:[#allocation8_spill] sm:$0xff] %v3201_v12  ;;  %v654_v58 = vpop.f32.mrb[55].mxu0  ;;  %v1040_v31 = vpop.f32.mrb[55].mxu1  ;;  %v3232_v12 = vld [vmem:[%s3443_s2] ss:$0 sm:$0xff] }
 0x176   : > { %v3205_v22 = vpop.f32.mrb[56].mxu0  ;;  %v3207_v60 = vpop.f32.mrb[56].mxu1 }
 0x177   : > { %3466 = vst [vmem:[#allocation9_spill] sm:$0xff] %v3205_v22  ;;  %3467 = vst [vmem:[#allocation10_spill] sm:$0xff] %v3207_v60  ;;  %v659_v4 = vpop.f32.mrb[57].mxu0  ;;  %v1045_v17 = vpop.f32.mrb[57].mxu1 }
 0x178   : > { %v3211_v8 = vpop.f32.mrb[58].mxu0  ;;  %v3213_v45 = vpop.f32.mrb[58].mxu1 }
 0x179   : > { %3468 = vst [vmem:[#allocation11_spill] sm:$0xff] %v3211_v8  ;;  %3469 = vst [vmem:[#allocation12_spill] sm:$0xff] %v3213_v45  ;;  %v662_v50 = vpop.f32.mrb[59].mxu0  ;;  %v1048_v3 = vpop.f32.mrb[59].mxu1 }
 0x17e   : > { %v3217_v58 = vpop.f32.mrb[60].mxu0  ;;  %v3219_v31 = vpop.f32.mrb[60].mxu1 }
 0x17f   : > { %3470 = vst [vmem:[#allocation13_spill] sm:$0xff] %v3217_v58  ;;  %3471 = vst [vmem:[#allocation14_spill] sm:$0xff] %v3219_v31  ;;  %v667_v47 = vpop.f32.mrb[61].mxu0  ;;  %v1053_v4 = vpop.f32.mrb[61].mxu1  ;;  %v3473_v31 = vmax.f32 %v3011_v56, %v3013_v57 }
 0x180   : > { %v3223_v17 = vpop.f32.mrb[62].mxu0  ;;  %v3225_v60 = vpop.f32.mrb[62].mxu1 }
 0x181   : > { %3472 = vst [vmem:[#allocation15_spill] sm:$0xff] %v3225_v60  ;;  %v670_v30 = vpop.f32.mrb[63].mxu0  ;;  %v1056_v50 = vpop.f32.mrb[63].mxu1 }
 0x186   : > { %v1349_v3 = vpop.f32.mrb[64].mxu0  ;;  %v1735_v45 = vpop.f32.mrb[64].mxu1 }
 0x187   : > { %v1862_v8 = vmax.f32 %v1349_v3, %v1735_v45  ;;  %v1351_v36 = vpop.f32.mrb[65].mxu0  ;;  %v1737_v5 = vpop.f32.mrb[65].mxu1 }
 0x188   : > { %v1352_v47 = vpop.f32.mrb[66].mxu0  ;;  %v1738_v4 = vpop.f32.mrb[66].mxu1  ;;  %v3474_v5 = vmax.f32 %v3019_v63, %v3021_v0 }
 0x189   : > { %v1894_v58 = vmax.f32 %v3473_v31, %v1862_v8  ;;  %v1863_v22 = vmax.f32 %v1352_v47, %v1738_v4  ;;  %v1354_v30 = vpop.f32.mrb[67].mxu0  ;;  %v1740_v50 = vpop.f32.mrb[67].mxu1  ;;  %v3475_v47 = vmax.f32 %v3029_v6, %v3031_v7 }
 0x18b   : > { %v1933_v60 = vadd.f32 %v3232_v12, %v1894_v58  ;;  %v1895_v36 = vmax.f32 %v3474_v5, %v1863_v22 }
 0x18d   : > { %v1965_v45 = vmax.f32 %v1933_v60, 0.0  ;;  %v1934_v56 = vadd.f32 %v3232_v12, %v1895_v36  ;;  %v3476_v36 = vmax.f32 %v3037_v13, %v3039_v14  ;;  %v3477_v13 = vmax.f32 %v3047_v20, %v3049_v21 }
 0x18e   : > { %v1357_v57 = vpop.f32.mrb[68].mxu0  ;;  %v1743_v8 = vpop.f32.mrb[68].mxu1 }
 0x18f   : > { %1998 = vst.msk [vmem:[%s3245_s20] sm:$0xff] %vm1997_vm1, %v1965_v45  ;;  %v1966_v58 = vmax.f32 %v1934_v56, 0.0  ;;  %v1864_v31 = vmax.f32 %v1357_v57, %v1743_v8  ;;  %v1359_v63 = vpop.f32.mrb[69].mxu0  ;;  %v1745_v0 = vpop.f32.mrb[69].mxu1 }
 0x190   : > { %v1360_v22 = vpop.f32.mrb[70].mxu0  ;;  %v1746_v3 = vpop.f32.mrb[70].mxu1 }
 0x191   : > { %1999 = vst.msk [vmem:[%s3245_s20 + $0x8] sm:$0xff] %vm1997_vm1, %v1966_v58  ;;  %v1896_v4 = vmax.f32 %v3475_v47, %v1864_v31  ;;  %v1865_v60 = vmax.f32 %v1360_v22, %v1746_v3  ;;  %v1362_v30 = vpop.f32.mrb[71].mxu0  ;;  %v1748_v50 = vpop.f32.mrb[71].mxu1 }
 0x192   : > { %v3478_v30 = vmax.f32 %v3055_v27, %v3057_v28  ;;  %v3479_v27 = vmax.f32 %v3065_v34, %v3067_v35 }
 0x193   : > { %v1935_v5 = vadd.f32 %v3232_v12, %v1896_v4  ;;  %v1897_v45 = vmax.f32 %v3476_v36, %v1865_v60 }
 0x195   : > { %v1967_v56 = vmax.f32 %v1935_v5, 0.0  ;;  %v1936_v57 = vadd.f32 %v3232_v12, %v1897_v45 }
 0x196   : > { %v1365_v8 = vpop.f32.mrb[72].mxu0  ;;  %v1751_v63 = vpop.f32.mrb[72].mxu1 }
 0x197   : > { %2000 = vst.msk [vmem:[%s3245_s20 + $0x10] sm:$0xff] %vm1997_vm1, %v1967_v56  ;;  %v1968_v58 = vmax.f32 %v1936_v57, 0.0  ;;  %v1866_v6 = vmax.f32 %v1365_v8, %v1751_v63  ;;  %v1367_v7 = vpop.f32.mrb[73].mxu0  ;;  %v1753_v31 = vpop.f32.mrb[73].mxu1 }
 0x198   : > { %v1368_v0 = vpop.f32.mrb[74].mxu0  ;;  %v1754_v22 = vpop.f32.mrb[74].mxu1 }
 0x199   : > { %2001 = vst.msk [vmem:[%s3245_s20 + $0x18] sm:$0xff] %vm1997_vm1, %v1968_v58  ;;  %v1898_v14 = vmax.f32 %v3477_v13, %v1866_v6  ;;  %v1867_v3 = vmax.f32 %v1368_v0, %v1754_v22  ;;  %v1370_v47 = vpop.f32.mrb[75].mxu0  ;;  %v1756_v4 = vpop.f32.mrb[75].mxu1  ;;  %v3480_v22 = vmax.f32 %v3073_v41, %v3075_v42  ;;  %v3481_v41 = vmax.f32 %v3083_v48, %v3085_v49 }
 0x19b   : > { %v1937_v60 = vadd.f32 %v3232_v12, %v1898_v14  ;;  %v1899_v50 = vmax.f32 %v3478_v30, %v1867_v3 }
 0x19d   : > { %v1969_v5 = vmax.f32 %v1937_v60, 0.0  ;;  %v1938_v36 = vadd.f32 %v3232_v12, %v1899_v50 }
 0x19e   : > { %v1373_v45 = vpop.f32.mrb[76].mxu0  ;;  %v1759_v56 = vpop.f32.mrb[76].mxu1 }
 0x19f   : > { %2002 = vst.msk [vmem:[%s3245_s20 + $0x20] sm:$0xff] %vm1997_vm1, %v1969_v5  ;;  %v1970_v57 = vmax.f32 %v1938_v36, 0.0  ;;  %v1868_v20 = vmax.f32 %v1373_v45, %v1759_v56  ;;  %v1375_v21 = vpop.f32.mrb[77].mxu0  ;;  %v1761_v8 = vpop.f32.mrb[77].mxu1 }
 0x1a0   : > { %v1376_v63 = vpop.f32.mrb[78].mxu0  ;;  %v1762_v58 = vpop.f32.mrb[78].mxu1 }
 0x1a1   : > { %2003 = vst.msk [vmem:[%s3245_s20 + $0x28] sm:$0xff] %vm1997_vm1, %v1970_v57  ;;  %v1900_v28 = vmax.f32 %v3479_v27, %v1868_v20  ;;  %v1869_v6 = vmax.f32 %v1376_v63, %v1762_v58  ;;  %v1378_v7 = vpop.f32.mrb[79].mxu0  ;;  %v1764_v31 = vpop.f32.mrb[79].mxu1  ;;  %v3482_v20 = vmax.f32 %v3091_v55, %v3093_v59  ;;  %v3483_v55 = vmax.f32 %v3097_v1, %v3099_v2 }
 0x1a3   : > { %v1939_v0 = vadd.f32 %v3232_v12, %v1900_v28  ;;  %v1901_v13 = vmax.f32 %v3480_v22, %v1869_v6 }
 0x1a5   : > { %v1971_v14 = vmax.f32 %v1939_v0, 0.0  ;;  %v1940_v3 = vadd.f32 %v3232_v12, %v1901_v13 }
 0x1a6   : > { %v1381_v47 = vpop.f32.mrb[80].mxu0  ;;  %v1767_v4 = vpop.f32.mrb[80].mxu1 }
 0x1a7   : > { %2004 = vst.msk [vmem:[%s3245_s20 + $0x30] sm:$0xff] %vm1997_vm1, %v1971_v14  ;;  %v1972_v60 = vmax.f32 %v1940_v3, 0.0  ;;  %v1870_v34 = vmax.f32 %v1381_v47, %v1767_v4  ;;  %v1383_v35 = vpop.f32.mrb[81].mxu0  ;;  %v1769_v30 = vpop.f32.mrb[81].mxu1  ;;  %v3484_v3 = vmax.f32 %v3103_v10, %v3105_v11  ;;  %v3485_v10 = vmax.f32 %v3109_v18, %v3111_v19 }
 0x1a8   : > { %v1384_v50 = vpop.f32.mrb[82].mxu0  ;;  %v1770_v5 = vpop.f32.mrb[82].mxu1 }
 0x1a9   : > { %2005 = vst.msk [vmem:[%s3245_s20 + $0x38] sm:$0xff] %vm1997_vm1, %v1972_v60  ;;  %v1902_v42 = vmax.f32 %v3481_v41, %v1870_v34  ;;  %v1871_v36 = vmax.f32 %v1384_v50, %v1770_v5  ;;  %v1386_v45 = vpop.f32.mrb[83].mxu0  ;;  %v1772_v56 = vpop.f32.mrb[83].mxu1 }
 0x1ab   : > { %v1941_v57 = vadd.f32 %v3232_v12, %v1902_v42  ;;  %v1903_v21 = vmax.f32 %v3482_v20, %v1871_v36 }
 0x1ad   : > { %v1973_v8 = vmax.f32 %v1941_v57, 0.0  ;;  %v1942_v63 = vadd.f32 %v3232_v12, %v1903_v21  ;;  %v3486_v57 = vmax.f32 %v3115_v26, %v3117_v29  ;;  %v3487_v26 = vmax.f32 %v3121_v37, %v3123_v38 }
 0x1ae   : > { %v1389_v58 = vpop.f32.mrb[84].mxu0  ;;  %v1775_v27 = vpop.f32.mrb[84].mxu1 }
 0x1af   : > { %2006 = vst.msk [vmem:[%s3245_s20 + $0x40] sm:$0xff] %vm1997_vm1, %v1973_v8  ;;  %v1974_v28 = vmax.f32 %v1942_v63, 0.0  ;;  %v1872_v48 = vmax.f32 %v1389_v58, %v1775_v27  ;;  %v1391_v49 = vpop.f32.mrb[85].mxu0  ;;  %v1777_v6 = vpop.f32.mrb[85].mxu1 }
 0x1b0   : > { %v1392_v7 = vpop.f32.mrb[86].mxu0  ;;  %v1778_v31 = vpop.f32.mrb[86].mxu1 }
 0x1b1   : > { %2007 = vst.msk [vmem:[%s3245_s20 + $0x48] sm:$0xff] %vm1997_vm1, %v1974_v28  ;;  %v1904_v59 = vmax.f32 %v3483_v55, %v1872_v48  ;;  %v1873_v0 = vmax.f32 %v1392_v7, %v1778_v31  ;;  %v1394_v22 = vpop.f32.mrb[87].mxu0  ;;  %v1780_v13 = vpop.f32.mrb[87].mxu1 }
 0x1b3   : > { %v1943_v14 = vadd.f32 %v3232_v12, %v1904_v59  ;;  %v1905_v47 = vmax.f32 %v3484_v3, %v1873_v0  ;;  %v3488_v59 = vmax.f32 %v3127_v44, %v3129_v46  ;;  %v3489_v44 = vmax.f32 %v3133_v53, %v3135_v54 }
 0x1b5   : > { %v1975_v4 = vmax.f32 %v1943_v14, 0.0  ;;  %v1944_v60 = vadd.f32 %v3232_v12, %v1905_v47 }
 0x1b6   : > { %v1397_v34 = vpop.f32.mrb[88].mxu0  ;;  %v1783_v35 = vpop.f32.mrb[88].mxu1 }
 0x1b7   : > { %2008 = vst.msk [vmem:[%s3245_s20 + $0x50] sm:$0xff] %vm1997_vm1, %v1975_v4  ;;  %v1976_v30 = vmax.f32 %v1944_v60, 0.0  ;;  %v1874_v1 = vmax.f32 %v1397_v34, %v1783_v35  ;;  %v1399_v2 = vpop.f32.mrb[89].mxu0  ;;  %v1785_v50 = vpop.f32.mrb[89].mxu1 }
 0x1b8   : > { %v1400_v5 = vpop.f32.mrb[90].mxu0  ;;  %v1786_v41 = vpop.f32.mrb[90].mxu1  ;;  %v3490_v50 = vmax.f32 %v3139_v9, %v3141_v15  ;;  %v3491_v9 = vmax.f32 %v3145_v32, %v3147_v33 }
 0x1b9   : > { %2009 = vst.msk [vmem:[%s3245_s20 + $0x58] sm:$0xff] %vm1997_vm1, %v1976_v30  ;;  %v1906_v11 = vmax.f32 %v3485_v10, %v1874_v1  ;;  %v1875_v42 = vmax.f32 %v1400_v5, %v1786_v41  ;;  %v1402_v36 = vpop.f32.mrb[91].mxu0  ;;  %v1788_v45 = vpop.f32.mrb[91].mxu1 }
 0x1bb   : > { %v1945_v56 = vadd.f32 %v3232_v12, %v1906_v11  ;;  %v1907_v20 = vmax.f32 %v3486_v57, %v1875_v42 }
 0x1bd   : > { %v1977_v21 = vmax.f32 %v1945_v56, 0.0  ;;  %v1946_v8 = vadd.f32 %v3232_v12, %v1907_v20 }
 0x1be   : > { %v1405_v63 = vpop.f32.mrb[92].mxu0  ;;  %v1791_v58 = vpop.f32.mrb[92].mxu1 }
 0x1bf   : > { %2010 = vst.msk [vmem:[%s3245_s20 + $0x60] sm:$0xff] %vm1997_vm1, %v1977_v21  ;;  %v1978_v27 = vmax.f32 %v1946_v8, 0.0  ;;  %v1876_v18 = vmax.f32 %v1405_v63, %v1791_v58  ;;  %v1407_v19 = vpop.f32.mrb[93].mxu0  ;;  %v1793_v28 = vpop.f32.mrb[93].mxu1  ;;  %v3492_v58 = vmax.f32 %v3151_v52, %v3153_v62  ;;  %v3493_v52 = vmax.f32 %v3157_v24, %v3159_v25 }
 0x1c0   : > { %v1408_v48 = vpop.f32.mrb[94].mxu0  ;;  %v1794_v49 = vpop.f32.mrb[94].mxu1 }
 0x1c1   : > { %2011 = vst.msk [vmem:[%s3245_s20 + $0x68] sm:$0xff] %vm1997_vm1, %v1978_v27  ;;  %v1908_v29 = vmax.f32 %v3487_v26, %v1876_v18  ;;  %v1877_v6 = vmax.f32 %v1408_v48, %v1794_v49  ;;  %v1410_v7 = vpop.f32.mrb[95].mxu0  ;;  %v1796_v31 = vpop.f32.mrb[95].mxu1 }
 0x1c3   : > { %v1947_v55 = vadd.f32 %v3232_v12, %v1908_v29  ;;  %v1909_v0 = vmax.f32 %v3488_v59, %v1877_v6 }
 0x1c5   : > { %v1979_v22 = vmax.f32 %v1947_v55, 0.0  ;;  %v1948_v13 = vadd.f32 %v3232_v12, %v1909_v0  ;;  %v3494_v0 = vmax.f32 %v3163_v43, %v3165_v51  ;;  %v3495_v43 = vmax.f32 %v3169_v61, %v3171_v16 }
 0x1c6   : > { %v1413_v14 = vpop.f32.mrb[96].mxu0  ;;  %v1799_v3 = vpop.f32.mrb[96].mxu1 }
 0x1c7   : > { %2012 = vst.msk [vmem:[%s3245_s20 + $0x70] sm:$0xff] %vm1997_vm1, %v1979_v22  ;;  %v1980_v47 = vmax.f32 %v1948_v13, 0.0  ;;  %v1878_v37 = vmax.f32 %v1413_v14, %v1799_v3  ;;  %v1415_v38 = vpop.f32.mrb[97].mxu0  ;;  %v1801_v4 = vpop.f32.mrb[97].mxu1 }
 0x1c8   : > { %v1416_v60 = vpop.f32.mrb[98].mxu0  ;;  %v1802_v34 = vpop.f32.mrb[98].mxu1 }
 0x1c9   : > { %2013 = vst.msk [vmem:[%s3245_s20 + $0x78] sm:$0xff] %vm1997_vm1, %v1980_v47  ;;  %v1910_v46 = vmax.f32 %v3489_v44, %v1878_v37  ;;  %v1879_v35 = vmax.f32 %v1416_v60, %v1802_v34  ;;  %v1418_v30 = vpop.f32.mrb[99].mxu0  ;;  %v1804_v1 = vpop.f32.mrb[99].mxu1 }
 0x1ca   : > { %v3496_v30 = vmax.f32 %v3175_v39, %v3177_v40 }
 0x1cb   : > { %v1949_v2 = vadd.f32 %v3232_v12, %v1910_v46  ;;  %v1911_v5 = vmax.f32 %v3490_v50, %v1879_v35 }
 0x1cd   : > { %v1981_v41 = vmax.f32 %v1949_v2, 0.0  ;;  %v1950_v10 = vadd.f32 %v3232_v12, %v1911_v5 }
 0x1ce   : > { %v1421_v11 = vpop.f32.mrb[100].mxu0  ;;  %v1807_v42 = vpop.f32.mrb[100].mxu1 }
 0x1cf   : > { %2014 = vst.msk [vmem:[%s3245_s20 + $0x80] sm:$0xff] %vm1997_vm1, %v1981_v41  ;;  %v1982_v36 = vmax.f32 %v1950_v10, 0.0  ;;  %v1880_v53 = vmax.f32 %v1421_v11, %v1807_v42  ;;  %v1423_v54 = vpop.f32.mrb[101].mxu0  ;;  %v1809_v45 = vpop.f32.mrb[101].mxu1 }
 0x1d0   : > { %v1424_v56 = vpop.f32.mrb[102].mxu0  ;;  %v1810_v57 = vpop.f32.mrb[102].mxu1 }
 0x1d1   : > { %2015 = vst.msk [vmem:[%s3245_s20 + $0x88] sm:$0xff] %vm1997_vm1, %v1982_v36  ;;  %v1912_v15 = vmax.f32 %v3491_v9, %v1880_v53  ;;  %v1881_v20 = vmax.f32 %v1424_v56, %v1810_v57  ;;  %v1426_v21 = vpop.f32.mrb[103].mxu0  ;;  %v1812_v8 = vpop.f32.mrb[103].mxu1  ;;  %v3497_v53 = vld [vmem:[#allocation2_spill] sm:$0xff]  ;;  %v3499_v9 = vld [vmem:[#allocation3_spill] sm:$0xff] }
 0x1d2   : > { %v3498_v39 = vmax.f32 %v3181_v23, %v3497_v53 }
 0x1d3   : > { %v1951_v63 = vadd.f32 %v3232_v12, %v1912_v15  ;;  %v1913_v27 = vmax.f32 %v3492_v58, %v1881_v20  ;;  %v3500_v15 = vld [vmem:[#allocation4_spill] sm:$0xff] }
 0x1d4   : > { %v3501_v20 = vmax.f32 %v3499_v9, %v3500_v15 }
 0x1d5   : > { %v1983_v18 = vmax.f32 %v1951_v63, 0.0  ;;  %v1952_v19 = vadd.f32 %v3232_v12, %v1913_v27 }
 0x1d6   : > { %v1429_v28 = vpop.f32.mrb[104].mxu0  ;;  %v1815_v48 = vpop.f32.mrb[104].mxu1 }
 0x1d7   : > { %2016 = vst.msk [vmem:[%s3245_s20 + $0x90] sm:$0xff] %vm1997_vm1, %v1983_v18  ;;  %v1984_v49 = vmax.f32 %v1952_v19, 0.0  ;;  %v1882_v32 = vmax.f32 %v1429_v28, %v1815_v48  ;;  %v1431_v33 = vpop.f32.mrb[105].mxu0  ;;  %v1817_v26 = vpop.f32.mrb[105].mxu1 }
 0x1d8   : > { %v1432_v29 = vpop.f32.mrb[106].mxu0  ;;  %v1818_v6 = vpop.f32.mrb[106].mxu1  ;;  %v3503_v33 = vld [vmem:[#allocation6_spill] sm:$0xff] }
 0x1d9   : > { %2017 = vst.msk [vmem:[%s3245_s20 + $0x98] sm:$0xff] %vm1997_vm1, %v1984_v49  ;;  %v1914_v62 = vmax.f32 %v3493_v52, %v1882_v32  ;;  %v1883_v7 = vmax.f32 %v1432_v29, %v1818_v6  ;;  %v1434_v31 = vpop.f32.mrb[107].mxu0  ;;  %v1820_v55 = vpop.f32.mrb[107].mxu1  ;;  %v3502_v32 = vld [vmem:[#allocation5_spill] sm:$0xff] }
 0x1da   : > { %v3504_v26 = vmax.f32 %v3502_v32, %v3503_v33  ;;  %v3505_v31 = vld [vmem:[#allocation7_spill] sm:$0xff]  ;;  %v3506_v55 = vld [vmem:[#allocation8_spill] sm:$0xff] }
 0x1db   : > { %v1953_v59 = vadd.f32 %v3232_v12, %v1914_v62  ;;  %v1915_v22 = vmax.f32 %v3494_v0, %v1883_v7 }
 0x1dd   : > { %v1985_v13 = vmax.f32 %v1953_v59, 0.0  ;;  %v1954_v14 = vadd.f32 %v3232_v12, %v1915_v22  ;;  %v3507_v59 = vmax.f32 %v3505_v31, %v3506_v55 }
 0x1de   : > { %v1437_v3 = vpop.f32.mrb[108].mxu0  ;;  %v1823_v47 = vpop.f32.mrb[108].mxu1 }
 0x1df   : > { %2018 = vst.msk [vmem:[%s3245_s20 + $0xa0] sm:$0xff] %vm1997_vm1, %v1985_v13  ;;  %v1986_v37 = vmax.f32 %v1954_v14, 0.0  ;;  %v1884_v24 = vmax.f32 %v1437_v3, %v1823_v47  ;;  %v1439_v25 = vpop.f32.mrb[109].mxu0  ;;  %v1825_v38 = vpop.f32.mrb[109].mxu1 }
 0x1e0   : > { %v1440_v4 = vpop.f32.mrb[110].mxu0  ;;  %v1826_v60 = vpop.f32.mrb[110].mxu1 }
 0x1e1   : > { %2019 = vst.msk [vmem:[%s3245_s20 + $0xa8] sm:$0xff] %vm1997_vm1, %v1986_v37  ;;  %v1916_v51 = vmax.f32 %v3495_v43, %v1884_v24  ;;  %v1885_v34 = vmax.f32 %v1440_v4, %v1826_v60  ;;  %v1442_v44 = vpop.f32.mrb[111].mxu0  ;;  %v1828_v46 = vpop.f32.mrb[111].mxu1  ;;  %v3508_v60 = vld [vmem:[#allocation9_spill] sm:$0xff]  ;;  %v3509_v43 = vld [vmem:[#allocation10_spill] sm:$0xff] }
 0x1e3   : > { %v1955_v35 = vadd.f32 %v3232_v12, %v1916_v51  ;;  %v1917_v1 = vmax.f32 %v3496_v30, %v1885_v34  ;;  %v3510_v51 = vmax.f32 %v3508_v60, %v3509_v43 }
 0x1e5   : > { %v1987_v2 = vmax.f32 %v1955_v35, 0.0  ;;  %v1956_v50 = vadd.f32 %v3232_v12, %v1917_v1  ;;  %v3511_v1 = vld [vmem:[#allocation11_spill] sm:$0xff] }
 0x1e6   : > { %v1445_v5 = vpop.f32.mrb[112].mxu0  ;;  %v1831_v41 = vpop.f32.mrb[112].mxu1 }
 0x1e7   : > { %2020 = vst.msk [vmem:[%s3245_s20 + $0xb0] sm:$0xff] %vm1997_vm1, %v1987_v2  ;;  %v1988_v10 = vmax.f32 %v1956_v50, 0.0  ;;  %v1886_v61 = vmax.f32 %v1445_v5, %v1831_v41  ;;  %v1447_v16 = vpop.f32.mrb[113].mxu0  ;;  %v1833_v11 = vpop.f32.mrb[113].mxu1  ;;  %v3512_v2 = vld [vmem:[#allocation12_spill] sm:$0xff] }
 0x1e8   : > { %v1448_v42 = vpop.f32.mrb[114].mxu0  ;;  %v1834_v36 = vpop.f32.mrb[114].mxu1  ;;  %v3513_v50 = vmax.f32 %v3511_v1, %v3512_v2 }
 0x1e9   : > { %2021 = vst.msk [vmem:[%s3245_s20 + $0xb8] sm:$0xff] %vm1997_vm1, %v1988_v10  ;;  %v1918_v40 = vmax.f32 %v3498_v39, %v1886_v61  ;;  %v1887_v54 = vmax.f32 %v1448_v42, %v1834_v36  ;;  %v1450_v45 = vpop.f32.mrb[115].mxu0  ;;  %v1836_v56 = vpop.f32.mrb[115].mxu1 }
 0x1ea   : > { %v3515_v45 = vld [vmem:[#allocation14_spill] sm:$0xff] }
 0x1eb   : > { %v1957_v57 = vadd.f32 %v3232_v12, %v1918_v40  ;;  %v1919_v21 = vmax.f32 %v3501_v20, %v1887_v54  ;;  %v3514_v54 = vld [vmem:[#allocation13_spill] sm:$0xff] }
 0x1ec   : > { %v3516_v56 = vmax.f32 %v3514_v54, %v3515_v45 }
 0x1ed   : > { %v1989_v8 = vmax.f32 %v1957_v57, 0.0  ;;  %v1958_v63 = vadd.f32 %v3232_v12, %v1919_v21 }
 0x1ee   : > { %v1453_v58 = vpop.f32.mrb[116].mxu0  ;;  %v1839_v27 = vpop.f32.mrb[116].mxu1 }
 0x1ef   : > { %2022 = vst.msk [vmem:[%s3245_s20 + $0xc0] sm:$0xff] %vm1997_vm1, %v1989_v8  ;;  %v1990_v18 = vmax.f32 %v1958_v63, 0.0  ;;  %v1888_v23 = vmax.f32 %v1453_v58, %v1839_v27  ;;  %v1455_v19 = vpop.f32.mrb[117].mxu0  ;;  %v1841_v28 = vpop.f32.mrb[117].mxu1  ;;  %v3517_v8 = vld [vmem:[#allocation15_spill] sm:$0xff] }
 0x1f0   : > { %v1456_v48 = vpop.f32.mrb[118].mxu0  ;;  %v1842_v49 = vpop.f32.mrb[118].mxu1  ;;  %v3518_v63 = vmax.f32 %v3223_v17, %v3517_v8 }
 0x1f1   : > { %2023 = vst.msk [vmem:[%s3245_s20 + $0xc8] sm:$0xff] %vm1997_vm1, %v1990_v18  ;;  %v1920_v29 = vmax.f32 %v3504_v26, %v1888_v23  ;;  %v1889_v6 = vmax.f32 %v1456_v48, %v1842_v49  ;;  %v1458_v52 = vpop.f32.mrb[119].mxu0  ;;  %v1844_v62 = vpop.f32.mrb[119].mxu1 }
 0x1f3   : > { %v1959_v7 = vadd.f32 %v3232_v12, %v1920_v29  ;;  %v1921_v0 = vmax.f32 %v3507_v59, %v1889_v6 }
 0x1f5   : > { %v1991_v22 = vmax.f32 %v1959_v7, 0.0  ;;  %v1960_v13 = vadd.f32 %v3232_v12, %v1921_v0 }
 0x1f6   : > { %v1461_v14 = vpop.f32.mrb[120].mxu0  ;;  %v1847_v3 = vpop.f32.mrb[120].mxu1 }
 0x1f7   : > { %2024 = vst.msk [vmem:[%s3245_s20 + $0xd0] sm:$0xff] %vm1997_vm1, %v1991_v22  ;;  %v1992_v47 = vmax.f32 %v1960_v13, 0.0  ;;  %v1890_v37 = vmax.f32 %v1461_v14, %v1847_v3  ;;  %v1463_v24 = vpop.f32.mrb[121].mxu0  ;;  %v1849_v25 = vpop.f32.mrb[121].mxu1 }
 0x1f8   : > { %v1464_v38 = vpop.f32.mrb[122].mxu0  ;;  %v1850_v4 = vpop.f32.mrb[122].mxu1 }
 0x1f9   : > { %2025 = vst.msk [vmem:[%s3245_s20 + $0xd8] sm:$0xff] %vm1997_vm1, %v1992_v47  ;;  %v1922_v34 = vmax.f32 %v3510_v51, %v1890_v37  ;;  %v1891_v44 = vmax.f32 %v1464_v38, %v1850_v4  ;;  %v1466_v46 = vpop.f32.mrb[123].mxu0  ;;  %v1852_v35 = vpop.f32.mrb[123].mxu1 }
 0x1fb   : > { %v1961_v30 = vadd.f32 %v3232_v12, %v1922_v34  ;;  %v1923_v5 = vmax.f32 %v3513_v50, %v1891_v44 }
 0x1fd   : > { %v1993_v41 = vmax.f32 %v1961_v30, 0.0  ;;  %v1962_v10 = vadd.f32 %v3232_v12, %v1923_v5 }
 0x1fe   : > { %v1469_v61 = vpop.f32.mrb[124].mxu0  ;;  %v1855_v16 = vpop.f32.mrb[124].mxu1 }
 0x1ff   : > { %2026 = vst.msk [vmem:[%s3245_s20 + $0xe0] sm:$0xff] %vm1997_vm1, %v1993_v41  ;;  %v1994_v11 = vmax.f32 %v1962_v10, 0.0  ;;  %v1892_v42 = vmax.f32 %v1469_v61, %v1855_v16  ;;  %v1471_v36 = vpop.f32.mrb[125].mxu0  ;;  %v1857_v53 = vpop.f32.mrb[125].mxu1 }
 0x200   : > { %v1472_v39 = vpop.f32.mrb[126].mxu0  ;;  %v1858_v40 = vpop.f32.mrb[126].mxu1 }
 0x201   : > { %2027 = vst.msk [vmem:[%s3245_s20 + $0xe8] sm:$0xff] %vm1997_vm1, %v1994_v11  ;;  %v1924_v57 = vmax.f32 %v3516_v56, %v1892_v42  ;;  %v1893_v9 = vmax.f32 %v1472_v39, %v1858_v40  ;;  %v1474_v15 = vpop.f32.mrb[127].mxu0  ;;  %v1860_v20 = vpop.f32.mrb[127].mxu1 }
 0x203   : > { %v1963_v21 = vadd.f32 %v3232_v12, %v1924_v57  ;;  %v1925_v58 = vmax.f32 %v3518_v63, %v1893_v9 }
 0x205   : > { %v1995_v27 = vmax.f32 %v1963_v21, 0.0  ;;  %v1964_v18 = vadd.f32 %v3232_v12, %v1925_v58 }
 0x207   : > { %2028 = vst.msk [vmem:[%s3245_s20 + $0xf0] sm:$0xff] %vm1997_vm1, %v1995_v27  ;;  %v1996_v23 = vmax.f32 %v1964_v18, 0.0 }
 0x209   : > { %2029 = vst.msk [vmem:[%s3245_s20 + $0xf8] sm:$0xff] %vm1997_vm1, %v1996_v23 }
 0x20a PF: > { %s13_s14 = sadd.s32 1, %s2679_s14   ;;  %s3519_s12 = smov %s2675_s13 }
 0x20b   : > { %p10_p5 = scmp.ge.s32.totalorder %s13_s14, 4   ;;  %s3520_s13 = smov %s3522_s15 }
 0x20d   :  { %12 = sbr.rel (!%p10_p5) target bundleno = 2 (0x2), region = 65 }

// kernel: adams_cnn_forward.11
= control target key start
LH: loop header
LB: loop body
LE: loop exit
PB: predicated region body
PF: predicated region fallthrough
CT: control target
= control target key end

     0   :  { %s1905_s12 = smov 0   ;;  %s1907_s13 = smov 0   ;;  %s2301_s0 = inlined_call_operand.vmem [shape: bf16[2,4,64,288], index: 0, kind: input, shape index: {}]   ;;  %s2302_s1 = inlined_call_operand.vmem [shape: bf16[288,64], index: 1, kind: input, shape index: {}]   ;;  %s2303_s2 = inlined_call_operand.vmem [shape: f32[1,64], index: 2, kind: input, shape index: {}]   ;;  %s2304_s3 = inlined_call_operand.vmem [shape: f32[2,64,64], index: 3, kind: output, shape index: {}]  }
   0x1   :  { %s1909_s14 = smov 0  }
   0x2 LB: > { %s25_s15 = sadd.s32 1, %s1879_s13  ;;  %p1384_p0 = scmp.ge.s32.totalorder %s1883_s14, 1  ;;  %s1883_s14 = sphi %s1909_s14, %s13_s14   ;;  %s1879_s13 = sphi %s1907_s13, %s2306_s13   ;;  %s1875_s12 = sphi %s1905_s12, %s2305_s12  }
   0x3   : > { %p27_p1 = scmp.ge.s32.totalorder %s25_s15, 2  ;;  %p159_p2 = scmp.lt.s32.totalorder %s1883_s14, 3 }
   0x5   : > { %s2308_s15 = smov (%p27_p1, %s25_s15), 0  ;;  %p160_p3 = pnand %p1384_p0, %p159_p2 }
   0x6   : > { %v1926_v0 = vld [vmem:[%s2302_s1 + $0x40] sm:$0xff] (!%p160_p3)   ;;  %v1938_v2 = vld [vmem:[%s2302_s1 + $0x48] sm:$0xff] (!%p160_p3)   ;;  %p193_p4 = scmp.lt.s32.totalorder (!%p160_p3), %s1875_s12, 1  ;;  %v1952_v4 = vld [vmem:[%s2302_s1 + $0x50] sm:$0xff] (!%p160_p3)   ;;  %vm434_vm0 = vcmask (!%p160_p3), 261120   ;;  %vm1281_vm1 = vcmask (!%p160_p3), 523264  }
   0x7   : > { %163 = sbr.rel (%p160_p3) target bundleno = 355 (0x163), region = 32  ;;  %v1931_v1 = vld [vmem:[%s2302_s1] sm:$0xff] (!%p160_p3)   ;;  %1522 = vmatprep.subr.bf16.mxu0 (!%p160_p3), %v1926_v0  ;;  %1568 = vmatprep.subr.bf16.mxu1 (!%p160_p3), %v1926_v0  ;;  %v1945_v3 = vld [vmem:[%s2302_s1 + $0x8] sm:$0xff] (!%p160_p3)   ;;  %v1961_v5 = vld [vmem:[%s2302_s1 + $0x10] sm:$0xff] (!%p160_p3)  }
   0x8   : > { %1523 = vmatpush3.bf16.msra.mxu0 (!%p160_p3), %v1931_v1  ;;  %1569 = vmatpush3.bf16.msra.mxu1 (!%p160_p3), %v1931_v1  ;;  %v1968_v6 = vld [vmem:[%s2302_s1 + $0x58] sm:$0xff] (!%p160_p3)   ;;  %v1983_v8 = vld [vmem:[%s2302_s1 + $0x60] sm:$0xff] (!%p160_p3)   ;;  %v2002_v10 = vld [vmem:[%s2302_s1 + $0x68] sm:$0xff] (!%p160_p3)  }
   0x9   : > { %1524 = vmatprep.subr.bf16.mxu0 (!%p160_p3), %v1938_v2  ;;  %1570 = vmatprep.subr.bf16.mxu1 (!%p160_p3), %v1938_v2  ;;  %v1976_v7 = vld [vmem:[%s2302_s1 + $0x18] sm:$0xff] (!%p160_p3)   ;;  %v1995_v9 = vld [vmem:[%s2302_s1 + $0x20] sm:$0xff] (!%p160_p3)   ;;  %v2011_v13 = vld [vmem:[%s2302_s1 + $0x28] sm:$0xff] (!%p160_p3)  }
   0xa   : > { %v2018_v14 = vld [vmem:[%s2302_s1 + $0x70] sm:$0xff] (!%p160_p3)   ;;  %v2032_v16 = vld [vmem:[%s2302_s1 + $0x78] sm:$0xff] (!%p160_p3)   ;;  %v2046_v18 = vld [vmem:[%s2302_s1 + $0x80] sm:$0xff] (!%p160_p3)  }
   0xb   : > { %v2025_v15 = vld [vmem:[%s2302_s1 + $0x30] sm:$0xff] (!%p160_p3)   ;;  %v2039_v17 = vld [vmem:[%s2302_s1 + $0x38] sm:$0xff] (!%p160_p3)   ;;  %v2059_v23 = vld [vmem:[%s2302_s1 + $0x88] sm:$0xff] (!%p160_p3)  }
   0xc   : > { %1525 = vmatpush3.bf16.msra.mxu0 (!%p160_p3), %v1945_v3  ;;  %1571 = vmatpush3.bf16.msra.mxu1 (!%p160_p3), %v1945_v3 }
   0xd   : > { %1526 = vmatprep.subr.bf16.mxu0 (!%p160_p3), %v1952_v4  ;;  %1572 = vmatprep.subr.bf16.mxu1 (!%p160_p3), %v1952_v4 }
   0xe   : > { %s2310_s12 = smov (!%p193_p4, %s1875_s12), 1 }
   0xf   : > { %s1754_s30 = smul.u32 384, %s2310_s12  ;;  %s1521_s8 = sshll.u32 %s2310_s12, 6 }
  0x10   : > { %1527 = vmatpush3.bf16.msra.mxu0 %v1961_v5  ;;  %1573 = vmatpush3.bf16.msra.mxu1 %v1961_v5  ;;  %s2256_s11 = scalar_lea.vmem %s2304_s3, %s1521_s8 }
  0x11   : > { %1528 = vmatprep.subr.bf16.mxu0 %v1968_v6  ;;  %1574 = vmatprep.subr.bf16.mxu1 %v1968_v6  ;;  %s1988_s10 = scalar_lea.vmem %s2301_s0, %s1754_s30 }
  0x12   : > { %v1797_v11 = vld [vmem:[%s1988_s10 + $0x4] ss:$12 sps:$4 sm:$0xff]   ;;  %v1795_v19 = vld [vmem:[%s1988_s10] ss:$12 sps:$4 sm:$0xff]   ;;  %v1802_v21 = vld [vmem:[%s1988_s10 + $0x1c] ss:$12 sps:$4 sm:$0xff]  }
  0x13   : > { %v1800_v12 = vld [vmem:[%s1988_s10 + $0x64] ss:$12 sps:$4 sm:$0xff]   ;;  %479 = vmatprep.mubr.bf16.mxu0 %v1797_v11  ;;  %v1798_v20 = vld [vmem:[%s1988_s10 + $0x60] ss:$12 sps:$4 sm:$0xff]   ;;  %v1804_v22 = vld [vmem:[%s1988_s10 + $0x7c] ss:$12 sps:$4 sm:$0xff]  }
  0x14   : > { %1529 = vmatpush3.bf16.msra.mxu0 %v1976_v7  ;;  %1575 = vmatpush3.bf16.msra.mxu1 %v1976_v7  ;;  %v1806_v24 = vld [vmem:[%s1988_s10 + $0x18] ss:$12 sps:$4 sm:$0xff]   ;;  %v1808_v26 = vld [vmem:[%s1988_s10 + $0x34] ss:$12 sps:$4 sm:$0xff]   ;;  %v1812_v28 = vld [vmem:[%s1988_s10 + $0x30] ss:$12 sps:$4 sm:$0xff]  }
  0x15   : > { %1530 = vmatprep.subr.bf16.mxu0 %v1983_v8  ;;  %1576 = vmatprep.subr.bf16.mxu1 %v1983_v8  ;;  %v1807_v25 = vld [vmem:[%s1988_s10 + $0x78] ss:$12 sps:$4 sm:$0xff]   ;;  %v1810_v27 = vld [vmem:[%s1988_s10 + $0x94] ss:$12 sps:$4 sm:$0xff]   ;;  %v1813_v29 = vld [vmem:[%s1988_s10 + $0x90] ss:$12 sps:$4 sm:$0xff]  }
  0x16   : > { %698 = vmatprep.mubr.bf16.mxu1 %v1800_v12  ;;  %v1815_v30 = vld [vmem:[%s1988_s10 + $0x4c] ss:$12 sps:$4 sm:$0xff]   ;;  %v1819_v32 = vld [vmem:[%s1988_s10 + $0x48] ss:$12 sps:$4 sm:$0xff]   ;;  %v1824_v35 = vld [vmem:[%s1988_s10 + $0xc4] ss:$12 sps:$4 sm:$0xff]  }
  0x17   : > { %v1817_v31 = vld [vmem:[%s1988_s10 + $0xac] ss:$12 sps:$4 sm:$0xff]   ;;  %v1820_v33 = vld [vmem:[%s1988_s10 + $0xa8] ss:$12 sps:$4 sm:$0xff]   ;;  %v1829_v40 = vld [vmem:[%s1988_s10 + $0x50] ss:$12 sps:$4 sm:$0xff]  }
  0x18   : > { %1531 = vmatpush3.bf16.msra.mxu0 %v1995_v9  ;;  %1577 = vmatpush3.bf16.msra.mxu1 %v1995_v9  ;;  %v1821_v34 = vld [vmem:[%s1988_s10 + $0x8] ss:$12 sps:$4 sm:$0xff]   ;;  %v1822_v36 = vld [vmem:[%s1988_s10 + $0xc0] ss:$12 sps:$4 sm:$0xff]   ;;  %v1826_v38 = vld [vmem:[%s1988_s10 + $0x38] ss:$12 sps:$4 sm:$0xff]  }
  0x19   : > { %1532 = vmatprep.subr.bf16.mxu0 %v2002_v10  ;;  %1578 = vmatprep.subr.bf16.mxu1 %v2002_v10  ;;  %v1825_v37 = vld [vmem:[%s1988_s10 + $0x20] ss:$12 sps:$4 sm:$0xff]   ;;  %v1827_v39 = vld [vmem:[%s1988_s10 + $0xdc] ss:$12 sps:$4 sm:$0xff]   ;;  %v1830_v41 = vld [vmem:[%s1988_s10 + $0xd8] ss:$12 sps:$4 sm:$0xff]  }
  0x1a   : > { %v1831_v42 = vld [vmem:[%s1988_s10 + $0x68] ss:$12 sps:$4 sm:$0xff]   ;;  %v1834_v44 = vld [vmem:[%s1988_s10 + $0x80] ss:$12 sps:$4 sm:$0xff]   ;;  %v1835_v45 = vld [vmem:[%s1988_s10 + $0xf0] ss:$12 sps:$4 sm:$0xff]  }
  0x1b   : > { %v1832_v43 = vld [vmem:[%s1988_s10 + $0xf4] ss:$12 sps:$4 sm:$0xff]   ;;  %v1836_v46 = vld [vmem:[%s1988_s10 + $0x98] ss:$12 sps:$4 sm:$0xff]   ;;  %v1839_v48 = vld [vmem:[%s1988_s10 + $0xb0] ss:$12 sps:$4 sm:$0xff]  }
  0x1c   : > { %1533 = vmatpush3.bf16.msra.mxu0 %v2011_v13  ;;  %1579 = vmatpush3.bf16.msra.mxu1 %v2011_v13  ;;  %v1837_v47 = vld [vmem:[%s1988_s10 + $0x10c] ss:$12 sps:$4 sm:$0xff]   ;;  %v1840_v49 = vld [vmem:[%s1988_s10 + $0x108] ss:$12 sps:$4 sm:$0xff]   ;;  %v1844_v51 = vld [vmem:[%s1988_s10 + $0x124] ss:$12 sps:$4 sm:$0xff]  }
  0x1d   : > { %1534 = vmatprep.subr.bf16.mxu0 %v2018_v14  ;;  %1580 = vmatprep.subr.bf16.mxu1 %v2018_v14  ;;  %v1841_v50 = vld [vmem:[%s1988_s10 + $0xc8] ss:$12 sps:$4 sm:$0xff]   ;;  %v1842_v52 = vld [vmem:[%s1988_s10 + $0x120] ss:$12 sps:$4 sm:$0xff]   ;;  %v1846_v54 = vld [vmem:[%s1988_s10 + $0xf8] ss:$12 sps:$4 sm:$0xff]  }
  0x1e   : > { %v1845_v53 = vld [vmem:[%s1988_s10 + $0xe0] ss:$12 sps:$4 sm:$0xff]   ;;  %v1847_v55 = vld [vmem:[%s1988_s10 + $0x13c] ss:$12 sps:$4 sm:$0xff]   ;;  %v1850_v57 = vld [vmem:[%s1988_s10 + $0x138] ss:$12 sps:$4 sm:$0xff]  }
  0x1f   : > { %v1849_v56 = vld [vmem:[%s1988_s10 + $0x110] ss:$12 sps:$4 sm:$0xff]   ;;  %v1851_v58 = vld [vmem:[%s1988_s10 + $0x154] ss:$12 sps:$4 sm:$0xff]   ;;  %v1856_v62 = vld [vmem:[%s1988_s10 + $0x16c] ss:$12 sps:$4 sm:$0xff]  }
  0x20   : > { %1535 = vmatpush3.bf16.msra.mxu0 %v2025_v15  ;;  %1581 = vmatpush3.bf16.msra.mxu1 %v2025_v15  ;;  %v1853_v59 = vld [vmem:[%s1988_s10 + $0x128] ss:$12 sps:$4 sm:$0xff]   ;;  %v1854_v60 = vld [vmem:[%s1988_s10 + $0x150] ss:$12 sps:$4 sm:$0xff]   ;;  %v1855_v61 = vld [vmem:[%s1988_s10 + $0x140] ss:$12 sps:$4 sm:$0xff]  }
  0x21   : > { %1536 = vmatprep.subr.bf16.mxu0 %v2032_v16  ;;  %1582 = vmatprep.subr.bf16.mxu1 %v2032_v16  ;;  %v1858_v63 = vld [vmem:[%s1988_s10 + $0x158] ss:$12 sps:$4 sm:$0xff]  }
  0x24   : > { %1537 = vmatpush3.bf16.msra.mxu0 %v2039_v17  ;;  %1583 = vmatpush3.bf16.msra.mxu1 %v2039_v17 }
  0x25   : > { %1614 = vmatprep.subr.bf16.mxu1 %v1926_v0  ;;  %1706 = vmatprep.subr.bf16.mxu0 %v2046_v18 }
  0x27   : > { %480 = vmatmul.mubr.bf16.vlgmr.msra.gmra.mrb[0].mxu0 %v1795_v19  ;;  %699 = vmatmul.mubr.bf16.vlgmr.msra.gmra.mrb[0].mxu1 %v1798_v20 }
  0x28   : > { %1615 = vmatpush3.bf16.msra.mxu1 %v1931_v1  ;;  %1707 = vmatpush3.bf16.msra.mxu0 %v2046_v18 }
  0x29   : > { %1616 = vmatprep.subr.bf16.mxu1 %v1938_v2  ;;  %487 = vmatprep.mubr.bf16.mxu0 %v1802_v21 }
  0x2a   : > { %706 = vmatprep.mubr.bf16.mxu1 %v1804_v22  ;;  %1708 = vmatprep.subr.bf16.mxu0 %v2059_v23 }
  0x2c   : > { %1617 = vmatpush3.bf16.msra.mxu1 %v1945_v3  ;;  %1709 = vmatpush3.bf16.msra.mxu0 %v2059_v23 }
  0x2d   : > { %1618 = vmatprep.subr.bf16.mxu1 %v1952_v4  ;;  %1718 = vmatprep.subr.bf16.mxu0 %v2046_v18 }
  0x2f   : > { %488 = vmatmul.mubr.bf16.gmra.mrb[4].mxu0 %v1806_v24  ;;  %707 = vmatmul.mubr.bf16.gmra.mrb[4].mxu1 %v1807_v25 }
  0x30   : > { %1619 = vmatpush3.bf16.msra.mxu1 %v1961_v5  ;;  %495 = vmatprep.mubr.bf16.mxu0 %v1808_v26 }
  0x31   : > { %1620 = vmatprep.subr.bf16.mxu1 %v1968_v6  ;;  %714 = vmatprep.mubr.bf16.mxu1 %v1810_v27 }
  0x34   : > { %1621 = vmatpush3.bf16.msra.mxu1 %v1976_v7 }
  0x35   : > { %1622 = vmatprep.subr.bf16.mxu1 %v1983_v8 }
  0x37   : > { %496 = vmatmul.mubr.bf16.gmra.mrb[8].mxu0 %v1812_v28  ;;  %715 = vmatmul.mubr.bf16.gmra.mrb[8].mxu1 %v1813_v29 }
  0x38   : > { %1623 = vmatpush3.bf16.msra.mxu1 %v1995_v9  ;;  %503 = vmatprep.mubr.bf16.mxu0 %v1815_v30 }
  0x39   : > { %1624 = vmatprep.subr.bf16.mxu1 %v2002_v10  ;;  %722 = vmatprep.mubr.bf16.mxu1 %v1817_v31 }
  0x3c   : > { %1625 = vmatpush3.bf16.msra.mxu1 %v2011_v13 }
  0x3d   : > { %1626 = vmatprep.subr.bf16.mxu1 %v2018_v14 }
  0x3f   : > { %504 = vmatmul.mubr.bf16.gmra.mrb[12].mxu0 %v1819_v32  ;;  %723 = vmatmul.mubr.bf16.gmra.mrb[12].mxu1 %v1820_v33 }
  0x40   : > { %1627 = vmatpush3.bf16.msra.mxu1 %v2025_v15  ;;  %1710 = vmatprep.mubr.msk.bf16.mxu0 %vm434_vm0, %v1821_v34 }
  0x41   : > { %1628 = vmatprep.subr.bf16.mxu1 %v2032_v16  ;;  %925 = vmatprep.mubr.bf16.mxu1 %v1824_v35 }
  0x44   : > { %1629 = vmatpush3.bf16.msra.mxu1 %v2039_v17 }
  0x45   : > { %1660 = vmatprep.subr.bf16.mxu1 %v1926_v0  ;;  %v1859_v0 = vld [vmem:[%s1988_s10 + $0x168] ss:$12 sps:$4 sm:$0xff]  }
  0x47   : > { %1711 = vmatmul.mubr.msk.bf16.vlgmr.msra.gmra.mrb[16].mxu0 %vm434_vm0, %v1825_v37  ;;  %926 = vmatmul.mubr.bf16.vlgmr.msra.gmra.mrb[16].mxu1 %v1822_v36 }
  0x48   : > { %1661 = vmatpush3.bf16.msra.mxu1 %v1931_v1  ;;  %1719 = vmatpush3.bf16.msra.mxu0 %v2046_v18  ;;  %v1860_v1 = vld [vmem:[%s1988_s10 + $0x170] ss:$12 sps:$4 sm:$0xff]  }
  0x49   : > { %1662 = vmatprep.subr.bf16.mxu1 %v1938_v2  ;;  %1714 = vmatprep.mubr.msk.bf16.mxu0 %vm434_vm0, %v1826_v38 }
  0x4a   : > { %933 = vmatprep.mubr.bf16.mxu1 %v1827_v39  ;;  %1720 = vmatprep.subr.bf16.mxu0 %v2059_v23 }
  0x4c   : > { %1663 = vmatpush3.bf16.msra.mxu1 %v1945_v3  ;;  %1721 = vmatpush3.bf16.msra.mxu0 %v2059_v23 }
  0x4d   : > { %1664 = vmatprep.subr.bf16.mxu1 %v1952_v4  ;;  %1730 = vmatprep.subr.bf16.mxu0 %v2046_v18 }
  0x4f   : > { %1715 = vmatmul.mubr.msk.bf16.gmra.mrb[20].mxu0 %vm434_vm0, %v1829_v40  ;;  %934 = vmatmul.mubr.bf16.gmra.mrb[20].mxu1 %v1830_v41 }
  0x50   : > { %1665 = vmatpush3.bf16.msra.mxu1 %v1961_v5  ;;  %1722 = vmatprep.mubr.msk.bf16.mxu0 %vm434_vm0, %v1831_v42 }
  0x51   : > { %1666 = vmatprep.subr.bf16.mxu1 %v1968_v6  ;;  %941 = vmatprep.mubr.bf16.mxu1 %v1832_v43 }
  0x54   : > { %1667 = vmatpush3.bf16.msra.mxu1 %v1976_v7 }
  0x55   : > { %1668 = vmatprep.subr.bf16.mxu1 %v1983_v8 }
  0x57   : > { %1723 = vmatmul.mubr.msk.bf16.vlgmr.msra.gmra.mrb[24].mxu0 %vm434_vm0, %v1834_v44  ;;  %942 = vmatmul.mubr.bf16.gmra.mrb[24].mxu1 %v1835_v45 }
  0x58   : > { %1669 = vmatpush3.bf16.msra.mxu1 %v1995_v9  ;;  %1731 = vmatpush3.bf16.msra.mxu0 %v2046_v18 }
  0x59   : > { %1670 = vmatprep.subr.bf16.mxu1 %v2002_v10  ;;  %1726 = vmatprep.mubr.msk.bf16.mxu0 %vm434_vm0, %v1836_v46 }
  0x5a   : > { %949 = vmatprep.mubr.bf16.mxu1 %v1837_v47  ;;  %1732 = vmatprep.subr.bf16.mxu0 %v2059_v23 }
  0x5c   : > { %1671 = vmatpush3.bf16.msra.mxu1 %v2011_v13  ;;  %1733 = vmatpush3.bf16.msra.mxu0 %v2059_v23 }
  0x5d   : > { %1672 = vmatprep.subr.bf16.mxu1 %v2018_v14  ;;  %1742 = vmatprep.subr.bf16.mxu0 %v2046_v18 }
  0x5f   : > { %1727 = vmatmul.mubr.msk.bf16.gmra.mrb[28].mxu0 %vm434_vm0, %v1839_v48  ;;  %950 = vmatmul.mubr.bf16.gmra.mrb[28].mxu1 %v1840_v49 }
  0x60   : > { %1673 = vmatpush3.bf16.msra.mxu1 %v2025_v15  ;;  %1734 = vmatprep.mubr.msk.bf16.mxu0 %vm434_vm0, %v1841_v50 }
  0x61   : > { %1674 = vmatprep.subr.bf16.mxu1 %v2032_v16  ;;  %1144 = vmatprep.mubr.bf16.mxu1 %v1844_v51 }
  0x64   : > { %1675 = vmatpush3.bf16.msra.mxu1 %v2039_v17 }
  0x67   : > { %1735 = vmatmul.mubr.msk.bf16.vlgmr.msra.gmra.mrb[32].mxu0 %vm434_vm0, %v1845_v53  ;;  %1145 = vmatmul.mubr.bf16.vlgmr.msra.gmra.mrb[32].mxu1 %v1842_v52 }
  0x68   : > { %1743 = vmatpush3.bf16.msra.mxu0 %v2046_v18  ;;  %1738 = vmatprep.mubr.msk.bf16.mxu0 %vm434_vm0, %v1846_v54 }
  0x69   : > { %1152 = vmatprep.mubr.bf16.mxu1 %v1847_v55  ;;  %1744 = vmatprep.subr.bf16.mxu0 %v2059_v23 }
  0x6c   : > { %1745 = vmatpush3.bf16.msra.mxu0 %v2059_v23 }
  0x6f   : > { %1739 = vmatmul.mubr.msk.bf16.gmra.mrb[36].mxu0 %vm434_vm0, %v1849_v56  ;;  %1153 = vmatmul.mubr.bf16.gmra.mrb[36].mxu1 %v1850_v57 }
  0x70   : > { %1160 = vmatprep.mubr.bf16.mxu1 %v1851_v58  ;;  %1746 = vmatprep.mubr.msk.bf16.mxu0 %vm434_vm0, %v1853_v59 }
  0x77   : > { %1161 = vmatmul.mubr.bf16.gmra.mrb[40].mxu1 %v1854_v60  ;;  %1747 = vmatmul.mubr.msk.bf16.vlgmr.msra.gmra.mrb[40].mxu0 %vm434_vm0, %v1855_v61 }
  0x78   : > { %1168 = vmatprep.mubr.bf16.mxu1 %v1856_v62  ;;  %1750 = vmatprep.mubr.msk.bf16.mxu0 %vm434_vm0, %v1858_v63 }
  0x7f   : > { %1169 = vmatmul.mubr.bf16.gmra.mrb[44].mxu1 %v1859_v0  ;;  %1751 = vmatmul.mubr.msk.bf16.gmra.mrb[44].mxu0 %vm434_vm0, %v1860_v1 }
  0xfa   : > { %v1538_v2 = vpop.f32.mrb[0].mxu0  ;;  %v1584_v3 = vpop.f32.mrb[0].mxu1 }
  0xfb   : > { %v1539_v4 = vpop.f32.mrb[1].mxu0  ;;  %v1585_v5 = vpop.f32.mrb[1].mxu1 }
  0xfc   : > { %v1540_v6 = vadd.f32 %v1539_v4, %v1538_v2  ;;  %v2165_v7 = vadd.f32 %v1585_v5, %v1584_v3  ;;  %v1541_v8 = vpop.f32.mrb[2].mxu0  ;;  %v1587_v9 = vpop.f32.mrb[2].mxu1 }
  0xfd   : > { %v1542_v10 = vpop.f32.mrb[3].mxu0  ;;  %v1588_v11 = vpop.f32.mrb[3].mxu1 }
  0xfe   : > { %v1543_v12 = vadd.f32 %v1542_v10, %v1541_v8  ;;  %v2167_v13 = vadd.f32 %v1588_v11, %v1587_v9 }
 0x102   : > { %v1544_v14 = vpop.f32.mrb[4].mxu0  ;;  %v1590_v15 = vpop.f32.mrb[4].mxu1 }
 0x103   : > { %v1545_v16 = vpop.f32.mrb[5].mxu0  ;;  %v1591_v17 = vpop.f32.mrb[5].mxu1 }
 0x104   : > { %v1546_v18 = vadd.f32 %v1545_v16, %v1544_v14  ;;  %v1592_v19 = vadd.f32 %v1591_v17, %v1590_v15  ;;  %v1547_v20 = vpop.f32.mrb[6].mxu0  ;;  %v1593_v21 = vpop.f32.mrb[6].mxu1 }
 0x105   : > { %v1548_v22 = vpop.f32.mrb[7].mxu0  ;;  %v1594_v23 = vpop.f32.mrb[7].mxu1 }
 0x106   : > { %v1549_v24 = vadd.f32 %v1548_v22, %v1547_v20  ;;  %v2169_v25 = vadd.f32 %v1594_v23, %v1593_v21 }
 0x10a   : > { %v1550_v26 = vpop.f32.mrb[8].mxu0  ;;  %v1596_v27 = vpop.f32.mrb[8].mxu1 }
 0x10b   : > { %v1551_v28 = vpop.f32.mrb[9].mxu0  ;;  %v1597_v29 = vpop.f32.mrb[9].mxu1 }
 0x10c   : > { %v1552_v30 = vadd.f32 %v1551_v28, %v1550_v26  ;;  %v2171_v31 = vadd.f32 %v1597_v29, %v1596_v27  ;;  %v1553_v32 = vpop.f32.mrb[10].mxu0  ;;  %v1599_v33 = vpop.f32.mrb[10].mxu1 }
 0x10d   : > { %v1554_v34 = vpop.f32.mrb[11].mxu0  ;;  %v1600_v35 = vpop.f32.mrb[11].mxu1 }
 0x10e   : > { %v1555_v36 = vadd.f32 %v1554_v34, %v1553_v32  ;;  %v2173_v37 = vadd.f32 %v1600_v35, %v1599_v33 }
 0x112   : > { %v1556_v38 = vpop.f32.mrb[12].mxu0  ;;  %v1602_v39 = vpop.f32.mrb[12].mxu1 }
 0x113   : > { %v1557_v40 = vpop.f32.mrb[13].mxu0  ;;  %v1603_v41 = vpop.f32.mrb[13].mxu1 }
 0x114   : > { %v1558_v42 = vadd.f32 %v1557_v40, %v1556_v38  ;;  %v1604_v43 = vadd.f32 %v1603_v41, %v1602_v39  ;;  %v1559_v44 = vpop.f32.mrb[14].mxu0  ;;  %v1605_v45 = vpop.f32.mrb[14].mxu1 }
 0x115   : > { %v1560_v46 = vpop.f32.mrb[15].mxu0  ;;  %v1606_v47 = vpop.f32.mrb[15].mxu1 }
 0x116   : > { %v1561_v48 = vadd.f32 %v1560_v46, %v1559_v44  ;;  %v1607_v49 = vadd.f32 %v1606_v47, %v1605_v45 }
 0x11a   : > { %v1712_v50 = vpop.f32.mrb[16].mxu0  ;;  %v1630_v51 = vpop.f32.mrb[16].mxu1 }
 0x11b   : > { %v2175_v52 = vadd.f32 %v1712_v50, %v1546_v18  ;;  %v546_v53 = vpop.f32.mrb[17].mxu0  ;;  %v1631_v54 = vpop.f32.mrb[17].mxu1 }
 0x11c   : > { %v2177_v55 = vadd.f32 %v1540_v6, %v546_v53  ;;  %v2179_v56 = vadd.f32 %v1631_v54, %v1630_v51  ;;  %v1713_v57 = vpop.f32.mrb[18].mxu0  ;;  %v1633_v58 = vpop.f32.mrb[18].mxu1 }
 0x11d   : > { %v2181_v59 = vadd.f32 %v1713_v57, %v1549_v24  ;;  %v549_v60 = vpop.f32.mrb[19].mxu0  ;;  %v1634_v61 = vpop.f32.mrb[19].mxu1 }
 0x11e   : > { %v2183_v62 = vadd.f32 %v1543_v12, %v549_v60  ;;  %v2185_v63 = vadd.f32 %v1634_v61, %v1633_v58 }
 0x122   : > { %v1716_v0 = vpop.f32.mrb[20].mxu0  ;;  %v1636_v1 = vpop.f32.mrb[20].mxu1 }
 0x123   : > { %v2187_v2 = vadd.f32 %v1716_v0, %v1558_v42  ;;  %v562_v3 = vpop.f32.mrb[21].mxu0  ;;  %v1637_v4 = vpop.f32.mrb[21].mxu1 }
 0x124   : > { %v2189_v5 = vadd.f32 %v1552_v30, %v562_v3  ;;  %v1638_v6 = vadd.f32 %v1637_v4, %v1636_v1  ;;  %v1717_v8 = vpop.f32.mrb[22].mxu0  ;;  %v1639_v9 = vpop.f32.mrb[22].mxu1 }
 0x125   : > { %v2191_v10 = vadd.f32 %v1717_v8, %v1561_v48  ;;  %v565_v11 = vpop.f32.mrb[23].mxu0  ;;  %v1640_v14 = vpop.f32.mrb[23].mxu1 }
 0x126   : > { %v2193_v15 = vadd.f32 %v1555_v36, %v565_v11  ;;  %v1641_v12 = vadd.f32 %v1640_v14, %v1639_v9 }
 0x12a   : > { %v1724_v16 = vpop.f32.mrb[24].mxu0  ;;  %v1642_v17 = vpop.f32.mrb[24].mxu1 }
 0x12b   : > { %v2195_v18 = vadd.f32 %v1724_v16, %v1592_v19  ;;  %v765_v20 = vpop.f32.mrb[25].mxu0  ;;  %v1643_v21 = vpop.f32.mrb[25].mxu1 }
 0x12c   : > { %v2198_v22 = vadd.f32 %v2165_v7, %v765_v20  ;;  %v1644_v23 = vadd.f32 %v1643_v21, %v1642_v17  ;;  %v1725_v24 = vpop.f32.mrb[26].mxu0  ;;  %v1645_v26 = vpop.f32.mrb[26].mxu1 }
 0x12d   : > { %v798_v27 = vmax.f32 %v2175_v52, %v2195_v18  ;;  %v2203_v28 = vadd.f32 %v1725_v24, %v2169_v25  ;;  %v768_v29 = vpop.f32.mrb[27].mxu0  ;;  %v1646_v30 = vpop.f32.mrb[27].mxu1 }
 0x12e   : > { %v796_v19 = vmax.f32 %v2177_v55, %v2198_v22  ;;  %v2208_v32 = vadd.f32 %v2167_v13, %v768_v29  ;;  %v1647_v33 = vadd.f32 %v1646_v30, %v1645_v26 }
 0x12f   : > { %v799_v7 = vmax.f32 %v2181_v59, %v2203_v28 }
 0x130   : > { %v797_v34 = vmax.f32 %v2183_v62, %v2208_v32 }
 0x132   : > { %v1728_v35 = vpop.f32.mrb[28].mxu0  ;;  %v1648_v36 = vpop.f32.mrb[28].mxu1 }
 0x133   : > { %v2214_v38 = vadd.f32 %v1728_v35, %v1604_v43  ;;  %v781_v25 = vpop.f32.mrb[29].mxu0  ;;  %v1649_v39 = vpop.f32.mrb[29].mxu1 }
 0x134   : > { %v2217_v40 = vadd.f32 %v2171_v31, %v781_v25  ;;  %v1650_v41 = vadd.f32 %v1649_v39, %v1648_v36  ;;  %v1729_v42 = vpop.f32.mrb[30].mxu0  ;;  %v1651_v13 = vpop.f32.mrb[30].mxu1 }
 0x135   : > { %v802_v44 = vmax.f32 %v2187_v2, %v2214_v38  ;;  %v2221_v45 = vadd.f32 %v1729_v42, %v1607_v49  ;;  %v784_v46 = vpop.f32.mrb[31].mxu0  ;;  %v1652_v47 = vpop.f32.mrb[31].mxu1 }
 0x136   : > { %v800_v48 = vmax.f32 %v2189_v5, %v2217_v40  ;;  %v2226_v43 = vadd.f32 %v2173_v37, %v784_v46  ;;  %v1653_v50 = vadd.f32 %v1652_v47, %v1651_v13 }
 0x137   : > { %v803_v31 = vmax.f32 %v2191_v10, %v2221_v45 }
 0x138   : > { %v801_v51 = vmax.f32 %v2193_v15, %v2226_v43 }
 0x13a   : > { %v1736_v53 = vpop.f32.mrb[32].mxu0  ;;  %v1676_v54 = vpop.f32.mrb[32].mxu1 }
 0x13b   : > { %v1001_v57 = vadd.f32 %v1736_v53, %v1638_v6  ;;  %v992_v49 = vpop.f32.mrb[33].mxu0  ;;  %v1677_v58 = vpop.f32.mrb[33].mxu1 }
 0x13c   : > { %v993_v60 = vadd.f32 %v2179_v56, %v992_v49  ;;  %v1678_v61 = vadd.f32 %v1677_v58, %v1676_v54  ;;  %v1737_v0 = vpop.f32.mrb[34].mxu0  ;;  %v1679_v1 = vpop.f32.mrb[34].mxu1 }
 0x13d   : > { %v1004_v3 = vadd.f32 %v1737_v0, %v1641_v12  ;;  %v995_v37 = vpop.f32.mrb[35].mxu0  ;;  %v1680_v4 = vpop.f32.mrb[35].mxu1 }
 0x13e   : > { %v996_v8 = vadd.f32 %v2185_v63, %v995_v37  ;;  %v1681_v9 = vadd.f32 %v1680_v4, %v1679_v1 }
 0x142   : > { %v1740_v11 = vpop.f32.mrb[36].mxu0  ;;  %v1682_v14 = vpop.f32.mrb[36].mxu1 }
 0x143   : > { %v2234_v16 = vadd.f32 %v1740_v11, %v1650_v41  ;;  %v1008_v17 = vpop.f32.mrb[37].mxu0  ;;  %v1683_v20 = vpop.f32.mrb[37].mxu1 }
 0x144   : > { %v2236_v6 = vadd.f32 %v1644_v23, %v1008_v17  ;;  %v1684_v21 = vadd.f32 %v1683_v20, %v1682_v14  ;;  %v1741_v24 = vpop.f32.mrb[38].mxu0  ;;  %v1685_v56 = vpop.f32.mrb[38].mxu1 }
 0x145   : > { %v2238_v26 = vadd.f32 %v1741_v24, %v1653_v50  ;;  %v1011_v29 = vpop.f32.mrb[39].mxu0  ;;  %v1686_v12 = vpop.f32.mrb[39].mxu1  ;;  %v1518_v50 = vld [vmem:[%s2303_s2] ss:$0 sm:$0xff] }
 0x146   : > { %v1012_v30 = vadd.f32 %v1647_v33, %v1011_v29  ;;  %v1687_v35 = vadd.f32 %v1686_v12, %v1685_v56 }
 0x14a   : > { %v1688_v36 = vpop.f32.mrb[40].mxu1  ;;  %v1748_v63 = vpop.f32.mrb[40].mxu0 }
 0x14b   : > { %v1220_v25 = vadd.f32 %v1748_v63, %v1684_v21  ;;  %v1689_v39 = vpop.f32.mrb[41].mxu1  ;;  %v1211_v41 = vpop.f32.mrb[41].mxu0 }
 0x14c   : > { %v1690_v42 = vadd.f32 %v1689_v39, %v1688_v36  ;;  %v1212_v13 = vadd.f32 %v1678_v61, %v1211_v41  ;;  %v1691_v46 = vpop.f32.mrb[42].mxu1  ;;  %v1749_v23 = vpop.f32.mrb[42].mxu0 }
 0x14d   : > { %v1244_v47 = vmax.f32 %v1001_v57, %v1220_v25  ;;  %v1223_v53 = vadd.f32 %v1749_v23, %v1687_v35  ;;  %v1692_v54 = vpop.f32.mrb[43].mxu1  ;;  %v1214_v49 = vpop.f32.mrb[43].mxu0 }
 0x14e   : > { %v1242_v33 = vmax.f32 %v993_v60, %v1212_v13  ;;  %v1693_v58 = vadd.f32 %v1692_v54, %v1691_v46  ;;  %v1215_v0 = vadd.f32 %v1681_v9, %v1214_v49 }
 0x14f   : > { %v1252_v1 = vmax.f32 %v798_v27, %v1244_v47  ;;  %v1245_v37 = vmax.f32 %v1004_v3, %v1223_v53 }
 0x150   : > { %v1250_v57 = vmax.f32 %v796_v19, %v1242_v33  ;;  %v1243_v61 = vmax.f32 %v996_v8, %v1215_v0 }
 0x151   : > { %v1267_v4 = vadd.f32 %v1518_v50, %v1252_v1  ;;  %v1253_v11 = vmax.f32 %v799_v7, %v1245_v37 }
 0x152   : > { %v1265_v52 = vadd.f32 %v1518_v50, %v1250_v57  ;;  %v1251_v18 = vmax.f32 %v797_v34, %v1243_v61  ;;  %v1694_v55 = vpop.f32.mrb[44].mxu1  ;;  %v1752_v22 = vpop.f32.mrb[44].mxu0 }
 0x153   : > { %v1275_v27 = vmax.f32 %v1267_v4, 0.0  ;;  %v1268_v19 = vadd.f32 %v1518_v50, %v1253_v11  ;;  %v1695_v60 = vpop.f32.mrb[45].mxu1  ;;  %v1227_v59 = vpop.f32.mrb[45].mxu0 }
 0x154   : > { %v1273_v28 = vmax.f32 %v1265_v52, 0.0  ;;  %v1266_v7 = vadd.f32 %v1518_v50, %v1251_v18  ;;  %v1696_v3 = vadd.f32 %v1695_v60, %v1694_v55  ;;  %v1228_v8 = vadd.f32 %v1690_v42, %v1227_v59  ;;  %v1697_v9 = vpop.f32.mrb[46].mxu1  ;;  %v1753_v14 = vpop.f32.mrb[46].mxu0 }
 0x155   : > { %1284 = vst.msk [vmem:[%s2256_s11 + $0x10] sm:$0xff] %vm1281_vm1, %v1275_v27  ;;  %v1276_v17 = vmax.f32 %v1268_v19, 0.0  ;;  %v1698_v62 = vpop.f32.mrb[47].mxu1  ;;  %v1230_v32 = vpop.f32.mrb[47].mxu0 }
 0x156   : > { %1282 = vst.msk [vmem:[%s2256_s11] sm:$0xff] %vm1281_vm1, %v1273_v28  ;;  %v1274_v34 = vmax.f32 %v1266_v7, 0.0  ;;  %v1236_v20 = vadd.f32 %v1752_v22, %v1696_v3  ;;  %v1246_v21 = vmax.f32 %v2236_v6, %v1228_v8  ;;  %v1699_v24 = vadd.f32 %v1698_v62, %v1697_v9 }
 0x157   : > { %1285 = vst.msk [vmem:[%s2256_s11 + $0x18] sm:$0xff] %vm1281_vm1, %v1276_v17  ;;  %v1231_v56 = vadd.f32 %v1693_v58, %v1230_v32 }
 0x158   : > { %1283 = vst.msk [vmem:[%s2256_s11 + $0x8] sm:$0xff] %vm1281_vm1, %v1274_v34  ;;  %v1248_v29 = vmax.f32 %v2234_v16, %v1236_v20  ;;  %v1254_v12 = vmax.f32 %v800_v48, %v1246_v21  ;;  %v1239_v35 = vadd.f32 %v1753_v14, %v1699_v24 }
 0x159   : > { %v1247_v36 = vmax.f32 %v1012_v30, %v1231_v56 }
 0x15a   : > { %v1256_v6 = vmax.f32 %v802_v44, %v1248_v29  ;;  %v1269_v63 = vadd.f32 %v1518_v50, %v1254_v12  ;;  %v1249_v25 = vmax.f32 %v2238_v26, %v1239_v35 }
 0x15b   : > { %v1255_v16 = vmax.f32 %v801_v51, %v1247_v36 }
 0x15c   : > { %v1271_v39 = vadd.f32 %v1518_v50, %v1256_v6  ;;  %v1277_v41 = vmax.f32 %v1269_v63, 0.0  ;;  %v1257_v5 = vmax.f32 %v803_v31, %v1249_v25 }
 0x15d   : > { %v1270_v40 = vadd.f32 %v1518_v50, %v1255_v16 }
 0x15e   : > { %v1279_v48 = vmax.f32 %v1271_v39, 0.0  ;;  %1286 = vst.msk [vmem:[%s2256_s11 + $0x20] sm:$0xff] %vm1281_vm1, %v1277_v41  ;;  %v1272_v2 = vadd.f32 %v1518_v50, %v1257_v5 }
 0x15f   : > { %v1278_v38 = vmax.f32 %v1270_v40, 0.0 }
 0x160   : > { %1288 = vst.msk [vmem:[%s2256_s11 + $0x30] sm:$0xff] %vm1281_vm1, %v1279_v48  ;;  %v1280_v44 = vmax.f32 %v1272_v2, 0.0 }
 0x161   : > { %1287 = vst.msk [vmem:[%s2256_s11 + $0x28] sm:$0xff] %vm1281_vm1, %v1278_v38 }
 0x162   : > { %1289 = vst.msk [vmem:[%s2256_s11 + $0x38] sm:$0xff] %vm1281_vm1, %v1280_v44 }
 0x163 PF: > { %s13_s14 = sadd.s32 1, %s1883_s14   ;;  %s2305_s12 = smov %s1879_s13 }
 0x164   : > { %p10_p5 = scmp.ge.s32.totalorder %s13_s14, 4   ;;  %s2306_s13 = smov %s2308_s15 }
 0x166   :  { %12 = sbr.rel (!%p10_p5) target bundleno = 2 (0x2), region = 65 }

// kernel: adams_cnn_forward.12
= control target key start
LH: loop header
LB: loop body
LE: loop exit
PB: predicated region body
PF: predicated region fallthrough
CT: control target
= control target key end

     0   :  { %s1714_s12 = smov 0   ;;  %s1716_s13 = smov 0   ;;  %s2138_s0 = inlined_call_operand.vmem [shape: bf16[2,4,16,576], index: 0, kind: input, shape index: {}]   ;;  %s2139_s1 = inlined_call_operand.vmem [shape: bf16[576,128], index: 1, kind: input, shape index: {}]   ;;  %s2140_s2 = inlined_call_operand.vmem [shape: f32[1,128], index: 2, kind: input, shape index: {}]   ;;  %s2141_s3 = inlined_call_operand.vmem [shape: f32[2,16,128], index: 3, kind: output, shape index: {}]  }
   0x1   :  { %s1718_s14 = smov 0  }
   0x2 LB: > { %s25_s15 = sadd.s32 1, %s1686_s13  ;;  %p1247_p0 = scmp.ge.s32.totalorder %s1690_s14, 1  ;;  %s1690_s14 = sphi %s1718_s14, %s13_s14   ;;  %s1686_s13 = sphi %s1716_s13, %s2143_s13   ;;  %s1682_s12 = sphi %s1714_s12, %s2142_s12  }
   0x3   : > { %p27_p1 = scmp.ge.s32.totalorder %s25_s15, 2  ;;  %p159_p2 = scmp.lt.s32.totalorder %s1690_s14, 3 }
   0x5   : > { %s2145_s15 = smov (%p27_p1, %s25_s15), 0  ;;  %p160_p3 = pnand %p1247_p0, %p159_p2 }
   0x6   : > { %v1737_v0 = vld [vmem:[%s2139_s1 + $0x40] sm:$0xff] (!%p160_p3)   ;;  %v1760_v4 = vld [vmem:[%s2139_s1 + $0x48] sm:$0xff] (!%p160_p3)   ;;  %v1784_v8 = vld [vmem:[%s2139_s1 + $0x50] sm:$0xff] (!%p160_p3)   ;;  %p193_p4 = scmp.lt.s32.totalorder (!%p160_p3), %s1682_s12, 1  ;;  %v1692_v34 = vmov (!%p160_p3), 0.0   ;;  %vm1693_vm0 = vmmov (!%p160_p3), 0  }
   0x7   : > { %163 = sbr.rel (%p160_p3) target bundleno = 398 (0x18e), region = 32  ;;  %v1742_v1 = vld [vmem:[%s2139_s1 + $0xc0] sm:$0xff] (!%p160_p3)   ;;  %1333 = vmatprep.subr.bf16.mxu0 (!%p160_p3), %v1737_v0  ;;  %v1766_v5 = vld [vmem:[%s2139_s1 + $0xc8] sm:$0xff] (!%p160_p3)   ;;  %v1790_v9 = vld [vmem:[%s2139_s1 + $0xd0] sm:$0xff] (!%p160_p3)   ;;  %vm533_vm1 = vcmask (!%p160_p3), 523264  }
   0x8   : > { %v1748_v2 = vld [vmem:[%s2139_s1] sm:$0xff] (!%p160_p3)   ;;  %1355 = vmatprep.subr.bf16.mxu1 (!%p160_p3), %v1742_v1  ;;  %v1772_v6 = vld [vmem:[%s2139_s1 + $0x8] sm:$0xff] (!%p160_p3)   ;;  %v1796_v10 = vld [vmem:[%s2139_s1 + $0x10] sm:$0xff] (!%p160_p3)  }
   0x9   : > { %v1754_v3 = vld [vmem:[%s2139_s1 + $0x80] sm:$0xff] (!%p160_p3)   ;;  %1334 = vmatpush3.bf16.msra.mxu0 (!%p160_p3), %v1748_v2  ;;  %v1778_v7 = vld [vmem:[%s2139_s1 + $0x88] sm:$0xff] (!%p160_p3)   ;;  %v1802_v11 = vld [vmem:[%s2139_s1 + $0x90] sm:$0xff] (!%p160_p3)  }
   0xa   : > { %1356 = vmatpush3.bf16.msra.mxu1 (!%p160_p3), %v1754_v3  ;;  %1335 = vmatprep.subr.bf16.mxu0 (!%p160_p3), %v1760_v4  ;;  %v1808_v12 = vld [vmem:[%s2139_s1 + $0x58] sm:$0xff] (!%p160_p3)   ;;  %v1832_v16 = vld [vmem:[%s2139_s1 + $0x60] sm:$0xff] (!%p160_p3)   ;;  %v1857_v20 = vld [vmem:[%s2139_s1 + $0x68] sm:$0xff] (!%p160_p3)  }
   0xb   : > { %1357 = vmatprep.subr.bf16.mxu1 (!%p160_p3), %v1766_v5  ;;  %v1814_v13 = vld [vmem:[%s2139_s1 + $0xd8] sm:$0xff] (!%p160_p3)   ;;  %v1838_v17 = vld [vmem:[%s2139_s1 + $0xe0] sm:$0xff] (!%p160_p3)   ;;  %v1863_v21 = vld [vmem:[%s2139_s1 + $0xe8] sm:$0xff] (!%p160_p3)  }
   0xc   : > { %v1820_v14 = vld [vmem:[%s2139_s1 + $0x18] sm:$0xff] (!%p160_p3)   ;;  %v1845_v18 = vld [vmem:[%s2139_s1 + $0x20] sm:$0xff] (!%p160_p3)   ;;  %v1872_v22 = vld [vmem:[%s2139_s1 + $0x28] sm:$0xff] (!%p160_p3)  }
   0xd   : > { %1336 = vmatpush3.bf16.msra.mxu0 (!%p160_p3), %v1772_v6  ;;  %v1826_v15 = vld [vmem:[%s2139_s1 + $0x98] sm:$0xff] (!%p160_p3)   ;;  %v1851_v19 = vld [vmem:[%s2139_s1 + $0xa0] sm:$0xff] (!%p160_p3)   ;;  %v1878_v23 = vld [vmem:[%s2139_s1 + $0xa8] sm:$0xff] (!%p160_p3)  }
   0xe   : > { %1358 = vmatpush3.bf16.msra.mxu1 %v1778_v7  ;;  %1337 = vmatprep.subr.bf16.mxu0 %v1784_v8  ;;  %s2147_s12 = smov (!%p193_p4, %s1682_s12), 1  ;;  %v1884_v24 = vld [vmem:[%s2139_s1 + $0x70] sm:$0xff]   ;;  %v1909_v28 = vld [vmem:[%s2139_s1 + $0x78] sm:$0xff]   ;;  %v1945_v37 = vld [vmem:[%s2139_s1 + $0x100] sm:$0xff]  }
   0xf   : > { %1359 = vmatprep.subr.bf16.mxu1 %v1790_v9  ;;  %v1890_v25 = vld [vmem:[%s2139_s1 + $0xf0] sm:$0xff]   ;;  %s1577_s22 = smul.u32 160, %s2147_s12  ;;  %v1915_v29 = vld [vmem:[%s2139_s1 + $0xf8] sm:$0xff]   ;;  %v1951_v38 = vld [vmem:[%s2139_s1 + $0x108] sm:$0xff]   ;;  %s1332_s25 = sshll.u32 %s2147_s12, 4 }
  0x10   : > { %v1897_v26 = vld [vmem:[%s2139_s1 + $0x30] sm:$0xff]   ;;  %v1926_v30 = vld [vmem:[%s2139_s1 + $0x38] sm:$0xff]   ;;  %s211_s28 = scalar_lea.vmem %s2141_s3, %s1332_s25 }
  0x11   : > { %1338 = vmatpush3.bf16.msra.mxu0 %v1796_v10  ;;  %v1903_v27 = vld [vmem:[%s2139_s1 + $0xb0] sm:$0xff]   ;;  %s1920_s6 = scalar_lea.vmem %s2138_s0, %s1577_s22  ;;  %v1932_v31 = vld [vmem:[%s2139_s1 + $0xb8] sm:$0xff]  }
  0x12   : > { %1360 = vmatpush3.bf16.msra.mxu1 %v1802_v11  ;;  %1339 = vmatprep.subr.bf16.mxu0 %v1808_v12  ;;  %v1636_v32 = vld [vmem:[%s1920_s6] ss:$20 sps:$4 sm:$0xff]   ;;  %v1638_v33 = vld [vmem:[%s1920_s6 + $0x4] ss:$20 sps:$4 sm:$0xff]   ;;  %v1639_v35 = vld [vmem:[%s1920_s6 + $0x8] ss:$20 sps:$4 sm:$0xff]  }
  0x13   : > { %1361 = vmatprep.subr.bf16.mxu1 %v1814_v13  ;;  %v1641_v36 = vld [vmem:[%s1920_s6 + $0xc] ss:$20 sps:$4 sm:$0xff]   ;;  %569 = vmatprep.mubr.bf16.mxu0 %v1638_v33  ;;  %v1963_v40 = vld [vmem:[%s2139_s1 + $0x110] sm:$0xff]   ;;  %v1972_v41 = vld [vmem:[%s2139_s1 + $0x118] sm:$0xff]  }
  0x14   : > { %610 = vmatprep.mubr.bf16.mxu1 %v1641_v36  ;;  %v1649_v39 = vld [vmem:[%s1920_s6 + $0x2c] ss:$20 sps:$4 sm:$0xff]   ;;  %v1646_v42 = vld [vmem:[%s1920_s6 + $0x10] ss:$20 sps:$4 sm:$0xff]   ;;  %v1652_v43 = vld [vmem:[%s1920_s6 + $0x34] ss:$20 sps:$4 sm:$0xff]  }
  0x15   : > { %1340 = vmatpush3.bf16.msra.mxu0 %v1820_v14  ;;  %v1647_v44 = vld [vmem:[%s1920_s6 + $0x28] ss:$20 sps:$4 sm:$0xff]   ;;  %v1650_v45 = vld [vmem:[%s1920_s6 + $0x30] ss:$20 sps:$4 sm:$0xff]   ;;  %v1653_v46 = vld [vmem:[%s1920_s6 + $0x38] ss:$20 sps:$4 sm:$0xff]  }
  0x16   : > { %1362 = vmatpush3.bf16.msra.mxu1 %v1826_v15  ;;  %1341 = vmatprep.subr.bf16.mxu0 %v1832_v16  ;;  %v1656_v47 = vld [vmem:[%s1920_s6 + $0x54] ss:$20 sps:$4 sm:$0xff]   ;;  %v1659_v48 = vld [vmem:[%s1920_s6 + $0x5c] ss:$20 sps:$4 sm:$0xff]   ;;  %v1657_v50 = vld [vmem:[%s1920_s6 + $0x58] ss:$20 sps:$4 sm:$0xff]  }
  0x17   : > { %1363 = vmatprep.subr.bf16.mxu1 %v1838_v17  ;;  %v1654_v49 = vld [vmem:[%s1920_s6 + $0x50] ss:$20 sps:$4 sm:$0xff]   ;;  %v1660_v52 = vld [vmem:[%s1920_s6 + $0x60] ss:$20 sps:$4 sm:$0xff]   ;;  %v1661_v54 = vld [vmem:[%s1920_s6 + $0x78] ss:$20 sps:$4 sm:$0xff]  }
  0x18   : > { %v1663_v51 = vld [vmem:[%s1920_s6 + $0x7c] ss:$20 sps:$4 sm:$0xff]   ;;  %v1666_v53 = vld [vmem:[%s1920_s6 + $0x84] ss:$20 sps:$4 sm:$0xff]   ;;  %v1664_v55 = vld [vmem:[%s1920_s6 + $0x80] ss:$20 sps:$4 sm:$0xff]  }
  0x19   : > { %1342 = vmatpush3.bf16.msra.mxu0 %v1845_v18  ;;  %v1667_v56 = vld [vmem:[%s1920_s6 + $0x88] ss:$20 sps:$4 sm:$0xff]  }
  0x1a   : > { %1364 = vmatpush3.bf16.msra.mxu1 %v1851_v19  ;;  %1343 = vmatprep.subr.bf16.mxu0 %v1857_v20 }
  0x1b   : > { %1365 = vmatprep.subr.bf16.mxu1 %v1863_v21 }
  0x1d   : > { %1344 = vmatpush3.bf16.msra.mxu0 %v1872_v22 }
  0x1e   : > { %1366 = vmatpush3.bf16.msra.mxu1 %v1878_v23  ;;  %1345 = vmatprep.subr.bf16.mxu0 %v1884_v24 }
  0x1f   : > { %1367 = vmatprep.subr.bf16.mxu1 %v1890_v25 }
  0x21   : > { %1346 = vmatpush3.bf16.msra.mxu0 %v1897_v26 }
  0x22   : > { %1368 = vmatpush3.bf16.msra.mxu1 %v1903_v27  ;;  %1347 = vmatprep.subr.bf16.mxu0 %v1909_v28 }
  0x23   : > { %1369 = vmatprep.subr.bf16.mxu1 %v1915_v29 }
  0x25   : > { %1348 = vmatpush3.bf16.msra.mxu0 %v1926_v30 }
  0x26   : > { %1370 = vmatpush3.bf16.msra.mxu1 %v1932_v31  ;;  %1529 = vmatprep.subr.bf16.mxu0 %v1692_v34 }
  0x27   : > { %1382 = vmatprep.subr.bf16.mxu1 %v1737_v0 }
  0x28   : > { %570 = vmatmul.mubr.bf16.vlgmr.msra.gmra.mrb[0].mxu0 %v1636_v32 }
  0x29   : > { %611 = vmatmul.mubr.bf16.vlgmr.msra.gmra.mrb[0].mxu1 %v1639_v35  ;;  %1530 = vmatpush3.bf16.msra.mxu0 %v1945_v37 }
  0x2a   : > { %1383 = vmatpush3.bf16.msra.mxu1 %v1748_v2  ;;  %1531 = vmatprep.subr.bf16.mxu0 %v1692_v34 }
  0x2b   : > { %1384 = vmatprep.subr.bf16.mxu1 %v1760_v4  ;;  %1537 = vmatprep.mubr.msk.bf16.mxu0 %vm1693_vm0, %v1692_v34 }
  0x2c   : > { %727 = vmatprep.mubr.bf16.mxu1 %v1649_v39 }
  0x2d   : > { %1532 = vmatpush3.bf16.msra.mxu0 %v1951_v38 }
  0x2e   : > { %1385 = vmatpush3.bf16.msra.mxu1 %v1772_v6  ;;  %1533 = vmatprep.subr.bf16.mxu0 %v1692_v34 }
  0x2f   : > { %1386 = vmatprep.subr.bf16.mxu1 %v1784_v8 }
  0x31   : > { %1534 = vmatpush3.bf16.msra.mxu0 %v1963_v40 }
  0x32   : > { %1387 = vmatpush3.bf16.msra.mxu1 %v1796_v10  ;;  %1535 = vmatprep.subr.bf16.mxu0 %v1692_v34 }
  0x33   : > { %1388 = vmatprep.subr.bf16.mxu1 %v1808_v12 }
  0x35   : > { %1536 = vmatpush3.bf16.msra.mxu0 %v1972_v41 }
  0x36   : > { %1389 = vmatpush3.bf16.msra.mxu1 %v1820_v14  ;;  %1404 = vmatprep.subr.bf16.mxu0 %v1742_v1 }
  0x37   : > { %1390 = vmatprep.subr.bf16.mxu1 %v1832_v16 }
  0x38   : > { %1538 = vmatmul.mubr.msk.bf16.vlgmr.msra.gmra.mrb[4].mxu0 %vm533_vm1, %v1646_v42 }
  0x39   : > { %1405 = vmatpush3.bf16.msra.mxu0 %v1754_v3  ;;  %768 = vmatprep.mubr.bf16.mxu0 %v1652_v43 }
  0x3a   : > { %1391 = vmatpush3.bf16.msra.mxu1 %v1845_v18  ;;  %1406 = vmatprep.subr.bf16.mxu0 %v1766_v5 }
  0x3b   : > { %1392 = vmatprep.subr.bf16.mxu1 %v1857_v20 }
  0x3d   : > { %1407 = vmatpush3.bf16.msra.mxu0 %v1778_v7 }
  0x3e   : > { %1393 = vmatpush3.bf16.msra.mxu1 %v1872_v22  ;;  %1408 = vmatprep.subr.bf16.mxu0 %v1790_v9 }
  0x3f   : > { %1394 = vmatprep.subr.bf16.mxu1 %v1884_v24 }
  0x41   : > { %1409 = vmatpush3.bf16.msra.mxu0 %v1802_v11 }
  0x42   : > { %1395 = vmatpush3.bf16.msra.mxu1 %v1897_v26  ;;  %1410 = vmatprep.subr.bf16.mxu0 %v1814_v13 }
  0x43   : > { %1396 = vmatprep.subr.bf16.mxu1 %v1909_v28 }
  0x45   : > { %1411 = vmatpush3.bf16.msra.mxu0 %v1826_v15 }
  0x46   : > { %1397 = vmatpush3.bf16.msra.mxu1 %v1926_v30  ;;  %1412 = vmatprep.subr.bf16.mxu0 %v1838_v17 }
  0x47   : > { %1541 = vmatprep.subr.bf16.mxu1 %v1692_v34 }
  0x49   : > { %728 = vmatmul.mubr.bf16.vlgmr.msra.gmra.mrb[4].mxu1 %v1647_v44  ;;  %1413 = vmatpush3.bf16.msra.mxu0 %v1851_v19 }
  0x4a   : > { %1542 = vmatpush3.bf16.msra.mxu1 %v1945_v37  ;;  %1414 = vmatprep.subr.bf16.mxu0 %v1863_v21 }
  0x4b   : > { %1543 = vmatprep.subr.bf16.mxu1 %v1692_v34  ;;  %1549 = vmatprep.mubr.msk.bf16.mxu1 %vm1693_vm0, %v1692_v34 }
  0x4d   : > { %1415 = vmatpush3.bf16.msra.mxu0 %v1878_v23 }
  0x4e   : > { %1544 = vmatpush3.bf16.msra.mxu1 %v1951_v38  ;;  %1416 = vmatprep.subr.bf16.mxu0 %v1890_v25 }
  0x4f   : > { %1545 = vmatprep.subr.bf16.mxu1 %v1692_v34 }
  0x51   : > { %1417 = vmatpush3.bf16.msra.mxu0 %v1903_v27 }
  0x52   : > { %1546 = vmatpush3.bf16.msra.mxu1 %v1963_v40  ;;  %1418 = vmatprep.subr.bf16.mxu0 %v1915_v29 }
  0x53   : > { %1547 = vmatprep.subr.bf16.mxu1 %v1692_v34 }
  0x55   : > { %1419 = vmatpush3.bf16.msra.mxu0 %v1932_v31 }
  0x56   : > { %1548 = vmatpush3.bf16.msra.mxu1 %v1972_v41  ;;  %1431 = vmatprep.subr.bf16.mxu0 %v1737_v0 }
  0x57   : > { %1453 = vmatprep.subr.bf16.mxu1 %v1742_v1 }
  0x58   : > { %769 = vmatmul.mubr.bf16.vlgmr.msra.gmra.mrb[8].mxu0 %v1650_v45 }
  0x59   : > { %1550 = vmatmul.mubr.msk.bf16.vlgmr.msra.gmra.mrb[8].mxu1 %vm533_vm1, %v1653_v46  ;;  %1432 = vmatpush3.bf16.msra.mxu0 %v1748_v2 }
  0x5a   : > { %1454 = vmatpush3.bf16.msra.mxu1 %v1754_v3  ;;  %1433 = vmatprep.subr.bf16.mxu0 %v1760_v4 }
  0x5b   : > { %1455 = vmatprep.subr.bf16.mxu1 %v1766_v5  ;;  %887 = vmatprep.mubr.bf16.mxu0 %v1656_v47 }
  0x5c   : > { %928 = vmatprep.mubr.bf16.mxu1 %v1659_v48 }
  0x5d   : > { %1434 = vmatpush3.bf16.msra.mxu0 %v1772_v6 }
  0x5e   : > { %1456 = vmatpush3.bf16.msra.mxu1 %v1778_v7  ;;  %1435 = vmatprep.subr.bf16.mxu0 %v1784_v8 }
  0x5f   : > { %1457 = vmatprep.subr.bf16.mxu1 %v1790_v9 }
  0x61   : > { %1436 = vmatpush3.bf16.msra.mxu0 %v1796_v10 }
  0x62   : > { %1458 = vmatpush3.bf16.msra.mxu1 %v1802_v11  ;;  %1437 = vmatprep.subr.bf16.mxu0 %v1808_v12 }
  0x63   : > { %1459 = vmatprep.subr.bf16.mxu1 %v1814_v13 }
  0x65   : > { %1438 = vmatpush3.bf16.msra.mxu0 %v1820_v14 }
  0x66   : > { %1460 = vmatpush3.bf16.msra.mxu1 %v1826_v15  ;;  %1439 = vmatprep.subr.bf16.mxu0 %v1832_v16 }
  0x67   : > { %1461 = vmatprep.subr.bf16.mxu1 %v1838_v17 }
  0x69   : > { %1440 = vmatpush3.bf16.msra.mxu0 %v1845_v18 }
  0x6a   : > { %1462 = vmatpush3.bf16.msra.mxu1 %v1851_v19  ;;  %1441 = vmatprep.subr.bf16.mxu0 %v1857_v20 }
  0x6b   : > { %1463 = vmatprep.subr.bf16.mxu1 %v1863_v21 }
  0x6d   : > { %1442 = vmatpush3.bf16.msra.mxu0 %v1872_v22 }
  0x6e   : > { %1464 = vmatpush3.bf16.msra.mxu1 %v1878_v23  ;;  %1443 = vmatprep.subr.bf16.mxu0 %v1884_v24 }
  0x6f   : > { %1465 = vmatprep.subr.bf16.mxu1 %v1890_v25 }
  0x71   : > { %1444 = vmatpush3.bf16.msra.mxu0 %v1897_v26 }
  0x72   : > { %1466 = vmatpush3.bf16.msra.mxu1 %v1903_v27  ;;  %1445 = vmatprep.subr.bf16.mxu0 %v1909_v28 }
  0x73   : > { %1467 = vmatprep.subr.bf16.mxu1 %v1915_v29 }
  0x75   : > { %1446 = vmatpush3.bf16.msra.mxu0 %v1926_v30 }
  0x76   : > { %1468 = vmatpush3.bf16.msra.mxu1 %v1932_v31  ;;  %1553 = vmatprep.subr.bf16.mxu0 %v1692_v34 }
  0x77   : > { %1480 = vmatprep.subr.bf16.mxu1 %v1737_v0 }
  0x78   : > { %888 = vmatmul.mubr.bf16.vlgmr.msra.gmra.mrb[12].mxu0 %v1654_v49 }
  0x79   : > { %929 = vmatmul.mubr.bf16.vlgmr.msra.gmra.mrb[12].mxu1 %v1657_v50  ;;  %1554 = vmatpush3.bf16.msra.mxu0 %v1945_v37 }
  0x7a   : > { %1481 = vmatpush3.bf16.msra.mxu1 %v1748_v2  ;;  %1555 = vmatprep.subr.bf16.mxu0 %v1692_v34 }
  0x7b   : > { %1482 = vmatprep.subr.bf16.mxu1 %v1760_v4  ;;  %1561 = vmatprep.mubr.msk.bf16.mxu0 %vm1693_vm0, %v1692_v34 }
  0x7c   : > { %1045 = vmatprep.mubr.bf16.mxu1 %v1663_v51 }
  0x7d   : > { %1556 = vmatpush3.bf16.msra.mxu0 %v1951_v38 }
  0x7e   : > { %1483 = vmatpush3.bf16.msra.mxu1 %v1772_v6  ;;  %1557 = vmatprep.subr.bf16.mxu0 %v1692_v34 }
  0x7f   : > { %1484 = vmatprep.subr.bf16.mxu1 %v1784_v8 }
  0x81   : > { %1558 = vmatpush3.bf16.msra.mxu0 %v1963_v40 }
  0x82   : > { %1485 = vmatpush3.bf16.msra.mxu1 %v1796_v10  ;;  %1559 = vmatprep.subr.bf16.mxu0 %v1692_v34 }
  0x83   : > { %1486 = vmatprep.subr.bf16.mxu1 %v1808_v12 }
  0x85   : > { %1560 = vmatpush3.bf16.msra.mxu0 %v1972_v41 }
  0x86   : > { %1487 = vmatpush3.bf16.msra.mxu1 %v1820_v14  ;;  %1502 = vmatprep.subr.bf16.mxu0 %v1742_v1 }
  0x87   : > { %1488 = vmatprep.subr.bf16.mxu1 %v1832_v16 }
  0x88   : > { %1562 = vmatmul.mubr.msk.bf16.vlgmr.msra.gmra.mrb[16].mxu0 %vm533_vm1, %v1660_v52 }
  0x89   : > { %1503 = vmatpush3.bf16.msra.mxu0 %v1754_v3  ;;  %1086 = vmatprep.mubr.bf16.mxu0 %v1666_v53 }
  0x8a   : > { %1489 = vmatpush3.bf16.msra.mxu1 %v1845_v18  ;;  %1504 = vmatprep.subr.bf16.mxu0 %v1766_v5 }
  0x8b   : > { %1490 = vmatprep.subr.bf16.mxu1 %v1857_v20 }
  0x8d   : > { %1505 = vmatpush3.bf16.msra.mxu0 %v1778_v7 }
  0x8e   : > { %1491 = vmatpush3.bf16.msra.mxu1 %v1872_v22  ;;  %1506 = vmatprep.subr.bf16.mxu0 %v1790_v9 }
  0x8f   : > { %1492 = vmatprep.subr.bf16.mxu1 %v1884_v24 }
  0x91   : > { %1507 = vmatpush3.bf16.msra.mxu0 %v1802_v11 }
  0x92   : > { %1493 = vmatpush3.bf16.msra.mxu1 %v1897_v26  ;;  %1508 = vmatprep.subr.bf16.mxu0 %v1814_v13 }
  0x93   : > { %1494 = vmatprep.subr.bf16.mxu1 %v1909_v28 }
  0x95   : > { %1509 = vmatpush3.bf16.msra.mxu0 %v1826_v15 }
  0x96   : > { %1495 = vmatpush3.bf16.msra.mxu1 %v1926_v30  ;;  %1510 = vmatprep.subr.bf16.mxu0 %v1838_v17 }
  0x97   : > { %1565 = vmatprep.subr.bf16.mxu1 %v1692_v34 }
  0x99   : > { %1511 = vmatpush3.bf16.msra.mxu0 %v1851_v19  ;;  %1046 = vmatmul.mubr.bf16.vlgmr.msra.gmra.mrb[16].mxu1 %v1661_v54 }
  0x9a   : > { %1566 = vmatpush3.bf16.msra.mxu1 %v1945_v37  ;;  %1512 = vmatprep.subr.bf16.mxu0 %v1863_v21 }
  0x9b   : > { %1567 = vmatprep.subr.bf16.mxu1 %v1692_v34  ;;  %1573 = vmatprep.mubr.msk.bf16.mxu1 %vm1693_vm0, %v1692_v34 }
  0x9d   : > { %1513 = vmatpush3.bf16.msra.mxu0 %v1878_v23 }
  0x9e   : > { %1568 = vmatpush3.bf16.msra.mxu1 %v1951_v38  ;;  %1514 = vmatprep.subr.bf16.mxu0 %v1890_v25 }
  0x9f   : > { %1569 = vmatprep.subr.bf16.mxu1 %v1692_v34 }
  0xa1   : > { %1515 = vmatpush3.bf16.msra.mxu0 %v1903_v27 }
  0xa2   : > { %1570 = vmatpush3.bf16.msra.mxu1 %v1963_v40  ;;  %1516 = vmatprep.subr.bf16.mxu0 %v1915_v29 }
  0xa3   : > { %1571 = vmatprep.subr.bf16.mxu1 %v1692_v34 }
  0xa5   : > { %1517 = vmatpush3.bf16.msra.mxu0 %v1932_v31 }
  0xa6   : > { %1572 = vmatpush3.bf16.msra.mxu1 %v1972_v41 }
  0xa8   : > { %1087 = vmatmul.mubr.bf16.vlgmr.msra.gmra.mrb[20].mxu0 %v1664_v55 }
  0xa9   : > { %1574 = vmatmul.mubr.msk.bf16.vlgmr.msra.gmra.mrb[20].mxu1 %vm533_vm1, %v1667_v56 }
  0xfb   : > { %v1349_v57 = vpop.f32.mrb[0].mxu0 }
  0xfc   : > { %v1371_v58 = vpop.f32.mrb[0].mxu1  ;;  %v1350_v59 = vpop.f32.mrb[1].mxu0 }
  0xfd   : > { %v1351_v60 = vadd.f32 %v1350_v59, %v1349_v57  ;;  %v1372_v61 = vpop.f32.mrb[1].mxu1  ;;  %v1352_v62 = vpop.f32.mrb[2].mxu0 }
  0xfe   : > { %v1373_v63 = vadd.f32 %v1372_v61, %v1371_v58  ;;  %v1374_v0 = vpop.f32.mrb[2].mxu1  ;;  %v1353_v1 = vpop.f32.mrb[3].mxu0 }
  0xff   : > { %v1354_v2 = vadd.f32 %v1353_v1, %v1352_v62  ;;  %v1375_v3 = vpop.f32.mrb[3].mxu1 }
 0x100   : > { %v1376_v4 = vadd.f32 %v1375_v3, %v1374_v0  ;;  %v613_v5 = vadd.f32 %v1373_v63, %v1351_v60 }
 0x102   : > { %v616_v6 = vadd.f32 %v1376_v4, %v1354_v2 }
 0x10b   : > { %v653_v7 = vpop.f32.mrb[4].mxu0 }
 0x10c   : > { %v2116_v8 = vadd.f32 %v653_v7, %v613_v5  ;;  %v1539_v9 = vpop.f32.mrb[5].mxu0 }
 0x10d   : > { %v656_v10 = vpop.f32.mrb[6].mxu0 }
 0x10e   : > { %v2118_v11 = vadd.f32 %v656_v10, %v616_v6  ;;  %v1540_v12 = vpop.f32.mrb[7].mxu0 }
 0x10f   : > { %v1329_v12 = vld [vmem:[%s2140_s2] ss:$0 sm:$0xff] }
 0x11c   : > { %v1398_v13 = vpop.f32.mrb[4].mxu1 }
 0x11d   : > { %v1399_v14 = vpop.f32.mrb[5].mxu1 }
 0x11e   : > { %v1400_v15 = vadd.f32 %v1399_v14, %v1398_v13  ;;  %v1401_v16 = vpop.f32.mrb[6].mxu1 }
 0x11f   : > { %v1402_v17 = vpop.f32.mrb[7].mxu1 }
 0x120   : > { %v1403_v18 = vadd.f32 %v1402_v17, %v1401_v16 }
 0x12b   : > { %v1420_v19 = vpop.f32.mrb[8].mxu0 }
 0x12c   : > { %v1421_v20 = vpop.f32.mrb[9].mxu0  ;;  %v811_v21 = vpop.f32.mrb[8].mxu1 }
 0x12d   : > { %v1422_v22 = vadd.f32 %v1421_v20, %v1420_v19  ;;  %v1423_v23 = vpop.f32.mrb[10].mxu0  ;;  %v1551_v24 = vpop.f32.mrb[9].mxu1 }
 0x12e   : > { %v1424_v25 = vpop.f32.mrb[11].mxu0  ;;  %v814_v26 = vpop.f32.mrb[10].mxu1 }
 0x12f   : > { %v1425_v27 = vadd.f32 %v1424_v25, %v1423_v23  ;;  %v771_v28 = vadd.f32 %v1422_v22, %v1400_v15  ;;  %v1552_v29 = vpop.f32.mrb[11].mxu1 }
 0x131   : > { %v812_v30 = vadd.f32 %v811_v21, %v771_v28  ;;  %v774_v31 = vadd.f32 %v1425_v27, %v1403_v18 }
 0x133   : > { %v818_v32 = vmax.f32 %v2116_v8, %v812_v30  ;;  %v815_v33 = vadd.f32 %v814_v26, %v774_v31 }
 0x135   : > { %v819_v34 = vmax.f32 %v2118_v11, %v815_v33 }
 0x14b   : > { %v1447_v35 = vpop.f32.mrb[12].mxu0 }
 0x14c   : > { %v1469_v36 = vpop.f32.mrb[12].mxu1  ;;  %v1448_v37 = vpop.f32.mrb[13].mxu0 }
 0x14d   : > { %v1449_v38 = vadd.f32 %v1448_v37, %v1447_v35  ;;  %v1470_v39 = vpop.f32.mrb[13].mxu1  ;;  %v1450_v40 = vpop.f32.mrb[14].mxu0 }
 0x14e   : > { %v1471_v41 = vadd.f32 %v1470_v39, %v1469_v36  ;;  %v1472_v42 = vpop.f32.mrb[14].mxu1  ;;  %v1451_v43 = vpop.f32.mrb[15].mxu0 }
 0x14f   : > { %v1452_v44 = vadd.f32 %v1451_v43, %v1450_v40  ;;  %v1473_v45 = vpop.f32.mrb[15].mxu1 }
 0x150   : > { %v1474_v46 = vadd.f32 %v1473_v45, %v1472_v42  ;;  %v931_v47 = vadd.f32 %v1471_v41, %v1449_v38 }
 0x152   : > { %v934_v48 = vadd.f32 %v1474_v46, %v1452_v44 }
 0x15b   : > { %v971_v49 = vpop.f32.mrb[16].mxu0 }
 0x15c   : > { %v972_v50 = vadd.f32 %v971_v49, %v931_v47  ;;  %v1563_v51 = vpop.f32.mrb[17].mxu0 }
 0x15d   : > { %v974_v52 = vpop.f32.mrb[18].mxu0 }
 0x15e   : > { %v975_v53 = vadd.f32 %v974_v52, %v934_v48  ;;  %v1564_v54 = vpop.f32.mrb[19].mxu0 }
 0x16c   : > { %v1496_v55 = vpop.f32.mrb[16].mxu1 }
 0x16d   : > { %v1497_v56 = vpop.f32.mrb[17].mxu1 }
 0x16e   : > { %v1498_v57 = vadd.f32 %v1497_v56, %v1496_v55  ;;  %v1499_v58 = vpop.f32.mrb[18].mxu1 }
 0x16f   : > { %v1500_v59 = vpop.f32.mrb[19].mxu1 }
 0x170   : > { %v1501_v60 = vadd.f32 %v1500_v59, %v1499_v58 }
 0x17b   : > { %v1518_v61 = vpop.f32.mrb[20].mxu0 }
 0x17c   : > { %v1519_v62 = vpop.f32.mrb[21].mxu0  ;;  %v1129_v63 = vpop.f32.mrb[20].mxu1 }
 0x17d   : > { %v1520_v0 = vadd.f32 %v1519_v62, %v1518_v61  ;;  %v1521_v1 = vpop.f32.mrb[22].mxu0  ;;  %v1575_v2 = vpop.f32.mrb[21].mxu1 }
 0x17e   : > { %v1522_v3 = vpop.f32.mrb[23].mxu0  ;;  %v1132_v4 = vpop.f32.mrb[22].mxu1 }
 0x17f   : > { %v1089_v5 = vadd.f32 %v1520_v0, %v1498_v57  ;;  %v1523_v6 = vadd.f32 %v1522_v3, %v1521_v1  ;;  %v1576_v7 = vpop.f32.mrb[23].mxu1 }
 0x181   : > { %v1130_v8 = vadd.f32 %v1129_v63, %v1089_v5  ;;  %v1092_v9 = vadd.f32 %v1523_v6, %v1501_v60 }
 0x183   : > { %v1136_v10 = vmax.f32 %v972_v50, %v1130_v8  ;;  %v1133_v11 = vadd.f32 %v1132_v4, %v1092_v9 }
 0x185   : > { %v1138_v13 = vmax.f32 %v818_v32, %v1136_v10  ;;  %v1137_v14 = vmax.f32 %v975_v53, %v1133_v11 }
 0x187   : > { %v1147_v15 = vadd.f32 %v1329_v12, %v1138_v13  ;;  %v1139_v16 = vmax.f32 %v819_v34, %v1137_v14 }
 0x189   : > { %v1149_v17 = vmax.f32 %v1147_v15, 0.0  ;;  %v1148_v18 = vadd.f32 %v1329_v12, %v1139_v16 }
 0x18b   : > { %1151 = vst [vmem:[%s211_s28] sm:$0xff] %v1149_v17  ;;  %v1150_v19 = vmax.f32 %v1148_v18, 0.0 }
 0x18d   : > { %1152 = vst [vmem:[%s211_s28 + $0x8] sm:$0xff] %v1150_v19 }
 0x18e PF: > { %s13_s14 = sadd.s32 1, %s1690_s14   ;;  %s2142_s12 = smov %s1686_s13 }
 0x18f   : > { %p10_p5 = scmp.ge.s32.totalorder %s13_s14, 4   ;;  %s2143_s13 = smov %s2145_s15 }
 0x191   :  { %12 = sbr.rel (!%p10_p5) target bundleno = 2 (0x2), region = 65 }

// kernel: adams_cnn_forward.14
= control target key start
LH: loop header
LB: loop body
LE: loop exit
PB: predicated region body
PF: predicated region fallthrough
CT: control target
= control target key end

     0   :  { %s1067_s15 = smov 0   ;;  %s1069_s16 = smov 0   ;;  %s1277_s0 = inlined_call_operand.vmem [shape: bf16[8,1024], index: 0, kind: input, shape index: {}]   ;;  %s1278_s1 = inlined_call_operand.vmem [shape: s8[1024,256], index: 1, kind: input, shape index: {}]   ;;  %s1279_s2 = inlined_call_operand.vmem [shape: f32[1,256], index: 2, kind: input, shape index: {}]   ;;  %s1280_s3 = inlined_call_operand.vmem [shape: f32[1,256], index: 3, kind: input, shape index: {}]   ;;  %s1281_s4 = inlined_call_operand.vmem [shape: f32[8,256], index: 4, kind: output, shape index: {}]  }
   0x1   :  { %s1071_s17 = smov 0   ;;  %s1073_s18 = smov 0  }
   0x2   :  { %s1075_s19 = smov 0  }
   0x3 LB: > { %s26_s20 = sadd.s32 1, %s1036_s18  ;;  %p68_p1 = scmp.ne.s32.totalorder %s1028_s16, %s1024_s15  ;;  %s1040_s19 = sphi %s1075_s19, %s14_s19   ;;  %s1036_s18 = sphi %s1073_s18, %s1285_s18   ;;  %s1032_s17 = sphi %s1071_s17, %s1284_s17   ;;  %s1028_s16 = sphi %s1069_s16, %s1283_s16   ;;  %s1024_s15 = sphi %s1067_s15, %s1282_s15  }
   0x4   : > { %p28_p0 = scmp.ge.s32.totalorder %s26_s20, 2  ;;  %p69_p2 = scmp.eq.s32.totalorder %s1040_s19, 0 }
   0x5   : > { %s61_s22 = sadd.s32 1, %s1028_s16  ;;  %p848_p5 = scmp.ge.s32.totalorder %s1040_s19, 2 }
   0x6   : > { %s1287_s20 = smov (%p28_p0, %s26_s20), 0  ;;  %p70_p3 = por %p69_p2, %p68_p1 }
   0x7   : > { %s57_s21 = ssub.s32 %s1036_s18, %s1287_s20  ;;  %181 = sbr.rel (%p848_p5) target bundleno = 34 (0x22), region = 20 }
   0x8   : > { %p59_p4 = scmp.eq.s32.totalorder %s57_s21, 0 }
   0xa   : > { %s1102_s23 = scalar_select %p59_p4, %s1028_s16, %s61_s22  }
   0xe   : > { %184 = sbr.rel (!%p70_p3) target bundleno = 34 (0x22), region = 24  ;;  %s186_s24 = sand.u32 (%p70_p3), 1, %s1028_s16  }
   0xf   : > { %s850_s25 = sshll.u32 (%p70_p3), %s1036_s18, 3  ;;  %s849_s26 = sshll.u32 (%p70_p3), %s186_s24, 8 }
  0x10   : > { %s1110_s29 = scalar_lea.vmem (%p70_p3), %s1278_s1, %s850_s25  ;;  %s1115_s30 = scalar_lea.vmem (%p70_p3), [#allocation3], %s849_s26 }
  0x11   : > { %v283_v0 = vld [vmem:[%s1110_s29] sm:$0xff] (%p70_p3)  ;;  %v285_v1 = vld [vmem:[%s1110_s29 + $0x10] sm:$0xff] (%p70_p3) }
  0x12   : > { %v287_v2 = vld [vmem:[%s1110_s29 + $0x20] sm:$0xff] (%p70_p3)  ;;  %284 = vst [vmem:[%s1115_s30] sm:$0xff] (%p70_p3), %v283_v0  ;;  %286 = vst [vmem:[%s1115_s30 + $0x8] sm:$0xff] (%p70_p3), %v285_v1  ;;  %v289_v3 = vld [vmem:[%s1110_s29 + $0x30] sm:$0xff] (%p70_p3) }
  0x13   : > { %288 = vst [vmem:[%s1115_s30 + $0x10] sm:$0xff] (%p70_p3), %v287_v2  ;;  %v291_v4 = vld [vmem:[%s1110_s29 + $0x40] sm:$0xff] (%p70_p3)  ;;  %v293_v5 = vld [vmem:[%s1110_s29 + $0x50] sm:$0xff] (%p70_p3)  ;;  %290 = vst [vmem:[%s1115_s30 + $0x18] sm:$0xff] (%p70_p3), %v289_v3 }
  0x14   : > { %292 = vst [vmem:[%s1115_s30 + $0x20] sm:$0xff] (%p70_p3), %v291_v4  ;;  %294 = vst [vmem:[%s1115_s30 + $0x28] sm:$0xff] (%p70_p3), %v293_v5  ;;  %v295_v6 = vld [vmem:[%s1110_s29 + $0x60] sm:$0xff] (%p70_p3)  ;;  %v297_v7 = vld [vmem:[%s1110_s29 + $0x70] sm:$0xff] (%p70_p3) }
  0x15   : > { %v299_v8 = vld [vmem:[%s1110_s29 + $0x80] sm:$0xff]  ;;  %296 = vst [vmem:[%s1115_s30 + $0x30] sm:$0xff] %v295_v6  ;;  %298 = vst [vmem:[%s1115_s30 + $0x38] sm:$0xff] %v297_v7  ;;  %v301_v9 = vld [vmem:[%s1110_s29 + $0x90] sm:$0xff] }
  0x16   : > { %300 = vst [vmem:[%s1115_s30 + $0x40] sm:$0xff] %v299_v8  ;;  %v303_v10 = vld [vmem:[%s1110_s29 + $0xa0] sm:$0xff]  ;;  %v305_v11 = vld [vmem:[%s1110_s29 + $0xb0] sm:$0xff]  ;;  %302 = vst [vmem:[%s1115_s30 + $0x48] sm:$0xff] %v301_v9 }
  0x17   : > { %304 = vst [vmem:[%s1115_s30 + $0x50] sm:$0xff] %v303_v10  ;;  %306 = vst [vmem:[%s1115_s30 + $0x58] sm:$0xff] %v305_v11  ;;  %v307_v12 = vld [vmem:[%s1110_s29 + $0xc0] sm:$0xff]  ;;  %v309_v13 = vld [vmem:[%s1110_s29 + $0xd0] sm:$0xff] }
  0x18   : > { %v311_v14 = vld [vmem:[%s1110_s29 + $0xe0] sm:$0xff]  ;;  %308 = vst [vmem:[%s1115_s30 + $0x60] sm:$0xff] %v307_v12  ;;  %310 = vst [vmem:[%s1115_s30 + $0x68] sm:$0xff] %v309_v13  ;;  %v313_v15 = vld [vmem:[%s1110_s29 + $0xf0] sm:$0xff] }
  0x19   : > { %312 = vst [vmem:[%s1115_s30 + $0x70] sm:$0xff] %v311_v14  ;;  %v315_v16 = vld [vmem:[%s1110_s29 + $0x100] sm:$0xff]  ;;  %v317_v17 = vld [vmem:[%s1110_s29 + $0x110] sm:$0xff]  ;;  %314 = vst [vmem:[%s1115_s30 + $0x78] sm:$0xff] %v313_v15 }
  0x1a   : > { %316 = vst [vmem:[%s1115_s30 + $0x80] sm:$0xff] %v315_v16  ;;  %318 = vst [vmem:[%s1115_s30 + $0x88] sm:$0xff] %v317_v17  ;;  %v319_v18 = vld [vmem:[%s1110_s29 + $0x120] sm:$0xff]  ;;  %v321_v19 = vld [vmem:[%s1110_s29 + $0x130] sm:$0xff] }
  0x1b   : > { %v323_v20 = vld [vmem:[%s1110_s29 + $0x140] sm:$0xff]  ;;  %320 = vst [vmem:[%s1115_s30 + $0x90] sm:$0xff] %v319_v18  ;;  %322 = vst [vmem:[%s1115_s30 + $0x98] sm:$0xff] %v321_v19  ;;  %v325_v21 = vld [vmem:[%s1110_s29 + $0x150] sm:$0xff] }
  0x1c   : > { %324 = vst [vmem:[%s1115_s30 + $0xa0] sm:$0xff] %v323_v20  ;;  %v327_v22 = vld [vmem:[%s1110_s29 + $0x160] sm:$0xff]  ;;  %v329_v23 = vld [vmem:[%s1110_s29 + $0x170] sm:$0xff]  ;;  %326 = vst [vmem:[%s1115_s30 + $0xa8] sm:$0xff] %v325_v21 }
  0x1d   : > { %328 = vst [vmem:[%s1115_s30 + $0xb0] sm:$0xff] %v327_v22  ;;  %330 = vst [vmem:[%s1115_s30 + $0xb8] sm:$0xff] %v329_v23  ;;  %v331_v24 = vld [vmem:[%s1110_s29 + $0x180] sm:$0xff]  ;;  %v333_v25 = vld [vmem:[%s1110_s29 + $0x190] sm:$0xff] }
  0x1e   : > { %v335_v26 = vld [vmem:[%s1110_s29 + $0x1a0] sm:$0xff]  ;;  %332 = vst [vmem:[%s1115_s30 + $0xc0] sm:$0xff] %v331_v24  ;;  %334 = vst [vmem:[%s1115_s30 + $0xc8] sm:$0xff] %v333_v25  ;;  %v337_v27 = vld [vmem:[%s1110_s29 + $0x1b0] sm:$0xff] }
  0x1f   : > { %336 = vst [vmem:[%s1115_s30 + $0xd0] sm:$0xff] %v335_v26  ;;  %v339_v28 = vld [vmem:[%s1110_s29 + $0x1c0] sm:$0xff]  ;;  %v341_v29 = vld [vmem:[%s1110_s29 + $0x1d0] sm:$0xff]  ;;  %338 = vst [vmem:[%s1115_s30 + $0xd8] sm:$0xff] %v337_v27 }
  0x20   : > { %340 = vst [vmem:[%s1115_s30 + $0xe0] sm:$0xff] %v339_v28  ;;  %342 = vst [vmem:[%s1115_s30 + $0xe8] sm:$0xff] %v341_v29  ;;  %v343_v30 = vld [vmem:[%s1110_s29 + $0x1e0] sm:$0xff]  ;;  %v345_v31 = vld [vmem:[%s1110_s29 + $0x1f0] sm:$0xff] }
  0x21   : > { %344 = vst [vmem:[%s1115_s30 + $0xf0] sm:$0xff] %v343_v30  ;;  %346 = vst [vmem:[%s1115_s30 + $0xf8] sm:$0xff] %v345_v31 }
  0x22 PF: > { %p851_p6 = scmp.ge.s32.totalorder %s1040_s19, 1  ;;  %p363_p7 = scmp.lt.s32.totalorder %s1040_s19, 3 }
  0x24   : > { %p364_p8 = pnand %p851_p6, %p363_p7 }
  0x25   : > { %s370_s5 = sand.u32 (!%p364_p8), 1, %s1024_s15   ;;  %v1184_v32 = vld [vmem:[%s1277_s0] sm:$0xff] (!%p364_p8)  ;;  %v1189_v33 = vld [vmem:[%s1277_s0 + $0x8] sm:$0xff] (!%p364_p8)  ;;  %v1224_v28 = vld [vmem:[%s1277_s0 + $0x10] sm:$0xff] (!%p364_p8)  ;;  %p412_p9 = scmp.lt.s32.totalorder (!%p364_p8), %s1032_s17, 1 }
  0x26   : > { %367 = sbr.rel (%p364_p8) target bundleno = 334 (0x14e), region = 70  ;;  %s852_s10 = sshll.u32 (!%p364_p8), %s370_s5, 8  ;;  %v855_v34 = vcombine.high (!%p364_p8), %v1184_v32, %v1184_v32  ;;  %v857_v35 = vcombine.high (!%p364_p8), %v1189_v33, %v1189_v33  ;;  %v854_v26 = vcombine.low (!%p364_p8), %v1184_v32, %v1184_v32  ;;  %v856_v27 = vcombine.low (!%p364_p8), %v1189_v33, %v1189_v33  ;;  %v1229_v29 = vld [vmem:[%s1277_s0 + $0x18] sm:$0xff] (!%p364_p8) }
  0x27   : > { %s1195_s11 = scalar_lea.vmem (!%p364_p8), [#allocation3], %s852_s10 }
  0x28   : > { %v437_v36 = vld [vmem:[%s1195_s11 + $0x20] sm:$0xff] (!%p364_p8)  ;;  %589 = vmatprep.mubr.bf16.mxu0 (!%p364_p8), %v855_v34  ;;  %629 = vmatprep.mubr.bf16.mxu1 (!%p364_p8), %v857_v35  ;;  %v438_v46 = vld [vmem:[%s1195_s11 + $0x28] sm:$0xff] (!%p364_p8)  ;;  %v439_v58 = vld [vmem:[%s1195_s11 + $0x30] sm:$0xff] (!%p364_p8) }
  0x29   : > { %v445_v37 = vld [vmem:[%s1195_s11 + $0x60] sm:$0xff] (!%p364_p8)  ;;  %v473_v39 = vunpack.c.l.s8.bf16 (!%p364_p8), %v437_v36  ;;  %v474_v40 = vunpack.c.h.s8.bf16 (!%p364_p8), %v437_v36  ;;  %v446_v47 = vld [vmem:[%s1195_s11 + $0x68] sm:$0xff] (!%p364_p8)  ;;  %v475_v50 = vunpack.c.l.s8.bf16 (!%p364_p8), %v438_v46  ;;  %v476_v56 = vunpack.c.h.s8.bf16 (!%p364_p8), %v438_v46  ;;  %v447_v59 = vld [vmem:[%s1195_s11 + $0x70] sm:$0xff] (!%p364_p8) }
  0x2a   : > { %v433_v38 = vld [vmem:[%s1195_s11] sm:$0xff] (!%p364_p8)  ;;  %v489_v41 = vunpack.c.l.s8.bf16 (!%p364_p8), %v445_v37  ;;  %v490_v42 = vunpack.c.h.s8.bf16 (!%p364_p8), %v445_v37  ;;  %v491_v51 = vunpack.c.l.s8.bf16 (!%p364_p8), %v446_v47  ;;  %v434_v52 = vld [vmem:[%s1195_s11 + $0x8] sm:$0xff] (!%p364_p8)  ;;  %v492_v57 = vunpack.c.h.s8.bf16 (!%p364_p8), %v446_v47  ;;  %v435_v0 = vld [vmem:[%s1195_s11 + $0x10] sm:$0xff] (!%p364_p8) }
  0x2b   : > { %v441_v43 = vld [vmem:[%s1195_s11 + $0x40] sm:$0xff] (!%p364_p8)  ;;  %v465_v44 = vunpack.c.l.s8.bf16 (!%p364_p8), %v433_v38  ;;  %866 = vmatprep.subr.bf16.mxu0 (!%p364_p8), %v473_v39  ;;  %v466_v48 = vunpack.c.h.s8.bf16 (!%p364_p8), %v433_v38  ;;  %v442_v53 = vld [vmem:[%s1195_s11 + $0x48] sm:$0xff] (!%p364_p8)  ;;  %v467_v54 = vunpack.c.l.s8.bf16 (!%p364_p8), %v434_v52  ;;  %v468_v60 = vunpack.c.h.s8.bf16 (!%p364_p8), %v434_v52  ;;  %v443_v1 = vld [vmem:[%s1195_s11 + $0x50] sm:$0xff] (!%p364_p8) }
  0x2c   : > { %v481_v45 = vunpack.c.l.s8.bf16 (!%p364_p8), %v441_v43  ;;  %888 = vmatprep.subr.bf16.mxu1 (!%p364_p8), %v489_v41  ;;  %v482_v49 = vunpack.c.h.s8.bf16 (!%p364_p8), %v441_v43  ;;  %v483_v55 = vunpack.c.l.s8.bf16 (!%p364_p8), %v442_v53  ;;  %v484_v61 = vunpack.c.h.s8.bf16 (!%p364_p8), %v442_v53  ;;  %v440_v6 = vld [vmem:[%s1195_s11 + $0x38] sm:$0xff] (!%p364_p8)  ;;  %v453_v18 = vld [vmem:[%s1195_s11 + $0xa0] sm:$0xff] (!%p364_p8)  ;;  %v454_v33 = vld [vmem:[%s1195_s11 + $0xa8] sm:$0xff] (!%p364_p8) }
  0x2d   : > { %867 = vmatpush3.bf16.msra.mxu0 %v465_v44  ;;  %v477_v62 = vunpack.c.l.s8.bf16 %v439_v58  ;;  %v493_v63 = vunpack.c.l.s8.bf16 %v447_v59  ;;  %v469_v2 = vunpack.c.l.s8.bf16 %v435_v0  ;;  %v485_v3 = vunpack.c.l.s8.bf16 %v443_v1  ;;  %v448_v7 = vld [vmem:[%s1195_s11 + $0x78] sm:$0xff]  ;;  %v461_v19 = vld [vmem:[%s1195_s11 + $0xe0] sm:$0xff]  ;;  %v462_v35 = vld [vmem:[%s1195_s11 + $0xe8] sm:$0xff]  ;;  %s1289_s17 = smov (!%p412_p9, %s1032_s17), 1 }
  0x2e   : > { %889 = vmatpush3.bf16.msra.mxu1 %v481_v45  ;;  %868 = vmatprep.subr.bf16.mxu0 %v474_v40  ;;  %v478_v4 = vunpack.c.h.s8.bf16 %v439_v58  ;;  %v494_v5 = vunpack.c.h.s8.bf16 %v447_v59  ;;  %v470_v8 = vunpack.c.h.s8.bf16 %v435_v0  ;;  %v486_v9 = vunpack.c.h.s8.bf16 %v443_v1  ;;  %v436_v12 = vld [vmem:[%s1195_s11 + $0x18] sm:$0xff]  ;;  %v449_v24 = vld [vmem:[%s1195_s11 + $0x80] sm:$0xff]  ;;  %v458_v43 = vld [vmem:[%s1195_s11 + $0xc8] sm:$0xff]  ;;  %s414_s24 = scalar_lea.vmem %s1279_s2, %s1289_s17  ;;  %s417_s27 = scalar_lea.vmem %s1280_s3, %s1289_s17 }
  0x2f   : > { %890 = vmatprep.subr.bf16.mxu1 %v490_v42  ;;  %v479_v10 = vunpack.c.l.s8.bf16 %v440_v6  ;;  %v495_v11 = vunpack.c.l.s8.bf16 %v448_v7  ;;  %v444_v13 = vld [vmem:[%s1195_s11 + $0x58] sm:$0xff]  ;;  %v471_v14 = vunpack.c.l.s8.bf16 %v436_v12  ;;  %v480_v16 = vunpack.c.h.s8.bf16 %v440_v6  ;;  %v457_v25 = vld [vmem:[%s1195_s11 + $0xc0] sm:$0xff]  ;;  %v450_v42 = vld [vmem:[%s1195_s11 + $0x88] sm:$0xff]  ;;  %s853_s28 = sshll.u32 %s1289_s17, 3 }
  0x30   : > { %v487_v15 = vunpack.c.l.s8.bf16 %v444_v13  ;;  %v496_v17 = vunpack.c.h.s8.bf16 %v448_v7  ;;  %v472_v20 = vunpack.c.h.s8.bf16 %v436_v12  ;;  %v488_v21 = vunpack.c.h.s8.bf16 %v444_v13  ;;  %s421_s5 = scalar_lea.vmem %s1281_s4, %s853_s28 }
  0x31   : > { %869 = vmatpush3.bf16.msra.mxu0 %v466_v48  ;;  %v505_v22 = vunpack.c.l.s8.bf16 %v453_v18  ;;  %v521_v23 = vunpack.c.l.s8.bf16 %v461_v19  ;;  %v497_v30 = vunpack.c.l.s8.bf16 %v449_v24  ;;  %v513_v31 = vunpack.c.l.s8.bf16 %v457_v25  ;;  %v455_v48 = vld [vmem:[%s1195_s11 + $0xb0] sm:$0xff] }
  0x32   : > { %891 = vmatpush3.bf16.msra.mxu1 %v482_v49  ;;  %870 = vmatprep.subr.bf16.mxu0 %v475_v50  ;;  %v506_v32 = vunpack.c.h.s8.bf16 %v453_v18  ;;  %v522_v34 = vunpack.c.h.s8.bf16 %v461_v19  ;;  %v859_v36 = vcombine.high %v1224_v28, %v1224_v28  ;;  %v861_v37 = vcombine.high %v1229_v29, %v1229_v29  ;;  %v463_v49 = vld [vmem:[%s1195_s11 + $0xf0] sm:$0xff] }
  0x33   : > { %892 = vmatprep.subr.bf16.mxu1 %v491_v51  ;;  %v498_v38 = vunpack.c.h.s8.bf16 %v449_v24  ;;  %v514_v39 = vunpack.c.h.s8.bf16 %v457_v25  ;;  %v507_v40 = vunpack.c.l.s8.bf16 %v454_v33  ;;  %v523_v41 = vunpack.c.l.s8.bf16 %v462_v35 }
  0x34   : > { %v499_v44 = vunpack.c.l.s8.bf16 %v450_v42  ;;  %v515_v45 = vunpack.c.l.s8.bf16 %v458_v43  ;;  %v508_v46 = vunpack.c.h.s8.bf16 %v454_v33  ;;  %v524_v47 = vunpack.c.h.s8.bf16 %v462_v35  ;;  %v862_v33 = vld [vmem:[%s414_s24] ss:$0 sm:$0xff] }
  0x35   : > { %871 = vmatpush3.bf16.msra.mxu0 %v467_v54  ;;  %v500_v50 = vunpack.c.h.s8.bf16 %v450_v42  ;;  %v516_v51 = vunpack.c.h.s8.bf16 %v458_v43  ;;  %v509_v52 = vunpack.c.l.s8.bf16 %v455_v48  ;;  %v525_v53 = vunpack.c.l.s8.bf16 %v463_v49  ;;  %v451_v54 = vld [vmem:[%s1195_s11 + $0x90] sm:$0xff] }
  0x36   : > { %893 = vmatpush3.bf16.msra.mxu1 %v483_v55  ;;  %872 = vmatprep.subr.bf16.mxu0 %v476_v56  ;;  %v459_v55 = vld [vmem:[%s1195_s11 + $0xd0] sm:$0xff]  ;;  %v501_v56 = vunpack.c.l.s8.bf16 %v451_v54  ;;  %v510_v58 = vunpack.c.h.s8.bf16 %v455_v48  ;;  %v526_v59 = vunpack.c.h.s8.bf16 %v463_v49 }
  0x37   : > { %894 = vmatprep.subr.bf16.mxu1 %v492_v57  ;;  %v517_v57 = vunpack.c.l.s8.bf16 %v459_v55 }
  0x39   : > { %873 = vmatpush3.bf16.msra.mxu0 %v468_v60  ;;  %v456_v60 = vld [vmem:[%s1195_s11 + $0xb8] sm:$0xff] }
  0x3a   : > { %895 = vmatpush3.bf16.msra.mxu1 %v484_v61  ;;  %874 = vmatprep.subr.bf16.mxu0 %v477_v62  ;;  %v464_v61 = vld [vmem:[%s1195_s11 + $0xf8] sm:$0xff]  ;;  %v502_v62 = vunpack.c.h.s8.bf16 %v451_v54  ;;  %v511_v0 = vunpack.c.l.s8.bf16 %v456_v60  ;;  %v512_v6 = vunpack.c.h.s8.bf16 %v456_v60 }
  0x3b   : > { %896 = vmatprep.subr.bf16.mxu1 %v493_v63  ;;  %v518_v63 = vunpack.c.h.s8.bf16 %v459_v55  ;;  %v527_v1 = vunpack.c.l.s8.bf16 %v464_v61  ;;  %v528_v7 = vunpack.c.h.s8.bf16 %v464_v61 }
  0x3d   : > { %875 = vmatpush3.bf16.msra.mxu0 %v469_v2  ;;  %v452_v2 = vld [vmem:[%s1195_s11 + $0x98] sm:$0xff] }
  0x3e   : > { %897 = vmatpush3.bf16.msra.mxu1 %v485_v3  ;;  %876 = vmatprep.subr.bf16.mxu0 %v478_v4  ;;  %v460_v3 = vld [vmem:[%s1195_s11 + $0xd8] sm:$0xff]  ;;  %v503_v4 = vunpack.c.l.s8.bf16 %v452_v2 }
  0x3f   : > { %898 = vmatprep.subr.bf16.mxu1 %v494_v5  ;;  %v519_v5 = vunpack.c.l.s8.bf16 %v460_v3 }
  0x41   : > { %877 = vmatpush3.bf16.msra.mxu0 %v470_v8  ;;  %v504_v8 = vunpack.c.h.s8.bf16 %v452_v2 }
  0x42   : > { %899 = vmatpush3.bf16.msra.mxu1 %v486_v9  ;;  %878 = vmatprep.subr.bf16.mxu0 %v479_v10  ;;  %v520_v9 = vunpack.c.h.s8.bf16 %v460_v3  ;;  %v858_v10 = vcombine.low %v1224_v28, %v1224_v28 }
  0x43   : > { %900 = vmatprep.subr.bf16.mxu1 %v495_v11  ;;  %v860_v11 = vcombine.low %v1229_v29, %v1229_v29 }
  0x45   : > { %879 = vmatpush3.bf16.msra.mxu0 %v471_v14 }
  0x46   : > { %901 = vmatpush3.bf16.msra.mxu1 %v487_v15  ;;  %880 = vmatprep.subr.bf16.mxu0 %v480_v16 }
  0x47   : > { %902 = vmatprep.subr.bf16.mxu1 %v496_v17 }
  0x49   : > { %881 = vmatpush3.bf16.msra.mxu0 %v472_v20 }
  0x4a   : > { %903 = vmatpush3.bf16.msra.mxu1 %v488_v21  ;;  %910 = vmatprep.subr.bf16.mxu0 %v505_v22 }
  0x4b   : > { %932 = vmatprep.subr.bf16.mxu1 %v521_v23 }
  0x4c   : > { %590 = vmatmul.mubr.bf16.vlgmr.msra.gmra.mrb[0].mxu0 %v854_v26 }
  0x4d   : > { %630 = vmatmul.mubr.bf16.vlgmr.msra.gmra.mrb[0].mxu1 %v856_v27  ;;  %911 = vmatpush3.bf16.msra.mxu0 %v497_v30 }
  0x4e   : > { %933 = vmatpush3.bf16.msra.mxu1 %v513_v31  ;;  %912 = vmatprep.subr.bf16.mxu0 %v506_v32 }
  0x4f   : > { %934 = vmatprep.subr.bf16.mxu1 %v522_v34  ;;  %669 = vmatprep.mubr.bf16.mxu0 %v859_v36  ;;  %v863_v36 = vld [vmem:[%s417_s27] ss:$0 sm:$0xff] }
  0x50   : > { %709 = vmatprep.mubr.bf16.mxu1 %v861_v37 }
  0x51   : > { %913 = vmatpush3.bf16.msra.mxu0 %v498_v38 }
  0x52   : > { %935 = vmatpush3.bf16.msra.mxu1 %v514_v39  ;;  %914 = vmatprep.subr.bf16.mxu0 %v507_v40 }
  0x53   : > { %936 = vmatprep.subr.bf16.mxu1 %v523_v41 }
  0x55   : > { %915 = vmatpush3.bf16.msra.mxu0 %v499_v44 }
  0x56   : > { %937 = vmatpush3.bf16.msra.mxu1 %v515_v45  ;;  %916 = vmatprep.subr.bf16.mxu0 %v508_v46 }
  0x57   : > { %938 = vmatprep.subr.bf16.mxu1 %v524_v47 }
  0x59   : > { %917 = vmatpush3.bf16.msra.mxu0 %v500_v50 }
  0x5a   : > { %939 = vmatpush3.bf16.msra.mxu1 %v516_v51  ;;  %918 = vmatprep.subr.bf16.mxu0 %v509_v52 }
  0x5b   : > { %940 = vmatprep.subr.bf16.mxu1 %v525_v53 }
  0x5d   : > { %919 = vmatpush3.bf16.msra.mxu0 %v501_v56 }
  0x5e   : > { %941 = vmatpush3.bf16.msra.mxu1 %v517_v57  ;;  %920 = vmatprep.subr.bf16.mxu0 %v510_v58 }
  0x5f   : > { %942 = vmatprep.subr.bf16.mxu1 %v526_v59 }
  0x61   : > { %921 = vmatpush3.bf16.msra.mxu0 %v502_v62 }
  0x62   : > { %943 = vmatpush3.bf16.msra.mxu1 %v518_v63  ;;  %922 = vmatprep.subr.bf16.mxu0 %v511_v0 }
  0x63   : > { %944 = vmatprep.subr.bf16.mxu1 %v527_v1 }
  0x65   : > { %923 = vmatpush3.bf16.msra.mxu0 %v503_v4 }
  0x66   : > { %945 = vmatpush3.bf16.msra.mxu1 %v519_v5  ;;  %924 = vmatprep.subr.bf16.mxu0 %v512_v6 }
  0x67   : > { %946 = vmatprep.subr.bf16.mxu1 %v528_v7 }
  0x69   : > { %925 = vmatpush3.bf16.msra.mxu0 %v504_v8 }
  0x6a   : > { %947 = vmatpush3.bf16.msra.mxu1 %v520_v9 }
  0x6c   : > { %670 = vmatmul.mubr.bf16.vlgmr.msra.gmra.mrb[4].mxu0 %v858_v10 }
  0x6d   : > { %710 = vmatmul.mubr.bf16.vlgmr.msra.gmra.mrb[4].mxu1 %v860_v11 }
 0x11f   : > { %v882_v12 = vpop.f32.mrb[0].mxu0 }
 0x120   : > { %v904_v13 = vpop.f32.mrb[0].mxu1  ;;  %v883_v14 = vpop.f32.mrb[1].mxu0 }
 0x121   : > { %v905_v15 = vpop.f32.mrb[1].mxu1  ;;  %v884_v16 = vadd.f32 %v883_v14, %v882_v12  ;;  %v885_v18 = vpop.f32.mrb[2].mxu0 }
 0x122   : > { %v906_v17 = vadd.f32 %v905_v15, %v904_v13  ;;  %v907_v19 = vpop.f32.mrb[2].mxu1  ;;  %v886_v20 = vpop.f32.mrb[3].mxu0 }
 0x123   : > { %v908_v21 = vpop.f32.mrb[3].mxu1 }
 0x124   : > { %v632_v22 = vadd.f32 %v906_v17, %v884_v16 }
 0x13f   : > { %v926_v23 = vpop.f32.mrb[4].mxu0 }
 0x140   : > { %v948_v24 = vpop.f32.mrb[4].mxu1  ;;  %v927_v25 = vpop.f32.mrb[5].mxu0 }
 0x141   : > { %v949_v26 = vpop.f32.mrb[5].mxu1  ;;  %v928_v27 = vadd.f32 %v927_v25, %v926_v23  ;;  %v929_v29 = vpop.f32.mrb[6].mxu0 }
 0x142   : > { %v950_v28 = vadd.f32 %v949_v26, %v948_v24  ;;  %v951_v30 = vpop.f32.mrb[6].mxu1  ;;  %v930_v31 = vpop.f32.mrb[7].mxu0 }
 0x143   : > { %v952_v32 = vpop.f32.mrb[7].mxu1  ;;  %v672_v34 = vadd.f32 %v928_v27, %v632_v22 }
 0x145   : > { %v712_v35 = vadd.f32 %v950_v28, %v672_v34 }
 0x147   : > { %v730_v37 = vmul.f32 %v862_v33, %v712_v35 }
 0x149   : > { %v738_v38 = vadd.f32 %v863_v36, %v730_v37 }
 0x14b   : > { %v739_v39 = vmax.f32 %v738_v38, 0.0 }
 0x14d   : > { %740 = vst [vmem:[%s421_s5] sm:$0xff] %v739_v39 }
 0x14e PF: > { %s14_s19 = sadd.s32 1, %s1040_s19   ;;  %s1282_s15 = smov %s1028_s16 }
 0x14f   : > { %p11_p10 = scmp.ge.s32.totalorder %s14_s19, 4   ;;  %s1283_s16 = smov %s1102_s23 }
 0x150   : > { %s1284_s17 = smov %s1036_s18  ;;  %s1285_s18 = smov %s1287_s20 }
 0x151   :  { %13 = sbr.rel (!%p11_p10) target bundleno = 3 (0x3), region = 126 }

// kernel: adams_cnn_forward.13
= control target key start
LH: loop header
LB: loop body
LE: loop exit
PB: predicated region body
PF: predicated region fallthrough
CT: control target
= control target key end

     0   :  { %s2700_s15 = smov 0   ;;  %s2702_s16 = smov 0   ;;  %s3622_s0 = inlined_call_operand.vmem [shape: bf16[8,2048], index: 0, kind: input, shape index: {}]   ;;  %s3623_s1 = inlined_call_operand.vmem [shape: s8[2048,1024], index: 1, kind: input, shape index: {}]   ;;  %s3624_s2 = inlined_call_operand.vmem [shape: f32[1,1024], index: 2, kind: input, shape index: {}]   ;;  %s3625_s3 = inlined_call_operand.vmem [shape: f32[1,1024], index: 3, kind: input, shape index: {}]   ;;  %s3626_s4 = inlined_call_operand.vmem [shape: f32[8,1024], index: 4, kind: output, shape index: {}]  }
   0x1   :  { %s2704_s17 = smov 0   ;;  %s2706_s18 = smov 0  }
   0x2   :  { %s2708_s19 = smov 0  }
   0x3 LB: > { %s26_s20 = sadd.s32 1, %s2669_s18  ;;  %p68_p1 = scmp.ne.s32.totalorder %s2661_s16, %s2657_s15  ;;  %s2673_s19 = sphi %s2708_s19, %s14_s19   ;;  %s2669_s18 = sphi %s2706_s18, %s3630_s18   ;;  %s2665_s17 = sphi %s2704_s17, %s3629_s17   ;;  %s2661_s16 = sphi %s2702_s16, %s3628_s16   ;;  %s2657_s15 = sphi %s2700_s15, %s3627_s15  }
   0x4   : > { %p28_p0 = scmp.ge.s32.totalorder %s26_s20, 2  ;;  %p69_p2 = scmp.eq.s32.totalorder %s2673_s19, 0 }
   0x5   : > { %s61_s22 = sadd.s32 1, %s2661_s16  ;;  %p2494_p5 = scmp.ge.s32.totalorder %s2673_s19, 2 }
   0x6   : > { %s3632_s20 = smov (%p28_p0, %s26_s20), 0  ;;  %p70_p3 = por %p69_p2, %p68_p1 }
   0x7   : > { %s57_s21 = ssub.s32 %s2669_s18, %s3632_s20  ;;  %181 = sbr.rel (%p2494_p5) target bundleno = 146 (0x92), region = 20 }
   0x8   : > { %p59_p4 = scmp.eq.s32.totalorder %s57_s21, 0 }
   0xa   : > { %s2735_s23 = scalar_select %p59_p4, %s2661_s16, %s61_s22  }
   0xe   : > { %184 = sbr.rel (!%p70_p3) target bundleno = 146 (0x92), region = 24  ;;  %s186_s24 = sand.u32 (%p70_p3), 1, %s2661_s16  }
   0xf   : > { %s2522_s25 = sshll.u32 (%p70_p3), %s2669_s18, 5  ;;  %s2495_s26 = sshll.u32 (%p70_p3), %s186_s24, 11 }
  0x10   : > { %s2743_s29 = scalar_lea.vmem (%p70_p3), %s3623_s1, %s2522_s25  ;;  %s2748_s30 = scalar_lea.vmem (%p70_p3), [#allocation3], %s2495_s26 }
  0x11   : > { %v207_v0 = vld [vmem:[%s2743_s29] sm:$0xff] (%p70_p3)  ;;  %v209_v1 = vld [vmem:[%s2743_s29 + $0x8] sm:$0xff] (%p70_p3)  ;;  %v211_v2 = vld [vmem:[%s2743_s29 + $0x10] sm:$0xff] (%p70_p3) }
  0x12   : > { %208 = vst [vmem:[%s2748_s30] sm:$0xff] (%p70_p3), %v207_v0  ;;  %210 = vst [vmem:[%s2748_s30 + $0x8] sm:$0xff] (%p70_p3), %v209_v1  ;;  %v213_v3 = vld [vmem:[%s2743_s29 + $0x18] sm:$0xff] (%p70_p3)  ;;  %v215_v4 = vld [vmem:[%s2743_s29 + $0x40] sm:$0xff] (%p70_p3) }
  0x13   : > { %212 = vst [vmem:[%s2748_s30 + $0x10] sm:$0xff] (%p70_p3), %v211_v2  ;;  %v217_v5 = vld [vmem:[%s2743_s29 + $0x48] sm:$0xff] (%p70_p3)  ;;  %214 = vst [vmem:[%s2748_s30 + $0x18] sm:$0xff] (%p70_p3), %v213_v3  ;;  %v219_v6 = vld [vmem:[%s2743_s29 + $0x50] sm:$0xff] (%p70_p3) }
  0x14   : > { %216 = vst [vmem:[%s2748_s30 + $0x20] sm:$0xff] (%p70_p3), %v215_v4  ;;  %218 = vst [vmem:[%s2748_s30 + $0x28] sm:$0xff] (%p70_p3), %v217_v5  ;;  %v221_v7 = vld [vmem:[%s2743_s29 + $0x58] sm:$0xff] (%p70_p3)  ;;  %v223_v8 = vld [vmem:[%s2743_s29 + $0x80] sm:$0xff] (%p70_p3) }
  0x15   : > { %220 = vst [vmem:[%s2748_s30 + $0x30] sm:$0xff] %v219_v6  ;;  %222 = vst [vmem:[%s2748_s30 + $0x38] sm:$0xff] %v221_v7  ;;  %v225_v9 = vld [vmem:[%s2743_s29 + $0x88] sm:$0xff]  ;;  %v227_v10 = vld [vmem:[%s2743_s29 + $0x90] sm:$0xff] }
  0x16   : > { %224 = vst [vmem:[%s2748_s30 + $0x40] sm:$0xff] %v223_v8  ;;  %v229_v11 = vld [vmem:[%s2743_s29 + $0x98] sm:$0xff]  ;;  %226 = vst [vmem:[%s2748_s30 + $0x48] sm:$0xff] %v225_v9  ;;  %v231_v12 = vld [vmem:[%s2743_s29 + $0xc0] sm:$0xff] }
  0x17   : > { %228 = vst [vmem:[%s2748_s30 + $0x50] sm:$0xff] %v227_v10  ;;  %230 = vst [vmem:[%s2748_s30 + $0x58] sm:$0xff] %v229_v11  ;;  %v233_v13 = vld [vmem:[%s2743_s29 + $0xc8] sm:$0xff]  ;;  %v235_v14 = vld [vmem:[%s2743_s29 + $0xd0] sm:$0xff] }
  0x18   : > { %232 = vst [vmem:[%s2748_s30 + $0x60] sm:$0xff] %v231_v12  ;;  %234 = vst [vmem:[%s2748_s30 + $0x68] sm:$0xff] %v233_v13  ;;  %v237_v15 = vld [vmem:[%s2743_s29 + $0xd8] sm:$0xff]  ;;  %v239_v16 = vld [vmem:[%s2743_s29 + $0x100] sm:$0xff] }
  0x19   : > { %236 = vst [vmem:[%s2748_s30 + $0x70] sm:$0xff] %v235_v14  ;;  %v241_v17 = vld [vmem:[%s2743_s29 + $0x108] sm:$0xff]  ;;  %238 = vst [vmem:[%s2748_s30 + $0x78] sm:$0xff] %v237_v15  ;;  %v243_v18 = vld [vmem:[%s2743_s29 + $0x110] sm:$0xff] }
  0x1a   : > { %240 = vst [vmem:[%s2748_s30 + $0x80] sm:$0xff] %v239_v16  ;;  %242 = vst [vmem:[%s2748_s30 + $0x88] sm:$0xff] %v241_v17  ;;  %v245_v19 = vld [vmem:[%s2743_s29 + $0x118] sm:$0xff]  ;;  %v247_v20 = vld [vmem:[%s2743_s29 + $0x140] sm:$0xff] }
  0x1b   : > { %244 = vst [vmem:[%s2748_s30 + $0x90] sm:$0xff] %v243_v18  ;;  %246 = vst [vmem:[%s2748_s30 + $0x98] sm:$0xff] %v245_v19  ;;  %v249_v21 = vld [vmem:[%s2743_s29 + $0x148] sm:$0xff]  ;;  %v251_v22 = vld [vmem:[%s2743_s29 + $0x150] sm:$0xff] }
  0x1c   : > { %248 = vst [vmem:[%s2748_s30 + $0xa0] sm:$0xff] %v247_v20  ;;  %v253_v23 = vld [vmem:[%s2743_s29 + $0x158] sm:$0xff]  ;;  %250 = vst [vmem:[%s2748_s30 + $0xa8] sm:$0xff] %v249_v21  ;;  %v255_v24 = vld [vmem:[%s2743_s29 + $0x180] sm:$0xff] }
  0x1d   : > { %252 = vst [vmem:[%s2748_s30 + $0xb0] sm:$0xff] %v251_v22  ;;  %254 = vst [vmem:[%s2748_s30 + $0xb8] sm:$0xff] %v253_v23  ;;  %v257_v25 = vld [vmem:[%s2743_s29 + $0x188] sm:$0xff]  ;;  %v259_v26 = vld [vmem:[%s2743_s29 + $0x190] sm:$0xff] }
  0x1e   : > { %256 = vst [vmem:[%s2748_s30 + $0xc0] sm:$0xff] %v255_v24  ;;  %258 = vst [vmem:[%s2748_s30 + $0xc8] sm:$0xff] %v257_v25  ;;  %v261_v27 = vld [vmem:[%s2743_s29 + $0x198] sm:$0xff]  ;;  %v263_v28 = vld [vmem:[%s2743_s29 + $0x1c0] sm:$0xff] }
  0x1f   : > { %260 = vst [vmem:[%s2748_s30 + $0xd0] sm:$0xff] %v259_v26  ;;  %v265_v29 = vld [vmem:[%s2743_s29 + $0x1c8] sm:$0xff]  ;;  %262 = vst [vmem:[%s2748_s30 + $0xd8] sm:$0xff] %v261_v27  ;;  %v267_v30 = vld [vmem:[%s2743_s29 + $0x1d0] sm:$0xff] }
  0x20   : > { %264 = vst [vmem:[%s2748_s30 + $0xe0] sm:$0xff] %v263_v28  ;;  %266 = vst [vmem:[%s2748_s30 + $0xe8] sm:$0xff] %v265_v29  ;;  %v269_v31 = vld [vmem:[%s2743_s29 + $0x1d8] sm:$0xff]  ;;  %v271_v32 = vld [vmem:[%s2743_s29 + $0x200] sm:$0xff] }
  0x21   : > { %268 = vst [vmem:[%s2748_s30 + $0xf0] sm:$0xff] %v267_v30  ;;  %270 = vst [vmem:[%s2748_s30 + $0xf8] sm:$0xff] %v269_v31  ;;  %v273_v33 = vld [vmem:[%s2743_s29 + $0x208] sm:$0xff]  ;;  %v275_v34 = vld [vmem:[%s2743_s29 + $0x210] sm:$0xff] }
  0x22   : > { %272 = vst [vmem:[%s2748_s30 + $0x100] sm:$0xff] %v271_v32  ;;  %v277_v35 = vld [vmem:[%s2743_s29 + $0x218] sm:$0xff]  ;;  %274 = vst [vmem:[%s2748_s30 + $0x108] sm:$0xff] %v273_v33  ;;  %v279_v36 = vld [vmem:[%s2743_s29 + $0x240] sm:$0xff] }
  0x23   : > { %276 = vst [vmem:[%s2748_s30 + $0x110] sm:$0xff] %v275_v34  ;;  %278 = vst [vmem:[%s2748_s30 + $0x118] sm:$0xff] %v277_v35  ;;  %v281_v37 = vld [vmem:[%s2743_s29 + $0x248] sm:$0xff]  ;;  %v283_v38 = vld [vmem:[%s2743_s29 + $0x250] sm:$0xff] }
  0x24   : > { %280 = vst [vmem:[%s2748_s30 + $0x120] sm:$0xff] %v279_v36  ;;  %282 = vst [vmem:[%s2748_s30 + $0x128] sm:$0xff] %v281_v37  ;;  %v285_v39 = vld [vmem:[%s2743_s29 + $0x258] sm:$0xff]  ;;  %v287_v40 = vld [vmem:[%s2743_s29 + $0x280] sm:$0xff] }
  0x25   : > { %284 = vst [vmem:[%s2748_s30 + $0x130] sm:$0xff] %v283_v38  ;;  %v289_v41 = vld [vmem:[%s2743_s29 + $0x288] sm:$0xff]  ;;  %286 = vst [vmem:[%s2748_s30 + $0x138] sm:$0xff] %v285_v39  ;;  %v291_v42 = vld [vmem:[%s2743_s29 + $0x290] sm:$0xff] }
  0x26   : > { %288 = vst [vmem:[%s2748_s30 + $0x140] sm:$0xff] %v287_v40  ;;  %290 = vst [vmem:[%s2748_s30 + $0x148] sm:$0xff] %v289_v41  ;;  %v293_v43 = vld [vmem:[%s2743_s29 + $0x298] sm:$0xff]  ;;  %v295_v44 = vld [vmem:[%s2743_s29 + $0x2c0] sm:$0xff] }
  0x27   : > { %292 = vst [vmem:[%s2748_s30 + $0x150] sm:$0xff] %v291_v42  ;;  %294 = vst [vmem:[%s2748_s30 + $0x158] sm:$0xff] %v293_v43  ;;  %v297_v45 = vld [vmem:[%s2743_s29 + $0x2c8] sm:$0xff]  ;;  %v299_v46 = vld [vmem:[%s2743_s29 + $0x2d0] sm:$0xff] }
  0x28   : > { %296 = vst [vmem:[%s2748_s30 + $0x160] sm:$0xff] %v295_v44  ;;  %v301_v47 = vld [vmem:[%s2743_s29 + $0x2d8] sm:$0xff]  ;;  %298 = vst [vmem:[%s2748_s30 + $0x168] sm:$0xff] %v297_v45  ;;  %v303_v48 = vld [vmem:[%s2743_s29 + $0x300] sm:$0xff] }
  0x29   : > { %300 = vst [vmem:[%s2748_s30 + $0x170] sm:$0xff] %v299_v46  ;;  %302 = vst [vmem:[%s2748_s30 + $0x178] sm:$0xff] %v301_v47  ;;  %v305_v49 = vld [vmem:[%s2743_s29 + $0x308] sm:$0xff]  ;;  %v307_v50 = vld [vmem:[%s2743_s29 + $0x310] sm:$0xff] }
  0x2a   : > { %304 = vst [vmem:[%s2748_s30 + $0x180] sm:$0xff] %v303_v48  ;;  %306 = vst [vmem:[%s2748_s30 + $0x188] sm:$0xff] %v305_v49  ;;  %v309_v51 = vld [vmem:[%s2743_s29 + $0x318] sm:$0xff]  ;;  %v311_v52 = vld [vmem:[%s2743_s29 + $0x340] sm:$0xff] }
  0x2b   : > { %308 = vst [vmem:[%s2748_s30 + $0x190] sm:$0xff] %v307_v50  ;;  %v313_v53 = vld [vmem:[%s2743_s29 + $0x348] sm:$0xff]  ;;  %310 = vst [vmem:[%s2748_s30 + $0x198] sm:$0xff] %v309_v51  ;;  %v315_v54 = vld [vmem:[%s2743_s29 + $0x350] sm:$0xff] }
  0x2c   : > { %312 = vst [vmem:[%s2748_s30 + $0x1a0] sm:$0xff] %v311_v52  ;;  %314 = vst [vmem:[%s2748_s30 + $0x1a8] sm:$0xff] %v313_v53  ;;  %v317_v55 = vld [vmem:[%s2743_s29 + $0x358] sm:$0xff]  ;;  %v319_v56 = vld [vmem:[%s2743_s29 + $0x380] sm:$0xff] }
  0x2d   : > { %316 = vst [vmem:[%s2748_s30 + $0x1b0] sm:$0xff] %v315_v54  ;;  %318 = vst [vmem:[%s2748_s30 + $0x1b8] sm:$0xff] %v317_v55  ;;  %v321_v57 = vld [vmem:[%s2743_s29 + $0x388] sm:$0xff]  ;;  %v323_v58 = vld [vmem:[%s2743_s29 + $0x390] sm:$0xff] }
  0x2e   : > { %320 = vst [vmem:[%s2748_s30 + $0x1c0] sm:$0xff] %v319_v56  ;;  %v325_v59 = vld [vmem:[%s2743_s29 + $0x398] sm:$0xff]  ;;  %322 = vst [vmem:[%s2748_s30 + $0x1c8] sm:$0xff] %v321_v57  ;;  %v327_v60 = vld [vmem:[%s2743_s29 + $0x3c0] sm:$0xff] }
  0x2f   : > { %324 = vst [vmem:[%s2748_s30 + $0x1d0] sm:$0xff] %v323_v58  ;;  %326 = vst [vmem:[%s2748_s30 + $0x1d8] sm:$0xff] %v325_v59  ;;  %v329_v61 = vld [vmem:[%s2743_s29 + $0x3c8] sm:$0xff]  ;;  %v331_v62 = vld [vmem:[%s2743_s29 + $0x3d0] sm:$0xff] }
  0x30   : > { %328 = vst [vmem:[%s2748_s30 + $0x1e0] sm:$0xff] %v327_v60  ;;  %330 = vst [vmem:[%s2748_s30 + $0x1e8] sm:$0xff] %v329_v61  ;;  %v333_v63 = vld [vmem:[%s2743_s29 + $0x3d8] sm:$0xff]  ;;  %v335_v0 = vld [vmem:[%s2743_s29 + $0x400] sm:$0xff] }
  0x31   : > { %332 = vst [vmem:[%s2748_s30 + $0x1f0] sm:$0xff] %v331_v62  ;;  %v337_v1 = vld [vmem:[%s2743_s29 + $0x408] sm:$0xff]  ;;  %334 = vst [vmem:[%s2748_s30 + $0x1f8] sm:$0xff] %v333_v63  ;;  %v339_v2 = vld [vmem:[%s2743_s29 + $0x410] sm:$0xff] }
  0x32   : > { %336 = vst [vmem:[%s2748_s30 + $0x200] sm:$0xff] %v335_v0  ;;  %338 = vst [vmem:[%s2748_s30 + $0x208] sm:$0xff] %v337_v1  ;;  %v341_v3 = vld [vmem:[%s2743_s29 + $0x418] sm:$0xff]  ;;  %v343_v4 = vld [vmem:[%s2743_s29 + $0x440] sm:$0xff] }
  0x33   : > { %340 = vst [vmem:[%s2748_s30 + $0x210] sm:$0xff] %v339_v2  ;;  %342 = vst [vmem:[%s2748_s30 + $0x218] sm:$0xff] %v341_v3  ;;  %v345_v5 = vld [vmem:[%s2743_s29 + $0x448] sm:$0xff]  ;;  %v347_v6 = vld [vmem:[%s2743_s29 + $0x450] sm:$0xff] }
  0x34   : > { %344 = vst [vmem:[%s2748_s30 + $0x220] sm:$0xff] %v343_v4  ;;  %v349_v7 = vld [vmem:[%s2743_s29 + $0x458] sm:$0xff]  ;;  %346 = vst [vmem:[%s2748_s30 + $0x228] sm:$0xff] %v345_v5  ;;  %v351_v8 = vld [vmem:[%s2743_s29 + $0x480] sm:$0xff] }
  0x35   : > { %348 = vst [vmem:[%s2748_s30 + $0x230] sm:$0xff] %v347_v6  ;;  %350 = vst [vmem:[%s2748_s30 + $0x238] sm:$0xff] %v349_v7  ;;  %v353_v9 = vld [vmem:[%s2743_s29 + $0x488] sm:$0xff]  ;;  %v355_v10 = vld [vmem:[%s2743_s29 + $0x490] sm:$0xff] }
  0x36   : > { %352 = vst [vmem:[%s2748_s30 + $0x240] sm:$0xff] %v351_v8  ;;  %354 = vst [vmem:[%s2748_s30 + $0x248] sm:$0xff] %v353_v9  ;;  %v357_v11 = vld [vmem:[%s2743_s29 + $0x498] sm:$0xff]  ;;  %v359_v12 = vld [vmem:[%s2743_s29 + $0x4c0] sm:$0xff] }
  0x37   : > { %356 = vst [vmem:[%s2748_s30 + $0x250] sm:$0xff] %v355_v10  ;;  %v361_v13 = vld [vmem:[%s2743_s29 + $0x4c8] sm:$0xff]  ;;  %358 = vst [vmem:[%s2748_s30 + $0x258] sm:$0xff] %v357_v11  ;;  %v363_v14 = vld [vmem:[%s2743_s29 + $0x4d0] sm:$0xff] }
  0x38   : > { %360 = vst [vmem:[%s2748_s30 + $0x260] sm:$0xff] %v359_v12  ;;  %362 = vst [vmem:[%s2748_s30 + $0x268] sm:$0xff] %v361_v13  ;;  %v365_v15 = vld [vmem:[%s2743_s29 + $0x4d8] sm:$0xff]  ;;  %v367_v16 = vld [vmem:[%s2743_s29 + $0x500] sm:$0xff] }
  0x39   : > { %364 = vst [vmem:[%s2748_s30 + $0x270] sm:$0xff] %v363_v14  ;;  %366 = vst [vmem:[%s2748_s30 + $0x278] sm:$0xff] %v365_v15  ;;  %v369_v17 = vld [vmem:[%s2743_s29 + $0x508] sm:$0xff]  ;;  %v371_v18 = vld [vmem:[%s2743_s29 + $0x510] sm:$0xff] }
  0x3a   : > { %368 = vst [vmem:[%s2748_s30 + $0x280] sm:$0xff] %v367_v16  ;;  %v373_v19 = vld [vmem:[%s2743_s29 + $0x518] sm:$0xff]  ;;  %370 = vst [vmem:[%s2748_s30 + $0x288] sm:$0xff] %v369_v17  ;;  %v375_v20 = vld [vmem:[%s2743_s29 + $0x540] sm:$0xff] }
  0x3b   : > { %372 = vst [vmem:[%s2748_s30 + $0x290] sm:$0xff] %v371_v18  ;;  %374 = vst [vmem:[%s2748_s30 + $0x298] sm:$0xff] %v373_v19  ;;  %v377_v21 = vld [vmem:[%s2743_s29 + $0x548] sm:$0xff]  ;;  %v379_v22 = vld [vmem:[%s2743_s29 + $0x550] sm:$0xff] }
  0x3c   : > { %376 = vst [vmem:[%s2748_s30 + $0x2a0] sm:$0xff] %v375_v20  ;;  %378 = vst [vmem:[%s2748_s30 + $0x2a8] sm:$0xff] %v377_v21  ;;  %v381_v23 = vld [vmem:[%s2743_s29 + $0x558] sm:$0xff]  ;;  %v383_v24 = vld [vmem:[%s2743_s29 + $0x580] sm:$0xff] }
  0x3d   : > { %380 = vst [vmem:[%s2748_s30 + $0x2b0] sm:$0xff] %v379_v22  ;;  %v385_v25 = vld [vmem:[%s2743_s29 + $0x588] sm:$0xff]  ;;  %382 = vst [vmem:[%s2748_s30 + $0x2b8] sm:$0xff] %v381_v23  ;;  %v387_v26 = vld [vmem:[%s2743_s29 + $0x590] sm:$0xff] }
  0x3e   : > { %384 = vst [vmem:[%s2748_s30 + $0x2c0] sm:$0xff] %v383_v24  ;;  %386 = vst [vmem:[%s2748_s30 + $0x2c8] sm:$0xff] %v385_v25  ;;  %v389_v27 = vld [vmem:[%s2743_s29 + $0x598] sm:$0xff]  ;;  %v391_v28 = vld [vmem:[%s2743_s29 + $0x5c0] sm:$0xff] }
  0x3f   : > { %388 = vst [vmem:[%s2748_s30 + $0x2d0] sm:$0xff] %v387_v26  ;;  %390 = vst [vmem:[%s2748_s30 + $0x2d8] sm:$0xff] %v389_v27  ;;  %v393_v29 = vld [vmem:[%s2743_s29 + $0x5c8] sm:$0xff]  ;;  %v395_v30 = vld [vmem:[%s2743_s29 + $0x5d0] sm:$0xff] }
  0x40   : > { %392 = vst [vmem:[%s2748_s30 + $0x2e0] sm:$0xff] %v391_v28  ;;  %v397_v31 = vld [vmem:[%s2743_s29 + $0x5d8] sm:$0xff]  ;;  %394 = vst [vmem:[%s2748_s30 + $0x2e8] sm:$0xff] %v393_v29  ;;  %v399_v32 = vld [vmem:[%s2743_s29 + $0x600] sm:$0xff] }
  0x41   : > { %396 = vst [vmem:[%s2748_s30 + $0x2f0] sm:$0xff] %v395_v30  ;;  %398 = vst [vmem:[%s2748_s30 + $0x2f8] sm:$0xff] %v397_v31  ;;  %v401_v33 = vld [vmem:[%s2743_s29 + $0x608] sm:$0xff]  ;;  %v403_v34 = vld [vmem:[%s2743_s29 + $0x610] sm:$0xff] }
  0x42   : > { %400 = vst [vmem:[%s2748_s30 + $0x300] sm:$0xff] %v399_v32  ;;  %402 = vst [vmem:[%s2748_s30 + $0x308] sm:$0xff] %v401_v33  ;;  %v405_v35 = vld [vmem:[%s2743_s29 + $0x618] sm:$0xff]  ;;  %v407_v36 = vld [vmem:[%s2743_s29 + $0x640] sm:$0xff] }
  0x43   : > { %404 = vst [vmem:[%s2748_s30 + $0x310] sm:$0xff] %v403_v34  ;;  %v409_v37 = vld [vmem:[%s2743_s29 + $0x648] sm:$0xff]  ;;  %406 = vst [vmem:[%s2748_s30 + $0x318] sm:$0xff] %v405_v35  ;;  %v411_v38 = vld [vmem:[%s2743_s29 + $0x650] sm:$0xff] }
  0x44   : > { %408 = vst [vmem:[%s2748_s30 + $0x320] sm:$0xff] %v407_v36  ;;  %410 = vst [vmem:[%s2748_s30 + $0x328] sm:$0xff] %v409_v37  ;;  %v413_v39 = vld [vmem:[%s2743_s29 + $0x658] sm:$0xff]  ;;  %v415_v40 = vld [vmem:[%s2743_s29 + $0x680] sm:$0xff] }
  0x45   : > { %412 = vst [vmem:[%s2748_s30 + $0x330] sm:$0xff] %v411_v38  ;;  %414 = vst [vmem:[%s2748_s30 + $0x338] sm:$0xff] %v413_v39  ;;  %v417_v41 = vld [vmem:[%s2743_s29 + $0x688] sm:$0xff]  ;;  %v419_v42 = vld [vmem:[%s2743_s29 + $0x690] sm:$0xff] }
  0x46   : > { %416 = vst [vmem:[%s2748_s30 + $0x340] sm:$0xff] %v415_v40  ;;  %v421_v43 = vld [vmem:[%s2743_s29 + $0x698] sm:$0xff]  ;;  %418 = vst [vmem:[%s2748_s30 + $0x348] sm:$0xff] %v417_v41  ;;  %v423_v44 = vld [vmem:[%s2743_s29 + $0x6c0] sm:$0xff] }
  0x47   : > { %420 = vst [vmem:[%s2748_s30 + $0x350] sm:$0xff] %v419_v42  ;;  %422 = vst [vmem:[%s2748_s30 + $0x358] sm:$0xff] %v421_v43  ;;  %v425_v45 = vld [vmem:[%s2743_s29 + $0x6c8] sm:$0xff]  ;;  %v427_v46 = vld [vmem:[%s2743_s29 + $0x6d0] sm:$0xff] }
  0x48   : > { %424 = vst [vmem:[%s2748_s30 + $0x360] sm:$0xff] %v423_v44  ;;  %426 = vst [vmem:[%s2748_s30 + $0x368] sm:$0xff] %v425_v45  ;;  %v429_v47 = vld [vmem:[%s2743_s29 + $0x6d8] sm:$0xff]  ;;  %v431_v48 = vld [vmem:[%s2743_s29 + $0x700] sm:$0xff] }
  0x49   : > { %428 = vst [vmem:[%s2748_s30 + $0x370] sm:$0xff] %v427_v46  ;;  %v433_v49 = vld [vmem:[%s2743_s29 + $0x708] sm:$0xff]  ;;  %430 = vst [vmem:[%s2748_s30 + $0x378] sm:$0xff] %v429_v47  ;;  %v435_v50 = vld [vmem:[%s2743_s29 + $0x710] sm:$0xff] }
  0x4a   : > { %432 = vst [vmem:[%s2748_s30 + $0x380] sm:$0xff] %v431_v48  ;;  %434 = vst [vmem:[%s2748_s30 + $0x388] sm:$0xff] %v433_v49  ;;  %v437_v51 = vld [vmem:[%s2743_s29 + $0x718] sm:$0xff]  ;;  %v439_v52 = vld [vmem:[%s2743_s29 + $0x740] sm:$0xff] }
  0x4b   : > { %436 = vst [vmem:[%s2748_s30 + $0x390] sm:$0xff] %v435_v50  ;;  %438 = vst [vmem:[%s2748_s30 + $0x398] sm:$0xff] %v437_v51  ;;  %v441_v53 = vld [vmem:[%s2743_s29 + $0x748] sm:$0xff]  ;;  %v443_v54 = vld [vmem:[%s2743_s29 + $0x750] sm:$0xff] }
  0x4c   : > { %440 = vst [vmem:[%s2748_s30 + $0x3a0] sm:$0xff] %v439_v52  ;;  %v445_v55 = vld [vmem:[%s2743_s29 + $0x758] sm:$0xff]  ;;  %442 = vst [vmem:[%s2748_s30 + $0x3a8] sm:$0xff] %v441_v53  ;;  %v447_v56 = vld [vmem:[%s2743_s29 + $0x780] sm:$0xff] }
  0x4d   : > { %444 = vst [vmem:[%s2748_s30 + $0x3b0] sm:$0xff] %v443_v54  ;;  %446 = vst [vmem:[%s2748_s30 + $0x3b8] sm:$0xff] %v445_v55  ;;  %v449_v57 = vld [vmem:[%s2743_s29 + $0x788] sm:$0xff]  ;;  %v451_v58 = vld [vmem:[%s2743_s29 + $0x790] sm:$0xff] }
  0x4e   : > { %448 = vst [vmem:[%s2748_s30 + $0x3c0] sm:$0xff] %v447_v56  ;;  %450 = vst [vmem:[%s2748_s30 + $0x3c8] sm:$0xff] %v449_v57  ;;  %v453_v59 = vld [vmem:[%s2743_s29 + $0x798] sm:$0xff]  ;;  %v455_v60 = vld [vmem:[%s2743_s29 + $0x7c0] sm:$0xff] }
  0x4f   : > { %452 = vst [vmem:[%s2748_s30 + $0x3d0] sm:$0xff] %v451_v58  ;;  %v457_v61 = vld [vmem:[%s2743_s29 + $0x7c8] sm:$0xff]  ;;  %454 = vst [vmem:[%s2748_s30 + $0x3d8] sm:$0xff] %v453_v59  ;;  %v459_v62 = vld [vmem:[%s2743_s29 + $0x7d0] sm:$0xff] }
  0x50   : > { %456 = vst [vmem:[%s2748_s30 + $0x3e0] sm:$0xff] %v455_v60  ;;  %458 = vst [vmem:[%s2748_s30 + $0x3e8] sm:$0xff] %v457_v61  ;;  %v461_v63 = vld [vmem:[%s2743_s29 + $0x7d8] sm:$0xff]  ;;  %v463_v0 = vld [vmem:[%s2743_s29 + $0x800] sm:$0xff] }
  0x51   : > { %460 = vst [vmem:[%s2748_s30 + $0x3f0] sm:$0xff] %v459_v62  ;;  %462 = vst [vmem:[%s2748_s30 + $0x3f8] sm:$0xff] %v461_v63  ;;  %v465_v1 = vld [vmem:[%s2743_s29 + $0x808] sm:$0xff]  ;;  %v467_v2 = vld [vmem:[%s2743_s29 + $0x810] sm:$0xff] }
  0x52   : > { %464 = vst [vmem:[%s2748_s30 + $0x400] sm:$0xff] %v463_v0  ;;  %v469_v3 = vld [vmem:[%s2743_s29 + $0x818] sm:$0xff]  ;;  %466 = vst [vmem:[%s2748_s30 + $0x408] sm:$0xff] %v465_v1  ;;  %v471_v4 = vld [vmem:[%s2743_s29 + $0x840] sm:$0xff] }
  0x53   : > { %468 = vst [vmem:[%s2748_s30 + $0x410] sm:$0xff] %v467_v2  ;;  %470 = vst [vmem:[%s2748_s30 + $0x418] sm:$0xff] %v469_v3  ;;  %v473_v5 = vld [vmem:[%s2743_s29 + $0x848] sm:$0xff]  ;;  %v475_v6 = vld [vmem:[%s2743_s29 + $0x850] sm:$0xff] }
  0x54   : > { %472 = vst [vmem:[%s2748_s30 + $0x420] sm:$0xff] %v471_v4  ;;  %474 = vst [vmem:[%s2748_s30 + $0x428] sm:$0xff] %v473_v5  ;;  %v477_v7 = vld [vmem:[%s2743_s29 + $0x858] sm:$0xff]  ;;  %v479_v8 = vld [vmem:[%s2743_s29 + $0x880] sm:$0xff] }
  0x55   : > { %476 = vst [vmem:[%s2748_s30 + $0x430] sm:$0xff] %v475_v6  ;;  %v481_v9 = vld [vmem:[%s2743_s29 + $0x888] sm:$0xff]  ;;  %478 = vst [vmem:[%s2748_s30 + $0x438] sm:$0xff] %v477_v7  ;;  %v483_v10 = vld [vmem:[%s2743_s29 + $0x890] sm:$0xff] }
  0x56   : > { %480 = vst [vmem:[%s2748_s30 + $0x440] sm:$0xff] %v479_v8  ;;  %482 = vst [vmem:[%s2748_s30 + $0x448] sm:$0xff] %v481_v9  ;;  %v485_v11 = vld [vmem:[%s2743_s29 + $0x898] sm:$0xff]  ;;  %v487_v12 = vld [vmem:[%s2743_s29 + $0x8c0] sm:$0xff] }
  0x57   : > { %484 = vst [vmem:[%s2748_s30 + $0x450] sm:$0xff] %v483_v10  ;;  %486 = vst [vmem:[%s2748_s30 + $0x458] sm:$0xff] %v485_v11  ;;  %v489_v13 = vld [vmem:[%s2743_s29 + $0x8c8] sm:$0xff]  ;;  %v491_v14 = vld [vmem:[%s2743_s29 + $0x8d0] sm:$0xff] }
  0x58   : > { %488 = vst [vmem:[%s2748_s30 + $0x460] sm:$0xff] %v487_v12  ;;  %v493_v15 = vld [vmem:[%s2743_s29 + $0x8d8] sm:$0xff]  ;;  %490 = vst [vmem:[%s2748_s30 + $0x468] sm:$0xff] %v489_v13  ;;  %v495_v16 = vld [vmem:[%s2743_s29 + $0x900] sm:$0xff] }
  0x59   : > { %492 = vst [vmem:[%s2748_s30 + $0x470] sm:$0xff] %v491_v14  ;;  %494 = vst [vmem:[%s2748_s30 + $0x478] sm:$0xff] %v493_v15  ;;  %v497_v17 = vld [vmem:[%s2743_s29 + $0x908] sm:$0xff]  ;;  %v499_v18 = vld [vmem:[%s2743_s29 + $0x910] sm:$0xff] }
  0x5a   : > { %496 = vst [vmem:[%s2748_s30 + $0x480] sm:$0xff] %v495_v16  ;;  %498 = vst [vmem:[%s2748_s30 + $0x488] sm:$0xff] %v497_v17  ;;  %v501_v19 = vld [vmem:[%s2743_s29 + $0x918] sm:$0xff]  ;;  %v503_v20 = vld [vmem:[%s2743_s29 + $0x940] sm:$0xff] }
  0x5b   : > { %500 = vst [vmem:[%s2748_s30 + $0x490] sm:$0xff] %v499_v18  ;;  %v505_v21 = vld [vmem:[%s2743_s29 + $0x948] sm:$0xff]  ;;  %502 = vst [vmem:[%s2748_s30 + $0x498] sm:$0xff] %v501_v19  ;;  %v507_v22 = vld [vmem:[%s2743_s29 + $0x950] sm:$0xff] }
  0x5c   : > { %504 = vst [vmem:[%s2748_s30 + $0x4a0] sm:$0xff] %v503_v20  ;;  %506 = vst [vmem:[%s2748_s30 + $0x4a8] sm:$0xff] %v505_v21  ;;  %v509_v23 = vld [vmem:[%s2743_s29 + $0x958] sm:$0xff]  ;;  %v511_v24 = vld [vmem:[%s2743_s29 + $0x980] sm:$0xff] }
  0x5d   : > { %508 = vst [vmem:[%s2748_s30 + $0x4b0] sm:$0xff] %v507_v22  ;;  %510 = vst [vmem:[%s2748_s30 + $0x4b8] sm:$0xff] %v509_v23  ;;  %v513_v25 = vld [vmem:[%s2743_s29 + $0x988] sm:$0xff]  ;;  %v515_v26 = vld [vmem:[%s2743_s29 + $0x990] sm:$0xff] }
  0x5e   : > { %512 = vst [vmem:[%s2748_s30 + $0x4c0] sm:$0xff] %v511_v24  ;;  %v517_v27 = vld [vmem:[%s2743_s29 + $0x998] sm:$0xff]  ;;  %514 = vst [vmem:[%s2748_s30 + $0x4c8] sm:$0xff] %v513_v25  ;;  %v519_v28 = vld [vmem:[%s2743_s29 + $0x9c0] sm:$0xff] }
  0x5f   : > { %516 = vst [vmem:[%s2748_s30 + $0x4d0] sm:$0xff] %v515_v26  ;;  %518 = vst [vmem:[%s2748_s30 + $0x4d8] sm:$0xff] %v517_v27  ;;  %v521_v29 = vld [vmem:[%s2743_s29 + $0x9c8] sm:$0xff]  ;;  %v523_v30 = vld [vmem:[%s2743_s29 + $0x9d0] sm:$0xff] }
  0x60   : > { %520 = vst [vmem:[%s2748_s30 + $0x4e0] sm:$0xff] %v519_v28  ;;  %522 = vst [vmem:[%s2748_s30 + $0x4e8] sm:$0xff] %v521_v29  ;;  %v525_v31 = vld [vmem:[%s2743_s29 + $0x9d8] sm:$0xff]  ;;  %v527_v32 = vld [vmem:[%s2743_s29 + $0xa00] sm:$0xff] }
  0x61   : > { %524 = vst [vmem:[%s2748_s30 + $0x4f0] sm:$0xff] %v523_v30  ;;  %v529_v33 = vld [vmem:[%s2743_s29 + $0xa08] sm:$0xff]  ;;  %526 = vst [vmem:[%s2748_s30 + $0x4f8] sm:$0xff] %v525_v31  ;;  %v531_v34 = vld [vmem:[%s2743_s29 + $0xa10] sm:$0xff] }
  0x62   : > { %528 = vst [vmem:[%s2748_s30 + $0x500] sm:$0xff] %v527_v32  ;;  %530 = vst [vmem:[%s2748_s30 + $0x508] sm:$0xff] %v529_v33  ;;  %v533_v35 = vld [vmem:[%s2743_s29 + $0xa18] sm:$0xff]  ;;  %v535_v36 = vld [vmem:[%s2743_s29 + $0xa40] sm:$0xff] }
  0x63   : > { %532 = vst [vmem:[%s2748_s30 + $0x510] sm:$0xff] %v531_v34  ;;  %534 = vst [vmem:[%s2748_s30 + $0x518] sm:$0xff] %v533_v35  ;;  %v537_v37 = vld [vmem:[%s2743_s29 + $0xa48] sm:$0xff]  ;;  %v539_v38 = vld [vmem:[%s2743_s29 + $0xa50] sm:$0xff] }
  0x64   : > { %536 = vst [vmem:[%s2748_s30 + $0x520] sm:$0xff] %v535_v36  ;;  %v541_v39 = vld [vmem:[%s2743_s29 + $0xa58] sm:$0xff]  ;;  %538 = vst [vmem:[%s2748_s30 + $0x528] sm:$0xff] %v537_v37  ;;  %v543_v40 = vld [vmem:[%s2743_s29 + $0xa80] sm:$0xff] }
  0x65   : > { %540 = vst [vmem:[%s2748_s30 + $0x530] sm:$0xff] %v539_v38  ;;  %542 = vst [vmem:[%s2748_s30 + $0x538] sm:$0xff] %v541_v39  ;;  %v545_v41 = vld [vmem:[%s2743_s29 + $0xa88] sm:$0xff]  ;;  %v547_v42 = vld [vmem:[%s2743_s29 + $0xa90] sm:$0xff] }
  0x66   : > { %544 = vst [vmem:[%s2748_s30 + $0x540] sm:$0xff] %v543_v40  ;;  %546 = vst [vmem:[%s2748_s30 + $0x548] sm:$0xff] %v545_v41  ;;  %v549_v43 = vld [vmem:[%s2743_s29 + $0xa98] sm:$0xff]  ;;  %v551_v44 = vld [vmem:[%s2743_s29 + $0xac0] sm:$0xff] }
  0x67   : > { %548 = vst [vmem:[%s2748_s30 + $0x550] sm:$0xff] %v547_v42  ;;  %v553_v45 = vld [vmem:[%s2743_s29 + $0xac8] sm:$0xff]  ;;  %550 = vst [vmem:[%s2748_s30 + $0x558] sm:$0xff] %v549_v43  ;;  %v555_v46 = vld [vmem:[%s2743_s29 + $0xad0] sm:$0xff] }
  0x68   : > { %552 = vst [vmem:[%s2748_s30 + $0x560] sm:$0xff] %v551_v44  ;;  %554 = vst [vmem:[%s2748_s30 + $0x568] sm:$0xff] %v553_v45  ;;  %v557_v47 = vld [vmem:[%s2743_s29 + $0xad8] sm:$0xff]  ;;  %v559_v48 = vld [vmem:[%s2743_s29 + $0xb00] sm:$0xff] }
  0x69   : > { %556 = vst [vmem:[%s2748_s30 + $0x570] sm:$0xff] %v555_v46  ;;  %558 = vst [vmem:[%s2748_s30 + $0x578] sm:$0xff] %v557_v47  ;;  %v561_v49 = vld [vmem:[%s2743_s29 + $0xb08] sm:$0xff]  ;;  %v563_v50 = vld [vmem:[%s2743_s29 + $0xb10] sm:$0xff] }
  0x6a   : > { %560 = vst [vmem:[%s2748_s30 + $0x580] sm:$0xff] %v559_v48  ;;  %v565_v51 = vld [vmem:[%s2743_s29 + $0xb18] sm:$0xff]  ;;  %562 = vst [vmem:[%s2748_s30 + $0x588] sm:$0xff] %v561_v49  ;;  %v567_v52 = vld [vmem:[%s2743_s29 + $0xb40] sm:$0xff] }
  0x6b   : > { %564 = vst [vmem:[%s2748_s30 + $0x590] sm:$0xff] %v563_v50  ;;  %566 = vst [vmem:[%s2748_s30 + $0x598] sm:$0xff] %v565_v51  ;;  %v569_v53 = vld [vmem:[%s2743_s29 + $0xb48] sm:$0xff]  ;;  %v571_v54 = vld [vmem:[%s2743_s29 + $0xb50] sm:$0xff] }
  0x6c   : > { %568 = vst [vmem:[%s2748_s30 + $0x5a0] sm:$0xff] %v567_v52  ;;  %570 = vst [vmem:[%s2748_s30 + $0x5a8] sm:$0xff] %v569_v53  ;;  %v573_v55 = vld [vmem:[%s2743_s29 + $0xb58] sm:$0xff]  ;;  %v575_v56 = vld [vmem:[%s2743_s29 + $0xb80] sm:$0xff] }
  0x6d   : > { %572 = vst [vmem:[%s2748_s30 + $0x5b0] sm:$0xff] %v571_v54  ;;  %v577_v57 = vld [vmem:[%s2743_s29 + $0xb88] sm:$0xff]  ;;  %574 = vst [vmem:[%s2748_s30 + $0x5b8] sm:$0xff] %v573_v55  ;;  %v579_v58 = vld [vmem:[%s2743_s29 + $0xb90] sm:$0xff] }
  0x6e   : > { %576 = vst [vmem:[%s2748_s30 + $0x5c0] sm:$0xff] %v575_v56  ;;  %578 = vst [vmem:[%s2748_s30 + $0x5c8] sm:$0xff] %v577_v57  ;;  %v581_v59 = vld [vmem:[%s2743_s29 + $0xb98] sm:$0xff]  ;;  %v583_v60 = vld [vmem:[%s2743_s29 + $0xbc0] sm:$0xff] }
  0x6f   : > { %580 = vst [vmem:[%s2748_s30 + $0x5d0] sm:$0xff] %v579_v58  ;;  %582 = vst [vmem:[%s2748_s30 + $0x5d8] sm:$0xff] %v581_v59  ;;  %v585_v61 = vld [vmem:[%s2743_s29 + $0xbc8] sm:$0xff]  ;;  %v587_v62 = vld [vmem:[%s2743_s29 + $0xbd0] sm:$0xff] }
  0x70   : > { %584 = vst [vmem:[%s2748_s30 + $0x5e0] sm:$0xff] %v583_v60  ;;  %v589_v63 = vld [vmem:[%s2743_s29 + $0xbd8] sm:$0xff]  ;;  %586 = vst [vmem:[%s2748_s30 + $0x5e8] sm:$0xff] %v585_v61  ;;  %v591_v0 = vld [vmem:[%s2743_s29 + $0xc00] sm:$0xff] }
  0x71   : > { %588 = vst [vmem:[%s2748_s30 + $0x5f0] sm:$0xff] %v587_v62  ;;  %590 = vst [vmem:[%s2748_s30 + $0x5f8] sm:$0xff] %v589_v63  ;;  %v593_v1 = vld [vmem:[%s2743_s29 + $0xc08] sm:$0xff]  ;;  %v595_v2 = vld [vmem:[%s2743_s29 + $0xc10] sm:$0xff] }
  0x72   : > { %592 = vst [vmem:[%s2748_s30 + $0x600] sm:$0xff] %v591_v0  ;;  %594 = vst [vmem:[%s2748_s30 + $0x608] sm:$0xff] %v593_v1  ;;  %v597_v3 = vld [vmem:[%s2743_s29 + $0xc18] sm:$0xff]  ;;  %v599_v4 = vld [vmem:[%s2743_s29 + $0xc40] sm:$0xff] }
  0x73   : > { %596 = vst [vmem:[%s2748_s30 + $0x610] sm:$0xff] %v595_v2  ;;  %v601_v5 = vld [vmem:[%s2743_s29 + $0xc48] sm:$0xff]  ;;  %598 = vst [vmem:[%s2748_s30 + $0x618] sm:$0xff] %v597_v3  ;;  %v603_v6 = vld [vmem:[%s2743_s29 + $0xc50] sm:$0xff] }
  0x74   : > { %600 = vst [vmem:[%s2748_s30 + $0x620] sm:$0xff] %v599_v4  ;;  %602 = vst [vmem:[%s2748_s30 + $0x628] sm:$0xff] %v601_v5  ;;  %v605_v7 = vld [vmem:[%s2743_s29 + $0xc58] sm:$0xff]  ;;  %v607_v8 = vld [vmem:[%s2743_s29 + $0xc80] sm:$0xff] }
  0x75   : > { %604 = vst [vmem:[%s2748_s30 + $0x630] sm:$0xff] %v603_v6  ;;  %606 = vst [vmem:[%s2748_s30 + $0x638] sm:$0xff] %v605_v7  ;;  %v609_v9 = vld [vmem:[%s2743_s29 + $0xc88] sm:$0xff]  ;;  %v611_v10 = vld [vmem:[%s2743_s29 + $0xc90] sm:$0xff] }
  0x76   : > { %608 = vst [vmem:[%s2748_s30 + $0x640] sm:$0xff] %v607_v8  ;;  %v613_v11 = vld [vmem:[%s2743_s29 + $0xc98] sm:$0xff]  ;;  %610 = vst [vmem:[%s2748_s30 + $0x648] sm:$0xff] %v609_v9  ;;  %v615_v12 = vld [vmem:[%s2743_s29 + $0xcc0] sm:$0xff] }
  0x77   : > { %612 = vst [vmem:[%s2748_s30 + $0x650] sm:$0xff] %v611_v10  ;;  %614 = vst [vmem:[%s2748_s30 + $0x658] sm:$0xff] %v613_v11  ;;  %v617_v13 = vld [vmem:[%s2743_s29 + $0xcc8] sm:$0xff]  ;;  %v619_v14 = vld [vmem:[%s2743_s29 + $0xcd0] sm:$0xff] }
  0x78   : > { %616 = vst [vmem:[%s2748_s30 + $0x660] sm:$0xff] %v615_v12  ;;  %618 = vst [vmem:[%s2748_s30 + $0x668] sm:$0xff] %v617_v13  ;;  %v621_v15 = vld [vmem:[%s2743_s29 + $0xcd8] sm:$0xff]  ;;  %v623_v16 = vld [vmem:[%s2743_s29 + $0xd00] sm:$0xff] }
  0x79   : > { %620 = vst [vmem:[%s2748_s30 + $0x670] sm:$0xff] %v619_v14  ;;  %v625_v17 = vld [vmem:[%s2743_s29 + $0xd08] sm:$0xff]  ;;  %622 = vst [vmem:[%s2748_s30 + $0x678] sm:$0xff] %v621_v15  ;;  %v627_v18 = vld [vmem:[%s2743_s29 + $0xd10] sm:$0xff] }
  0x7a   : > { %624 = vst [vmem:[%s2748_s30 + $0x680] sm:$0xff] %v623_v16  ;;  %626 = vst [vmem:[%s2748_s30 + $0x688] sm:$0xff] %v625_v17  ;;  %v629_v19 = vld [vmem:[%s2743_s29 + $0xd18] sm:$0xff]  ;;  %v631_v20 = vld [vmem:[%s2743_s29 + $0xd40] sm:$0xff] }
  0x7b   : > { %628 = vst [vmem:[%s2748_s30 + $0x690] sm:$0xff] %v627_v18  ;;  %630 = vst [vmem:[%s2748_s30 + $0x698] sm:$0xff] %v629_v19  ;;  %v633_v21 = vld [vmem:[%s2743_s29 + $0xd48] sm:$0xff]  ;;  %v635_v22 = vld [vmem:[%s2743_s29 + $0xd50] sm:$0xff] }
  0x7c   : > { %632 = vst [vmem:[%s2748_s30 + $0x6a0] sm:$0xff] %v631_v20  ;;  %v637_v23 = vld [vmem:[%s2743_s29 + $0xd58] sm:$0xff]  ;;  %634 = vst [vmem:[%s2748_s30 + $0x6a8] sm:$0xff] %v633_v21  ;;  %v639_v24 = vld [vmem:[%s2743_s29 + $0xd80] sm:$0xff] }
  0x7d   : > { %636 = vst [vmem:[%s2748_s30 + $0x6b0] sm:$0xff] %v635_v22  ;;  %638 = vst [vmem:[%s2748_s30 + $0x6b8] sm:$0xff] %v637_v23  ;;  %v641_v25 = vld [vmem:[%s2743_s29 + $0xd88] sm:$0xff]  ;;  %v643_v26 = vld [vmem:[%s2743_s29 + $0xd90] sm:$0xff] }
  0x7e   : > { %640 = vst [vmem:[%s2748_s30 + $0x6c0] sm:$0xff] %v639_v24  ;;  %642 = vst [vmem:[%s2748_s30 + $0x6c8] sm:$0xff] %v641_v25  ;;  %v645_v27 = vld [vmem:[%s2743_s29 + $0xd98] sm:$0xff]  ;;  %v647_v28 = vld [vmem:[%s2743_s29 + $0xdc0] sm:$0xff] }
  0x7f   : > { %644 = vst [vmem:[%s2748_s30 + $0x6d0] sm:$0xff] %v643_v26  ;;  %v649_v29 = vld [vmem:[%s2743_s29 + $0xdc8] sm:$0xff]  ;;  %646 = vst [vmem:[%s2748_s30 + $0x6d8] sm:$0xff] %v645_v27  ;;  %v651_v30 = vld [vmem:[%s2743_s29 + $0xdd0] sm:$0xff] }
  0x80   : > { %648 = vst [vmem:[%s2748_s30 + $0x6e0] sm:$0xff] %v647_v28  ;;  %650 = vst [vmem:[%s2748_s30 + $0x6e8] sm:$0xff] %v649_v29  ;;  %v653_v31 = vld [vmem:[%s2743_s29 + $0xdd8] sm:$0xff]  ;;  %v655_v32 = vld [vmem:[%s2743_s29 + $0xe00] sm:$0xff] }
  0x81   : > { %652 = vst [vmem:[%s2748_s30 + $0x6f0] sm:$0xff] %v651_v30  ;;  %654 = vst [vmem:[%s2748_s30 + $0x6f8] sm:$0xff] %v653_v31  ;;  %v657_v33 = vld [vmem:[%s2743_s29 + $0xe08] sm:$0xff]  ;;  %v659_v34 = vld [vmem:[%s2743_s29 + $0xe10] sm:$0xff] }
  0x82   : > { %656 = vst [vmem:[%s2748_s30 + $0x700] sm:$0xff] %v655_v32  ;;  %v661_v35 = vld [vmem:[%s2743_s29 + $0xe18] sm:$0xff]  ;;  %658 = vst [vmem:[%s2748_s30 + $0x708] sm:$0xff] %v657_v33  ;;  %v663_v36 = vld [vmem:[%s2743_s29 + $0xe40] sm:$0xff] }
  0x83   : > { %660 = vst [vmem:[%s2748_s30 + $0x710] sm:$0xff] %v659_v34  ;;  %662 = vst [vmem:[%s2748_s30 + $0x718] sm:$0xff] %v661_v35  ;;  %v665_v37 = vld [vmem:[%s2743_s29 + $0xe48] sm:$0xff]  ;;  %v667_v38 = vld [vmem:[%s2743_s29 + $0xe50] sm:$0xff] }
  0x84   : > { %664 = vst [vmem:[%s2748_s30 + $0x720] sm:$0xff] %v663_v36  ;;  %666 = vst [vmem:[%s2748_s30 + $0x728] sm:$0xff] %v665_v37  ;;  %v669_v39 = vld [vmem:[%s2743_s29 + $0xe58] sm:$0xff]  ;;  %v671_v40 = vld [vmem:[%s2743_s29 + $0xe80] sm:$0xff] }
  0x85   : > { %668 = vst [vmem:[%s2748_s30 + $0x730] sm:$0xff] %v667_v38  ;;  %v673_v41 = vld [vmem:[%s2743_s29 + $0xe88] sm:$0xff]  ;;  %670 = vst [vmem:[%s2748_s30 + $0x738] sm:$0xff] %v669_v39  ;;  %v675_v42 = vld [vmem:[%s2743_s29 + $0xe90] sm:$0xff] }
  0x86   : > { %672 = vst [vmem:[%s2748_s30 + $0x740] sm:$0xff] %v671_v40  ;;  %674 = vst [vmem:[%s2748_s30 + $0x748] sm:$0xff] %v673_v41  ;;  %v677_v43 = vld [vmem:[%s2743_s29 + $0xe98] sm:$0xff]  ;;  %v679_v44 = vld [vmem:[%s2743_s29 + $0xec0] sm:$0xff] }
  0x87   : > { %676 = vst [vmem:[%s2748_s30 + $0x750] sm:$0xff] %v675_v42  ;;  %678 = vst [vmem:[%s2748_s30 + $0x758] sm:$0xff] %v677_v43  ;;  %v681_v45 = vld [vmem:[%s2743_s29 + $0xec8] sm:$0xff]  ;;  %v683_v46 = vld [vmem:[%s2743_s29 + $0xed0] sm:$0xff] }
  0x88   : > { %680 = vst [vmem:[%s2748_s30 + $0x760] sm:$0xff] %v679_v44  ;;  %v685_v47 = vld [vmem:[%s2743_s29 + $0xed8] sm:$0xff]  ;;  %682 = vst [vmem:[%s2748_s30 + $0x768] sm:$0xff] %v681_v45  ;;  %v687_v48 = vld [vmem:[%s2743_s29 + $0xf00] sm:$0xff] }
  0x89   : > { %684 = vst [vmem:[%s2748_s30 + $0x770] sm:$0xff] %v683_v46  ;;  %686 = vst [vmem:[%s2748_s30 + $0x778] sm:$0xff] %v685_v47  ;;  %v689_v49 = vld [vmem:[%s2743_s29 + $0xf08] sm:$0xff]  ;;  %v691_v50 = vld [vmem:[%s2743_s29 + $0xf10] sm:$0xff] }
  0x8a   : > { %688 = vst [vmem:[%s2748_s30 + $0x780] sm:$0xff] %v687_v48  ;;  %690 = vst [vmem:[%s2748_s30 + $0x788] sm:$0xff] %v689_v49  ;;  %v693_v51 = vld [vmem:[%s2743_s29 + $0xf18] sm:$0xff]  ;;  %v695_v52 = vld [vmem:[%s2743_s29 + $0xf40] sm:$0xff] }
  0x8b   : > { %692 = vst [vmem:[%s2748_s30 + $0x790] sm:$0xff] %v691_v50  ;;  %v697_v53 = vld [vmem:[%s2743_s29 + $0xf48] sm:$0xff]  ;;  %694 = vst [vmem:[%s2748_s30 + $0x798] sm:$0xff] %v693_v51  ;;  %v699_v54 = vld [vmem:[%s2743_s29 + $0xf50] sm:$0xff] }
  0x8c   : > { %696 = vst [vmem:[%s2748_s30 + $0x7a0] sm:$0xff] %v695_v52  ;;  %698 = vst [vmem:[%s2748_s30 + $0x7a8] sm:$0xff] %v697_v53  ;;  %v701_v55 = vld [vmem:[%s2743_s29 + $0xf58] sm:$0xff]  ;;  %v703_v56 = vld [vmem:[%s2743_s29 + $0xf80] sm:$0xff] }
  0x8d   : > { %700 = vst [vmem:[%s2748_s30 + $0x7b0] sm:$0xff] %v699_v54  ;;  %702 = vst [vmem:[%s2748_s30 + $0x7b8] sm:$0xff] %v701_v55  ;;  %v705_v57 = vld [vmem:[%s2743_s29 + $0xf88] sm:$0xff]  ;;  %v707_v58 = vld [vmem:[%s2743_s29 + $0xf90] sm:$0xff] }
  0x8e   : > { %704 = vst [vmem:[%s2748_s30 + $0x7c0] sm:$0xff] %v703_v56  ;;  %v709_v59 = vld [vmem:[%s2743_s29 + $0xf98] sm:$0xff]  ;;  %706 = vst [vmem:[%s2748_s30 + $0x7c8] sm:$0xff] %v705_v57  ;;  %v711_v60 = vld [vmem:[%s2743_s29 + $0xfc0] sm:$0xff] }
  0x8f   : > { %708 = vst [vmem:[%s2748_s30 + $0x7d0] sm:$0xff] %v707_v58  ;;  %710 = vst [vmem:[%s2748_s30 + $0x7d8] sm:$0xff] %v709_v59  ;;  %v713_v61 = vld [vmem:[%s2743_s29 + $0xfc8] sm:$0xff]  ;;  %v715_v62 = vld [vmem:[%s2743_s29 + $0xfd0] sm:$0xff] }
  0x90   : > { %712 = vst [vmem:[%s2748_s30 + $0x7e0] sm:$0xff] %v711_v60  ;;  %714 = vst [vmem:[%s2748_s30 + $0x7e8] sm:$0xff] %v713_v61  ;;  %v717_v63 = vld [vmem:[%s2743_s29 + $0xfd8] sm:$0xff] }
  0x91   : > { %716 = vst [vmem:[%s2748_s30 + $0x7f0] sm:$0xff] %v715_v62  ;;  %718 = vst [vmem:[%s2748_s30 + $0x7f8] sm:$0xff] %v717_v63 }
  0x92 PF: > { %p2498_p6 = scmp.ge.s32.totalorder %s2673_s19, 1  ;;  %p739_p7 = scmp.lt.s32.totalorder %s2673_s19, 3 }
  0x94   : > { %p740_p8 = pnand %p2498_p6, %p739_p7 }
  0x95   : > { %s746_s5 = sand.u32 (!%p740_p8), 1, %s2657_s15   ;;  %v3265_v0 = vld [vmem:[%s3622_s0] sm:$0xff] (!%p740_p8)  ;;  %s2500_s30 = sshll.u32 (!%p740_p8), %s2665_s17, 2 }
  0x96   : > { %743 = sbr.rel (%p740_p8) target bundleno = 887 (0x377), region = 55  ;;  %s2499_s8 = sshll.u32 (!%p740_p8), %s746_s5, 11  ;;  %v2505_v1 = vcombine.high (!%p740_p8), %v3265_v0, %v3265_v0 }
  0x97   : > { %s3269_s9 = scalar_lea.vmem (!%p740_p8), [#allocation3], %s2499_s8  ;;  %p793_p9 = scmp.lt.s32.totalorder (!%p740_p8), %s2500_s30, 7 }
  0x98   : > { %v829_v2 = vld [vmem:[%s3269_s9 + $0x8] sm:$0xff] (!%p740_p8)  ;;  %v831_v3 = vld [vmem:[%s3269_s9 + $0x18] sm:$0xff] (!%p740_p8)  ;;  %v828_v4 = vld [vmem:[%s3269_s9] sm:$0xff] (!%p740_p8)  ;;  %1684 = vmatprep.mubr.bf16.mxu0 (!%p740_p8), %v2505_v1  ;;  %2012 = vmatprep.mubr.bf16.mxu1 (!%p740_p8), %v2505_v1 }
  0x99   : > { %v1085_v5 = vunpack.c.l.s8.bf16 (!%p740_p8), %v829_v2  ;;  %v1089_v6 = vunpack.c.h.s8.bf16 (!%p740_p8), %v829_v2  ;;  %v1087_v7 = vunpack.c.l.s8.bf16 (!%p740_p8), %v831_v3  ;;  %v1091_v8 = vunpack.c.h.s8.bf16 (!%p740_p8), %v831_v3  ;;  %v830_v9 = vld [vmem:[%s3269_s9 + $0x10] sm:$0xff] (!%p740_p8)  ;;  %v833_v12 = vld [vmem:[%s3269_s9 + $0x28] sm:$0xff] (!%p740_p8)  ;;  %v835_v13 = vld [vmem:[%s3269_s9 + $0x38] sm:$0xff] (!%p740_p8) }
  0x9a   : > { %v1084_v10 = vunpack.c.l.s8.bf16 (!%p740_p8), %v828_v4  ;;  %v1086_v11 = vunpack.c.l.s8.bf16 (!%p740_p8), %v830_v9  ;;  %v1088_v14 = vunpack.c.h.s8.bf16 (!%p740_p8), %v828_v4  ;;  %v1090_v15 = vunpack.c.h.s8.bf16 (!%p740_p8), %v830_v9  ;;  %v832_v18 = vld [vmem:[%s3269_s9 + $0x20] sm:$0xff] (!%p740_p8)  ;;  %v834_v19 = vld [vmem:[%s3269_s9 + $0x30] sm:$0xff] (!%p740_p8)  ;;  %v837_v24 = vld [vmem:[%s3269_s9 + $0x48] sm:$0xff] (!%p740_p8) }
  0x9b   : > { %1652 = vmatprep.subr.bf16.mxu0 (!%p740_p8), %v1085_v5  ;;  %1980 = vmatprep.subr.bf16.mxu1 (!%p740_p8), %v1087_v7  ;;  %v1093_v16 = vunpack.c.l.s8.bf16 (!%p740_p8), %v833_v12  ;;  %v1095_v17 = vunpack.c.l.s8.bf16 (!%p740_p8), %v835_v13  ;;  %v1092_v20 = vunpack.c.l.s8.bf16 (!%p740_p8), %v832_v18  ;;  %v1094_v21 = vunpack.c.l.s8.bf16 (!%p740_p8), %v834_v19  ;;  %v839_v25 = vld [vmem:[%s3269_s9 + $0x58] sm:$0xff] (!%p740_p8)  ;;  %v836_v30 = vld [vmem:[%s3269_s9 + $0x40] sm:$0xff] (!%p740_p8)  ;;  %v838_v31 = vld [vmem:[%s3269_s9 + $0x50] sm:$0xff] (!%p740_p8) }
  0x9c   : > { %1653 = vmatpush1.bf16.msra.mxu0 (!%p740_p8), %v1084_v10  ;;  %1981 = vmatpush1.bf16.msra.mxu1 (!%p740_p8), %v1086_v11  ;;  %v1097_v22 = vunpack.c.h.s8.bf16 (!%p740_p8), %v833_v12  ;;  %v1099_v23 = vunpack.c.h.s8.bf16 (!%p740_p8), %v835_v13  ;;  %v1096_v26 = vunpack.c.h.s8.bf16 (!%p740_p8), %v832_v18  ;;  %v1098_v27 = vunpack.c.h.s8.bf16 (!%p740_p8), %v834_v19  ;;  %v841_v36 = vld [vmem:[%s3269_s9 + $0x68] sm:$0xff] (!%p740_p8)  ;;  %v843_v37 = vld [vmem:[%s3269_s9 + $0x78] sm:$0xff] (!%p740_p8)  ;;  %v840_v42 = vld [vmem:[%s3269_s9 + $0x60] sm:$0xff] (!%p740_p8) }
  0x9d   : > { %1654 = vmatprep.subr.bf16.mxu0 %v1089_v6  ;;  %1982 = vmatprep.subr.bf16.mxu1 %v1091_v8  ;;  %v1101_v28 = vunpack.c.l.s8.bf16 %v837_v24  ;;  %v1103_v29 = vunpack.c.l.s8.bf16 %v839_v25  ;;  %v1100_v32 = vunpack.c.l.s8.bf16 %v836_v30  ;;  %v1102_v33 = vunpack.c.l.s8.bf16 %v838_v31  ;;  %v842_v43 = vld [vmem:[%s3269_s9 + $0x70] sm:$0xff]  ;;  %v845_v48 = vld [vmem:[%s3269_s9 + $0x88] sm:$0xff]  ;;  %v847_v49 = vld [vmem:[%s3269_s9 + $0x98] sm:$0xff]  ;;  %s3634_s30 = smov (!%p793_p9, %s2500_s30), 7 }
  0x9e   : > { %v1105_v34 = vunpack.c.h.s8.bf16 %v837_v24  ;;  %v1107_v35 = vunpack.c.h.s8.bf16 %v839_v25  ;;  %v1104_v38 = vunpack.c.h.s8.bf16 %v836_v30  ;;  %v1106_v39 = vunpack.c.h.s8.bf16 %v838_v31  ;;  %v844_v54 = vld [vmem:[%s3269_s9 + $0x80] sm:$0xff]  ;;  %v846_v55 = vld [vmem:[%s3269_s9 + $0x90] sm:$0xff]  ;;  %v849_v60 = vld [vmem:[%s3269_s9 + $0xa8] sm:$0xff]  ;;  %s795_s7 = scalar_lea.vmem %s3624_s2, %s3634_s30  ;;  %s800_s10 = scalar_lea.vmem %s3625_s3, %s3634_s30 }
  0x9f   : > { %v1109_v40 = vunpack.c.l.s8.bf16 %v841_v36  ;;  %v1111_v41 = vunpack.c.l.s8.bf16 %v843_v37  ;;  %v1108_v44 = vunpack.c.l.s8.bf16 %v840_v42  ;;  %v1110_v45 = vunpack.c.l.s8.bf16 %v842_v43  ;;  %v851_v61 = vld [vmem:[%s3269_s9 + $0xb8] sm:$0xff]  ;;  %v848_v3 = vld [vmem:[%s3269_s9 + $0xa0] sm:$0xff]  ;;  %v850_v4 = vld [vmem:[%s3269_s9 + $0xb0] sm:$0xff]  ;;  %s2503_s17 = sshll.u32 %s3634_s30, 3 }
  0xa0   : > { %1655 = vmatpush1.bf16.msra.mxu0 %v1088_v14  ;;  %1983 = vmatpush1.bf16.msra.mxu1 %v1090_v15  ;;  %v1113_v46 = vunpack.c.h.s8.bf16 %v841_v36  ;;  %v1115_v47 = vunpack.c.h.s8.bf16 %v843_v37  ;;  %v1112_v50 = vunpack.c.h.s8.bf16 %v840_v42  ;;  %v1114_v51 = vunpack.c.h.s8.bf16 %v842_v43  ;;  %v853_v9 = vld [vmem:[%s3269_s9 + $0xc8] sm:$0xff]  ;;  %v855_v10 = vld [vmem:[%s3269_s9 + $0xd8] sm:$0xff]  ;;  %v852_v15 = vld [vmem:[%s3269_s9 + $0xc0] sm:$0xff]  ;;  %s806_s13 = scalar_lea.vmem %s3626_s4, %s2503_s17 }
  0xa1   : > { %1656 = vmatprep.subr.bf16.mxu0 %v1093_v16  ;;  %1984 = vmatprep.subr.bf16.mxu1 %v1095_v17  ;;  %v1117_v52 = vunpack.c.l.s8.bf16 %v845_v48  ;;  %v1119_v53 = vunpack.c.l.s8.bf16 %v847_v49  ;;  %v1116_v56 = vunpack.c.l.s8.bf16 %v844_v54  ;;  %v1118_v57 = vunpack.c.l.s8.bf16 %v846_v55  ;;  %v854_v16 = vld [vmem:[%s3269_s9 + $0xd0] sm:$0xff]  ;;  %v3312_v42 = vld [vmem:[%s3622_s0 + $0x8] sm:$0xff] }
  0xa2   : > { %v1121_v58 = vunpack.c.h.s8.bf16 %v845_v48  ;;  %v1123_v59 = vunpack.c.h.s8.bf16 %v847_v49  ;;  %v1120_v62 = vunpack.c.h.s8.bf16 %v844_v54  ;;  %v1122_v63 = vunpack.c.h.s8.bf16 %v846_v55  ;;  %v867_v48 = vld [vmem:[%s3269_s9 + $0x138] sm:$0xff]  ;;  %v866_v54 = vld [vmem:[%s3269_s9 + $0x130] sm:$0xff] }
  0xa3   : > { %v1125_v1 = vunpack.c.l.s8.bf16 %v849_v60  ;;  %v1127_v2 = vunpack.c.l.s8.bf16 %v851_v61  ;;  %v1124_v5 = vunpack.c.l.s8.bf16 %v848_v3  ;;  %v1126_v6 = vunpack.c.l.s8.bf16 %v850_v4 }
  0xa4   : > { %1657 = vmatpush1.bf16.msra.mxu0 %v1092_v20  ;;  %1985 = vmatpush1.bf16.msra.mxu1 %v1094_v21  ;;  %v1129_v7 = vunpack.c.h.s8.bf16 %v849_v60  ;;  %v1131_v8 = vunpack.c.h.s8.bf16 %v851_v61  ;;  %v1128_v11 = vunpack.c.h.s8.bf16 %v848_v3  ;;  %v1130_v12 = vunpack.c.h.s8.bf16 %v850_v4  ;;  %v857_v21 = vld [vmem:[%s3269_s9 + $0xe8] sm:$0xff]  ;;  %v871_v60 = vld [vmem:[%s3269_s9 + $0x158] sm:$0xff]  ;;  %v870_v3 = vld [vmem:[%s3269_s9 + $0x150] sm:$0xff] }
  0xa5   : > { %1658 = vmatprep.subr.bf16.mxu0 %v1097_v22  ;;  %1986 = vmatprep.subr.bf16.mxu1 %v1099_v23  ;;  %v1133_v13 = vunpack.c.l.s8.bf16 %v853_v9  ;;  %v1135_v14 = vunpack.c.l.s8.bf16 %v855_v10  ;;  %v1132_v17 = vunpack.c.l.s8.bf16 %v852_v15  ;;  %v1134_v18 = vunpack.c.l.s8.bf16 %v854_v16  ;;  %v859_v22 = vld [vmem:[%s3269_s9 + $0xf8] sm:$0xff] }
  0xa6   : > { %v1137_v19 = vunpack.c.h.s8.bf16 %v853_v9  ;;  %v1139_v20 = vunpack.c.h.s8.bf16 %v855_v10  ;;  %v1136_v23 = vunpack.c.h.s8.bf16 %v852_v15  ;;  %v1138_v24 = vunpack.c.h.s8.bf16 %v854_v16  ;;  %v875_v9 = vld [vmem:[%s3269_s9 + $0x178] sm:$0xff]  ;;  %v874_v15 = vld [vmem:[%s3269_s9 + $0x170] sm:$0xff] }
  0xa7   : > { %v1141_v25 = vunpack.c.l.s8.bf16 %v857_v21  ;;  %v1145_v31 = vunpack.c.h.s8.bf16 %v857_v21  ;;  %v879_v21 = vld [vmem:[%s3269_s9 + $0x198] sm:$0xff] }
  0xa8   : > { %1659 = vmatpush1.bf16.msra.mxu0 %v1096_v26  ;;  %1987 = vmatpush1.bf16.msra.mxu1 %v1098_v27  ;;  %v1143_v26 = vunpack.c.l.s8.bf16 %v859_v22  ;;  %v856_v27 = vld [vmem:[%s3269_s9 + $0xe0] sm:$0xff] }
  0xa9   : > { %1660 = vmatprep.subr.bf16.mxu0 %v1101_v28  ;;  %1988 = vmatprep.subr.bf16.mxu1 %v1103_v29  ;;  %v858_v28 = vld [vmem:[%s3269_s9 + $0xf0] sm:$0xff]  ;;  %v1140_v29 = vunpack.c.l.s8.bf16 %v856_v27 }
  0xaa   : > { %v1142_v30 = vunpack.c.l.s8.bf16 %v858_v28  ;;  %v1146_v36 = vunpack.c.h.s8.bf16 %v858_v28 }
  0xac   : > { %1661 = vmatpush1.bf16.msra.mxu0 %v1100_v32  ;;  %1989 = vmatpush1.bf16.msra.mxu1 %v1102_v33  ;;  %v1147_v32 = vunpack.c.h.s8.bf16 %v859_v22  ;;  %v861_v33 = vld [vmem:[%s3269_s9 + $0x108] sm:$0xff] }
  0xad   : > { %1662 = vmatprep.subr.bf16.mxu0 %v1105_v34  ;;  %1990 = vmatprep.subr.bf16.mxu1 %v1107_v35  ;;  %v863_v34 = vld [vmem:[%s3269_s9 + $0x118] sm:$0xff]  ;;  %v1144_v35 = vunpack.c.h.s8.bf16 %v856_v27  ;;  %v1149_v37 = vunpack.c.l.s8.bf16 %v861_v33  ;;  %v878_v27 = vld [vmem:[%s3269_s9 + $0x190] sm:$0xff] }
  0xb0   : > { %1663 = vmatpush1.bf16.msra.mxu0 %v1104_v38  ;;  %1991 = vmatpush1.bf16.msra.mxu1 %v1106_v39  ;;  %v1151_v38 = vunpack.c.l.s8.bf16 %v863_v34  ;;  %v860_v39 = vld [vmem:[%s3269_s9 + $0x100] sm:$0xff] }
  0xb1   : > { %1664 = vmatprep.subr.bf16.mxu0 %v1109_v40  ;;  %1992 = vmatprep.subr.bf16.mxu1 %v1111_v41  ;;  %v862_v40 = vld [vmem:[%s3269_s9 + $0x110] sm:$0xff]  ;;  %v2504_v41 = vcombine.low %v3265_v0, %v3265_v0  ;;  %v1148_v43 = vunpack.c.l.s8.bf16 %v860_v39  ;;  %v2507_v0 = vcombine.high %v3312_v42, %v3312_v42  ;;  %v1152_v49 = vunpack.c.h.s8.bf16 %v860_v39 }
  0xb2   : > { %v882_v39 = vld [vmem:[%s3269_s9 + $0x1b0] sm:$0xff] }
  0xb4   : > { %1665 = vmatpush1.bf16.msra.mxu0 %v1108_v44  ;;  %1993 = vmatpush1.bf16.msra.mxu1 %v1110_v45  ;;  %v1150_v44 = vunpack.c.l.s8.bf16 %v862_v40  ;;  %v1153_v45 = vunpack.c.h.s8.bf16 %v861_v33  ;;  %v883_v33 = vld [vmem:[%s3269_s9 + $0x1b8] sm:$0xff] }
  0xb5   : > { %1666 = vmatprep.subr.bf16.mxu0 %v1113_v46  ;;  %1994 = vmatprep.subr.bf16.mxu1 %v1115_v47  ;;  %v1155_v46 = vunpack.c.h.s8.bf16 %v863_v34  ;;  %v865_v47 = vld [vmem:[%s3269_s9 + $0x128] sm:$0xff] }
  0xb8   : > { %1667 = vmatpush1.bf16.msra.mxu0 %v1112_v50  ;;  %1995 = vmatpush1.bf16.msra.mxu1 %v1114_v51  ;;  %v1154_v50 = vunpack.c.h.s8.bf16 %v862_v40  ;;  %v1157_v51 = vunpack.c.l.s8.bf16 %v865_v47 }
  0xb9   : > { %1668 = vmatprep.subr.bf16.mxu0 %v1117_v52  ;;  %1996 = vmatprep.subr.bf16.mxu1 %v1119_v53  ;;  %v1159_v52 = vunpack.c.l.s8.bf16 %v867_v48  ;;  %v864_v53 = vld [vmem:[%s3269_s9 + $0x120] sm:$0xff] }
  0xba   : > { %v1156_v55 = vunpack.c.l.s8.bf16 %v864_v53  ;;  %v1160_v61 = vunpack.c.h.s8.bf16 %v864_v53 }
  0xbc   : > { %1669 = vmatpush1.bf16.msra.mxu0 %v1116_v56  ;;  %1997 = vmatpush1.bf16.msra.mxu1 %v1118_v57  ;;  %v1158_v56 = vunpack.c.l.s8.bf16 %v866_v54  ;;  %v1161_v57 = vunpack.c.h.s8.bf16 %v865_v47 }
  0xbd   : > { %1670 = vmatprep.subr.bf16.mxu0 %v1121_v58  ;;  %1998 = vmatprep.subr.bf16.mxu1 %v1123_v59  ;;  %v1163_v58 = vunpack.c.h.s8.bf16 %v867_v48  ;;  %v869_v59 = vld [vmem:[%s3269_s9 + $0x148] sm:$0xff]  ;;  %v1194_v48 = vunpack.c.h.s8.bf16 %v882_v39 }
  0xc0   : > { %1671 = vmatpush1.bf16.msra.mxu0 %v1120_v62  ;;  %1999 = vmatpush1.bf16.msra.mxu1 %v1122_v63  ;;  %v1162_v62 = vunpack.c.h.s8.bf16 %v866_v54  ;;  %v1165_v63 = vunpack.c.l.s8.bf16 %v869_v59 }
  0xc1   : > { %1672 = vmatprep.subr.bf16.mxu0 %v1125_v1  ;;  %2000 = vmatprep.subr.bf16.mxu1 %v1127_v2  ;;  %v1167_v1 = vunpack.c.l.s8.bf16 %v871_v60  ;;  %v868_v2 = vld [vmem:[%s3269_s9 + $0x140] sm:$0xff] }
  0xc2   : > { %v1164_v4 = vunpack.c.l.s8.bf16 %v868_v2  ;;  %v1168_v10 = vunpack.c.h.s8.bf16 %v868_v2 }
  0xc4   : > { %1673 = vmatpush1.bf16.msra.mxu0 %v1124_v5  ;;  %2001 = vmatpush1.bf16.msra.mxu1 %v1126_v6  ;;  %v1166_v5 = vunpack.c.l.s8.bf16 %v870_v3  ;;  %v1169_v6 = vunpack.c.h.s8.bf16 %v869_v59 }
  0xc5   : > { %1674 = vmatprep.subr.bf16.mxu0 %v1129_v7  ;;  %2002 = vmatprep.subr.bf16.mxu1 %v1131_v8  ;;  %v1171_v7 = vunpack.c.h.s8.bf16 %v871_v60  ;;  %v873_v8 = vld [vmem:[%s3269_s9 + $0x168] sm:$0xff] }
  0xc8   : > { %1675 = vmatpush1.bf16.msra.mxu0 %v1128_v11  ;;  %2003 = vmatpush1.bf16.msra.mxu1 %v1130_v12  ;;  %v1170_v11 = vunpack.c.h.s8.bf16 %v870_v3  ;;  %v1173_v12 = vunpack.c.l.s8.bf16 %v873_v8 }
  0xc9   : > { %1676 = vmatprep.subr.bf16.mxu0 %v1133_v13  ;;  %2004 = vmatprep.subr.bf16.mxu1 %v1135_v14  ;;  %v1175_v13 = vunpack.c.l.s8.bf16 %v875_v9  ;;  %v872_v14 = vld [vmem:[%s3269_s9 + $0x160] sm:$0xff] }
  0xca   : > { %v1172_v16 = vunpack.c.l.s8.bf16 %v872_v14  ;;  %v1176_v22 = vunpack.c.h.s8.bf16 %v872_v14  ;;  %v3353_v14 = vld [vmem:[%s3622_s0 + $0x10] sm:$0xff] }
  0xcc   : > { %1677 = vmatpush1.bf16.msra.mxu0 %v1132_v17  ;;  %2005 = vmatpush1.bf16.msra.mxu1 %v1134_v18  ;;  %v1174_v17 = vunpack.c.l.s8.bf16 %v874_v15  ;;  %v1177_v18 = vunpack.c.h.s8.bf16 %v873_v8 }
  0xcd   : > { %1678 = vmatprep.subr.bf16.mxu0 %v1137_v19  ;;  %2006 = vmatprep.subr.bf16.mxu1 %v1139_v20  ;;  %v1179_v19 = vunpack.c.h.s8.bf16 %v875_v9  ;;  %v877_v20 = vld [vmem:[%s3269_s9 + $0x188] sm:$0xff] }
  0xd0   : > { %1679 = vmatpush1.bf16.msra.mxu0 %v1136_v23  ;;  %2007 = vmatpush1.bf16.msra.mxu1 %v1138_v24  ;;  %v1178_v23 = vunpack.c.h.s8.bf16 %v874_v15  ;;  %v1181_v24 = vunpack.c.l.s8.bf16 %v877_v20 }
  0xd1   : > { %1680 = vmatprep.subr.bf16.mxu0 %v1141_v25  ;;  %2008 = vmatprep.subr.bf16.mxu1 %v1143_v26  ;;  %v1183_v25 = vunpack.c.l.s8.bf16 %v879_v21  ;;  %v876_v26 = vld [vmem:[%s3269_s9 + $0x180] sm:$0xff] }
  0xd2   : > { %v1180_v28 = vunpack.c.l.s8.bf16 %v876_v26  ;;  %v1184_v34 = vunpack.c.h.s8.bf16 %v876_v26  ;;  %v898_v26 = vld [vmem:[%s3269_s9 + $0x230] sm:$0xff] }
  0xd4   : > { %1681 = vmatpush1.bf16.msra.mxu0 %v1140_v29  ;;  %2009 = vmatpush1.bf16.msra.mxu1 %v1142_v30  ;;  %v1182_v29 = vunpack.c.l.s8.bf16 %v878_v27  ;;  %v1185_v30 = vunpack.c.h.s8.bf16 %v877_v20  ;;  %v899_v20 = vld [vmem:[%s3269_s9 + $0x238] sm:$0xff] }
  0xd5   : > { %1682 = vmatprep.subr.bf16.mxu0 %v1145_v31  ;;  %2010 = vmatprep.subr.bf16.mxu1 %v1147_v32  ;;  %v1187_v31 = vunpack.c.h.s8.bf16 %v879_v21  ;;  %v881_v32 = vld [vmem:[%s3269_s9 + $0x1a8] sm:$0xff] }
  0xd8   : > { %1683 = vmatpush1.bf16.msra.mxu0 %v1144_v35  ;;  %2011 = vmatpush1.bf16.msra.mxu1 %v1146_v36  ;;  %v1186_v35 = vunpack.c.h.s8.bf16 %v878_v27  ;;  %v1189_v36 = vunpack.c.l.s8.bf16 %v881_v32 }
  0xd9   : > { %1693 = vmatprep.subr.bf16.mxu0 %v1149_v37  ;;  %2021 = vmatprep.subr.bf16.mxu1 %v1151_v38  ;;  %v1191_v37 = vunpack.c.l.s8.bf16 %v883_v33  ;;  %v880_v38 = vld [vmem:[%s3269_s9 + $0x1a0] sm:$0xff] }
  0xda   : > { %v1188_v40 = vunpack.c.l.s8.bf16 %v880_v38  ;;  %v1192_v47 = vunpack.c.h.s8.bf16 %v880_v38  ;;  %v902_v38 = vld [vmem:[%s3269_s9 + $0x250] sm:$0xff] }
  0xdb   : > { %1685 = vmatmul.mubr.bf16.vlgmr.msra.gmra.mrb[0].mxu0 %v2504_v41  ;;  %2013 = vmatmul.mubr.bf16.vlgmr.msra.gmra.mrb[0].mxu1 %v2504_v41  ;;  %v1190_v41 = vunpack.c.l.s8.bf16 %v882_v39 }
  0xdc   : > { %1694 = vmatpush1.bf16.msra.mxu0 %v1148_v43  ;;  %2022 = vmatpush1.bf16.msra.mxu1 %v1150_v44  ;;  %v1193_v43 = vunpack.c.h.s8.bf16 %v881_v32  ;;  %v1195_v44 = vunpack.c.h.s8.bf16 %v883_v33  ;;  %v903_v32 = vld [vmem:[%s3269_s9 + $0x258] sm:$0xff] }
  0xdd   : > { %1695 = vmatprep.subr.bf16.mxu0 %v1153_v45  ;;  %2023 = vmatprep.subr.bf16.mxu1 %v1155_v46  ;;  %v885_v45 = vld [vmem:[%s3269_s9 + $0x1c8] sm:$0xff]  ;;  %v887_v46 = vld [vmem:[%s3269_s9 + $0x1d8] sm:$0xff] }
  0xde   : > { %1725 = vmatprep.mubr.bf16.mxu0 %v2507_v0  ;;  %2053 = vmatprep.mubr.bf16.mxu1 %v2507_v0  ;;  %v1197_v0 = vunpack.c.l.s8.bf16 %v885_v45  ;;  %v1201_v54 = vunpack.c.h.s8.bf16 %v885_v45  ;;  %v907_v45 = vld [vmem:[%s3269_s9 + $0x278] sm:$0xff] }
  0xe0   : > { %1696 = vmatpush1.bf16.msra.mxu0 %v1152_v49  ;;  %2024 = vmatpush1.bf16.msra.mxu1 %v1154_v50  ;;  %v1199_v49 = vunpack.c.l.s8.bf16 %v887_v46  ;;  %v884_v50 = vld [vmem:[%s3269_s9 + $0x1c0] sm:$0xff] }
  0xe1   : > { %1697 = vmatprep.subr.bf16.mxu0 %v1157_v51  ;;  %2025 = vmatprep.subr.bf16.mxu1 %v1159_v52  ;;  %v886_v51 = vld [vmem:[%s3269_s9 + $0x1d0] sm:$0xff]  ;;  %v1196_v52 = vunpack.c.l.s8.bf16 %v884_v50 }
  0xe2   : > { %v1198_v53 = vunpack.c.l.s8.bf16 %v886_v51  ;;  %v1202_v59 = vunpack.c.h.s8.bf16 %v886_v51 }
  0xe4   : > { %1698 = vmatpush1.bf16.msra.mxu0 %v1156_v55  ;;  %2026 = vmatpush1.bf16.msra.mxu1 %v1158_v56  ;;  %v1203_v55 = vunpack.c.h.s8.bf16 %v887_v46  ;;  %v889_v56 = vld [vmem:[%s3269_s9 + $0x1e8] sm:$0xff] }
  0xe5   : > { %1699 = vmatprep.subr.bf16.mxu0 %v1161_v57  ;;  %2027 = vmatprep.subr.bf16.mxu1 %v1163_v58  ;;  %v891_v57 = vld [vmem:[%s3269_s9 + $0x1f8] sm:$0xff]  ;;  %v1200_v58 = vunpack.c.h.s8.bf16 %v884_v50  ;;  %v1205_v60 = vunpack.c.l.s8.bf16 %v889_v56  ;;  %v1209_v3 = vunpack.c.h.s8.bf16 %v889_v56  ;;  %v906_v50 = vld [vmem:[%s3269_s9 + $0x270] sm:$0xff] }
  0xe6   : > { %v911_v56 = vld [vmem:[%s3269_s9 + $0x298] sm:$0xff] }
  0xe8   : > { %1700 = vmatpush1.bf16.msra.mxu0 %v1160_v61  ;;  %2028 = vmatpush1.bf16.msra.mxu1 %v1162_v62  ;;  %v1207_v61 = vunpack.c.l.s8.bf16 %v891_v57  ;;  %v888_v62 = vld [vmem:[%s3269_s9 + $0x1e0] sm:$0xff] }
  0xe9   : > { %1701 = vmatprep.subr.bf16.mxu0 %v1165_v63  ;;  %2029 = vmatprep.subr.bf16.mxu1 %v1167_v1  ;;  %v890_v63 = vld [vmem:[%s3269_s9 + $0x1f0] sm:$0xff]  ;;  %v1204_v1 = vunpack.c.l.s8.bf16 %v888_v62 }
  0xea   : > { %v1206_v2 = vunpack.c.l.s8.bf16 %v890_v63  ;;  %v1210_v8 = vunpack.c.h.s8.bf16 %v890_v63 }
  0xec   : > { %1702 = vmatpush1.bf16.msra.mxu0 %v1164_v4  ;;  %2030 = vmatpush1.bf16.msra.mxu1 %v1166_v5  ;;  %v1211_v4 = vunpack.c.h.s8.bf16 %v891_v57  ;;  %v893_v5 = vld [vmem:[%s3269_s9 + $0x208] sm:$0xff] }
  0xed   : > { %1703 = vmatprep.subr.bf16.mxu0 %v1169_v6  ;;  %2031 = vmatprep.subr.bf16.mxu1 %v1171_v7  ;;  %v895_v6 = vld [vmem:[%s3269_s9 + $0x218] sm:$0xff]  ;;  %v1208_v7 = vunpack.c.h.s8.bf16 %v888_v62  ;;  %v1213_v9 = vunpack.c.l.s8.bf16 %v893_v5  ;;  %v910_v62 = vld [vmem:[%s3269_s9 + $0x290] sm:$0xff] }
  0xf0   : > { %1704 = vmatpush1.bf16.msra.mxu0 %v1168_v10  ;;  %2032 = vmatpush1.bf16.msra.mxu1 %v1170_v11  ;;  %v1215_v10 = vunpack.c.l.s8.bf16 %v895_v6  ;;  %v892_v11 = vld [vmem:[%s3269_s9 + $0x200] sm:$0xff] }
  0xf1   : > { %1705 = vmatprep.subr.bf16.mxu0 %v1173_v12  ;;  %2033 = vmatprep.subr.bf16.mxu1 %v1175_v13  ;;  %v894_v12 = vld [vmem:[%s3269_s9 + $0x210] sm:$0xff]  ;;  %v2506_v13 = vcombine.low %v3312_v42, %v3312_v42  ;;  %v1212_v15 = vunpack.c.l.s8.bf16 %v892_v11  ;;  %v2509_v42 = vcombine.high %v3353_v14, %v3353_v14  ;;  %v1216_v21 = vunpack.c.h.s8.bf16 %v892_v11 }
  0xf2   : > { %v914_v11 = vld [vmem:[%s3269_s9 + $0x2b0] sm:$0xff] }
  0xf4   : > { %1706 = vmatpush1.bf16.msra.mxu0 %v1172_v16  ;;  %2034 = vmatpush1.bf16.msra.mxu1 %v1174_v17  ;;  %v1214_v16 = vunpack.c.l.s8.bf16 %v894_v12  ;;  %v1217_v17 = vunpack.c.h.s8.bf16 %v893_v5  ;;  %v915_v5 = vld [vmem:[%s3269_s9 + $0x2b8] sm:$0xff] }
  0xf5   : > { %1707 = vmatprep.subr.bf16.mxu0 %v1177_v18  ;;  %2035 = vmatprep.subr.bf16.mxu1 %v1179_v19  ;;  %v1219_v18 = vunpack.c.h.s8.bf16 %v895_v6  ;;  %v897_v19 = vld [vmem:[%s3269_s9 + $0x228] sm:$0xff] }
  0xf8   : > { %1708 = vmatpush1.bf16.msra.mxu0 %v1176_v22  ;;  %2036 = vmatpush1.bf16.msra.mxu1 %v1178_v23  ;;  %v1218_v22 = vunpack.c.h.s8.bf16 %v894_v12  ;;  %v1221_v23 = vunpack.c.l.s8.bf16 %v897_v19 }
  0xf9   : > { %1709 = vmatprep.subr.bf16.mxu0 %v1181_v24  ;;  %2037 = vmatprep.subr.bf16.mxu1 %v1183_v25  ;;  %v1223_v24 = vunpack.c.l.s8.bf16 %v899_v20  ;;  %v896_v25 = vld [vmem:[%s3269_s9 + $0x220] sm:$0xff] }
  0xfa   : > { %v1220_v27 = vunpack.c.l.s8.bf16 %v896_v25  ;;  %v1224_v33 = vunpack.c.h.s8.bf16 %v896_v25 }
  0xfc   : > { %1710 = vmatpush1.bf16.msra.mxu0 %v1180_v28  ;;  %2038 = vmatpush1.bf16.msra.mxu1 %v1182_v29  ;;  %v1222_v28 = vunpack.c.l.s8.bf16 %v898_v26  ;;  %v1225_v29 = vunpack.c.h.s8.bf16 %v897_v19 }
  0xfd   : > { %1711 = vmatprep.subr.bf16.mxu0 %v1185_v30  ;;  %2039 = vmatprep.subr.bf16.mxu1 %v1187_v31  ;;  %v1227_v30 = vunpack.c.h.s8.bf16 %v899_v20  ;;  %v901_v31 = vld [vmem:[%s3269_s9 + $0x248] sm:$0xff]  ;;  %v1258_v20 = vunpack.c.h.s8.bf16 %v914_v11 }
 0x100   : > { %1712 = vmatpush1.bf16.msra.mxu0 %v1184_v34  ;;  %2040 = vmatpush1.bf16.msra.mxu1 %v1186_v35  ;;  %v1226_v34 = vunpack.c.h.s8.bf16 %v898_v26  ;;  %v1229_v35 = vunpack.c.l.s8.bf16 %v901_v31 }
 0x101   : > { %1713 = vmatprep.subr.bf16.mxu0 %v1189_v36  ;;  %2041 = vmatprep.subr.bf16.mxu1 %v1191_v37  ;;  %v1231_v36 = vunpack.c.l.s8.bf16 %v903_v32  ;;  %v900_v37 = vld [vmem:[%s3269_s9 + $0x240] sm:$0xff] }
 0x102   : > { %v1228_v39 = vunpack.c.l.s8.bf16 %v900_v37  ;;  %v1232_v46 = vunpack.c.h.s8.bf16 %v900_v37 }
 0x104   : > { %1714 = vmatpush1.bf16.msra.mxu0 %v1188_v40  ;;  %2042 = vmatpush1.bf16.msra.mxu1 %v1190_v41  ;;  %v1230_v40 = vunpack.c.l.s8.bf16 %v902_v38  ;;  %v1233_v41 = vunpack.c.h.s8.bf16 %v901_v31 }
 0x105   : > { %1715 = vmatprep.subr.bf16.mxu0 %v1193_v43  ;;  %2043 = vmatprep.subr.bf16.mxu1 %v1195_v44  ;;  %v1235_v43 = vunpack.c.h.s8.bf16 %v903_v32  ;;  %v905_v44 = vld [vmem:[%s3269_s9 + $0x268] sm:$0xff] }
 0x108   : > { %1716 = vmatpush1.bf16.msra.mxu0 %v1192_v47  ;;  %2044 = vmatpush1.bf16.msra.mxu1 %v1194_v48  ;;  %v1234_v47 = vunpack.c.h.s8.bf16 %v902_v38  ;;  %v1237_v48 = vunpack.c.l.s8.bf16 %v905_v44 }
 0x109   : > { %1717 = vmatprep.subr.bf16.mxu0 %v1197_v0  ;;  %2045 = vmatprep.subr.bf16.mxu1 %v1199_v49  ;;  %v1239_v0 = vunpack.c.l.s8.bf16 %v907_v45  ;;  %v904_v49 = vld [vmem:[%s3269_s9 + $0x260] sm:$0xff] }
 0x10a   : > { %v1236_v51 = vunpack.c.l.s8.bf16 %v904_v49  ;;  %v1240_v57 = vunpack.c.h.s8.bf16 %v904_v49  ;;  %v3394_v49 = vld [vmem:[%s3622_s0 + $0x18] sm:$0xff] }
 0x10c   : > { %1718 = vmatpush1.bf16.msra.mxu0 %v1196_v52  ;;  %2046 = vmatpush1.bf16.msra.mxu1 %v1198_v53  ;;  %v1238_v52 = vunpack.c.l.s8.bf16 %v906_v50  ;;  %v1241_v53 = vunpack.c.h.s8.bf16 %v905_v44 }
 0x10d   : > { %1719 = vmatprep.subr.bf16.mxu0 %v1201_v54  ;;  %2047 = vmatprep.subr.bf16.mxu1 %v1203_v55  ;;  %v1243_v54 = vunpack.c.h.s8.bf16 %v907_v45  ;;  %v909_v55 = vld [vmem:[%s3269_s9 + $0x288] sm:$0xff] }
 0x110   : > { %1720 = vmatpush1.bf16.msra.mxu0 %v1200_v58  ;;  %2048 = vmatpush1.bf16.msra.mxu1 %v1202_v59  ;;  %v1242_v58 = vunpack.c.h.s8.bf16 %v906_v50  ;;  %v1245_v59 = vunpack.c.l.s8.bf16 %v909_v55 }
 0x111   : > { %1721 = vmatprep.subr.bf16.mxu0 %v1205_v60  ;;  %2049 = vmatprep.subr.bf16.mxu1 %v1207_v61  ;;  %v1247_v60 = vunpack.c.l.s8.bf16 %v911_v56  ;;  %v908_v61 = vld [vmem:[%s3269_s9 + $0x280] sm:$0xff] }
 0x112   : > { %v1244_v63 = vunpack.c.l.s8.bf16 %v908_v61  ;;  %v1248_v6 = vunpack.c.h.s8.bf16 %v908_v61  ;;  %v930_v61 = vld [vmem:[%s3269_s9 + $0x330] sm:$0xff] }
 0x114   : > { %1722 = vmatpush1.bf16.msra.mxu0 %v1204_v1  ;;  %2050 = vmatpush1.bf16.msra.mxu1 %v1206_v2  ;;  %v1246_v1 = vunpack.c.l.s8.bf16 %v910_v62  ;;  %v1249_v2 = vunpack.c.h.s8.bf16 %v909_v55  ;;  %v931_v55 = vld [vmem:[%s3269_s9 + $0x338] sm:$0xff] }
 0x115   : > { %1723 = vmatprep.subr.bf16.mxu0 %v1209_v3  ;;  %2051 = vmatprep.subr.bf16.mxu1 %v1211_v4  ;;  %v1251_v3 = vunpack.c.h.s8.bf16 %v911_v56  ;;  %v913_v4 = vld [vmem:[%s3269_s9 + $0x2a8] sm:$0xff] }
 0x118   : > { %1724 = vmatpush1.bf16.msra.mxu0 %v1208_v7  ;;  %2052 = vmatpush1.bf16.msra.mxu1 %v1210_v8  ;;  %v1250_v7 = vunpack.c.h.s8.bf16 %v910_v62  ;;  %v1253_v8 = vunpack.c.l.s8.bf16 %v913_v4 }
 0x119   : > { %1734 = vmatprep.subr.bf16.mxu0 %v1213_v9  ;;  %2062 = vmatprep.subr.bf16.mxu1 %v1215_v10  ;;  %v1255_v9 = vunpack.c.l.s8.bf16 %v915_v5  ;;  %v912_v10 = vld [vmem:[%s3269_s9 + $0x2a0] sm:$0xff] }
 0x11a   : > { %v1252_v12 = vunpack.c.l.s8.bf16 %v912_v10  ;;  %v1256_v19 = vunpack.c.h.s8.bf16 %v912_v10  ;;  %v934_v10 = vld [vmem:[%s3269_s9 + $0x350] sm:$0xff] }
 0x11b   : > { %1726 = vmatmul.mubr.bf16.vlgmr.msra.gmra.mrb[0].mxu0 %v2506_v13  ;;  %2054 = vmatmul.mubr.bf16.vlgmr.msra.gmra.mrb[0].mxu1 %v2506_v13  ;;  %v1254_v13 = vunpack.c.l.s8.bf16 %v914_v11 }
 0x11c   : > { %1735 = vmatpush1.bf16.msra.mxu0 %v1212_v15  ;;  %2063 = vmatpush1.bf16.msra.mxu1 %v1214_v16  ;;  %v1257_v15 = vunpack.c.h.s8.bf16 %v913_v4  ;;  %v1259_v16 = vunpack.c.h.s8.bf16 %v915_v5  ;;  %v935_v4 = vld [vmem:[%s3269_s9 + $0x358] sm:$0xff] }
 0x11d   : > { %1736 = vmatprep.subr.bf16.mxu0 %v1217_v17  ;;  %2064 = vmatprep.subr.bf16.mxu1 %v1219_v18  ;;  %v917_v17 = vld [vmem:[%s3269_s9 + $0x2c8] sm:$0xff]  ;;  %v919_v18 = vld [vmem:[%s3269_s9 + $0x2d8] sm:$0xff] }
 0x11e   : > { %1766 = vmatprep.mubr.bf16.mxu0 %v2509_v42  ;;  %2094 = vmatprep.mubr.bf16.mxu1 %v2509_v42  ;;  %v1261_v42 = vunpack.c.l.s8.bf16 %v917_v17  ;;  %v1265_v26 = vunpack.c.h.s8.bf16 %v917_v17  ;;  %v939_v17 = vld [vmem:[%s3269_s9 + $0x378] sm:$0xff] }
 0x120   : > { %1737 = vmatpush1.bf16.msra.mxu0 %v1216_v21  ;;  %2065 = vmatpush1.bf16.msra.mxu1 %v1218_v22  ;;  %v1263_v21 = vunpack.c.l.s8.bf16 %v919_v18  ;;  %v916_v22 = vld [vmem:[%s3269_s9 + $0x2c0] sm:$0xff] }
 0x121   : > { %1738 = vmatprep.subr.bf16.mxu0 %v1221_v23  ;;  %2066 = vmatprep.subr.bf16.mxu1 %v1223_v24  ;;  %v918_v23 = vld [vmem:[%s3269_s9 + $0x2d0] sm:$0xff]  ;;  %v1260_v24 = vunpack.c.l.s8.bf16 %v916_v22 }
 0x122   : > { %v1262_v25 = vunpack.c.l.s8.bf16 %v918_v23  ;;  %v1266_v31 = vunpack.c.h.s8.bf16 %v918_v23 }
 0x124   : > { %1739 = vmatpush1.bf16.msra.mxu0 %v1220_v27  ;;  %2067 = vmatpush1.bf16.msra.mxu1 %v1222_v28  ;;  %v1267_v27 = vunpack.c.h.s8.bf16 %v919_v18  ;;  %v921_v28 = vld [vmem:[%s3269_s9 + $0x2e8] sm:$0xff] }
 0x125   : > { %1740 = vmatprep.subr.bf16.mxu0 %v1225_v29  ;;  %2068 = vmatprep.subr.bf16.mxu1 %v1227_v30  ;;  %v923_v29 = vld [vmem:[%s3269_s9 + $0x2f8] sm:$0xff]  ;;  %v1264_v30 = vunpack.c.h.s8.bf16 %v916_v22  ;;  %v1269_v32 = vunpack.c.l.s8.bf16 %v921_v28  ;;  %v1273_v38 = vunpack.c.h.s8.bf16 %v921_v28  ;;  %v938_v22 = vld [vmem:[%s3269_s9 + $0x370] sm:$0xff] }
 0x126   : > { %v943_v28 = vld [vmem:[%s3269_s9 + $0x398] sm:$0xff] }
 0x128   : > { %1741 = vmatpush1.bf16.msra.mxu0 %v1224_v33  ;;  %2069 = vmatpush1.bf16.msra.mxu1 %v1226_v34  ;;  %v1271_v33 = vunpack.c.l.s8.bf16 %v923_v29  ;;  %v920_v34 = vld [vmem:[%s3269_s9 + $0x2e0] sm:$0xff] }
 0x129   : > { %1742 = vmatprep.subr.bf16.mxu0 %v1229_v35  ;;  %2070 = vmatprep.subr.bf16.mxu1 %v1231_v36  ;;  %v922_v35 = vld [vmem:[%s3269_s9 + $0x2f0] sm:$0xff]  ;;  %v1268_v36 = vunpack.c.l.s8.bf16 %v920_v34 }
 0x12a   : > { %v1270_v37 = vunpack.c.l.s8.bf16 %v922_v35  ;;  %v1274_v44 = vunpack.c.h.s8.bf16 %v922_v35 }
 0x12c   : > { %1743 = vmatpush1.bf16.msra.mxu0 %v1228_v39  ;;  %2071 = vmatpush1.bf16.msra.mxu1 %v1230_v40  ;;  %v1275_v39 = vunpack.c.h.s8.bf16 %v923_v29  ;;  %v925_v40 = vld [vmem:[%s3269_s9 + $0x308] sm:$0xff] }
 0x12d   : > { %1744 = vmatprep.subr.bf16.mxu0 %v1233_v41  ;;  %2072 = vmatprep.subr.bf16.mxu1 %v1235_v43  ;;  %v927_v41 = vld [vmem:[%s3269_s9 + $0x318] sm:$0xff]  ;;  %v1272_v43 = vunpack.c.h.s8.bf16 %v920_v34  ;;  %v1277_v45 = vunpack.c.l.s8.bf16 %v925_v40  ;;  %v942_v34 = vld [vmem:[%s3269_s9 + $0x390] sm:$0xff] }
 0x130   : > { %1745 = vmatpush1.bf16.msra.mxu0 %v1232_v46  ;;  %2073 = vmatpush1.bf16.msra.mxu1 %v1234_v47  ;;  %v1279_v46 = vunpack.c.l.s8.bf16 %v927_v41  ;;  %v924_v47 = vld [vmem:[%s3269_s9 + $0x300] sm:$0xff] }
 0x131   : > { %1746 = vmatprep.subr.bf16.mxu0 %v1237_v48  ;;  %2074 = vmatprep.subr.bf16.mxu1 %v1239_v0  ;;  %v926_v48 = vld [vmem:[%s3269_s9 + $0x310] sm:$0xff]  ;;  %v2508_v0 = vcombine.low %v3353_v14, %v3353_v14  ;;  %v1276_v50 = vunpack.c.l.s8.bf16 %v924_v47  ;;  %v2511_v14 = vcombine.high %v3394_v49, %v3394_v49  ;;  %v1280_v56 = vunpack.c.h.s8.bf16 %v924_v47 }
 0x132   : > { %v946_v47 = vld [vmem:[%s3269_s9 + $0x3b0] sm:$0xff] }
 0x134   : > { %1747 = vmatpush1.bf16.msra.mxu0 %v1236_v51  ;;  %2075 = vmatpush1.bf16.msra.mxu1 %v1238_v52  ;;  %v1278_v51 = vunpack.c.l.s8.bf16 %v926_v48  ;;  %v1281_v52 = vunpack.c.h.s8.bf16 %v925_v40  ;;  %v947_v40 = vld [vmem:[%s3269_s9 + $0x3b8] sm:$0xff] }
 0x135   : > { %1748 = vmatprep.subr.bf16.mxu0 %v1241_v53  ;;  %2076 = vmatprep.subr.bf16.mxu1 %v1243_v54  ;;  %v1283_v53 = vunpack.c.h.s8.bf16 %v927_v41  ;;  %v929_v54 = vld [vmem:[%s3269_s9 + $0x328] sm:$0xff] }
 0x138   : > { %1749 = vmatpush1.bf16.msra.mxu0 %v1240_v57  ;;  %2077 = vmatpush1.bf16.msra.mxu1 %v1242_v58  ;;  %v1282_v57 = vunpack.c.h.s8.bf16 %v926_v48  ;;  %v1285_v58 = vunpack.c.l.s8.bf16 %v929_v54 }
 0x139   : > { %1750 = vmatprep.subr.bf16.mxu0 %v1245_v59  ;;  %2078 = vmatprep.subr.bf16.mxu1 %v1247_v60  ;;  %v1287_v59 = vunpack.c.l.s8.bf16 %v931_v55  ;;  %v928_v60 = vld [vmem:[%s3269_s9 + $0x320] sm:$0xff] }
 0x13a   : > { %v1284_v62 = vunpack.c.l.s8.bf16 %v928_v60  ;;  %v1288_v5 = vunpack.c.h.s8.bf16 %v928_v60 }
 0x13c   : > { %1751 = vmatpush1.bf16.msra.mxu0 %v1244_v63  ;;  %2079 = vmatpush1.bf16.msra.mxu1 %v1246_v1  ;;  %v1286_v63 = vunpack.c.l.s8.bf16 %v930_v61  ;;  %v1289_v1 = vunpack.c.h.s8.bf16 %v929_v54 }
 0x13d   : > { %1752 = vmatprep.subr.bf16.mxu0 %v1249_v2  ;;  %2080 = vmatprep.subr.bf16.mxu1 %v1251_v3  ;;  %v1291_v2 = vunpack.c.h.s8.bf16 %v931_v55  ;;  %v933_v3 = vld [vmem:[%s3269_s9 + $0x348] sm:$0xff]  ;;  %v1322_v55 = vunpack.c.h.s8.bf16 %v946_v47 }
 0x140   : > { %1753 = vmatpush1.bf16.msra.mxu0 %v1248_v6  ;;  %2081 = vmatpush1.bf16.msra.mxu1 %v1250_v7  ;;  %v1290_v6 = vunpack.c.h.s8.bf16 %v930_v61  ;;  %v1293_v7 = vunpack.c.l.s8.bf16 %v933_v3 }
 0x141   : > { %1754 = vmatprep.subr.bf16.mxu0 %v1253_v8  ;;  %2082 = vmatprep.subr.bf16.mxu1 %v1255_v9  ;;  %v1295_v8 = vunpack.c.l.s8.bf16 %v935_v4  ;;  %v932_v9 = vld [vmem:[%s3269_s9 + $0x340] sm:$0xff] }
 0x142   : > { %v1292_v11 = vunpack.c.l.s8.bf16 %v932_v9  ;;  %v1296_v18 = vunpack.c.h.s8.bf16 %v932_v9 }
 0x144   : > { %1755 = vmatpush1.bf16.msra.mxu0 %v1252_v12  ;;  %2083 = vmatpush1.bf16.msra.mxu1 %v1254_v13  ;;  %v1294_v12 = vunpack.c.l.s8.bf16 %v934_v10  ;;  %v1297_v13 = vunpack.c.h.s8.bf16 %v933_v3 }
 0x145   : > { %1756 = vmatprep.subr.bf16.mxu0 %v1257_v15  ;;  %2084 = vmatprep.subr.bf16.mxu1 %v1259_v16  ;;  %v1299_v15 = vunpack.c.h.s8.bf16 %v935_v4  ;;  %v937_v16 = vld [vmem:[%s3269_s9 + $0x368] sm:$0xff] }
 0x148   : > { %1757 = vmatpush1.bf16.msra.mxu0 %v1256_v19  ;;  %2085 = vmatpush1.bf16.msra.mxu1 %v1258_v20  ;;  %v1298_v19 = vunpack.c.h.s8.bf16 %v934_v10  ;;  %v1301_v20 = vunpack.c.l.s8.bf16 %v937_v16 }
 0x149   : > { %1758 = vmatprep.subr.bf16.mxu0 %v1261_v42  ;;  %2086 = vmatprep.subr.bf16.mxu1 %v1263_v21  ;;  %v1303_v42 = vunpack.c.l.s8.bf16 %v939_v17  ;;  %v936_v21 = vld [vmem:[%s3269_s9 + $0x360] sm:$0xff] }
 0x14a   : > { %v1300_v23 = vunpack.c.l.s8.bf16 %v936_v21  ;;  %v1304_v29 = vunpack.c.h.s8.bf16 %v936_v21  ;;  %v3435_v21 = vld [vmem:[%s3622_s0 + $0x20] sm:$0xff] }
 0x14c   : > { %1759 = vmatpush1.bf16.msra.mxu0 %v1260_v24  ;;  %2087 = vmatpush1.bf16.msra.mxu1 %v1262_v25  ;;  %v1302_v24 = vunpack.c.l.s8.bf16 %v938_v22  ;;  %v1305_v25 = vunpack.c.h.s8.bf16 %v937_v16 }
 0x14d   : > { %1760 = vmatprep.subr.bf16.mxu0 %v1265_v26  ;;  %2088 = vmatprep.subr.bf16.mxu1 %v1267_v27  ;;  %v1307_v26 = vunpack.c.h.s8.bf16 %v939_v17  ;;  %v941_v27 = vld [vmem:[%s3269_s9 + $0x388] sm:$0xff] }
 0x150   : > { %1761 = vmatpush1.bf16.msra.mxu0 %v1264_v30  ;;  %2089 = vmatpush1.bf16.msra.mxu1 %v1266_v31  ;;  %v1306_v30 = vunpack.c.h.s8.bf16 %v938_v22  ;;  %v1309_v31 = vunpack.c.l.s8.bf16 %v941_v27 }
 0x151   : > { %1762 = vmatprep.subr.bf16.mxu0 %v1269_v32  ;;  %2090 = vmatprep.subr.bf16.mxu1 %v1271_v33  ;;  %v1311_v32 = vunpack.c.l.s8.bf16 %v943_v28  ;;  %v940_v33 = vld [vmem:[%s3269_s9 + $0x380] sm:$0xff] }
 0x152   : > { %v1308_v35 = vunpack.c.l.s8.bf16 %v940_v33  ;;  %v1312_v41 = vunpack.c.h.s8.bf16 %v940_v33  ;;  %v962_v33 = vld [vmem:[%s3269_s9 + $0x430] sm:$0xff] }
 0x154   : > { %1763 = vmatpush1.bf16.msra.mxu0 %v1268_v36  ;;  %2091 = vmatpush1.bf16.msra.mxu1 %v1270_v37  ;;  %v1310_v36 = vunpack.c.l.s8.bf16 %v942_v34  ;;  %v1313_v37 = vunpack.c.h.s8.bf16 %v941_v27  ;;  %v963_v27 = vld [vmem:[%s3269_s9 + $0x438] sm:$0xff] }
 0x155   : > { %1764 = vmatprep.subr.bf16.mxu0 %v1273_v38  ;;  %2092 = vmatprep.subr.bf16.mxu1 %v1275_v39  ;;  %v1315_v38 = vunpack.c.h.s8.bf16 %v943_v28  ;;  %v945_v39 = vld [vmem:[%s3269_s9 + $0x3a8] sm:$0xff] }
 0x158   : > { %1765 = vmatpush1.bf16.msra.mxu0 %v1272_v43  ;;  %2093 = vmatpush1.bf16.msra.mxu1 %v1274_v44  ;;  %v1314_v43 = vunpack.c.h.s8.bf16 %v942_v34  ;;  %v1317_v44 = vunpack.c.l.s8.bf16 %v945_v39 }
 0x159   : > { %1775 = vmatprep.subr.bf16.mxu0 %v1277_v45  ;;  %2103 = vmatprep.subr.bf16.mxu1 %v1279_v46  ;;  %v1319_v45 = vunpack.c.l.s8.bf16 %v947_v40  ;;  %v944_v46 = vld [vmem:[%s3269_s9 + $0x3a0] sm:$0xff] }
 0x15a   : > { %v1316_v48 = vunpack.c.l.s8.bf16 %v944_v46  ;;  %v1320_v54 = vunpack.c.h.s8.bf16 %v944_v46  ;;  %v966_v46 = vld [vmem:[%s3269_s9 + $0x450] sm:$0xff] }
 0x15b   : > { %1767 = vmatmul.mubr.bf16.vlgmr.msra.gmra.mrb[0].mxu0 %v2508_v0  ;;  %2095 = vmatmul.mubr.bf16.vlgmr.msra.gmra.mrb[0].mxu1 %v2508_v0  ;;  %v1318_v0 = vunpack.c.l.s8.bf16 %v946_v47 }
 0x15c   : > { %1776 = vmatpush1.bf16.msra.mxu0 %v1276_v50  ;;  %2104 = vmatpush1.bf16.msra.mxu1 %v1278_v51  ;;  %v1321_v50 = vunpack.c.h.s8.bf16 %v945_v39  ;;  %v1323_v51 = vunpack.c.h.s8.bf16 %v947_v40  ;;  %v967_v39 = vld [vmem:[%s3269_s9 + $0x458] sm:$0xff] }
 0x15d   : > { %1777 = vmatprep.subr.bf16.mxu0 %v1281_v52  ;;  %2105 = vmatprep.subr.bf16.mxu1 %v1283_v53  ;;  %v949_v52 = vld [vmem:[%s3269_s9 + $0x3c8] sm:$0xff]  ;;  %v951_v53 = vld [vmem:[%s3269_s9 + $0x3d8] sm:$0xff] }
 0x15e   : > { %1807 = vmatprep.mubr.bf16.mxu0 %v2511_v14  ;;  %2135 = vmatprep.mubr.bf16.mxu1 %v2511_v14  ;;  %v1325_v14 = vunpack.c.l.s8.bf16 %v949_v52  ;;  %v1329_v61 = vunpack.c.h.s8.bf16 %v949_v52  ;;  %v971_v52 = vld [vmem:[%s3269_s9 + $0x478] sm:$0xff] }
 0x160   : > { %1778 = vmatpush1.bf16.msra.mxu0 %v1280_v56  ;;  %2106 = vmatpush1.bf16.msra.mxu1 %v1282_v57  ;;  %v1327_v56 = vunpack.c.l.s8.bf16 %v951_v53  ;;  %v948_v57 = vld [vmem:[%s3269_s9 + $0x3c0] sm:$0xff] }
 0x161   : > { %1779 = vmatprep.subr.bf16.mxu0 %v1285_v58  ;;  %2107 = vmatprep.subr.bf16.mxu1 %v1287_v59  ;;  %v950_v58 = vld [vmem:[%s3269_s9 + $0x3d0] sm:$0xff]  ;;  %v1324_v59 = vunpack.c.l.s8.bf16 %v948_v57 }
 0x162   : > { %v1326_v60 = vunpack.c.l.s8.bf16 %v950_v58  ;;  %v1330_v3 = vunpack.c.h.s8.bf16 %v950_v58 }
 0x164   : > { %1780 = vmatpush1.bf16.msra.mxu0 %v1284_v62  ;;  %2108 = vmatpush1.bf16.msra.mxu1 %v1286_v63  ;;  %v1331_v62 = vunpack.c.h.s8.bf16 %v951_v53  ;;  %v953_v63 = vld [vmem:[%s3269_s9 + $0x3e8] sm:$0xff] }
 0x165   : > { %1781 = vmatprep.subr.bf16.mxu0 %v1289_v1  ;;  %2109 = vmatprep.subr.bf16.mxu1 %v1291_v2  ;;  %v955_v1 = vld [vmem:[%s3269_s9 + $0x3f8] sm:$0xff]  ;;  %v1328_v2 = vunpack.c.h.s8.bf16 %v948_v57  ;;  %v1333_v4 = vunpack.c.l.s8.bf16 %v953_v63  ;;  %v1337_v10 = vunpack.c.h.s8.bf16 %v953_v63  ;;  %v970_v57 = vld [vmem:[%s3269_s9 + $0x470] sm:$0xff] }
 0x166   : > { %v975_v63 = vld [vmem:[%s3269_s9 + $0x498] sm:$0xff] }
 0x168   : > { %1782 = vmatpush1.bf16.msra.mxu0 %v1288_v5  ;;  %2110 = vmatpush1.bf16.msra.mxu1 %v1290_v6  ;;  %v1335_v5 = vunpack.c.l.s8.bf16 %v955_v1  ;;  %v952_v6 = vld [vmem:[%s3269_s9 + $0x3e0] sm:$0xff] }
 0x169   : > { %1783 = vmatprep.subr.bf16.mxu0 %v1293_v7  ;;  %2111 = vmatprep.subr.bf16.mxu1 %v1295_v8  ;;  %v954_v7 = vld [vmem:[%s3269_s9 + $0x3f0] sm:$0xff]  ;;  %v1332_v8 = vunpack.c.l.s8.bf16 %v952_v6 }
 0x16a   : > { %v1334_v9 = vunpack.c.l.s8.bf16 %v954_v7  ;;  %v1338_v16 = vunpack.c.h.s8.bf16 %v954_v7 }
 0x16c   : > { %1784 = vmatpush1.bf16.msra.mxu0 %v1292_v11  ;;  %2112 = vmatpush1.bf16.msra.mxu1 %v1294_v12  ;;  %v1339_v11 = vunpack.c.h.s8.bf16 %v955_v1  ;;  %v957_v12 = vld [vmem:[%s3269_s9 + $0x408] sm:$0xff] }
 0x16d   : > { %1785 = vmatprep.subr.bf16.mxu0 %v1297_v13  ;;  %2113 = vmatprep.subr.bf16.mxu1 %v1299_v15  ;;  %v959_v13 = vld [vmem:[%s3269_s9 + $0x418] sm:$0xff]  ;;  %v1336_v15 = vunpack.c.h.s8.bf16 %v952_v6  ;;  %v1341_v17 = vunpack.c.l.s8.bf16 %v957_v12  ;;  %v974_v6 = vld [vmem:[%s3269_s9 + $0x490] sm:$0xff] }
 0x170   : > { %1786 = vmatpush1.bf16.msra.mxu0 %v1296_v18  ;;  %2114 = vmatpush1.bf16.msra.mxu1 %v1298_v19  ;;  %v1343_v18 = vunpack.c.l.s8.bf16 %v959_v13  ;;  %v956_v19 = vld [vmem:[%s3269_s9 + $0x400] sm:$0xff] }
 0x171   : > { %1787 = vmatprep.subr.bf16.mxu0 %v1301_v20  ;;  %2115 = vmatprep.subr.bf16.mxu1 %v1303_v42  ;;  %v958_v20 = vld [vmem:[%s3269_s9 + $0x410] sm:$0xff]  ;;  %v2510_v42 = vcombine.low %v3394_v49, %v3394_v49  ;;  %v1340_v22 = vunpack.c.l.s8.bf16 %v956_v19  ;;  %v2513_v49 = vcombine.high %v3435_v21, %v3435_v21  ;;  %v1344_v28 = vunpack.c.h.s8.bf16 %v956_v19 }
 0x172   : > { %v978_v19 = vld [vmem:[%s3269_s9 + $0x4b0] sm:$0xff] }
 0x174   : > { %1788 = vmatpush1.bf16.msra.mxu0 %v1300_v23  ;;  %2116 = vmatpush1.bf16.msra.mxu1 %v1302_v24  ;;  %v1342_v23 = vunpack.c.l.s8.bf16 %v958_v20  ;;  %v1345_v24 = vunpack.c.h.s8.bf16 %v957_v12  ;;  %v979_v12 = vld [vmem:[%s3269_s9 + $0x4b8] sm:$0xff] }
 0x175   : > { %1789 = vmatprep.subr.bf16.mxu0 %v1305_v25  ;;  %2117 = vmatprep.subr.bf16.mxu1 %v1307_v26  ;;  %v1347_v25 = vunpack.c.h.s8.bf16 %v959_v13  ;;  %v961_v26 = vld [vmem:[%s3269_s9 + $0x428] sm:$0xff] }
 0x178   : > { %1790 = vmatpush1.bf16.msra.mxu0 %v1304_v29  ;;  %2118 = vmatpush1.bf16.msra.mxu1 %v1306_v30  ;;  %v1346_v29 = vunpack.c.h.s8.bf16 %v958_v20  ;;  %v1349_v30 = vunpack.c.l.s8.bf16 %v961_v26 }
 0x179   : > { %1791 = vmatprep.subr.bf16.mxu0 %v1309_v31  ;;  %2119 = vmatprep.subr.bf16.mxu1 %v1311_v32  ;;  %v1351_v31 = vunpack.c.l.s8.bf16 %v963_v27  ;;  %v960_v32 = vld [vmem:[%s3269_s9 + $0x420] sm:$0xff] }
 0x17a   : > { %v1348_v34 = vunpack.c.l.s8.bf16 %v960_v32  ;;  %v1352_v40 = vunpack.c.h.s8.bf16 %v960_v32 }
 0x17c   : > { %1792 = vmatpush1.bf16.msra.mxu0 %v1308_v35  ;;  %2120 = vmatpush1.bf16.msra.mxu1 %v1310_v36  ;;  %v1350_v35 = vunpack.c.l.s8.bf16 %v962_v33  ;;  %v1353_v36 = vunpack.c.h.s8.bf16 %v961_v26 }
 0x17d   : > { %1793 = vmatprep.subr.bf16.mxu0 %v1313_v37  ;;  %2121 = vmatprep.subr.bf16.mxu1 %v1315_v38  ;;  %v1355_v37 = vunpack.c.h.s8.bf16 %v963_v27  ;;  %v965_v38 = vld [vmem:[%s3269_s9 + $0x448] sm:$0xff]  ;;  %v1386_v27 = vunpack.c.h.s8.bf16 %v978_v19 }
 0x180   : > { %1794 = vmatpush1.bf16.msra.mxu0 %v1312_v41  ;;  %2122 = vmatpush1.bf16.msra.mxu1 %v1314_v43  ;;  %v1354_v41 = vunpack.c.h.s8.bf16 %v962_v33  ;;  %v1357_v43 = vunpack.c.l.s8.bf16 %v965_v38 }
 0x181   : > { %1795 = vmatprep.subr.bf16.mxu0 %v1317_v44  ;;  %2123 = vmatprep.subr.bf16.mxu1 %v1319_v45  ;;  %v1359_v44 = vunpack.c.l.s8.bf16 %v967_v39  ;;  %v964_v45 = vld [vmem:[%s3269_s9 + $0x440] sm:$0xff] }
 0x182   : > { %v1356_v47 = vunpack.c.l.s8.bf16 %v964_v45  ;;  %v1360_v53 = vunpack.c.h.s8.bf16 %v964_v45 }
 0x184   : > { %1796 = vmatpush1.bf16.msra.mxu0 %v1316_v48  ;;  %2124 = vmatpush1.bf16.msra.mxu1 %v1318_v0  ;;  %v1358_v48 = vunpack.c.l.s8.bf16 %v966_v46  ;;  %v1361_v0 = vunpack.c.h.s8.bf16 %v965_v38 }
 0x185   : > { %1797 = vmatprep.subr.bf16.mxu0 %v1321_v50  ;;  %2125 = vmatprep.subr.bf16.mxu1 %v1323_v51  ;;  %v1363_v50 = vunpack.c.h.s8.bf16 %v967_v39  ;;  %v969_v51 = vld [vmem:[%s3269_s9 + $0x468] sm:$0xff] }
 0x188   : > { %1798 = vmatpush1.bf16.msra.mxu0 %v1320_v54  ;;  %2126 = vmatpush1.bf16.msra.mxu1 %v1322_v55  ;;  %v1362_v54 = vunpack.c.h.s8.bf16 %v966_v46  ;;  %v1365_v55 = vunpack.c.l.s8.bf16 %v969_v51 }
 0x189   : > { %1799 = vmatprep.subr.bf16.mxu0 %v1325_v14  ;;  %2127 = vmatprep.subr.bf16.mxu1 %v1327_v56  ;;  %v1367_v14 = vunpack.c.l.s8.bf16 %v971_v52  ;;  %v968_v56 = vld [vmem:[%s3269_s9 + $0x460] sm:$0xff] }
 0x18a   : > { %v1364_v58 = vunpack.c.l.s8.bf16 %v968_v56  ;;  %v1368_v1 = vunpack.c.h.s8.bf16 %v968_v56  ;;  %v3476_v56 = vld [vmem:[%s3622_s0 + $0x28] sm:$0xff] }
 0x18c   : > { %1800 = vmatpush1.bf16.msra.mxu0 %v1324_v59  ;;  %2128 = vmatpush1.bf16.msra.mxu1 %v1326_v60  ;;  %v1366_v59 = vunpack.c.l.s8.bf16 %v970_v57  ;;  %v1369_v60 = vunpack.c.h.s8.bf16 %v969_v51 }
 0x18d   : > { %1801 = vmatprep.subr.bf16.mxu0 %v1329_v61  ;;  %2129 = vmatprep.subr.bf16.mxu1 %v1331_v62  ;;  %v1371_v61 = vunpack.c.h.s8.bf16 %v971_v52  ;;  %v973_v62 = vld [vmem:[%s3269_s9 + $0x488] sm:$0xff] }
 0x190   : > { %1802 = vmatpush1.bf16.msra.mxu0 %v1328_v2  ;;  %2130 = vmatpush1.bf16.msra.mxu1 %v1330_v3  ;;  %v1370_v2 = vunpack.c.h.s8.bf16 %v970_v57  ;;  %v1373_v3 = vunpack.c.l.s8.bf16 %v973_v62 }
 0x191   : > { %1803 = vmatprep.subr.bf16.mxu0 %v1333_v4  ;;  %2131 = vmatprep.subr.bf16.mxu1 %v1335_v5  ;;  %v1375_v4 = vunpack.c.l.s8.bf16 %v975_v63  ;;  %v972_v5 = vld [vmem:[%s3269_s9 + $0x480] sm:$0xff] }
 0x192   : > { %v1372_v7 = vunpack.c.l.s8.bf16 %v972_v5  ;;  %v1376_v13 = vunpack.c.h.s8.bf16 %v972_v5  ;;  %v994_v5 = vld [vmem:[%s3269_s9 + $0x530] sm:$0xff] }
 0x194   : > { %1804 = vmatpush1.bf16.msra.mxu0 %v1332_v8  ;;  %2132 = vmatpush1.bf16.msra.mxu1 %v1334_v9  ;;  %v1374_v8 = vunpack.c.l.s8.bf16 %v974_v6  ;;  %v1377_v9 = vunpack.c.h.s8.bf16 %v973_v62  ;;  %v995_v62 = vld [vmem:[%s3269_s9 + $0x538] sm:$0xff] }
 0x195   : > { %1805 = vmatprep.subr.bf16.mxu0 %v1337_v10  ;;  %2133 = vmatprep.subr.bf16.mxu1 %v1339_v11  ;;  %v1379_v10 = vunpack.c.h.s8.bf16 %v975_v63  ;;  %v977_v11 = vld [vmem:[%s3269_s9 + $0x4a8] sm:$0xff] }
 0x198   : > { %1806 = vmatpush1.bf16.msra.mxu0 %v1336_v15  ;;  %2134 = vmatpush1.bf16.msra.mxu1 %v1338_v16  ;;  %v1378_v15 = vunpack.c.h.s8.bf16 %v974_v6  ;;  %v1381_v16 = vunpack.c.l.s8.bf16 %v977_v11 }
 0x199   : > { %1816 = vmatprep.subr.bf16.mxu0 %v1341_v17  ;;  %2144 = vmatprep.subr.bf16.mxu1 %v1343_v18  ;;  %v1383_v17 = vunpack.c.l.s8.bf16 %v979_v12  ;;  %v976_v18 = vld [vmem:[%s3269_s9 + $0x4a0] sm:$0xff] }
 0x19a   : > { %v1380_v20 = vunpack.c.l.s8.bf16 %v976_v18  ;;  %v1384_v26 = vunpack.c.h.s8.bf16 %v976_v18  ;;  %v998_v18 = vld [vmem:[%s3269_s9 + $0x550] sm:$0xff] }
 0x19b   : > { %1808 = vmatmul.mubr.bf16.vlgmr.msra.gmra.mrb[0].mxu0 %v2510_v42  ;;  %2136 = vmatmul.mubr.bf16.vlgmr.msra.gmra.mrb[0].mxu1 %v2510_v42  ;;  %v1382_v42 = vunpack.c.l.s8.bf16 %v978_v19 }
 0x19c   : > { %1817 = vmatpush1.bf16.msra.mxu0 %v1340_v22  ;;  %2145 = vmatpush1.bf16.msra.mxu1 %v1342_v23  ;;  %v1385_v22 = vunpack.c.h.s8.bf16 %v977_v11  ;;  %v1387_v23 = vunpack.c.h.s8.bf16 %v979_v12  ;;  %v999_v11 = vld [vmem:[%s3269_s9 + $0x558] sm:$0xff] }
 0x19d   : > { %1818 = vmatprep.subr.bf16.mxu0 %v1345_v24  ;;  %2146 = vmatprep.subr.bf16.mxu1 %v1347_v25  ;;  %v981_v24 = vld [vmem:[%s3269_s9 + $0x4c8] sm:$0xff]  ;;  %v983_v25 = vld [vmem:[%s3269_s9 + $0x4d8] sm:$0xff] }
 0x19e   : > { %1848 = vmatprep.mubr.bf16.mxu0 %v2513_v49  ;;  %2176 = vmatprep.mubr.bf16.mxu1 %v2513_v49  ;;  %v1389_v49 = vunpack.c.l.s8.bf16 %v981_v24  ;;  %v1393_v33 = vunpack.c.h.s8.bf16 %v981_v24  ;;  %v1003_v24 = vld [vmem:[%s3269_s9 + $0x578] sm:$0xff] }
 0x1a0   : > { %1819 = vmatpush1.bf16.msra.mxu0 %v1344_v28  ;;  %2147 = vmatpush1.bf16.msra.mxu1 %v1346_v29  ;;  %v1391_v28 = vunpack.c.l.s8.bf16 %v983_v25  ;;  %v980_v29 = vld [vmem:[%s3269_s9 + $0x4c0] sm:$0xff] }
 0x1a1   : > { %1820 = vmatprep.subr.bf16.mxu0 %v1349_v30  ;;  %2148 = vmatprep.subr.bf16.mxu1 %v1351_v31  ;;  %v982_v30 = vld [vmem:[%s3269_s9 + $0x4d0] sm:$0xff]  ;;  %v1388_v31 = vunpack.c.l.s8.bf16 %v980_v29 }
 0x1a2   : > { %v1390_v32 = vunpack.c.l.s8.bf16 %v982_v30  ;;  %v1394_v38 = vunpack.c.h.s8.bf16 %v982_v30 }
 0x1a4   : > { %1821 = vmatpush1.bf16.msra.mxu0 %v1348_v34  ;;  %2149 = vmatpush1.bf16.msra.mxu1 %v1350_v35  ;;  %v1395_v34 = vunpack.c.h.s8.bf16 %v983_v25  ;;  %v985_v35 = vld [vmem:[%s3269_s9 + $0x4e8] sm:$0xff] }
 0x1a5   : > { %1822 = vmatprep.subr.bf16.mxu0 %v1353_v36  ;;  %2150 = vmatprep.subr.bf16.mxu1 %v1355_v37  ;;  %v987_v36 = vld [vmem:[%s3269_s9 + $0x4f8] sm:$0xff]  ;;  %v1392_v37 = vunpack.c.h.s8.bf16 %v980_v29  ;;  %v1397_v39 = vunpack.c.l.s8.bf16 %v985_v35  ;;  %v1401_v46 = vunpack.c.h.s8.bf16 %v985_v35  ;;  %v1002_v29 = vld [vmem:[%s3269_s9 + $0x570] sm:$0xff] }
 0x1a6   : > { %v1007_v35 = vld [vmem:[%s3269_s9 + $0x598] sm:$0xff] }
 0x1a8   : > { %1823 = vmatpush1.bf16.msra.mxu0 %v1352_v40  ;;  %2151 = vmatpush1.bf16.msra.mxu1 %v1354_v41  ;;  %v1399_v40 = vunpack.c.l.s8.bf16 %v987_v36  ;;  %v984_v41 = vld [vmem:[%s3269_s9 + $0x4e0] sm:$0xff] }
 0x1a9   : > { %1824 = vmatprep.subr.bf16.mxu0 %v1357_v43  ;;  %2152 = vmatprep.subr.bf16.mxu1 %v1359_v44  ;;  %v986_v43 = vld [vmem:[%s3269_s9 + $0x4f0] sm:$0xff]  ;;  %v1396_v44 = vunpack.c.l.s8.bf16 %v984_v41 }
 0x1aa   : > { %v1398_v45 = vunpack.c.l.s8.bf16 %v986_v43  ;;  %v1402_v51 = vunpack.c.h.s8.bf16 %v986_v43 }
 0x1ac   : > { %1825 = vmatpush1.bf16.msra.mxu0 %v1356_v47  ;;  %2153 = vmatpush1.bf16.msra.mxu1 %v1358_v48  ;;  %v1403_v47 = vunpack.c.h.s8.bf16 %v987_v36  ;;  %v989_v48 = vld [vmem:[%s3269_s9 + $0x508] sm:$0xff] }
 0x1ad   : > { %1826 = vmatprep.subr.bf16.mxu0 %v1361_v0  ;;  %2154 = vmatprep.subr.bf16.mxu1 %v1363_v50  ;;  %v991_v0 = vld [vmem:[%s3269_s9 + $0x518] sm:$0xff]  ;;  %v1400_v50 = vunpack.c.h.s8.bf16 %v984_v41  ;;  %v1405_v52 = vunpack.c.l.s8.bf16 %v989_v48  ;;  %v1006_v41 = vld [vmem:[%s3269_s9 + $0x590] sm:$0xff] }
 0x1b0   : > { %1827 = vmatpush1.bf16.msra.mxu0 %v1360_v53  ;;  %2155 = vmatpush1.bf16.msra.mxu1 %v1362_v54  ;;  %v1407_v53 = vunpack.c.l.s8.bf16 %v991_v0  ;;  %v988_v54 = vld [vmem:[%s3269_s9 + $0x500] sm:$0xff] }
 0x1b1   : > { %1828 = vmatprep.subr.bf16.mxu0 %v1365_v55  ;;  %2156 = vmatprep.subr.bf16.mxu1 %v1367_v14  ;;  %v990_v55 = vld [vmem:[%s3269_s9 + $0x510] sm:$0xff]  ;;  %v2512_v14 = vcombine.low %v3435_v21, %v3435_v21  ;;  %v1404_v57 = vunpack.c.l.s8.bf16 %v988_v54  ;;  %v2515_v21 = vcombine.high %v3476_v56, %v3476_v56  ;;  %v1408_v63 = vunpack.c.h.s8.bf16 %v988_v54 }
 0x1b2   : > { %v1010_v54 = vld [vmem:[%s3269_s9 + $0x5b0] sm:$0xff] }
 0x1b4   : > { %1829 = vmatpush1.bf16.msra.mxu0 %v1364_v58  ;;  %2157 = vmatpush1.bf16.msra.mxu1 %v1366_v59  ;;  %v1406_v58 = vunpack.c.l.s8.bf16 %v990_v55  ;;  %v1409_v59 = vunpack.c.h.s8.bf16 %v989_v48  ;;  %v1011_v48 = vld [vmem:[%s3269_s9 + $0x5b8] sm:$0xff] }
 0x1b5   : > { %1830 = vmatprep.subr.bf16.mxu0 %v1369_v60  ;;  %2158 = vmatprep.subr.bf16.mxu1 %v1371_v61  ;;  %v1411_v60 = vunpack.c.h.s8.bf16 %v991_v0  ;;  %v993_v61 = vld [vmem:[%s3269_s9 + $0x528] sm:$0xff] }
 0x1b8   : > { %1831 = vmatpush1.bf16.msra.mxu0 %v1368_v1  ;;  %2159 = vmatpush1.bf16.msra.mxu1 %v1370_v2  ;;  %v1410_v1 = vunpack.c.h.s8.bf16 %v990_v55  ;;  %v1413_v2 = vunpack.c.l.s8.bf16 %v993_v61 }
 0x1b9   : > { %1832 = vmatprep.subr.bf16.mxu0 %v1373_v3  ;;  %2160 = vmatprep.subr.bf16.mxu1 %v1375_v4  ;;  %v1415_v3 = vunpack.c.l.s8.bf16 %v995_v62  ;;  %v992_v4 = vld [vmem:[%s3269_s9 + $0x520] sm:$0xff] }
 0x1ba   : > { %v1412_v6 = vunpack.c.l.s8.bf16 %v992_v4  ;;  %v1416_v12 = vunpack.c.h.s8.bf16 %v992_v4 }
 0x1bc   : > { %1833 = vmatpush1.bf16.msra.mxu0 %v1372_v7  ;;  %2161 = vmatpush1.bf16.msra.mxu1 %v1374_v8  ;;  %v1414_v7 = vunpack.c.l.s8.bf16 %v994_v5  ;;  %v1417_v8 = vunpack.c.h.s8.bf16 %v993_v61 }
 0x1bd   : > { %1834 = vmatprep.subr.bf16.mxu0 %v1377_v9  ;;  %2162 = vmatprep.subr.bf16.mxu1 %v1379_v10  ;;  %v1419_v9 = vunpack.c.h.s8.bf16 %v995_v62  ;;  %v997_v10 = vld [vmem:[%s3269_s9 + $0x548] sm:$0xff]  ;;  %v1450_v62 = vunpack.c.h.s8.bf16 %v1010_v54 }
 0x1c0   : > { %1835 = vmatpush1.bf16.msra.mxu0 %v1376_v13  ;;  %2163 = vmatpush1.bf16.msra.mxu1 %v1378_v15  ;;  %v1418_v13 = vunpack.c.h.s8.bf16 %v994_v5  ;;  %v1421_v15 = vunpack.c.l.s8.bf16 %v997_v10 }
 0x1c1   : > { %1836 = vmatprep.subr.bf16.mxu0 %v1381_v16  ;;  %2164 = vmatprep.subr.bf16.mxu1 %v1383_v17  ;;  %v1423_v16 = vunpack.c.l.s8.bf16 %v999_v11  ;;  %v996_v17 = vld [vmem:[%s3269_s9 + $0x540] sm:$0xff] }
 0x1c2   : > { %v1420_v19 = vunpack.c.l.s8.bf16 %v996_v17  ;;  %v1424_v25 = vunpack.c.h.s8.bf16 %v996_v17 }
 0x1c4   : > { %1837 = vmatpush1.bf16.msra.mxu0 %v1380_v20  ;;  %2165 = vmatpush1.bf16.msra.mxu1 %v1382_v42  ;;  %v1422_v20 = vunpack.c.l.s8.bf16 %v998_v18  ;;  %v1425_v42 = vunpack.c.h.s8.bf16 %v997_v10 }
 0x1c5   : > { %1838 = vmatprep.subr.bf16.mxu0 %v1385_v22  ;;  %2166 = vmatprep.subr.bf16.mxu1 %v1387_v23  ;;  %v1427_v22 = vunpack.c.h.s8.bf16 %v999_v11  ;;  %v1001_v23 = vld [vmem:[%s3269_s9 + $0x568] sm:$0xff] }
 0x1c8   : > { %1839 = vmatpush1.bf16.msra.mxu0 %v1384_v26  ;;  %2167 = vmatpush1.bf16.msra.mxu1 %v1386_v27  ;;  %v1426_v26 = vunpack.c.h.s8.bf16 %v998_v18  ;;  %v1429_v27 = vunpack.c.l.s8.bf16 %v1001_v23 }
 0x1c9   : > { %1840 = vmatprep.subr.bf16.mxu0 %v1389_v49  ;;  %2168 = vmatprep.subr.bf16.mxu1 %v1391_v28  ;;  %v1431_v49 = vunpack.c.l.s8.bf16 %v1003_v24  ;;  %v1000_v28 = vld [vmem:[%s3269_s9 + $0x560] sm:$0xff] }
 0x1ca   : > { %v1428_v30 = vunpack.c.l.s8.bf16 %v1000_v28  ;;  %v1432_v36 = vunpack.c.h.s8.bf16 %v1000_v28  ;;  %v3517_v28 = vld [vmem:[%s3622_s0 + $0x30] sm:$0xff] }
 0x1cc   : > { %1841 = vmatpush1.bf16.msra.mxu0 %v1388_v31  ;;  %2169 = vmatpush1.bf16.msra.mxu1 %v1390_v32  ;;  %v1430_v31 = vunpack.c.l.s8.bf16 %v1002_v29  ;;  %v1433_v32 = vunpack.c.h.s8.bf16 %v1001_v23 }
 0x1cd   : > { %1842 = vmatprep.subr.bf16.mxu0 %v1393_v33  ;;  %2170 = vmatprep.subr.bf16.mxu1 %v1395_v34  ;;  %v1435_v33 = vunpack.c.h.s8.bf16 %v1003_v24  ;;  %v1005_v34 = vld [vmem:[%s3269_s9 + $0x588] sm:$0xff] }
 0x1d0   : > { %1843 = vmatpush1.bf16.msra.mxu0 %v1392_v37  ;;  %2171 = vmatpush1.bf16.msra.mxu1 %v1394_v38  ;;  %v1434_v37 = vunpack.c.h.s8.bf16 %v1002_v29  ;;  %v1437_v38 = vunpack.c.l.s8.bf16 %v1005_v34 }
 0x1d1   : > { %1844 = vmatprep.subr.bf16.mxu0 %v1397_v39  ;;  %2172 = vmatprep.subr.bf16.mxu1 %v1399_v40  ;;  %v1439_v39 = vunpack.c.l.s8.bf16 %v1007_v35  ;;  %v1004_v40 = vld [vmem:[%s3269_s9 + $0x580] sm:$0xff] }
 0x1d2   : > { %v1436_v43 = vunpack.c.l.s8.bf16 %v1004_v40  ;;  %v1440_v0 = vunpack.c.h.s8.bf16 %v1004_v40  ;;  %v1026_v40 = vld [vmem:[%s3269_s9 + $0x630] sm:$0xff] }
 0x1d4   : > { %1845 = vmatpush1.bf16.msra.mxu0 %v1396_v44  ;;  %2173 = vmatpush1.bf16.msra.mxu1 %v1398_v45  ;;  %v1438_v44 = vunpack.c.l.s8.bf16 %v1006_v41  ;;  %v1441_v45 = vunpack.c.h.s8.bf16 %v1005_v34  ;;  %v1027_v34 = vld [vmem:[%s3269_s9 + $0x638] sm:$0xff] }
 0x1d5   : > { %1846 = vmatprep.subr.bf16.mxu0 %v1401_v46  ;;  %2174 = vmatprep.subr.bf16.mxu1 %v1403_v47  ;;  %v1443_v46 = vunpack.c.h.s8.bf16 %v1007_v35  ;;  %v1009_v47 = vld [vmem:[%s3269_s9 + $0x5a8] sm:$0xff] }
 0x1d8   : > { %1847 = vmatpush1.bf16.msra.mxu0 %v1400_v50  ;;  %2175 = vmatpush1.bf16.msra.mxu1 %v1402_v51  ;;  %v1442_v50 = vunpack.c.h.s8.bf16 %v1006_v41  ;;  %v1445_v51 = vunpack.c.l.s8.bf16 %v1009_v47 }
 0x1d9   : > { %1857 = vmatprep.subr.bf16.mxu0 %v1405_v52  ;;  %2185 = vmatprep.subr.bf16.mxu1 %v1407_v53  ;;  %v1447_v52 = vunpack.c.l.s8.bf16 %v1011_v48  ;;  %v1008_v53 = vld [vmem:[%s3269_s9 + $0x5a0] sm:$0xff] }
 0x1da   : > { %v1444_v55 = vunpack.c.l.s8.bf16 %v1008_v53  ;;  %v1448_v61 = vunpack.c.h.s8.bf16 %v1008_v53  ;;  %v1030_v53 = vld [vmem:[%s3269_s9 + $0x650] sm:$0xff] }
 0x1db   : > { %1849 = vmatmul.mubr.bf16.vlgmr.msra.gmra.mrb[0].mxu0 %v2512_v14  ;;  %2177 = vmatmul.mubr.bf16.vlgmr.msra.gmra.mrb[0].mxu1 %v2512_v14  ;;  %v1446_v14 = vunpack.c.l.s8.bf16 %v1010_v54 }
 0x1dc   : > { %1858 = vmatpush1.bf16.msra.mxu0 %v1404_v57  ;;  %2186 = vmatpush1.bf16.msra.mxu1 %v1406_v58  ;;  %v1449_v57 = vunpack.c.h.s8.bf16 %v1009_v47  ;;  %v1451_v58 = vunpack.c.h.s8.bf16 %v1011_v48  ;;  %v1031_v47 = vld [vmem:[%s3269_s9 + $0x658] sm:$0xff] }
 0x1dd   : > { %1859 = vmatprep.subr.bf16.mxu0 %v1409_v59  ;;  %2187 = vmatprep.subr.bf16.mxu1 %v1411_v60  ;;  %v1013_v59 = vld [vmem:[%s3269_s9 + $0x5c8] sm:$0xff]  ;;  %v1015_v60 = vld [vmem:[%s3269_s9 + $0x5d8] sm:$0xff] }
 0x1de   : > { %1889 = vmatprep.mubr.bf16.mxu0 %v2515_v21  ;;  %2217 = vmatprep.mubr.bf16.mxu1 %v2515_v21  ;;  %v1453_v21 = vunpack.c.l.s8.bf16 %v1013_v59  ;;  %v1457_v5 = vunpack.c.h.s8.bf16 %v1013_v59  ;;  %v1035_v59 = vld [vmem:[%s3269_s9 + $0x678] sm:$0xff] }
 0x1e0   : > { %1860 = vmatpush1.bf16.msra.mxu0 %v1408_v63  ;;  %2188 = vmatpush1.bf16.msra.mxu1 %v1410_v1  ;;  %v1455_v63 = vunpack.c.l.s8.bf16 %v1015_v60  ;;  %v1012_v1 = vld [vmem:[%s3269_s9 + $0x5c0] sm:$0xff] }
 0x1e1   : > { %1861 = vmatprep.subr.bf16.mxu0 %v1413_v2  ;;  %2189 = vmatprep.subr.bf16.mxu1 %v1415_v3  ;;  %v1014_v2 = vld [vmem:[%s3269_s9 + $0x5d0] sm:$0xff]  ;;  %v1452_v3 = vunpack.c.l.s8.bf16 %v1012_v1 }
 0x1e2   : > { %v1454_v4 = vunpack.c.l.s8.bf16 %v1014_v2  ;;  %v1458_v10 = vunpack.c.h.s8.bf16 %v1014_v2 }
 0x1e4   : > { %1862 = vmatpush1.bf16.msra.mxu0 %v1412_v6  ;;  %2190 = vmatpush1.bf16.msra.mxu1 %v1414_v7  ;;  %v1459_v6 = vunpack.c.h.s8.bf16 %v1015_v60  ;;  %v1017_v7 = vld [vmem:[%s3269_s9 + $0x5e8] sm:$0xff] }
 0x1e5   : > { %1863 = vmatprep.subr.bf16.mxu0 %v1417_v8  ;;  %2191 = vmatprep.subr.bf16.mxu1 %v1419_v9  ;;  %v1019_v8 = vld [vmem:[%s3269_s9 + $0x5f8] sm:$0xff]  ;;  %v1456_v9 = vunpack.c.h.s8.bf16 %v1012_v1  ;;  %v1461_v11 = vunpack.c.l.s8.bf16 %v1017_v7  ;;  %v1465_v18 = vunpack.c.h.s8.bf16 %v1017_v7  ;;  %v1034_v1 = vld [vmem:[%s3269_s9 + $0x670] sm:$0xff] }
 0x1e6   : > { %v1039_v7 = vld [vmem:[%s3269_s9 + $0x698] sm:$0xff] }
 0x1e8   : > { %1864 = vmatpush1.bf16.msra.mxu0 %v1416_v12  ;;  %2192 = vmatpush1.bf16.msra.mxu1 %v1418_v13  ;;  %v1463_v12 = vunpack.c.l.s8.bf16 %v1019_v8  ;;  %v1016_v13 = vld [vmem:[%s3269_s9 + $0x5e0] sm:$0xff] }
 0x1e9   : > { %1865 = vmatprep.subr.bf16.mxu0 %v1421_v15  ;;  %2193 = vmatprep.subr.bf16.mxu1 %v1423_v16  ;;  %v1018_v15 = vld [vmem:[%s3269_s9 + $0x5f0] sm:$0xff]  ;;  %v1460_v16 = vunpack.c.l.s8.bf16 %v1016_v13 }
 0x1ea   : > { %v1462_v17 = vunpack.c.l.s8.bf16 %v1018_v15  ;;  %v1466_v23 = vunpack.c.h.s8.bf16 %v1018_v15 }
 0x1ec   : > { %1866 = vmatpush1.bf16.msra.mxu0 %v1420_v19  ;;  %2194 = vmatpush1.bf16.msra.mxu1 %v1422_v20  ;;  %v1467_v19 = vunpack.c.h.s8.bf16 %v1019_v8  ;;  %v1021_v20 = vld [vmem:[%s3269_s9 + $0x608] sm:$0xff] }
 0x1ed   : > { %1867 = vmatprep.subr.bf16.mxu0 %v1425_v42  ;;  %2195 = vmatprep.subr.bf16.mxu1 %v1427_v22  ;;  %v1023_v42 = vld [vmem:[%s3269_s9 + $0x618] sm:$0xff]  ;;  %v1464_v22 = vunpack.c.h.s8.bf16 %v1016_v13  ;;  %v1469_v24 = vunpack.c.l.s8.bf16 %v1021_v20  ;;  %v1038_v13 = vld [vmem:[%s3269_s9 + $0x690] sm:$0xff] }
 0x1f0   : > { %1868 = vmatpush1.bf16.msra.mxu0 %v1424_v25  ;;  %2196 = vmatpush1.bf16.msra.mxu1 %v1426_v26  ;;  %v1471_v25 = vunpack.c.l.s8.bf16 %v1023_v42  ;;  %v1020_v26 = vld [vmem:[%s3269_s9 + $0x600] sm:$0xff] }
 0x1f1   : > { %1869 = vmatprep.subr.bf16.mxu0 %v1429_v27  ;;  %2197 = vmatprep.subr.bf16.mxu1 %v1431_v49  ;;  %v1022_v27 = vld [vmem:[%s3269_s9 + $0x610] sm:$0xff]  ;;  %v2514_v49 = vcombine.low %v3476_v56, %v3476_v56  ;;  %v1468_v29 = vunpack.c.l.s8.bf16 %v1020_v26  ;;  %v2517_v56 = vcombine.high %v3517_v28, %v3517_v28  ;;  %v1472_v35 = vunpack.c.h.s8.bf16 %v1020_v26 }
 0x1f2   : > { %v1042_v26 = vld [vmem:[%s3269_s9 + $0x6b0] sm:$0xff] }
 0x1f4   : > { %1870 = vmatpush1.bf16.msra.mxu0 %v1428_v30  ;;  %2198 = vmatpush1.bf16.msra.mxu1 %v1430_v31  ;;  %v1470_v30 = vunpack.c.l.s8.bf16 %v1022_v27  ;;  %v1473_v31 = vunpack.c.h.s8.bf16 %v1021_v20  ;;  %v1043_v20 = vld [vmem:[%s3269_s9 + $0x6b8] sm:$0xff] }
 0x1f5   : > { %1871 = vmatprep.subr.bf16.mxu0 %v1433_v32  ;;  %2199 = vmatprep.subr.bf16.mxu1 %v1435_v33  ;;  %v1475_v32 = vunpack.c.h.s8.bf16 %v1023_v42  ;;  %v1025_v33 = vld [vmem:[%s3269_s9 + $0x628] sm:$0xff] }
 0x1f8   : > { %1872 = vmatpush1.bf16.msra.mxu0 %v1432_v36  ;;  %2200 = vmatpush1.bf16.msra.mxu1 %v1434_v37  ;;  %v1474_v36 = vunpack.c.h.s8.bf16 %v1022_v27  ;;  %v1477_v37 = vunpack.c.l.s8.bf16 %v1025_v33 }
 0x1f9   : > { %1873 = vmatprep.subr.bf16.mxu0 %v1437_v38  ;;  %2201 = vmatprep.subr.bf16.mxu1 %v1439_v39  ;;  %v1479_v38 = vunpack.c.l.s8.bf16 %v1027_v34  ;;  %v1024_v39 = vld [vmem:[%s3269_s9 + $0x620] sm:$0xff] }
 0x1fa   : > { %v1476_v41 = vunpack.c.l.s8.bf16 %v1024_v39  ;;  %v1480_v48 = vunpack.c.h.s8.bf16 %v1024_v39 }
 0x1fc   : > { %1874 = vmatpush1.bf16.msra.mxu0 %v1436_v43  ;;  %2202 = vmatpush1.bf16.msra.mxu1 %v1438_v44  ;;  %v1478_v43 = vunpack.c.l.s8.bf16 %v1026_v40  ;;  %v1481_v44 = vunpack.c.h.s8.bf16 %v1025_v33 }
 0x1fd   : > { %1875 = vmatprep.subr.bf16.mxu0 %v1441_v45  ;;  %2203 = vmatprep.subr.bf16.mxu1 %v1443_v46  ;;  %v1483_v45 = vunpack.c.h.s8.bf16 %v1027_v34  ;;  %v1029_v46 = vld [vmem:[%s3269_s9 + $0x648] sm:$0xff]  ;;  %v1514_v34 = vunpack.c.h.s8.bf16 %v1042_v26 }
 0x200   : > { %1876 = vmatpush1.bf16.msra.mxu0 %v1440_v0  ;;  %2204 = vmatpush1.bf16.msra.mxu1 %v1442_v50  ;;  %v1482_v0 = vunpack.c.h.s8.bf16 %v1026_v40  ;;  %v1485_v50 = vunpack.c.l.s8.bf16 %v1029_v46 }
 0x201   : > { %1877 = vmatprep.subr.bf16.mxu0 %v1445_v51  ;;  %2205 = vmatprep.subr.bf16.mxu1 %v1447_v52  ;;  %v1487_v51 = vunpack.c.l.s8.bf16 %v1031_v47  ;;  %v1028_v52 = vld [vmem:[%s3269_s9 + $0x640] sm:$0xff] }
 0x202   : > { %v1484_v54 = vunpack.c.l.s8.bf16 %v1028_v52  ;;  %v1488_v60 = vunpack.c.h.s8.bf16 %v1028_v52 }
 0x204   : > { %1878 = vmatpush1.bf16.msra.mxu0 %v1444_v55  ;;  %2206 = vmatpush1.bf16.msra.mxu1 %v1446_v14  ;;  %v1486_v55 = vunpack.c.l.s8.bf16 %v1030_v53  ;;  %v1489_v14 = vunpack.c.h.s8.bf16 %v1029_v46 }
 0x205   : > { %1879 = vmatprep.subr.bf16.mxu0 %v1449_v57  ;;  %2207 = vmatprep.subr.bf16.mxu1 %v1451_v58  ;;  %v1491_v57 = vunpack.c.h.s8.bf16 %v1031_v47  ;;  %v1033_v58 = vld [vmem:[%s3269_s9 + $0x668] sm:$0xff] }
 0x208   : > { %1880 = vmatpush1.bf16.msra.mxu0 %v1448_v61  ;;  %2208 = vmatpush1.bf16.msra.mxu1 %v1450_v62  ;;  %v1490_v61 = vunpack.c.h.s8.bf16 %v1030_v53  ;;  %v1493_v62 = vunpack.c.l.s8.bf16 %v1033_v58 }
 0x209   : > { %1881 = vmatprep.subr.bf16.mxu0 %v1453_v21  ;;  %2209 = vmatprep.subr.bf16.mxu1 %v1455_v63  ;;  %v1495_v21 = vunpack.c.l.s8.bf16 %v1035_v59  ;;  %v1032_v63 = vld [vmem:[%s3269_s9 + $0x660] sm:$0xff] }
 0x20a   : > { %v1492_v2 = vunpack.c.l.s8.bf16 %v1032_v63  ;;  %v1496_v8 = vunpack.c.h.s8.bf16 %v1032_v63  ;;  %v3558_v63 = vld [vmem:[%s3622_s0 + $0x38] sm:$0xff] }
 0x20c   : > { %1882 = vmatpush1.bf16.msra.mxu0 %v1452_v3  ;;  %2210 = vmatpush1.bf16.msra.mxu1 %v1454_v4  ;;  %v1494_v3 = vunpack.c.l.s8.bf16 %v1034_v1  ;;  %v1497_v4 = vunpack.c.h.s8.bf16 %v1033_v58 }
 0x20d   : > { %1883 = vmatprep.subr.bf16.mxu0 %v1457_v5  ;;  %2211 = vmatprep.subr.bf16.mxu1 %v1459_v6  ;;  %v1499_v5 = vunpack.c.h.s8.bf16 %v1035_v59  ;;  %v1037_v6 = vld [vmem:[%s3269_s9 + $0x688] sm:$0xff] }
 0x210   : > { %1884 = vmatpush1.bf16.msra.mxu0 %v1456_v9  ;;  %2212 = vmatpush1.bf16.msra.mxu1 %v1458_v10  ;;  %v1498_v9 = vunpack.c.h.s8.bf16 %v1034_v1  ;;  %v1501_v10 = vunpack.c.l.s8.bf16 %v1037_v6 }
 0x211   : > { %1885 = vmatprep.subr.bf16.mxu0 %v1461_v11  ;;  %2213 = vmatprep.subr.bf16.mxu1 %v1463_v12  ;;  %v1503_v11 = vunpack.c.l.s8.bf16 %v1039_v7  ;;  %v1036_v12 = vld [vmem:[%s3269_s9 + $0x680] sm:$0xff] }
 0x212   : > { %v1500_v15 = vunpack.c.l.s8.bf16 %v1036_v12  ;;  %v1504_v42 = vunpack.c.h.s8.bf16 %v1036_v12  ;;  %v1058_v12 = vld [vmem:[%s3269_s9 + $0x730] sm:$0xff] }
 0x214   : > { %1886 = vmatpush1.bf16.msra.mxu0 %v1460_v16  ;;  %2214 = vmatpush1.bf16.msra.mxu1 %v1462_v17  ;;  %v1502_v16 = vunpack.c.l.s8.bf16 %v1038_v13  ;;  %v1505_v17 = vunpack.c.h.s8.bf16 %v1037_v6  ;;  %v1059_v6 = vld [vmem:[%s3269_s9 + $0x738] sm:$0xff] }
 0x215   : > { %1887 = vmatprep.subr.bf16.mxu0 %v1465_v18  ;;  %2215 = vmatprep.subr.bf16.mxu1 %v1467_v19  ;;  %v1507_v18 = vunpack.c.h.s8.bf16 %v1039_v7  ;;  %v1041_v19 = vld [vmem:[%s3269_s9 + $0x6a8] sm:$0xff] }
 0x218   : > { %1888 = vmatpush1.bf16.msra.mxu0 %v1464_v22  ;;  %2216 = vmatpush1.bf16.msra.mxu1 %v1466_v23  ;;  %v1506_v22 = vunpack.c.h.s8.bf16 %v1038_v13  ;;  %v1509_v23 = vunpack.c.l.s8.bf16 %v1041_v19 }
 0x219   : > { %1898 = vmatprep.subr.bf16.mxu0 %v1469_v24  ;;  %2226 = vmatprep.subr.bf16.mxu1 %v1471_v25  ;;  %v1511_v24 = vunpack.c.l.s8.bf16 %v1043_v20  ;;  %v1040_v25 = vld [vmem:[%s3269_s9 + $0x6a0] sm:$0xff] }
 0x21a   : > { %v1508_v27 = vunpack.c.l.s8.bf16 %v1040_v25  ;;  %v1512_v33 = vunpack.c.h.s8.bf16 %v1040_v25  ;;  %v1062_v25 = vld [vmem:[%s3269_s9 + $0x750] sm:$0xff] }
 0x21b   : > { %1890 = vmatmul.mubr.bf16.vlgmr.msra.gmra.mrb[0].mxu0 %v2514_v49  ;;  %2218 = vmatmul.mubr.bf16.vlgmr.msra.gmra.mrb[0].mxu1 %v2514_v49  ;;  %v1510_v49 = vunpack.c.l.s8.bf16 %v1042_v26 }
 0x21c   : > { %1899 = vmatpush1.bf16.msra.mxu0 %v1468_v29  ;;  %2227 = vmatpush1.bf16.msra.mxu1 %v1470_v30  ;;  %v1513_v29 = vunpack.c.h.s8.bf16 %v1041_v19  ;;  %v1515_v30 = vunpack.c.h.s8.bf16 %v1043_v20  ;;  %v1063_v19 = vld [vmem:[%s3269_s9 + $0x758] sm:$0xff] }
 0x21d   : > { %1900 = vmatprep.subr.bf16.mxu0 %v1473_v31  ;;  %2228 = vmatprep.subr.bf16.mxu1 %v1475_v32  ;;  %v1045_v31 = vld [vmem:[%s3269_s9 + $0x6c8] sm:$0xff]  ;;  %v1047_v32 = vld [vmem:[%s3269_s9 + $0x6d8] sm:$0xff] }
 0x21e   : > { %1930 = vmatprep.mubr.bf16.mxu0 %v2517_v56  ;;  %2258 = vmatprep.mubr.bf16.mxu1 %v2517_v56  ;;  %v1517_v56 = vunpack.c.l.s8.bf16 %v1045_v31  ;;  %v1521_v40 = vunpack.c.h.s8.bf16 %v1045_v31  ;;  %v1067_v31 = vld [vmem:[%s3269_s9 + $0x778] sm:$0xff] }
 0x220   : > { %1901 = vmatpush1.bf16.msra.mxu0 %v1472_v35  ;;  %2229 = vmatpush1.bf16.msra.mxu1 %v1474_v36  ;;  %v1519_v35 = vunpack.c.l.s8.bf16 %v1047_v32  ;;  %v1044_v36 = vld [vmem:[%s3269_s9 + $0x6c0] sm:$0xff] }
 0x221   : > { %1902 = vmatprep.subr.bf16.mxu0 %v1477_v37  ;;  %2230 = vmatprep.subr.bf16.mxu1 %v1479_v38  ;;  %v1046_v37 = vld [vmem:[%s3269_s9 + $0x6d0] sm:$0xff]  ;;  %v1516_v38 = vunpack.c.l.s8.bf16 %v1044_v36 }
 0x222   : > { %v1518_v39 = vunpack.c.l.s8.bf16 %v1046_v37  ;;  %v1522_v46 = vunpack.c.h.s8.bf16 %v1046_v37 }
 0x224   : > { %1903 = vmatpush1.bf16.msra.mxu0 %v1476_v41  ;;  %2231 = vmatpush1.bf16.msra.mxu1 %v1478_v43  ;;  %v1523_v41 = vunpack.c.h.s8.bf16 %v1047_v32  ;;  %v1049_v43 = vld [vmem:[%s3269_s9 + $0x6e8] sm:$0xff] }
 0x225   : > { %1904 = vmatprep.subr.bf16.mxu0 %v1481_v44  ;;  %2232 = vmatprep.subr.bf16.mxu1 %v1483_v45  ;;  %v1051_v44 = vld [vmem:[%s3269_s9 + $0x6f8] sm:$0xff]  ;;  %v1520_v45 = vunpack.c.h.s8.bf16 %v1044_v36  ;;  %v1525_v47 = vunpack.c.l.s8.bf16 %v1049_v43  ;;  %v1529_v53 = vunpack.c.h.s8.bf16 %v1049_v43  ;;  %v1066_v36 = vld [vmem:[%s3269_s9 + $0x770] sm:$0xff] }
 0x226   : > { %v1071_v43 = vld [vmem:[%s3269_s9 + $0x798] sm:$0xff] }
 0x228   : > { %1905 = vmatpush1.bf16.msra.mxu0 %v1480_v48  ;;  %2233 = vmatpush1.bf16.msra.mxu1 %v1482_v0  ;;  %v1527_v48 = vunpack.c.l.s8.bf16 %v1051_v44  ;;  %v1048_v0 = vld [vmem:[%s3269_s9 + $0x6e0] sm:$0xff] }
 0x229   : > { %1906 = vmatprep.subr.bf16.mxu0 %v1485_v50  ;;  %2234 = vmatprep.subr.bf16.mxu1 %v1487_v51  ;;  %v1050_v50 = vld [vmem:[%s3269_s9 + $0x6f0] sm:$0xff]  ;;  %v1524_v51 = vunpack.c.l.s8.bf16 %v1048_v0 }
 0x22a   : > { %v1526_v52 = vunpack.c.l.s8.bf16 %v1050_v50  ;;  %v1530_v58 = vunpack.c.h.s8.bf16 %v1050_v50 }
 0x22c   : > { %1907 = vmatpush1.bf16.msra.mxu0 %v1484_v54  ;;  %2235 = vmatpush1.bf16.msra.mxu1 %v1486_v55  ;;  %v1531_v54 = vunpack.c.h.s8.bf16 %v1051_v44  ;;  %v1053_v55 = vld [vmem:[%s3269_s9 + $0x708] sm:$0xff] }
 0x22d   : > { %1908 = vmatprep.subr.bf16.mxu0 %v1489_v14  ;;  %2236 = vmatprep.subr.bf16.mxu1 %v1491_v57  ;;  %v1055_v14 = vld [vmem:[%s3269_s9 + $0x718] sm:$0xff]  ;;  %v1528_v57 = vunpack.c.h.s8.bf16 %v1048_v0  ;;  %v1533_v59 = vunpack.c.l.s8.bf16 %v1053_v55  ;;  %v1070_v0 = vld [vmem:[%s3269_s9 + $0x790] sm:$0xff] }
 0x230   : > { %1909 = vmatpush1.bf16.msra.mxu0 %v1488_v60  ;;  %2237 = vmatpush1.bf16.msra.mxu1 %v1490_v61  ;;  %v1535_v60 = vunpack.c.l.s8.bf16 %v1055_v14  ;;  %v1052_v61 = vld [vmem:[%s3269_s9 + $0x700] sm:$0xff] }
 0x231   : > { %1910 = vmatprep.subr.bf16.mxu0 %v1493_v62  ;;  %2238 = vmatprep.subr.bf16.mxu1 %v1495_v21  ;;  %v1054_v62 = vld [vmem:[%s3269_s9 + $0x710] sm:$0xff]  ;;  %v2516_v21 = vcombine.low %v3517_v28, %v3517_v28  ;;  %v1532_v1 = vunpack.c.l.s8.bf16 %v1052_v61  ;;  %v2519_v28 = vcombine.high %v3558_v63, %v3558_v63  ;;  %v1536_v7 = vunpack.c.h.s8.bf16 %v1052_v61 }
 0x232   : > { %v1074_v61 = vld [vmem:[%s3269_s9 + $0x7b0] sm:$0xff] }
 0x234   : > { %1911 = vmatpush1.bf16.msra.mxu0 %v1492_v2  ;;  %2239 = vmatpush1.bf16.msra.mxu1 %v1494_v3  ;;  %v1534_v2 = vunpack.c.l.s8.bf16 %v1054_v62  ;;  %v1537_v3 = vunpack.c.h.s8.bf16 %v1053_v55  ;;  %v1075_v55 = vld [vmem:[%s3269_s9 + $0x7b8] sm:$0xff] }
 0x235   : > { %1912 = vmatprep.subr.bf16.mxu0 %v1497_v4  ;;  %2240 = vmatprep.subr.bf16.mxu1 %v1499_v5  ;;  %v1539_v4 = vunpack.c.h.s8.bf16 %v1055_v14  ;;  %v1057_v5 = vld [vmem:[%s3269_s9 + $0x728] sm:$0xff] }
 0x238   : > { %1913 = vmatpush1.bf16.msra.mxu0 %v1496_v8  ;;  %2241 = vmatpush1.bf16.msra.mxu1 %v1498_v9  ;;  %v1538_v8 = vunpack.c.h.s8.bf16 %v1054_v62  ;;  %v1541_v9 = vunpack.c.l.s8.bf16 %v1057_v5 }
 0x239   : > { %1914 = vmatprep.subr.bf16.mxu0 %v1501_v10  ;;  %2242 = vmatprep.subr.bf16.mxu1 %v1503_v11  ;;  %v1543_v10 = vunpack.c.l.s8.bf16 %v1059_v6  ;;  %v1056_v11 = vld [vmem:[%s3269_s9 + $0x720] sm:$0xff] }
 0x23a   : > { %v1540_v13 = vunpack.c.l.s8.bf16 %v1056_v11  ;;  %v1544_v20 = vunpack.c.h.s8.bf16 %v1056_v11 }
 0x23c   : > { %1915 = vmatpush1.bf16.msra.mxu0 %v1500_v15  ;;  %2243 = vmatpush1.bf16.msra.mxu1 %v1502_v16  ;;  %v1542_v15 = vunpack.c.l.s8.bf16 %v1058_v12  ;;  %v1545_v16 = vunpack.c.h.s8.bf16 %v1057_v5 }
 0x23d   : > { %1916 = vmatprep.subr.bf16.mxu0 %v1505_v17  ;;  %2244 = vmatprep.subr.bf16.mxu1 %v1507_v18  ;;  %v1547_v17 = vunpack.c.h.s8.bf16 %v1059_v6  ;;  %v1061_v18 = vld [vmem:[%s3269_s9 + $0x748] sm:$0xff]  ;;  %v1578_v6 = vunpack.c.h.s8.bf16 %v1074_v61 }
 0x240   : > { %1917 = vmatpush1.bf16.msra.mxu0 %v1504_v42  ;;  %2245 = vmatpush1.bf16.msra.mxu1 %v1506_v22  ;;  %v1546_v42 = vunpack.c.h.s8.bf16 %v1058_v12  ;;  %v1549_v22 = vunpack.c.l.s8.bf16 %v1061_v18 }
 0x241   : > { %1918 = vmatprep.subr.bf16.mxu0 %v1509_v23  ;;  %2246 = vmatprep.subr.bf16.mxu1 %v1511_v24  ;;  %v1551_v23 = vunpack.c.l.s8.bf16 %v1063_v19  ;;  %v1060_v24 = vld [vmem:[%s3269_s9 + $0x740] sm:$0xff] }
 0x242   : > { %v1548_v26 = vunpack.c.l.s8.bf16 %v1060_v24  ;;  %v1552_v32 = vunpack.c.h.s8.bf16 %v1060_v24 }
 0x244   : > { %1919 = vmatpush1.bf16.msra.mxu0 %v1508_v27  ;;  %2247 = vmatpush1.bf16.msra.mxu1 %v1510_v49  ;;  %v1550_v27 = vunpack.c.l.s8.bf16 %v1062_v25  ;;  %v1553_v49 = vunpack.c.h.s8.bf16 %v1061_v18 }
 0x245   : > { %1920 = vmatprep.subr.bf16.mxu0 %v1513_v29  ;;  %2248 = vmatprep.subr.bf16.mxu1 %v1515_v30  ;;  %v1555_v29 = vunpack.c.h.s8.bf16 %v1063_v19  ;;  %v1065_v30 = vld [vmem:[%s3269_s9 + $0x768] sm:$0xff] }
 0x248   : > { %1921 = vmatpush1.bf16.msra.mxu0 %v1512_v33  ;;  %2249 = vmatpush1.bf16.msra.mxu1 %v1514_v34  ;;  %v1554_v33 = vunpack.c.h.s8.bf16 %v1062_v25  ;;  %v1557_v34 = vunpack.c.l.s8.bf16 %v1065_v30 }
 0x249   : > { %1922 = vmatprep.subr.bf16.mxu0 %v1517_v56  ;;  %2250 = vmatprep.subr.bf16.mxu1 %v1519_v35  ;;  %v1559_v56 = vunpack.c.l.s8.bf16 %v1067_v31  ;;  %v1064_v35 = vld [vmem:[%s3269_s9 + $0x760] sm:$0xff] }
 0x24a   : > { %v1556_v37 = vunpack.c.l.s8.bf16 %v1064_v35  ;;  %v1560_v44 = vunpack.c.h.s8.bf16 %v1064_v35  ;;  %v2349_v35 = vld [vmem:[%s800_s10] sm:$0xf] }
 0x24c   : > { %1923 = vmatpush1.bf16.msra.mxu0 %v1516_v38  ;;  %2251 = vmatpush1.bf16.msra.mxu1 %v1518_v39  ;;  %v1558_v38 = vunpack.c.l.s8.bf16 %v1066_v36  ;;  %v1561_v39 = vunpack.c.h.s8.bf16 %v1065_v30  ;;  %v2325_v30 = vlaneseq }
 0x24d   : > { %1924 = vmatprep.subr.bf16.mxu0 %v1521_v40  ;;  %2252 = vmatprep.subr.bf16.mxu1 %v1523_v41  ;;  %v1563_v40 = vunpack.c.h.s8.bf16 %v1067_v31  ;;  %v1069_v41 = vld [vmem:[%s3269_s9 + $0x788] sm:$0xff] }
 0x24e   : > { %v2326_v31 = vshrl.u32 %v2325_v30, 7 }
 0x250   : > { %1925 = vmatpush1.bf16.msra.mxu0 %v1520_v45  ;;  %2253 = vmatpush1.bf16.msra.mxu1 %v1522_v46  ;;  %v1562_v45 = vunpack.c.h.s8.bf16 %v1066_v36  ;;  %v1565_v46 = vunpack.c.l.s8.bf16 %v1069_v41 }
 0x251   : > { %1926 = vmatprep.subr.bf16.mxu0 %v1525_v47  ;;  %2254 = vmatprep.subr.bf16.mxu1 %v1527_v48  ;;  %v1567_v47 = vunpack.c.l.s8.bf16 %v1071_v43  ;;  %v1068_v48 = vld [vmem:[%s3269_s9 + $0x780] sm:$0xff] }
 0x252   : > { %v1564_v50 = vunpack.c.l.s8.bf16 %v1068_v48  ;;  %v1568_v14 = vunpack.c.h.s8.bf16 %v1068_v48 }
 0x254   : > { %1927 = vmatpush1.bf16.msra.mxu0 %v1524_v51  ;;  %2255 = vmatpush1.bf16.msra.mxu1 %v1526_v52  ;;  %v1566_v51 = vunpack.c.l.s8.bf16 %v1070_v0  ;;  %v1569_v52 = vunpack.c.h.s8.bf16 %v1069_v41 }
 0x255   : > { %1928 = vmatprep.subr.bf16.mxu0 %v1529_v53  ;;  %2256 = vmatprep.subr.bf16.mxu1 %v1531_v54  ;;  %v1571_v53 = vunpack.c.h.s8.bf16 %v1071_v43  ;;  %v1073_v54 = vld [vmem:[%s3269_s9 + $0x7a8] sm:$0xff] }
 0x258   : > { %1929 = vmatpush1.bf16.msra.mxu0 %v1528_v57  ;;  %2257 = vmatpush1.bf16.msra.mxu1 %v1530_v58  ;;  %v1570_v57 = vunpack.c.h.s8.bf16 %v1070_v0  ;;  %v1573_v58 = vunpack.c.l.s8.bf16 %v1073_v54 }
 0x259   : > { %1939 = vmatprep.subr.bf16.mxu0 %v1533_v59  ;;  %2267 = vmatprep.subr.bf16.mxu1 %v1535_v60  ;;  %v1575_v59 = vunpack.c.l.s8.bf16 %v1075_v55  ;;  %v1072_v60 = vld [vmem:[%s3269_s9 + $0x7a0] sm:$0xff] }
 0x25a   : > { %v1572_v62 = vunpack.c.l.s8.bf16 %v1072_v60  ;;  %v1576_v5 = vunpack.c.h.s8.bf16 %v1072_v60 }
 0x25b   : > { %1931 = vmatmul.mubr.bf16.vlgmr.msra.gmra.mrb[0].mxu0 %v2516_v21  ;;  %2259 = vmatmul.mubr.bf16.vlgmr.msra.gmra.mrb[0].mxu1 %v2516_v21  ;;  %v1574_v21 = vunpack.c.l.s8.bf16 %v1074_v61 }
 0x25c   : > { %1940 = vmatpush1.bf16.msra.mxu0 %v1532_v1  ;;  %2268 = vmatpush1.bf16.msra.mxu1 %v1534_v2  ;;  %v1577_v1 = vunpack.c.h.s8.bf16 %v1073_v54  ;;  %v1579_v2 = vunpack.c.h.s8.bf16 %v1075_v55 }
 0x25d   : > { %1941 = vmatprep.subr.bf16.mxu0 %v1537_v3  ;;  %2269 = vmatprep.subr.bf16.mxu1 %v1539_v4  ;;  %v1077_v3 = vld [vmem:[%s3269_s9 + $0x7c8] sm:$0xff]  ;;  %v1079_v4 = vld [vmem:[%s3269_s9 + $0x7d8] sm:$0xff] }
 0x25e   : > { %1971 = vmatprep.mubr.bf16.mxu0 %v2519_v28  ;;  %2299 = vmatprep.mubr.bf16.mxu1 %v2519_v28  ;;  %v1581_v28 = vunpack.c.l.s8.bf16 %v1077_v3  ;;  %v1585_v12 = vunpack.c.h.s8.bf16 %v1077_v3 }
 0x260   : > { %1942 = vmatpush1.bf16.msra.mxu0 %v1536_v7  ;;  %2270 = vmatpush1.bf16.msra.mxu1 %v1538_v8  ;;  %v1583_v7 = vunpack.c.l.s8.bf16 %v1079_v4  ;;  %v1076_v8 = vld [vmem:[%s3269_s9 + $0x7c0] sm:$0xff] }
 0x261   : > { %1943 = vmatprep.subr.bf16.mxu0 %v1541_v9  ;;  %2271 = vmatprep.subr.bf16.mxu1 %v1543_v10  ;;  %v1078_v9 = vld [vmem:[%s3269_s9 + $0x7d0] sm:$0xff]  ;;  %v1580_v10 = vunpack.c.l.s8.bf16 %v1076_v8 }
 0x262   : > { %v1582_v11 = vunpack.c.l.s8.bf16 %v1078_v9  ;;  %v1586_v18 = vunpack.c.h.s8.bf16 %v1078_v9 }
 0x264   : > { %1944 = vmatpush1.bf16.msra.mxu0 %v1540_v13  ;;  %2272 = vmatpush1.bf16.msra.mxu1 %v1542_v15  ;;  %v1587_v13 = vunpack.c.h.s8.bf16 %v1079_v4  ;;  %v1081_v15 = vld [vmem:[%s3269_s9 + $0x7e8] sm:$0xff] }
 0x265   : > { %1945 = vmatprep.subr.bf16.mxu0 %v1545_v16  ;;  %2273 = vmatprep.subr.bf16.mxu1 %v1547_v17  ;;  %v1083_v16 = vld [vmem:[%s3269_s9 + $0x7f8] sm:$0xff]  ;;  %v1584_v17 = vunpack.c.h.s8.bf16 %v1076_v8  ;;  %v1589_v19 = vunpack.c.l.s8.bf16 %v1081_v15  ;;  %v1593_v25 = vunpack.c.h.s8.bf16 %v1081_v15 }
 0x268   : > { %1946 = vmatpush1.bf16.msra.mxu0 %v1544_v20  ;;  %2274 = vmatpush1.bf16.msra.mxu1 %v1546_v42  ;;  %v1591_v20 = vunpack.c.l.s8.bf16 %v1083_v16  ;;  %v1080_v42 = vld [vmem:[%s3269_s9 + $0x7e0] sm:$0xff] }
 0x269   : > { %1947 = vmatprep.subr.bf16.mxu0 %v1549_v22  ;;  %2275 = vmatprep.subr.bf16.mxu1 %v1551_v23  ;;  %v1082_v22 = vld [vmem:[%s3269_s9 + $0x7f0] sm:$0xff]  ;;  %v1588_v23 = vunpack.c.l.s8.bf16 %v1080_v42 }
 0x26a   : > { %v1590_v24 = vunpack.c.l.s8.bf16 %v1082_v22 }
 0x26c   : > { %1948 = vmatpush1.bf16.msra.mxu0 %v1548_v26  ;;  %2276 = vmatpush1.bf16.msra.mxu1 %v1550_v27  ;;  %v1595_v26 = vunpack.c.h.s8.bf16 %v1083_v16  ;;  %v1592_v27 = vunpack.c.h.s8.bf16 %v1080_v42 }
 0x26d   : > { %1949 = vmatprep.subr.bf16.mxu0 %v1553_v49  ;;  %2277 = vmatprep.subr.bf16.mxu1 %v1555_v29  ;;  %v1594_v49 = vunpack.c.h.s8.bf16 %v1082_v22  ;;  %v2518_v29 = vcombine.low %v3558_v63, %v3558_v63  ;;  %v2327_v63 = vsub.s32 0, %v2326_v31 }
 0x270   : > { %1950 = vmatpush1.bf16.msra.mxu0 %v1552_v32  ;;  %2278 = vmatpush1.bf16.msra.mxu1 %v1554_v33  ;;  %v2335_v32 = vsub.s32 2, %v2326_v31  ;;  %v2323_v33 = vld [vmem:[%s795_s7] sm:$0xf] }
 0x271   : > { %1951 = vmatprep.subr.bf16.mxu0 %v1557_v34  ;;  %2279 = vmatprep.subr.bf16.mxu1 %v1559_v56  ;;  %v2331_v34 = vsub.s32 1, %v2326_v31  ;;  %v2339_v56 = vsub.s32 3, %v2326_v31  ;;  %v2328_v36 = vrot.slane %v2323_v33, %v2327_v63 }
 0x272   : > { %v2362_v41 = vrot.slane %v2349_v35, %v2335_v32 }
 0x274   : > { %1952 = vmatpush1.bf16.msra.mxu0 %v1556_v37  ;;  %2280 = vmatpush1.bf16.msra.mxu1 %v1558_v38  ;;  %v2336_v37 = vrot.slane %v2323_v33, %v2335_v32  ;;  %v2332_v38 = vrot.slane %v2323_v33, %v2331_v34 }
 0x275   : > { %1953 = vmatprep.subr.bf16.mxu0 %v1561_v39  ;;  %2281 = vmatprep.subr.bf16.mxu1 %v1563_v40  ;;  %v2340_v39 = vrot.slane %v2323_v33, %v2339_v56  ;;  %v2354_v40 = vrot.slane %v2349_v35, %v2327_v63 }
 0x278   : > { %1954 = vmatpush1.bf16.msra.mxu0 %v1560_v44  ;;  %2282 = vmatpush1.bf16.msra.mxu1 %v1562_v45  ;;  %v2358_v45 = vrot.slane %v2349_v35, %v2331_v34 }
 0x279   : > { %1955 = vmatprep.subr.bf16.mxu0 %v1565_v46  ;;  %2283 = vmatprep.subr.bf16.mxu1 %v1567_v47  ;;  %v2366_v46 = vrot.slane %v2349_v35, %v2339_v56 }
 0x27c   : > { %1956 = vmatpush1.bf16.msra.mxu0 %v1564_v50  ;;  %2284 = vmatpush1.bf16.msra.mxu1 %v1566_v51 }
 0x27d   : > { %1957 = vmatprep.subr.bf16.mxu0 %v1569_v52  ;;  %2285 = vmatprep.subr.bf16.mxu1 %v1571_v53 }
 0x280   : > { %1958 = vmatpush1.bf16.msra.mxu0 %v1568_v14  ;;  %2286 = vmatpush1.bf16.msra.mxu1 %v1570_v57 }
 0x281   : > { %1959 = vmatprep.subr.bf16.mxu0 %v1573_v58  ;;  %2287 = vmatprep.subr.bf16.mxu1 %v1575_v59 }
 0x284   : > { %1960 = vmatpush1.bf16.msra.mxu0 %v1572_v62  ;;  %2288 = vmatpush1.bf16.msra.mxu1 %v1574_v21 }
 0x285   : > { %1961 = vmatprep.subr.bf16.mxu0 %v1577_v1  ;;  %2289 = vmatprep.subr.bf16.mxu1 %v1579_v2 }
 0x288   : > { %1962 = vmatpush1.bf16.msra.mxu0 %v1576_v5  ;;  %2290 = vmatpush1.bf16.msra.mxu1 %v1578_v6 }
 0x289   : > { %1963 = vmatprep.subr.bf16.mxu0 %v1581_v28  ;;  %2291 = vmatprep.subr.bf16.mxu1 %v1583_v7 }
 0x28c   : > { %1964 = vmatpush1.bf16.msra.mxu0 %v1580_v10  ;;  %2292 = vmatpush1.bf16.msra.mxu1 %v1582_v11 }
 0x28d   : > { %1965 = vmatprep.subr.bf16.mxu0 %v1585_v12  ;;  %2293 = vmatprep.subr.bf16.mxu1 %v1587_v13 }
 0x290   : > { %1966 = vmatpush1.bf16.msra.mxu0 %v1584_v17  ;;  %2294 = vmatpush1.bf16.msra.mxu1 %v1586_v18 }
 0x291   : > { %1967 = vmatprep.subr.bf16.mxu0 %v1589_v19  ;;  %2295 = vmatprep.subr.bf16.mxu1 %v1591_v20 }
 0x294   : > { %1968 = vmatpush1.bf16.msra.mxu0 %v1588_v23  ;;  %2296 = vmatpush1.bf16.msra.mxu1 %v1590_v24 }
 0x295   : > { %1969 = vmatprep.subr.bf16.mxu0 %v1593_v25  ;;  %2297 = vmatprep.subr.bf16.mxu1 %v1595_v26 }
 0x298   : > { %1970 = vmatpush1.bf16.msra.mxu0 %v1592_v27  ;;  %2298 = vmatpush1.bf16.msra.mxu1 %v1594_v49 }
 0x29b   : > { %1972 = vmatmul.mubr.bf16.vlgmr.msra.gmra.mrb[0].mxu0 %v2518_v29  ;;  %2300 = vmatmul.mubr.bf16.vlgmr.msra.gmra.mrb[0].mxu1 %v2518_v29 }
 0x36e   : > { %v1973_v43 = vpop.f32.mrb[0].mxu0  ;;  %v2301_v44 = vpop.f32.mrb[0].mxu1 }
 0x36f   : > { %v2345_v47 = vmul.f32 %v2328_v36, %v1973_v43  ;;  %v2347_v48 = vmul.f32 %v2336_v37, %v2301_v44  ;;  %v1975_v0 = vpop.f32.mrb[1].mxu0  ;;  %v2303_v50 = vpop.f32.mrb[1].mxu1 }
 0x370   : > { %v2346_v51 = vmul.f32 %v2332_v38, %v1975_v0  ;;  %v2348_v52 = vmul.f32 %v2340_v39, %v2303_v50  ;;  %v1977_v53 = vpop.f32.mrb[2].mxu0  ;;  %v2305_v54 = vpop.f32.mrb[2].mxu1 }
 0x371   : > { %v2371_v55 = vadd.f32 %v2354_v40, %v2345_v47  ;;  %v2373_v14 = vadd.f32 %v2362_v41, %v2347_v48  ;;  %v1978_v57 = vpop.f32.mrb[3].mxu0  ;;  %v2306_v58 = vpop.f32.mrb[3].mxu1 }
 0x372   : > { %v2372_v59 = vadd.f32 %v2358_v45, %v2346_v51  ;;  %v2374_v60 = vadd.f32 %v2366_v46, %v2348_v52 }
 0x373   : > { %v2375_v61 = vmax.f32 %v2371_v55, 0.0  ;;  %v2377_v21 = vmax.f32 %v2373_v14, 0.0 }
 0x374   : > { %v2376_v62 = vmax.f32 %v2372_v59, 0.0  ;;  %v2378_v1 = vmax.f32 %v2374_v60, 0.0 }
 0x375   : > { %2379 = vst [vmem:[%s806_s13] sm:$0xff] %v2375_v61  ;;  %2381 = vst [vmem:[%s806_s13 + $0x10] sm:$0xff] %v2377_v21 }
 0x376   : > { %2380 = vst [vmem:[%s806_s13 + $0x8] sm:$0xff] %v2376_v62  ;;  %2382 = vst [vmem:[%s806_s13 + $0x18] sm:$0xff] %v2378_v1 }
 0x377 PF: > { %s14_s19 = sadd.s32 1, %s2673_s19   ;;  %s3627_s15 = smov %s2661_s16 }
 0x378   : > { %p11_p10 = scmp.ge.s32.totalorder %s14_s19, 4   ;;  %s3628_s16 = smov %s2735_s23 }
 0x379   : > { %s3629_s17 = smov %s2669_s18  ;;  %s3630_s18 = smov %s3632_s20 }
 0x37a   :  { %13 = sbr.rel (!%p11_p10) target bundleno = 3 (0x3), region = 111 }

// kernel: adams_cnn_forward.15
= control target key start
LH: loop header
LB: loop body
LE: loop exit
PB: predicated region body
PF: predicated region fallthrough
CT: control target
= control target key end

     0   :  { %s213_s1 = inlined_call_operand.vmem [shape: s8[256,128], index: 1, kind: input, shape index: {}]   ;;  %s214_s0 = inlined_call_operand.vmem [shape: bf16[8,256], index: 0, kind: input, shape index: {}]   ;;  %s215_s2 = inlined_call_operand.vmem [shape: f32[1,128], index: 2, kind: input, shape index: {}]   ;;  %s216_s3 = inlined_call_operand.vmem [shape: f32[1,128], index: 3, kind: input, shape index: {}]   ;;  %s217_s4 = inlined_call_operand.vmem [shape: f32[8,128], index: 4, kind: output, shape index: {}]  }
   0x1   :  { %v29_v0 = vld [vmem:[%s213_s1 + $0x20] sm:$0xff]  ;;  %v30_v5 = vld [vmem:[%s213_s1 + $0x28] sm:$0xff]  ;;  %v31_v13 = vld [vmem:[%s213_s1 + $0x30] sm:$0xff] }
   0x2   :  { %v25_v1 = vld [vmem:[%s213_s1] sm:$0xff]  ;;  %v41_v2 = vunpack.c.l.s8.bf16 %v29_v0  ;;  %v42_v3 = vunpack.c.h.s8.bf16 %v29_v0  ;;  %v43_v8 = vunpack.c.l.s8.bf16 %v30_v5  ;;  %v26_v9 = vld [vmem:[%s213_s1 + $0x8] sm:$0xff]  ;;  %v44_v12 = vunpack.c.h.s8.bf16 %v30_v5  ;;  %v27_v16 = vld [vmem:[%s213_s1 + $0x10] sm:$0xff] }
   0x3   :  { %v33_v4 = vunpack.c.l.s8.bf16 %v25_v1  ;;  %v24_v6 = vld [vmem:[%s214_s0] sm:$0xff]  ;;  %v34_v7 = vunpack.c.h.s8.bf16 %v25_v1  ;;  %v35_v11 = vunpack.c.l.s8.bf16 %v26_v9  ;;  %v36_v14 = vunpack.c.h.s8.bf16 %v26_v9  ;;  %v32_v19 = vld [vmem:[%s213_s1 + $0x38] sm:$0xff] }
   0x4   :  { %128 = vmatprep.subr.bf16.mxu0 %v41_v2  ;;  %v125_v10 = vcombine.high %v24_v6, %v24_v6  ;;  %v45_v15 = vunpack.c.l.s8.bf16 %v31_v13  ;;  %v37_v17 = vunpack.c.l.s8.bf16 %v27_v16  ;;  %v46_v18 = vunpack.c.h.s8.bf16 %v31_v13  ;;  %v28_v22 = vld [vmem:[%s213_s1 + $0x18] sm:$0xff]  ;;  %v126_v29 = vld [vmem:[%s215_s2] ss:$0 sm:$0xff] }
   0x5   :  { %129 = vmatpush3.bf16.msra.mxu0 %v33_v4  ;;  %v38_v20 = vunpack.c.h.s8.bf16 %v27_v16  ;;  %v47_v21 = vunpack.c.l.s8.bf16 %v32_v19  ;;  %v39_v23 = vunpack.c.l.s8.bf16 %v28_v22  ;;  %v48_v24 = vunpack.c.h.s8.bf16 %v32_v19  ;;  %v127_v32 = vld [vmem:[%s216_s3] ss:$0 sm:$0xff] }
   0x6   :  { %130 = vmatprep.subr.bf16.mxu0 %v42_v3  ;;  %88 = vmatprep.mubr.bf16.mxu0 %v125_v10  ;;  %v40_v25 = vunpack.c.h.s8.bf16 %v28_v22  ;;  %v124_v26 = vcombine.low %v24_v6, %v24_v6 }
   0x9   :  { %131 = vmatpush3.bf16.msra.mxu0 %v34_v7 }
   0xa   :  { %132 = vmatprep.subr.bf16.mxu0 %v43_v8 }
   0xd   :  { %133 = vmatpush3.bf16.msra.mxu0 %v35_v11 }
   0xe   :  { %134 = vmatprep.subr.bf16.mxu0 %v44_v12 }
  0x11   :  { %135 = vmatpush3.bf16.msra.mxu0 %v36_v14 }
  0x12   :  { %136 = vmatprep.subr.bf16.mxu0 %v45_v15 }
  0x15   :  { %137 = vmatpush3.bf16.msra.mxu0 %v37_v17 }
  0x16   :  { %138 = vmatprep.subr.bf16.mxu0 %v46_v18 }
  0x19   :  { %139 = vmatpush3.bf16.msra.mxu0 %v38_v20 }
  0x1a   :  { %140 = vmatprep.subr.bf16.mxu0 %v47_v21 }
  0x1d   :  { %141 = vmatpush3.bf16.msra.mxu0 %v39_v23 }
  0x1e   :  { %142 = vmatprep.subr.bf16.mxu0 %v48_v24 }
  0x21   :  { %143 = vmatpush3.bf16.msra.mxu0 %v40_v25 }
  0x24   :  { %89 = vmatmul.mubr.bf16.vlgmr.msra.gmra.mrb[0].mxu0 %v124_v26 }
  0xf7   :  { %v144_v27 = vpop.f32.mrb[0].mxu0 }
  0xf8   :  { %v145_v28 = vpop.f32.mrb[1].mxu0 }
  0xf9   :  { %v146_v30 = vadd.f32 %v145_v28, %v144_v27  ;;  %v147_v31 = vpop.f32.mrb[2].mxu0 }
  0xfa   :  { %v148_v33 = vpop.f32.mrb[3].mxu0 }
  0xfb   :  { %v109_v34 = vmul.f32 %v146_v30, %v126_v29 }
  0xfd   :  { %v117_v35 = vadd.f32 %v127_v32, %v109_v34 }
  0xff   :  { %v118_v36 = vmax.f32 %v117_v35, 0.0 }
 0x101   :  { %119 = vst [vmem:[%s217_s4] sm:$0xff] %v118_v36 }

// kernel: adams_cnn_forward.16
= control target key start
LH: loop header
LB: loop body
LE: loop exit
PB: predicated region body
PF: predicated region fallthrough
CT: control target
= control target key end

     0   :  { %v138_v0 = vmov 0.0   ;;  %vm139_vm0 = vmmov 0   ;;  %s189_s1 = inlined_call_operand.vmem [shape: s8[128,128], index: 1, kind: input, shape index: {}]   ;;  %s190_s0 = inlined_call_operand.vmem [shape: bf16[8,128], index: 0, kind: input, shape index: {}]   ;;  %s191_s2 = inlined_call_operand.vmem [shape: f32[1,128], index: 2, kind: input, shape index: {}]   ;;  %s192_s3 = inlined_call_operand.vmem [shape: f32[1,128], index: 3, kind: input, shape index: {}]   ;;  %s193_s4 = inlined_call_operand.vmem [shape: f32[8,128], index: 4, kind: output, shape index: {}]  }
   0x1   :  { %116 = vmatprep.subr.bf16.mxu0 %v138_v0  ;;  %v25_v1 = vld [vmem:[%s189_s1] sm:$0xff]  ;;  %132 = vmatprep.mubr.msk.bf16.mxu0 %vm139_vm0, %v138_v0  ;;  %v26_v4 = vld [vmem:[%s189_s1 + $0x8] sm:$0xff]  ;;  %v27_v7 = vld [vmem:[%s189_s1 + $0x10] sm:$0xff] }
   0x2   :  { %v29_v2 = vunpack.c.l.s8.bf16 %v25_v1  ;;  %v30_v3 = vunpack.c.h.s8.bf16 %v25_v1  ;;  %v31_v5 = vunpack.c.l.s8.bf16 %v26_v4  ;;  %v32_v6 = vunpack.c.h.s8.bf16 %v26_v4  ;;  %v28_v10 = vld [vmem:[%s189_s1 + $0x18] sm:$0xff]  ;;  %v24_v13 = vld [vmem:[%s190_s0] sm:$0xf] }
   0x3   :  { %v33_v8 = vunpack.c.l.s8.bf16 %v27_v7  ;;  %v34_v9 = vunpack.c.h.s8.bf16 %v27_v7  ;;  %v35_v11 = vunpack.c.l.s8.bf16 %v28_v10  ;;  %v36_v12 = vunpack.c.h.s8.bf16 %v28_v10  ;;  %v105_v14 = vld [vmem:[%s191_s2] ss:$0 sm:$0xff] }
   0x4   :  { %117 = vmatpush3.bf16.msra.mxu0 %v29_v2  ;;  %v106_v16 = vld [vmem:[%s192_s3] ss:$0 sm:$0xff] }
   0x5   :  { %118 = vmatprep.subr.bf16.mxu0 %v138_v0 }
   0x8   :  { %119 = vmatpush3.bf16.msra.mxu0 %v30_v3 }
   0x9   :  { %120 = vmatprep.subr.bf16.mxu0 %v138_v0 }
   0xc   :  { %121 = vmatpush3.bf16.msra.mxu0 %v31_v5 }
   0xd   :  { %122 = vmatprep.subr.bf16.mxu0 %v138_v0 }
  0x10   :  { %123 = vmatpush3.bf16.msra.mxu0 %v32_v6 }
  0x11   :  { %124 = vmatprep.subr.bf16.mxu0 %v138_v0 }
  0x14   :  { %125 = vmatpush3.bf16.msra.mxu0 %v33_v8 }
  0x15   :  { %126 = vmatprep.subr.bf16.mxu0 %v138_v0 }
  0x18   :  { %127 = vmatpush3.bf16.msra.mxu0 %v34_v9 }
  0x19   :  { %128 = vmatprep.subr.bf16.mxu0 %v138_v0 }
  0x1c   :  { %129 = vmatpush3.bf16.msra.mxu0 %v35_v11 }
  0x1d   :  { %130 = vmatprep.subr.bf16.mxu0 %v138_v0 }
  0x20   :  { %131 = vmatpush3.bf16.msra.mxu0 %v36_v12 }
  0x23   :  { %133 = vmatmul.mubr.bf16.vlgmr.msra.gmra.mrb[0].mxu0 %v24_v13 }
  0xf6   :  { %v71_v15 = vpop.f32.mrb[0].mxu0 }
  0xf7   :  { %v90_v17 = vmul.f32 %v105_v14, %v71_v15  ;;  %v134_v18 = vpop.f32.mrb[1].mxu0 }
  0xf8   :  { %v74_v19 = vpop.f32.mrb[2].mxu0 }
  0xf9   :  { %v98_v20 = vadd.f32 %v106_v16, %v90_v17  ;;  %v135_v21 = vpop.f32.mrb[3].mxu0 }
  0xfb   :  { %v99_v22 = vmax.f32 %v98_v20, 0.0 }
  0xfd   :  { %100 = vst [vmem:[%s193_s4] sm:$0xff] %v99_v22 }

// kernel: adams_cnn_forward.17
= control target key start
LH: loop header
LB: loop body
LE: loop exit
PB: predicated region body
PF: predicated region fallthrough
CT: control target
= control target key end

     0   :  { %v151_v0 = vmov 0.0   ;;  %vm152_vm0 = vmmov 0   ;;  %s202_s1 = inlined_call_operand.vmem [shape: s8[128,128], index: 1, kind: input, shape index: {}]   ;;  %s203_s0 = inlined_call_operand.vmem [shape: bf16[8,128], index: 0, kind: input, shape index: {}]   ;;  %s204_s2 = inlined_call_operand.vmem [shape: f32[1,128], index: 2, kind: input, shape index: {}]   ;;  %s205_s3 = inlined_call_operand.vmem [shape: f32[1,128], index: 3, kind: input, shape index: {}]   ;;  %s206_s4 = inlined_call_operand.vmem [shape: f32[8,128], index: 4, kind: output, shape index: {}]  }
   0x1   :  { %125 = vmatprep.subr.bf16.mxu0 %v151_v0  ;;  %v25_v1 = vld [vmem:[%s202_s1] sm:$0xff]  ;;  %141 = vmatprep.mubr.msk.bf16.mxu0 %vm152_vm0, %v151_v0  ;;  %v26_v4 = vld [vmem:[%s202_s1 + $0x8] sm:$0xff]  ;;  %v27_v7 = vld [vmem:[%s202_s1 + $0x10] sm:$0xff] }
   0x2   :  { %v29_v2 = vunpack.c.l.s8.bf16 %v25_v1  ;;  %v30_v3 = vunpack.c.h.s8.bf16 %v25_v1  ;;  %v31_v5 = vunpack.c.l.s8.bf16 %v26_v4  ;;  %v32_v6 = vunpack.c.h.s8.bf16 %v26_v4  ;;  %v28_v10 = vld [vmem:[%s202_s1 + $0x18] sm:$0xff]  ;;  %v24_v13 = vld [vmem:[%s203_s0] sm:$0xf] }
   0x3   :  { %v33_v8 = vunpack.c.l.s8.bf16 %v27_v7  ;;  %v34_v9 = vunpack.c.h.s8.bf16 %v27_v7  ;;  %v35_v11 = vunpack.c.l.s8.bf16 %v28_v10  ;;  %v36_v12 = vunpack.c.h.s8.bf16 %v28_v10  ;;  %v114_v14 = vld [vmem:[%s204_s2] ss:$0 sm:$0xff] }
   0x4   :  { %126 = vmatpush3.bf16.msra.mxu0 %v29_v2  ;;  %v115_v16 = vld [vmem:[%s205_s3] ss:$0 sm:$0xff] }
   0x5   :  { %127 = vmatprep.subr.bf16.mxu0 %v151_v0 }
   0x8   :  { %128 = vmatpush3.bf16.msra.mxu0 %v30_v3 }
   0x9   :  { %129 = vmatprep.subr.bf16.mxu0 %v151_v0 }
   0xc   :  { %130 = vmatpush3.bf16.msra.mxu0 %v31_v5 }
   0xd   :  { %131 = vmatprep.subr.bf16.mxu0 %v151_v0 }
  0x10   :  { %132 = vmatpush3.bf16.msra.mxu0 %v32_v6 }
  0x11   :  { %133 = vmatprep.subr.bf16.mxu0 %v151_v0 }
  0x14   :  { %134 = vmatpush3.bf16.msra.mxu0 %v33_v8 }
  0x15   :  { %135 = vmatprep.subr.bf16.mxu0 %v151_v0 }
  0x18   :  { %136 = vmatpush3.bf16.msra.mxu0 %v34_v9 }
  0x19   :  { %137 = vmatprep.subr.bf16.mxu0 %v151_v0 }
  0x1c   :  { %138 = vmatpush3.bf16.msra.mxu0 %v35_v11 }
  0x1d   :  { %139 = vmatprep.subr.bf16.mxu0 %v151_v0 }
  0x20   :  { %140 = vmatpush3.bf16.msra.mxu0 %v36_v12 }
  0x23   :  { %142 = vmatmul.mubr.bf16.vlgmr.msra.gmra.mrb[0].mxu0 %v24_v13 }
  0xf6   :  { %v71_v15 = vpop.f32.mrb[0].mxu0 }
  0xf7   :  { %v90_v17 = vmul.f32 %v114_v14, %v71_v15  ;;  %v143_v18 = vpop.f32.mrb[1].mxu0 }
  0xf8   :  { %v74_v19 = vpop.f32.mrb[2].mxu0 }
  0xf9   :  { %v98_v20 = vadd.f32 %v115_v16, %v90_v17  ;;  %v144_v21 = vpop.f32.mrb[3].mxu0 }
  0xfb   :  { %v99_v22 = vand.u32 2147483647, %v98_v20  ;;  %vm103_vm1 = vcmp.ge.f32.partialorder %v98_v20, 0.0 }
  0xfd   :  { %v100_v23 = vsub.f32 0.0, %v99_v22 }
  0xff   :  { %v101_v24 = vmul.f32 1.442695, %v100_v23 }
 0x101   :  { %147 = vpow2.f32 %v101_v24 }
 0x10b   :  { %v148_v25 = vpop.eup %147 }
 0x10c   :  { %v104_v26 = vadd.f32 1.0, %v148_v25 }
 0x10e   :  { %149 = vrcp.f32 %v104_v26 }
 0x118   :  { %v150_v27 = vpop.eup %149 }
 0x119   :  { %v107_v28 = vmul.f32 %v150_v27, %v148_v25 }
 0x11b   :  { %v108_v29 = vsel %vm103_vm1, %v150_v27, %v107_v28 }
 0x11c   :  { %109 = vst [vmem:[%s206_s4] sm:$0xff] %v108_v29 }

</bundles_post_ra>
